<compile_context>
chip_gen: v5e
topology: v5e:2x2
jax: 0.10.0
libtpu: 0.0.40
codegen_flags: <defaults>
</compile_context>

<pallas_src>
import functools

import jax
import jax.numpy as jnp
from jax import lax
from jax.experimental import pallas as pl
from jax.experimental.pallas import tpu as pltpu

_EPS = 1e-5
_VMEM = functools.partial(pl.BlockSpec, memory_space=pltpu.MemorySpace.VMEM)


# --------------------------------------------------------------------------
# Static stage configuration
# --------------------------------------------------------------------------

def _derive_static(cfg):
    """Static layout info shared by kernel, weight prep and wrapper."""
    ngf, img, nc = cfg["ngf"], cfg["img_size"], cfg["nc"]
    init = img // 16
    c2, c1 = 2 * ngf, ngf
    w_last = 16 * init
    nc_pad = nc
    while (w_last * nc_pad) % 128:          # lane-dense output store
        nc_pad += 1
    # (H_in, W_store, C_in, W_img, C_out, upsample_after, is_last)
    # W_store = stored slab width; W_img = true image width (2*W_store when the
    # preceding Upsample's column duplication is folded into this conv weight).
    stages = (
        (init,      init,      c2, init,      c2,     True,  False),
        (2 * init,  init,      c2, 2 * init,  c2,     True,  False),
        (4 * init,  2 * init,  c2, 4 * init,  c1,     True,  False),
        (8 * init,  4 * init,  c1, 8 * init,  c1,     True,  False),
        (16 * init, 8 * init,  c1, 16 * init, c1,     False, False),
        (16 * init, 16 * init, c1, 16 * init, nc_pad, False, True),
    )
    return init, c2, nc_pad, stages


# --------------------------------------------------------------------------
# The fused kernel
# --------------------------------------------------------------------------

def _generator_kernel(*refs, B, nl, le_emb, nle, init, c0, stages, guard):
    ns = len(stages)
    (le_ref, w1_ref, b1_ref, w2_ref, b2_ref), rest = refs[:5], refs[5:]
    g_refs = rest[:ns]
    bias_ref = rest[ns]
    o_ref = rest[ns + 1]
    s_ref = rest[ns + 2]                      # shared slab scratch (f32)

    N, G = B, guard

    # ---------------- head: BatchNorm1d + chunked le1 Linears + l1 ----------------
    x = le_ref[...]                                            # (B, le_size) f32
    mu = jnp.mean(x, axis=0, keepdims=True)
    xc = x - mu
    var = jnp.mean(xc * xc, axis=0, keepdims=True)             # biased, centered
    xn = xc * lax.rsqrt(var + _EPS)

    # All nle chunk-linears as a single stacked matmul, then per-row select.
    v_all = jnp.dot(xn, w1_ref[...], preferred_element_type=jnp.float32) + b1_ref[...]
    rows = lax.broadcasted_iota(jnp.int32, (B, 1), 0)
    v = jnp.zeros((B, le_emb), jnp.float32)
    for i in range(nle):                                       # row r uses chunk r // nl
        sel = jnp.logical_and(rows >= i * nl, rows < (i + 1) * nl)
        v = v + jnp.where(sel, v_all[:, i * le_emb:(i + 1) * le_emb], 0.0)

    head = jnp.dot(v, w2_ref[...], preferred_element_type=jnp.float32) + b2_ref[...]
    # head columns are pre-permuted to (h, w, c): place the stage-0 slab
    # (rows (h, n)-major) with aligned block stores + zeroed H-halo guards.
    wc0 = init * c0
    zg0 = jnp.zeros((N, wc0), jnp.float32)
    s_ref[G - N:G, 0:wc0] = zg0
    for h in range(init):
        s_ref[G + h * N:G + (h + 1) * N, 0:wc0] = head[:, h * wc0:(h + 1) * wc0]
    s_ref[G + init * N:G + (init + 1) * N, 0:wc0] = zg0

    # ---------------- conv pipeline ----------------
    for s, (H, wst, cin, wimg, cout, up_after, is_last) in enumerate(stages):
        HN = H * N
        wc = wst * cin

        # 3x3 conv = ONE matmul: the three H-taps are aligned slices of the slab
        # (guard rows provide the zero padding); W padding and the preceding
        # nearest-upsample column duplication live in the banded weight.
        t_up = s_ref[G - N:G - N + HN, 0:wc].astype(jnp.bfloat16)
        t_md = s_ref[G:G + HN, 0:wc].astype(jnp.bfloat16)
        t_dn = s_ref[G + N:G + N + HN, 0:wc].astype(jnp.bfloat16)
        xk = jnp.concatenate([t_up, t_md, t_dn], axis=1)        # (HN, 3*wc) bf16
        acc = jnp.dot(xk, g_refs[s][...], preferred_element_type=jnp.float32)

        if is_last:
            # final conv: bias + Sigmoid, lane-dense (HN, wimg*nc_pad) store.
            o_ref[...] = jax.nn.sigmoid(acc + bias_ref[...])
            continue

        # BatchNorm2d (batch statistics, centered two-pass) + LeakyReLU(0.2),
        # per-channel fold across W via lane-group adds / lane concat (no matmuls).
        cnt = float(N * H * wimg)
        s1 = jnp.sum(acc, axis=0, keepdims=True)                # (1, wimg*cout)
        mc = s1[:, 0:cout]
        for w in range(1, wimg):
            mc = mc + s1[:, w * cout:(w + 1) * cout]
        mc = mc * (1.0 / cnt)                                    # (1, cout)
        ml = jnp.concatenate([mc] * wimg, axis=1)                # (1, wimg*cout)
        ac = acc - ml
        s2 = jnp.sum(ac * ac, axis=0, keepdims=True)
        vc = s2[:, 0:cout]
        for w in range(1, wimg):
            vc = vc + s2[:, w * cout:(w + 1) * cout]
        il = jnp.concatenate([lax.rsqrt(vc * (1.0 / cnt) + _EPS)] * wimg, axis=1)
        y = ac * il
        y = jnp.maximum(y, 0.2 * y)                              # LeakyReLU(0.2)

        # Write the next stage's input slab + zero guards.  Nearest-2x upsample:
        # H duplication = duplicated aligned block stores; W duplication is
        # folded into the next stage's banded weight (nothing to do here).
        wcn = wimg * cout
        h_next = 2 * H if up_after else H
        zgn = jnp.zeros((N, wcn), jnp.float32)
        s_ref[G - N:G, 0:wcn] = zgn
        if up_after:
            for h in range(H):
                blk = y[h * N:(h + 1) * N, :]
                s_ref[G + (2 * h) * N:G + (2 * h + 1) * N, 0:wcn] = blk
                s_ref[G + (2 * h + 1) * N:G + (2 * h + 2) * N, 0:wcn] = blk
        else:
            s_ref[G:G + HN, 0:wcn] = y
        s_ref[G + h_next * N:G + (h_next + 1) * N, 0:wcn] = zgn


# --------------------------------------------------------------------------
# pallas_call wrapper
# --------------------------------------------------------------------------

def _generator_call(le, prepped, cfg):
    init, c0, nc_pad, stages = _derive_static(cfg)
    nl, le_emb, sbz = cfg["nl"], cfg["le_emb_size"], cfg["sbz"]
    nle = -(-sbz // nl)
    B = le.shape[0]
    N = B
    guard = max(8, N)
    h_last, w_last = stages[-1][0], stages[-1][3]

    rows = guard + h_last * N + N
    rows = ((rows + 7) // 8) * 8
    cols = max(wst * cin for (_, wst, cin, _, _, _, _) in stages)
    cols = ((cols + 127) // 128) * 128

    kernel = functools.partial(
        _generator_kernel, B=B, nl=nl, le_emb=le_emb, nle=nle,
        init=init, c0=c0, stages=stages, guard=guard)

    n_in = 5 + len(stages) + 1
    return pl.pallas_call(
        kernel,
        out_shape=jax.ShapeDtypeStruct((h_last * N, w_last * nc_pad), jnp.float32),
        in_specs=[_VMEM() for _ in range(n_in)],
        out_specs=_VMEM(),
        scratch_shapes=[pltpu.VMEM((rows, cols), jnp.float32)],
        compiler_params=pltpu.CompilerParams(vmem_limit_bytes=32 * 1024 * 1024),
    )(le, prepped["w1"], prepped["b1"], prepped["w2"], prepped["b2"],
      *prepped["gs"], prepped["bias_lane"])


# --------------------------------------------------------------------------
# Weight preparation (wrapper side, done once per set of weights)
# --------------------------------------------------------------------------

def _banded_stacked(w_oihw, wstore, wimg, cout_pad):
    """3x3 conv weight (OIHW) -> (3*wstore*cin, wimg*cout) banded block-Toeplitz
    weight with the 3 kh taps stacked along K.  wimg = d*wstore folds the
    nearest-2x column duplication of a preceding Upsample into the weight;
    cout_pad zero-pads output channels (for a lane-dense final store)."""
    cout, cin = w_oihw.shape[0], w_oihw.shape[1]
    if cout_pad > cout:
        w_oihw = jnp.concatenate(
            [w_oihw, jnp.zeros((cout_pad - cout,) + w_oihw.shape[1:], w_oihw.dtype)],
            axis=0)
        cout = cout_pad
    w_hwio = jnp.transpose(w_oihw, (2, 3, 1, 0)).astype(jnp.float32)   # (3,3,cin,cout)
    d = wimg // wstore
    w_out = jnp.arange(wimg)
    taps = []
    for kh in range(3):
        g = jnp.zeros((wstore * cin, wimg * cout), jnp.float32)
        for kw in range(3):
            w_in = w_out + (kw - 1)                       # column in the (upsampled) image
            valid = (w_in >= 0) & (w_in < wimg)
            w_src = jnp.clip(w_in, 0, wimg - 1) // d       # stored (pre-duplication) column
            sel = (jnp.arange(wstore)[:, None] == w_src[None, :]) & valid[None, :]
            g = g + jnp.kron(sel.astype(jnp.float32), w_hwio[kh, kw])
        taps.append(g)
    return jnp.concatenate(taps, axis=0).astype(jnp.bfloat16)


def prepare_generator(params, cfg):
    """Precompute kernel-ready weight tensors (arrays only, jit-friendly pytree)."""
    init, c0, nc_pad, stages = _derive_static(cfg)
    nc = cfg["nc"]
    w_last = stages[-1][3]

    # Head: stack the nle chunk linears into a single matmul; permute l1 columns
    # from torch (c, h, w) order into slab (h, w, c) order (no transpose glue).
    w1 = jnp.concatenate([w.T for w in params["le1_w"]], axis=1)   # (le_size, nle*le_emb)
    b1 = jnp.concatenate(params["le1_b"], axis=0)[None, :]
    hh = jnp.arange(init)[:, None, None]
    ww = jnp.arange(init)[None, :, None]
    cc = jnp.arange(c0)[None, None, :]
    perm = (cc * (init * init) + hh * init + ww).reshape(-1)       # old col for each new col
    w2 = params["l1_w"].T[:, perm]
    b2 = params["l1_b"][perm][None, :]

    gs = [
        _banded_stacked(params["conv_w"][s], wst, wimg, cout)
        for s, (_, wst, _, wimg, cout, _, _) in enumerate(stages)
    ]
    bias_pad = jnp.concatenate(
        [params["conv_b"].astype(jnp.float32), jnp.zeros((nc_pad - nc,), jnp.float32)])
    bias_lane = jnp.tile(bias_pad, (w_last,))[None, :]

    return dict(label_emb=params["label_emb"], w1=w1, b1=b1, w2=w2, b2=b2,
                gs=gs, bias_lane=bias_lane)


def init_params(key, cfg):
    ngf, img, nc = cfg["ngf"], cfg["img_size"], cfg["nc"]
    nl, le_emb, le_size, sbz = cfg["nl"], cfg["le_emb_size"], cfg["le_size"], cfg["sbz"]
    num_labels = cfg["num_labels"]
    init = img // 16
    nle = -(-sbz // nl)
    convs = [(2 * ngf, 2 * ngf), (2 * ngf, 2 * ngf), (2 * ngf, ngf),
             (ngf, ngf), (ngf, ngf), (ngf, nc)]
    keys = iter(jax.random.split(key, 32))

    def rnd(shape, scale=0.05):
        return (scale * jax.random.normal(next(keys), shape)).astype(jnp.float32)

    return {
        "label_emb": jax.random.normal(next(keys), (num_labels, le_size), dtype=jnp.float32),
        # PyTorch-native layouts: Linear (out, in), Conv2d OIHW.
        "le1_w": [rnd((le_emb, le_size), 0.1) for _ in range(nle)],
        "le1_b": [rnd((le_emb,), 0.05) for _ in range(nle)],
        "l1_w": rnd((2 * ngf * init * init, le_emb)),
        "l1_b": rnd((2 * ngf * init * init,), 0.05),
        "conv_w": [rnd((cout, cin, 3, 3)) for (cin, cout) in convs],
        "conv_b": rnd((nc,)),
    }


# --------------------------------------------------------------------------
# Forward pass (wrapper) and pure-JAX reference
# --------------------------------------------------------------------------

def generator_forward(prepped, targets, cfg):
    nc = cfg["nc"]
    init, c0, nc_pad, stages = _derive_static(cfg)
    B = targets.shape[0]
    h_last, w_last = stages[-1][0], stages[-1][3]

    le = jnp.take(prepped["label_emb"], targets, axis=0)           # embedding gather (XLA)
    out = _generator_call(le, prepped, cfg)                        # (h_last*B, w_last*nc_pad)
    img = out.reshape(h_last, B, w_last, nc_pad)[:, :, :, :nc]     # rows are (h, n)-major
    return jnp.transpose(img, (1, 3, 0, 2))                        # NCHW


def reference_forward(params, targets, cfg):
    """Pure-JAX (f32) reference of the PyTorch module's forward."""
    ngf, img_sz, nc, nl = cfg["ngf"], cfg["img_size"], cfg["nc"], cfg["nl"]
    sbz = cfg["sbz"]
    init = img_sz // 16
    nle = -(-sbz // nl)
    B = targets.shape[0]

    le = params["label_emb"][targets]
    mu = jnp.mean(le, axis=0, keepdims=True)
    var = jnp.mean((le - mu) ** 2, axis=0, keepdims=True)
    le = (le - mu) * lax.rsqrt(var + _EPS)

    chunks = []
    for i in range(nle):
        sle = le[i * nl:(i + 1) * nl]
        if sle.shape[0]:
            chunks.append(sle @ params["le1_w"][i].T + params["le1_b"][i])
    v = jnp.concatenate(chunks, axis=0)
    out = v @ params["l1_w"].T + params["l1_b"]
    x = out.reshape(B, 2 * ngf, init, init)

    for s in range(6):
        x = lax.conv_general_dilated(
            x, params["conv_w"][s], window_strides=(1, 1),
            padding=((1, 1), (1, 1)), dimension_numbers=("NCHW", "OIHW", "NCHW"))
        if s < 5:
            mu = jnp.mean(x, axis=(0, 2, 3), keepdims=True)
            var = jnp.mean((x - mu) ** 2, axis=(0, 2, 3), keepdims=True)
            x = (x - mu) * lax.rsqrt(var + _EPS)
            x = jnp.where(x > 0, x, 0.2 * x)
            if s < 4:
                x = jnp.repeat(jnp.repeat(x, 2, axis=2), 2, axis=3)
        else:
            x = jax.nn.sigmoid(x + params["conv_b"][None, :, None, None])
    return x


# --------------------------------------------------------------------------
# main
# --------------------------------------------------------------------------

if __name__ == "__main__":
    # Small shapes consistent with the module:
    # ngf=8, img_size=32 -> init_size=2, nc=3, nl=4, le_emb=32, le_size=64, sbz=8.
    cfg = dict(ngf=8, img_size=32, nc=3, nl=4, le_emb_size=32, le_size=64,
               sbz=8, num_labels=10)

    key = jax.random.PRNGKey(0)
    pkey, tkey = jax.random.split(key)
    params = init_params(pkey, cfg)
    prepped = prepare_generator(params, cfg)
    targets = jax.random.randint(tkey, (cfg["sbz"],), 0, cfg["num_labels"],
                                 dtype=jnp.int32)

    fwd = jax.jit(functools.partial(generator_forward, cfg=cfg))
    img = jax.block_until_ready(fwd(prepped, targets))

    assert img.shape == (cfg["sbz"], cfg["nc"], cfg["img_size"], cfg["img_size"]), img.shape
    assert bool(jnp.all(jnp.isfinite(img)))
    assert bool(jnp.all((img >= 0.0) & (img <= 1.0)))      # sigmoid output range

    ref = reference_forward(params, targets, cfg)
    err = float(jnp.max(jnp.abs(img - ref)))
    assert err < 5e-2, f"max |kernel - reference| = {err}"

    print("KERNEL_OK")
</pallas_src>

<mosaic_0001>
module attributes {stable_mosaic.version = 11 : i64} {
  func.func @_generator_kernel(%arg0: memref<8x64xf32, #tpu.memory_space<vmem>>, %arg1: memref<64x64xf32, #tpu.memory_space<vmem>>, %arg2: memref<1x64xf32, #tpu.memory_space<vmem>>, %arg3: memref<32x64xf32, #tpu.memory_space<vmem>>, %arg4: memref<1x64xf32, #tpu.memory_space<vmem>>, %arg5: memref<96x32xbf16, #tpu.memory_space<vmem>>, %arg6: memref<96x64xbf16, #tpu.memory_space<vmem>>, %arg7: memref<192x64xbf16, #tpu.memory_space<vmem>>, %arg8: memref<192x128xbf16, #tpu.memory_space<vmem>>, %arg9: memref<384x256xbf16, #tpu.memory_space<vmem>>, %arg10: memref<768x128xbf16, #tpu.memory_space<vmem>>, %arg11: memref<1x128xf32, #tpu.memory_space<vmem>>, %arg12: memref<256x128xf32, #tpu.memory_space<vmem>>, %arg13: memref<272x256xf32, #tpu.memory_space<vmem>>) attributes {dimension_semantics = [], scalar_prefetch = 0 : i64, scratch_operands = 1 : i64, tpu.core_type = #tpu.core_type<tc>} {
    %c0 = arith.constant 0 : index
    %c0_0 = arith.constant 0 : index
    %0 = vector.load %arg0[%c0, %c0_0] : memref<8x64xf32, #tpu.memory_space<vmem>>, vector<8x64xf32>
    %cst = arith.constant dense<0.000000e+00> : vector<64xf32>
    %1 = vector.multi_reduction <add>, %0, %cst [0] : vector<8x64xf32> to vector<64xf32>
    %2 = vector.shape_cast %1 : vector<64xf32> to vector<1x64xf32>
    %cst_1 = arith.constant 8.000000e+00 : f32
    %3 = vector.broadcast %cst_1 : f32 to vector<1x64xf32>
    %4 = arith.divf %2, %3 : vector<1x64xf32>
    %5 = vector.broadcast %4 : vector<1x64xf32> to vector<8x64xf32>
    %6 = arith.subf %0, %5 : vector<8x64xf32>
    %7 = arith.mulf %6, %6 : vector<8x64xf32>
    %cst_2 = arith.constant dense<0.000000e+00> : vector<64xf32>
    %8 = vector.multi_reduction <add>, %7, %cst_2 [0] : vector<8x64xf32> to vector<64xf32>
    %9 = vector.shape_cast %8 : vector<64xf32> to vector<1x64xf32>
    %cst_3 = arith.constant 8.000000e+00 : f32
    %10 = vector.broadcast %cst_3 : f32 to vector<1x64xf32>
    %11 = arith.divf %9, %10 : vector<1x64xf32>
    %cst_4 = arith.constant 9.99999974E-6 : f32
    %12 = vector.broadcast %cst_4 : f32 to vector<1x64xf32>
    %13 = arith.addf %11, %12 : vector<1x64xf32>
    %14 = math.rsqrt %13 : vector<1x64xf32>
    %15 = vector.broadcast %14 : vector<1x64xf32> to vector<8x64xf32>
    %16 = arith.mulf %6, %15 : vector<8x64xf32>
    %c0_5 = arith.constant 0 : index
    %c0_6 = arith.constant 0 : index
    %17 = vector.load %arg1[%c0_5, %c0_6] : memref<64x64xf32, #tpu.memory_space<vmem>>, vector<64x64xf32>
    %cst_7 = arith.constant dense<0.000000e+00> : vector<8x64xf32>
    %18 = tpu.matmul %16, %17, %cst_7 {dimension_numbers = #tpu.dot_dimension_numbers<[1], [0], [0], [1], [0, 0, 1, 1], [], []>} : vector<8x64xf32>, vector<64x64xf32>, vector<8x64xf32> -> vector<8x64xf32>
    %c0_8 = arith.constant 0 : index
    %c0_9 = arith.constant 0 : index
    %19 = vector.load %arg2[%c0_8, %c0_9] : memref<1x64xf32, #tpu.memory_space<vmem>>, vector<1x64xf32>
    %20 = vector.broadcast %19 : vector<1x64xf32> to vector<8x64xf32>
    %21 = arith.addf %18, %20 : vector<8x64xf32>
    %22 = tpu.iota {dimensions = array<i32: 0>} : vector<8x1xi32>
    %cst_10 = arith.constant 0.000000e+00 : f32
    %23 = vector.broadcast %cst_10 : f32 to vector<8x32xf32>
    %c0_i32 = arith.constant 0 : i32
    %24 = vector.broadcast %c0_i32 : i32 to vector<8x1xi32>
    %25 = arith.cmpi sge, %22, %24 : vector<8x1xi32>
    %c4_i32 = arith.constant 4 : i32
    %26 = vector.broadcast %c4_i32 : i32 to vector<8x1xi32>
    %27 = arith.cmpi slt, %22, %26 : vector<8x1xi32>
    %28 = arith.andi %25, %27 : vector<8x1xi1>
    %29 = vector.extract_strided_slice %21 {offsets = [0, 0], sizes = [8, 32], strides = [1, 1]} : vector<8x64xf32> to vector<8x32xf32>
    %cst_11 = arith.constant 0.000000e+00 : f32
    %30 = vector.shape_cast %28 : vector<8x1xi1> to vector<8x1xi1>
    %31 = vector.broadcast %30 : vector<8x1xi1> to vector<8x32xi1>
    %32 = vector.broadcast %cst_11 : f32 to vector<8x32xf32>
    %33 = arith.select %31, %29, %32 : vector<8x32xi1>, vector<8x32xf32>
    %34 = arith.addf %23, %33 : vector<8x32xf32>
    %c4_i32_12 = arith.constant 4 : i32
    %35 = vector.broadcast %c4_i32_12 : i32 to vector<8x1xi32>
    %36 = arith.cmpi sge, %22, %35 : vector<8x1xi32>
    %c8_i32 = arith.constant 8 : i32
    %37 = vector.broadcast %c8_i32 : i32 to vector<8x1xi32>
    %38 = arith.cmpi slt, %22, %37 : vector<8x1xi32>
    %39 = arith.andi %36, %38 : vector<8x1xi1>
    %40 = vector.extract_strided_slice %21 {offsets = [0, 32], sizes = [8, 32], strides = [1, 1]} : vector<8x64xf32> to vector<8x32xf32>
    %cst_13 = arith.constant 0.000000e+00 : f32
    %41 = vector.shape_cast %39 : vector<8x1xi1> to vector<8x1xi1>
    %42 = vector.broadcast %41 : vector<8x1xi1> to vector<8x32xi1>
    %43 = vector.broadcast %cst_13 : f32 to vector<8x32xf32>
    %44 = arith.select %42, %40, %43 : vector<8x32xi1>, vector<8x32xf32>
    %45 = arith.addf %34, %44 : vector<8x32xf32>
    %c0_14 = arith.constant 0 : index
    %c0_15 = arith.constant 0 : index
    %46 = vector.load %arg3[%c0_14, %c0_15] : memref<32x64xf32, #tpu.memory_space<vmem>>, vector<32x64xf32>
    %cst_16 = arith.constant dense<0.000000e+00> : vector<8x64xf32>
    %47 = tpu.matmul %45, %46, %cst_16 {dimension_numbers = #tpu.dot_dimension_numbers<[1], [0], [0], [1], [0, 0, 1, 1], [], []>} : vector<8x32xf32>, vector<32x64xf32>, vector<8x64xf32> -> vector<8x64xf32>
    %c0_17 = arith.constant 0 : index
    %c0_18 = arith.constant 0 : index
    %48 = vector.load %arg4[%c0_17, %c0_18] : memref<1x64xf32, #tpu.memory_space<vmem>>, vector<1x64xf32>
    %49 = vector.broadcast %48 : vector<1x64xf32> to vector<8x64xf32>
    %50 = arith.addf %47, %49 : vector<8x64xf32>
    %cst_19 = arith.constant 0.000000e+00 : f32
    %51 = vector.broadcast %cst_19 : f32 to vector<8x32xf32>
    %c0_20 = arith.constant 0 : index
    %c0_21 = arith.constant 0 : index
    %52 = vector.load %arg13[%c0_20, %c0_21] : memref<272x256xf32, #tpu.memory_space<vmem>>, vector<8x32xf32>
    tpu.vector_store %arg13[%c0_20, %c0_21], %51 {strides = array<i32>} : memref<272x256xf32, #tpu.memory_space<vmem>>, vector<8x32xf32>,
    %53 = vector.extract_strided_slice %50 {offsets = [0, 0], sizes = [8, 32], strides = [1, 1]} : vector<8x64xf32> to vector<8x32xf32>
    %c8 = arith.constant 8 : index
    %c0_22 = arith.constant 0 : index
    %54 = vector.load %arg13[%c8, %c0_22] : memref<272x256xf32, #tpu.memory_space<vmem>>, vector<8x32xf32>
    tpu.vector_store %arg13[%c8, %c0_22], %53 {strides = array<i32>} : memref<272x256xf32, #tpu.memory_space<vmem>>, vector<8x32xf32>,
    %55 = vector.extract_strided_slice %50 {offsets = [0, 32], sizes = [8, 32], strides = [1, 1]} : vector<8x64xf32> to vector<8x32xf32>
    %c16 = arith.constant 16 : index
    %c0_23 = arith.constant 0 : index
    %56 = vector.load %arg13[%c16, %c0_23] : memref<272x256xf32, #tpu.memory_space<vmem>>, vector<8x32xf32>
    tpu.vector_store %arg13[%c16, %c0_23], %55 {strides = array<i32>} : memref<272x256xf32, #tpu.memory_space<vmem>>, vector<8x32xf32>,
    %c24 = arith.constant 24 : index
    %c0_24 = arith.constant 0 : index
    %57 = vector.load %arg13[%c24, %c0_24] : memref<272x256xf32, #tpu.memory_space<vmem>>, vector<8x32xf32>
    tpu.vector_store %arg13[%c24, %c0_24], %51 {strides = array<i32>} : memref<272x256xf32, #tpu.memory_space<vmem>>, vector<8x32xf32>,
    %c0_25 = arith.constant 0 : index
    %c0_26 = arith.constant 0 : index
    %58 = vector.load %arg13[%c0_25, %c0_26] : memref<272x256xf32, #tpu.memory_space<vmem>>, vector<16x32xf32>
    %59 = arith.truncf %58 : vector<16x32xf32> to vector<16x32xbf16>
    %c8_27 = arith.constant 8 : index
    %c0_28 = arith.constant 0 : index
    %60 = vector.load %arg13[%c8_27, %c0_28] : memref<272x256xf32, #tpu.memory_space<vmem>>, vector<16x32xf32>
    %61 = arith.truncf %60 : vector<16x32xf32> to vector<16x32xbf16>
    %c16_29 = arith.constant 16 : index
    %c0_30 = arith.constant 0 : index
    %62 = vector.load %arg13[%c16_29, %c0_30] : memref<272x256xf32, #tpu.memory_space<vmem>>, vector<16x32xf32>
    %63 = arith.truncf %62 : vector<16x32xf32> to vector<16x32xbf16>
    %64 = tpu.concatenate %59, %61, %63 in 1 : vector<16x32xbf16>, vector<16x32xbf16>, vector<16x32xbf16> -> vector<16x96xbf16>
    %c0_31 = arith.constant 0 : index
    %c0_32 = arith.constant 0 : index
    %65 = vector.load %arg5[%c0_31, %c0_32] : memref<96x32xbf16, #tpu.memory_space<vmem>>, vector<96x32xbf16>
    %cst_33 = arith.constant dense<0.000000e+00> : vector<16x32xf32>
    %66 = tpu.matmul %64, %65, %cst_33 {dimension_numbers = #tpu.dot_dimension_numbers<[1], [0], [0], [1], [0, 0, 1, 1], [], []>} : vector<16x96xbf16>, vector<96x32xbf16>, vector<16x32xf32> -> vector<16x32xf32>
    %cst_34 = arith.constant dense<0.000000e+00> : vector<32xf32>
    %67 = vector.multi_reduction <add>, %66, %cst_34 [0] : vector<16x32xf32> to vector<32xf32>
    %68 = vector.shape_cast %67 : vector<32xf32> to vector<1x32xf32>
    %69 = vector.extract_strided_slice %68 {offsets = [0, 0], sizes = [1, 16], strides = [1, 1]} : vector<1x32xf32> to vector<1x16xf32>
    %70 = vector.extract_strided_slice %68 {offsets = [0, 16], sizes = [1, 16], strides = [1, 1]} : vector<1x32xf32> to vector<1x16xf32>
    %71 = arith.addf %69, %70 : vector<1x16xf32>
    %cst_35 = arith.constant 3.125000e-02 : f32
    %72 = vector.broadcast %cst_35 : f32 to vector<1x16xf32>
    %73 = arith.mulf %71, %72 : vector<1x16xf32>
    %74 = tpu.concatenate %73, %73 in 1 : vector<1x16xf32>, vector<1x16xf32> -> vector<1x32xf32>
    %75 = vector.broadcast %74 : vector<1x32xf32> to vector<16x32xf32>
    %76 = arith.subf %66, %75 : vector<16x32xf32>
    %77 = arith.mulf %76, %76 : vector<16x32xf32>
    %cst_36 = arith.constant dense<0.000000e+00> : vector<32xf32>
    %78 = vector.multi_reduction <add>, %77, %cst_36 [0] : vector<16x32xf32> to vector<32xf32>
    %79 = vector.shape_cast %78 : vector<32xf32> to vector<1x32xf32>
    %80 = vector.extract_strided_slice %79 {offsets = [0, 0], sizes = [1, 16], strides = [1, 1]} : vector<1x32xf32> to vector<1x16xf32>
    %81 = vector.extract_strided_slice %79 {offsets = [0, 16], sizes = [1, 16], strides = [1, 1]} : vector<1x32xf32> to vector<1x16xf32>
    %82 = arith.addf %80, %81 : vector<1x16xf32>
    %cst_37 = arith.constant 3.125000e-02 : f32
    %83 = vector.broadcast %cst_37 : f32 to vector<1x16xf32>
    %84 = arith.mulf %82, %83 : vector<1x16xf32>
    %cst_38 = arith.constant 9.99999974E-6 : f32
    %85 = vector.broadcast %cst_38 : f32 to vector<1x16xf32>
    %86 = arith.addf %84, %85 : vector<1x16xf32>
    %87 = math.rsqrt %86 : vector<1x16xf32>
    %88 = tpu.concatenate %87, %87 in 1 : vector<1x16xf32>, vector<1x16xf32> -> vector<1x32xf32>
    %89 = vector.broadcast %88 : vector<1x32xf32> to vector<16x32xf32>
    %90 = arith.mulf %76, %89 : vector<16x32xf32>
    %cst_39 = arith.constant 2.000000e-01 : f32
    %91 = vector.broadcast %cst_39 : f32 to vector<16x32xf32>
    %92 = arith.mulf %91, %90 : vector<16x32xf32>
    %93 = arith.maximumf %90, %92 : vector<16x32xf32>
    %cst_40 = arith.constant 0.000000e+00 : f32
    %94 = vector.broadcast %cst_40 : f32 to vector<8x32xf32>
    %c0_41 = arith.constant 0 : index
    %c0_42 = arith.constant 0 : index
    %95 = vector.load %arg13[%c0_41, %c0_42] : memref<272x256xf32, #tpu.memory_space<vmem>>, vector<8x32xf32>
    tpu.vector_store %arg13[%c0_41, %c0_42], %94 {strides = array<i32>} : memref<272x256xf32, #tpu.memory_space<vmem>>, vector<8x32xf32>,
    %96 = vector.extract_strided_slice %93 {offsets = [0, 0], sizes = [8, 32], strides = [1, 1]} : vector<16x32xf32> to vector<8x32xf32>
    %c8_43 = arith.constant 8 : index
    %c0_44 = arith.constant 0 : index
    %97 = vector.load %arg13[%c8_43, %c0_44] : memref<272x256xf32, #tpu.memory_space<vmem>>, vector<8x32xf32>
    tpu.vector_store %arg13[%c8_43, %c0_44], %96 {strides = array<i32>} : memref<272x256xf32, #tpu.memory_space<vmem>>, vector<8x32xf32>,
    %c16_45 = arith.constant 16 : index
    %c0_46 = arith.constant 0 : index
    %98 = vector.load %arg13[%c16_45, %c0_46] : memref<272x256xf32, #tpu.memory_space<vmem>>, vector<8x32xf32>
    tpu.vector_store %arg13[%c16_45, %c0_46], %96 {strides = array<i32>} : memref<272x256xf32, #tpu.memory_space<vmem>>, vector<8x32xf32>,
    %99 = vector.extract_strided_slice %93 {offsets = [8, 0], sizes = [8, 32], strides = [1, 1]} : vector<16x32xf32> to vector<8x32xf32>
    %c24_47 = arith.constant 24 : index
    %c0_48 = arith.constant 0 : index
    %100 = vector.load %arg13[%c24_47, %c0_48] : memref<272x256xf32, #tpu.memory_space<vmem>>, vector<8x32xf32>
    tpu.vector_store %arg13[%c24_47, %c0_48], %99 {strides = array<i32>} : memref<272x256xf32, #tpu.memory_space<vmem>>, vector<8x32xf32>,
    %c32 = arith.constant 32 : index
    %c0_49 = arith.constant 0 : index
    %101 = vector.load %arg13[%c32, %c0_49] : memref<272x256xf32, #tpu.memory_space<vmem>>, vector<8x32xf32>
    tpu.vector_store %arg13[%c32, %c0_49], %99 {strides = array<i32>} : memref<272x256xf32, #tpu.memory_space<vmem>>, vector<8x32xf32>,
    %c40 = arith.constant 40 : index
    %c0_50 = arith.constant 0 : index
    %102 = vector.load %arg13[%c40, %c0_50] : memref<272x256xf32, #tpu.memory_space<vmem>>, vector<8x32xf32>
    tpu.vector_store %arg13[%c40, %c0_50], %94 {strides = array<i32>} : memref<272x256xf32, #tpu.memory_space<vmem>>, vector<8x32xf32>,
    %c0_51 = arith.constant 0 : index
    %c0_52 = arith.constant 0 : index
    %103 = vector.load %arg13[%c0_51, %c0_52] : memref<272x256xf32, #tpu.memory_space<vmem>>, vector<32x32xf32>
    %104 = arith.truncf %103 : vector<32x32xf32> to vector<32x32xbf16>
    %c8_53 = arith.constant 8 : index
    %c0_54 = arith.constant 0 : index
    %105 = vector.load %arg13[%c8_53, %c0_54] : memref<272x256xf32, #tpu.memory_space<vmem>>, vector<32x32xf32>
    %106 = arith.truncf %105 : vector<32x32xf32> to vector<32x32xbf16>
    %c16_55 = arith.constant 16 : index
    %c0_56 = arith.constant 0 : index
    %107 = vector.load %arg13[%c16_55, %c0_56] : memref<272x256xf32, #tpu.memory_space<vmem>>, vector<32x32xf32>
    %108 = arith.truncf %107 : vector<32x32xf32> to vector<32x32xbf16>
    %109 = tpu.concatenate %104, %106, %108 in 1 : vector<32x32xbf16>, vector<32x32xbf16>, vector<32x32xbf16> -> vector<32x96xbf16>
    %c0_57 = arith.constant 0 : index
    %c0_58 = arith.constant 0 : index
    %110 = vector.load %arg6[%c0_57, %c0_58] : memref<96x64xbf16, #tpu.memory_space<vmem>>, vector<96x64xbf16>
    %cst_59 = arith.constant dense<0.000000e+00> : vector<32x64xf32>
    %111 = tpu.matmul %109, %110, %cst_59 {dimension_numbers = #tpu.dot_dimension_numbers<[1], [0], [0], [1], [0, 0, 1, 1], [], []>} : vector<32x96xbf16>, vector<96x64xbf16>, vector<32x64xf32> -> vector<32x64xf32>
    %cst_60 = arith.constant dense<0.000000e+00> : vector<64xf32>
    %112 = vector.multi_reduction <add>, %111, %cst_60 [0] : vector<32x64xf32> to vector<64xf32>
    %113 = vector.shape_cast %112 : vector<64xf32> to vector<1x64xf32>
    %114 = vector.extract_strided_slice %113 {offsets = [0, 0], sizes = [1, 16], strides = [1, 1]} : vector<1x64xf32> to vector<1x16xf32>
    %115 = vector.extract_strided_slice %113 {offsets = [0, 16], sizes = [1, 16], strides = [1, 1]} : vector<1x64xf32> to vector<1x16xf32>
    %116 = arith.addf %114, %115 : vector<1x16xf32>
    %117 = vector.extract_strided_slice %113 {offsets = [0, 32], sizes = [1, 16], strides = [1, 1]} : vector<1x64xf32> to vector<1x16xf32>
    %118 = arith.addf %116, %117 : vector<1x16xf32>
    %119 = vector.extract_strided_slice %113 {offsets = [0, 48], sizes = [1, 16], strides = [1, 1]} : vector<1x64xf32> to vector<1x16xf32>
    %120 = arith.addf %118, %119 : vector<1x16xf32>
    %cst_61 = arith.constant 7.812500e-03 : f32
    %121 = vector.broadcast %cst_61 : f32 to vector<1x16xf32>
    %122 = arith.mulf %120, %121 : vector<1x16xf32>
    %123 = tpu.concatenate %122, %122, %122, %122 in 1 : vector<1x16xf32>, vector<1x16xf32>, vector<1x16xf32>, vector<1x16xf32> -> vector<1x64xf32>
    %124 = vector.broadcast %123 : vector<1x64xf32> to vector<32x64xf32>
    %125 = arith.subf %111, %124 : vector<32x64xf32>
    %126 = arith.mulf %125, %125 : vector<32x64xf32>
    %cst_62 = arith.constant dense<0.000000e+00> : vector<64xf32>
    %127 = vector.multi_reduction <add>, %126, %cst_62 [0] : vector<32x64xf32> to vector<64xf32>
    %128 = vector.shape_cast %127 : vector<64xf32> to vector<1x64xf32>
    %129 = vector.extract_strided_slice %128 {offsets = [0, 0], sizes = [1, 16], strides = [1, 1]} : vector<1x64xf32> to vector<1x16xf32>
    %130 = vector.extract_strided_slice %128 {offsets = [0, 16], sizes = [1, 16], strides = [1, 1]} : vector<1x64xf32> to vector<1x16xf32>
    %131 = arith.addf %129, %130 : vector<1x16xf32>
    %132 = vector.extract_strided_slice %128 {offsets = [0, 32], sizes = [1, 16], strides = [1, 1]} : vector<1x64xf32> to vector<1x16xf32>
    %133 = arith.addf %131, %132 : vector<1x16xf32>
    %134 = vector.extract_strided_slice %128 {offsets = [0, 48], sizes = [1, 16], strides = [1, 1]} : vector<1x64xf32> to vector<1x16xf32>
    %135 = arith.addf %133, %134 : vector<1x16xf32>
    %cst_63 = arith.constant 7.812500e-03 : f32
    %136 = vector.broadcast %cst_63 : f32 to vector<1x16xf32>
    %137 = arith.mulf %135, %136 : vector<1x16xf32>
    %cst_64 = arith.constant 9.99999974E-6 : f32
    %138 = vector.broadcast %cst_64 : f32 to vector<1x16xf32>
    %139 = arith.addf %137, %138 : vector<1x16xf32>
    %140 = math.rsqrt %139 : vector<1x16xf32>
    %141 = tpu.concatenate %140, %140, %140, %140 in 1 : vector<1x16xf32>, vector<1x16xf32>, vector<1x16xf32>, vector<1x16xf32> -> vector<1x64xf32>
    %142 = vector.broadcast %141 : vector<1x64xf32> to vector<32x64xf32>
    %143 = arith.mulf %125, %142 : vector<32x64xf32>
    %cst_65 = arith.constant 2.000000e-01 : f32
    %144 = vector.broadcast %cst_65 : f32 to vector<32x64xf32>
    %145 = arith.mulf %144, %143 : vector<32x64xf32>
    %146 = arith.maximumf %143, %145 : vector<32x64xf32>
    %cst_66 = arith.constant 0.000000e+00 : f32
    %147 = vector.broadcast %cst_66 : f32 to vector<8x64xf32>
    %c0_67 = arith.constant 0 : index
    %c0_68 = arith.constant 0 : index
    %148 = vector.load %arg13[%c0_67, %c0_68] : memref<272x256xf32, #tpu.memory_space<vmem>>, vector<8x64xf32>
    tpu.vector_store %arg13[%c0_67, %c0_68], %147 {strides = array<i32>} : memref<272x256xf32, #tpu.memory_space<vmem>>, vector<8x64xf32>,
    %149 = vector.extract_strided_slice %146 {offsets = [0, 0], sizes = [8, 64], strides = [1, 1]} : vector<32x64xf32> to vector<8x64xf32>
    %c8_69 = arith.constant 8 : index
    %c0_70 = arith.constant 0 : index
    %150 = vector.load %arg13[%c8_69, %c0_70] : memref<272x256xf32, #tpu.memory_space<vmem>>, vector<8x64xf32>
    tpu.vector_store %arg13[%c8_69, %c0_70], %149 {strides = array<i32>} : memref<272x256xf32, #tpu.memory_space<vmem>>, vector<8x64xf32>,
    %c16_71 = arith.constant 16 : index
    %c0_72 = arith.constant 0 : index
    %151 = vector.load %arg13[%c16_71, %c0_72] : memref<272x256xf32, #tpu.memory_space<vmem>>, vector<8x64xf32>
    tpu.vector_store %arg13[%c16_71, %c0_72], %149 {strides = array<i32>} : memref<272x256xf32, #tpu.memory_space<vmem>>, vector<8x64xf32>,
    %152 = vector.extract_strided_slice %146 {offsets = [8, 0], sizes = [8, 64], strides = [1, 1]} : vector<32x64xf32> to vector<8x64xf32>
    %c24_73 = arith.constant 24 : index
    %c0_74 = arith.constant 0 : index
    %153 = vector.load %arg13[%c24_73, %c0_74] : memref<272x256xf32, #tpu.memory_space<vmem>>, vector<8x64xf32>
    tpu.vector_store %arg13[%c24_73, %c0_74], %152 {strides = array<i32>} : memref<272x256xf32, #tpu.memory_space<vmem>>, vector<8x64xf32>,
    %c32_75 = arith.constant 32 : index
    %c0_76 = arith.constant 0 : index
    %154 = vector.load %arg13[%c32_75, %c0_76] : memref<272x256xf32, #tpu.memory_space<vmem>>, vector<8x64xf32>
    tpu.vector_store %arg13[%c32_75, %c0_76], %152 {strides = array<i32>} : memref<272x256xf32, #tpu.memory_space<vmem>>, vector<8x64xf32>,
    %155 = vector.extract_strided_slice %146 {offsets = [16, 0], sizes = [8, 64], strides = [1, 1]} : vector<32x64xf32> to vector<8x64xf32>
    %c40_77 = arith.constant 40 : index
    %c0_78 = arith.constant 0 : index
    %156 = vector.load %arg13[%c40_77, %c0_78] : memref<272x256xf32, #tpu.memory_space<vmem>>, vector<8x64xf32>
    tpu.vector_store %arg13[%c40_77, %c0_78], %155 {strides = array<i32>} : memref<272x256xf32, #tpu.memory_space<vmem>>, vector<8x64xf32>,
    %c48 = arith.constant 48 : index
    %c0_79 = arith.constant 0 : index
    %157 = vector.load %arg13[%c48, %c0_79] : memref<272x256xf32, #tpu.memory_space<vmem>>, vector<8x64xf32>
    tpu.vector_store %arg13[%c48, %c0_79], %155 {strides = array<i32>} : memref<272x256xf32, #tpu.memory_space<vmem>>, vector<8x64xf32>,
    %158 = vector.extract_strided_slice %146 {offsets = [24, 0], sizes = [8, 64], strides = [1, 1]} : vector<32x64xf32> to vector<8x64xf32>
    %c56 = arith.constant 56 : index
    %c0_80 = arith.constant 0 : index
    %159 = vector.load %arg13[%c56, %c0_80] : memref<272x256xf32, #tpu.memory_space<vmem>>, vector<8x64xf32>
    tpu.vector_store %arg13[%c56, %c0_80], %158 {strides = array<i32>} : memref<272x256xf32, #tpu.memory_space<vmem>>, vector<8x64xf32>,
    %c64 = arith.constant 64 : index
    %c0_81 = arith.constant 0 : index
    %160 = vector.load %arg13[%c64, %c0_81] : memref<272x256xf32, #tpu.memory_space<vmem>>, vector<8x64xf32>
    tpu.vector_store %arg13[%c64, %c0_81], %158 {strides = array<i32>} : memref<272x256xf32, #tpu.memory_space<vmem>>, vector<8x64xf32>,
    %c72 = arith.constant 72 : index
    %c0_82 = arith.constant 0 : index
    %161 = vector.load %arg13[%c72, %c0_82] : memref<272x256xf32, #tpu.memory_space<vmem>>, vector<8x64xf32>
    tpu.vector_store %arg13[%c72, %c0_82], %147 {strides = array<i32>} : memref<272x256xf32, #tpu.memory_space<vmem>>, vector<8x64xf32>,
    %c0_83 = arith.constant 0 : index
    %c0_84 = arith.constant 0 : index
    %162 = vector.load %arg13[%c0_83, %c0_84] : memref<272x256xf32, #tpu.memory_space<vmem>>, vector<64x64xf32>
    %163 = arith.truncf %162 : vector<64x64xf32> to vector<64x64xbf16>
    %c8_85 = arith.constant 8 : index
    %c0_86 = arith.constant 0 : index
    %164 = vector.load %arg13[%c8_85, %c0_86] : memref<272x256xf32, #tpu.memory_space<vmem>>, vector<64x64xf32>
    %165 = arith.truncf %164 : vector<64x64xf32> to vector<64x64xbf16>
    %c16_87 = arith.constant 16 : index
    %c0_88 = arith.constant 0 : index
    %166 = vector.load %arg13[%c16_87, %c0_88] : memref<272x256xf32, #tpu.memory_space<vmem>>, vector<64x64xf32>
    %167 = arith.truncf %166 : vector<64x64xf32> to vector<64x64xbf16>
    %168 = tpu.concatenate %163, %165, %167 in 1 : vector<64x64xbf16>, vector<64x64xbf16>, vector<64x64xbf16> -> vector<64x192xbf16>
    %c0_89 = arith.constant 0 : index
    %c0_90 = arith.constant 0 : index
    %169 = vector.load %arg7[%c0_89, %c0_90] : memref<192x64xbf16, #tpu.memory_space<vmem>>, vector<192x64xbf16>
    %cst_91 = arith.constant dense<0.000000e+00> : vector<64x64xf32>
    %170 = tpu.matmul %168, %169, %cst_91 {dimension_numbers = #tpu.dot_dimension_numbers<[1], [0], [0], [1], [0, 0, 1, 1], [], []>} : vector<64x192xbf16>, vector<192x64xbf16>, vector<64x64xf32> -> vector<64x64xf32>
    %cst_92 = arith.constant dense<0.000000e+00> : vector<64xf32>
    %171 = vector.multi_reduction <add>, %170, %cst_92 [0] : vector<64x64xf32> to vector<64xf32>
    %172 = vector.shape_cast %171 : vector<64xf32> to vector<1x64xf32>
    %173 = vector.extract_strided_slice %172 {offsets = [0, 0], sizes = [1, 8], strides = [1, 1]} : vector<1x64xf32> to vector<1x8xf32>
    %174 = vector.extract_strided_slice %172 {offsets = [0, 8], sizes = [1, 8], strides = [1, 1]} : vector<1x64xf32> to vector<1x8xf32>
    %175 = arith.addf %173, %174 : vector<1x8xf32>
    %176 = vector.extract_strided_slice %172 {offsets = [0, 16], sizes = [1, 8], strides = [1, 1]} : vector<1x64xf32> to vector<1x8xf32>
    %177 = arith.addf %175, %176 : vector<1x8xf32>
    %178 = vector.extract_strided_slice %172 {offsets = [0, 24], sizes = [1, 8], strides = [1, 1]} : vector<1x64xf32> to vector<1x8xf32>
    %179 = arith.addf %177, %178 : vector<1x8xf32>
    %180 = vector.extract_strided_slice %172 {offsets = [0, 32], sizes = [1, 8], strides = [1, 1]} : vector<1x64xf32> to vector<1x8xf32>
    %181 = arith.addf %179, %180 : vector<1x8xf32>
    %182 = vector.extract_strided_slice %172 {offsets = [0, 40], sizes = [1, 8], strides = [1, 1]} : vector<1x64xf32> to vector<1x8xf32>
    %183 = arith.addf %181, %182 : vector<1x8xf32>
    %184 = vector.extract_strided_slice %172 {offsets = [0, 48], sizes = [1, 8], strides = [1, 1]} : vector<1x64xf32> to vector<1x8xf32>
    %185 = arith.addf %183, %184 : vector<1x8xf32>
    %186 = vector.extract_strided_slice %172 {offsets = [0, 56], sizes = [1, 8], strides = [1, 1]} : vector<1x64xf32> to vector<1x8xf32>
    %187 = arith.addf %185, %186 : vector<1x8xf32>
    %cst_93 = arith.constant 0.001953125 : f32
    %188 = vector.broadcast %cst_93 : f32 to vector<1x8xf32>
    %189 = arith.mulf %187, %188 : vector<1x8xf32>
    %190 = tpu.concatenate %189, %189, %189, %189, %189, %189, %189, %189 in 1 : vector<1x8xf32>, vector<1x8xf32>, vector<1x8xf32>, vector<1x8xf32>, vector<1x8xf32>, vector<1x8xf32>, vector<1x8xf32>, vector<1x8xf32> -> vector<1x64xf32>
    %191 = vector.broadcast %190 : vector<1x64xf32> to vector<64x64xf32>
    %192 = arith.subf %170, %191 : vector<64x64xf32>
    %193 = arith.mulf %192, %192 : vector<64x64xf32>
    %cst_94 = arith.constant dense<0.000000e+00> : vector<64xf32>
    %194 = vector.multi_reduction <add>, %193, %cst_94 [0] : vector<64x64xf32> to vector<64xf32>
    %195 = vector.shape_cast %194 : vector<64xf32> to vector<1x64xf32>
    %196 = vector.extract_strided_slice %195 {offsets = [0, 0], sizes = [1, 8], strides = [1, 1]} : vector<1x64xf32> to vector<1x8xf32>
    %197 = vector.extract_strided_slice %195 {offsets = [0, 8], sizes = [1, 8], strides = [1, 1]} : vector<1x64xf32> to vector<1x8xf32>
    %198 = arith.addf %196, %197 : vector<1x8xf32>
    %199 = vector.extract_strided_slice %195 {offsets = [0, 16], sizes = [1, 8], strides = [1, 1]} : vector<1x64xf32> to vector<1x8xf32>
    %200 = arith.addf %198, %199 : vector<1x8xf32>
    %201 = vector.extract_strided_slice %195 {offsets = [0, 24], sizes = [1, 8], strides = [1, 1]} : vector<1x64xf32> to vector<1x8xf32>
    %202 = arith.addf %200, %201 : vector<1x8xf32>
    %203 = vector.extract_strided_slice %195 {offsets = [0, 32], sizes = [1, 8], strides = [1, 1]} : vector<1x64xf32> to vector<1x8xf32>
    %204 = arith.addf %202, %203 : vector<1x8xf32>
    %205 = vector.extract_strided_slice %195 {offsets = [0, 40], sizes = [1, 8], strides = [1, 1]} : vector<1x64xf32> to vector<1x8xf32>
    %206 = arith.addf %204, %205 : vector<1x8xf32>
    %207 = vector.extract_strided_slice %195 {offsets = [0, 48], sizes = [1, 8], strides = [1, 1]} : vector<1x64xf32> to vector<1x8xf32>
    %208 = arith.addf %206, %207 : vector<1x8xf32>
    %209 = vector.extract_strided_slice %195 {offsets = [0, 56], sizes = [1, 8], strides = [1, 1]} : vector<1x64xf32> to vector<1x8xf32>
    %210 = arith.addf %208, %209 : vector<1x8xf32>
    %cst_95 = arith.constant 0.001953125 : f32
    %211 = vector.broadcast %cst_95 : f32 to vector<1x8xf32>
    %212 = arith.mulf %210, %211 : vector<1x8xf32>
    %cst_96 = arith.constant 9.99999974E-6 : f32
    %213 = vector.broadcast %cst_96 : f32 to vector<1x8xf32>
    %214 = arith.addf %212, %213 : vector<1x8xf32>
    %215 = math.rsqrt %214 : vector<1x8xf32>
    %216 = tpu.concatenate %215, %215, %215, %215, %215, %215, %215, %215 in 1 : vector<1x8xf32>, vector<1x8xf32>, vector<1x8xf32>, vector<1x8xf32>, vector<1x8xf32>, vector<1x8xf32>, vector<1x8xf32>, vector<1x8xf32> -> vector<1x64xf32>
    %217 = vector.broadcast %216 : vector<1x64xf32> to vector<64x64xf32>
    %218 = arith.mulf %192, %217 : vector<64x64xf32>
    %cst_97 = arith.constant 2.000000e-01 : f32
    %219 = vector.broadcast %cst_97 : f32 to vector<64x64xf32>
    %220 = arith.mulf %219, %218 : vector<64x64xf32>
    %221 = arith.maximumf %218, %220 : vector<64x64xf32>
    %cst_98 = arith.constant 0.000000e+00 : f32
    %222 = vector.broadcast %cst_98 : f32 to vector<8x64xf32>
    %c0_99 = arith.constant 0 : index
    %c0_100 = arith.constant 0 : index
    %223 = vector.load %arg13[%c0_99, %c0_100] : memref<272x256xf32, #tpu.memory_space<vmem>>, vector<8x64xf32>
    tpu.vector_store %arg13[%c0_99, %c0_100], %222 {strides = array<i32>} : memref<272x256xf32, #tpu.memory_space<vmem>>, vector<8x64xf32>,
    %224 = vector.extract_strided_slice %221 {offsets = [0, 0], sizes = [8, 64], strides = [1, 1]} : vector<64x64xf32> to vector<8x64xf32>
    %c8_101 = arith.constant 8 : index
    %c0_102 = arith.constant 0 : index
    %225 = vector.load %arg13[%c8_101, %c0_102] : memref<272x256xf32, #tpu.memory_space<vmem>>, vector<8x64xf32>
    tpu.vector_store %arg13[%c8_101, %c0_102], %224 {strides = array<i32>} : memref<272x256xf32, #tpu.memory_space<vmem>>, vector<8x64xf32>,
    %c16_103 = arith.constant 16 : index
    %c0_104 = arith.constant 0 : index
    %226 = vector.load %arg13[%c16_103, %c0_104] : memref<272x256xf32, #tpu.memory_space<vmem>>, vector<8x64xf32>
    tpu.vector_store %arg13[%c16_103, %c0_104], %224 {strides = array<i32>} : memref<272x256xf32, #tpu.memory_space<vmem>>, vector<8x64xf32>,
    %227 = vector.extract_strided_slice %221 {offsets = [8, 0], sizes = [8, 64], strides = [1, 1]} : vector<64x64xf32> to vector<8x64xf32>
    %c24_105 = arith.constant 24 : index
    %c0_106 = arith.constant 0 : index
    %228 = vector.load %arg13[%c24_105, %c0_106] : memref<272x256xf32, #tpu.memory_space<vmem>>, vector<8x64xf32>
    tpu.vector_store %arg13[%c24_105, %c0_106], %227 {strides = array<i32>} : memref<272x256xf32, #tpu.memory_space<vmem>>, vector<8x64xf32>,
    %c32_107 = arith.constant 32 : index
    %c0_108 = arith.constant 0 : index
    %229 = vector.load %arg13[%c32_107, %c0_108] : memref<272x256xf32, #tpu.memory_space<vmem>>, vector<8x64xf32>
    tpu.vector_store %arg13[%c32_107, %c0_108], %227 {strides = array<i32>} : memref<272x256xf32, #tpu.memory_space<vmem>>, vector<8x64xf32>,
    %230 = vector.extract_strided_slice %221 {offsets = [16, 0], sizes = [8, 64], strides = [1, 1]} : vector<64x64xf32> to vector<8x64xf32>
    %c40_109 = arith.constant 40 : index
    %c0_110 = arith.constant 0 : index
    %231 = vector.load %arg13[%c40_109, %c0_110] : memref<272x256xf32, #tpu.memory_space<vmem>>, vector<8x64xf32>
    tpu.vector_store %arg13[%c40_109, %c0_110], %230 {strides = array<i32>} : memref<272x256xf32, #tpu.memory_space<vmem>>, vector<8x64xf32>,
    %c48_111 = arith.constant 48 : index
    %c0_112 = arith.constant 0 : index
    %232 = vector.load %arg13[%c48_111, %c0_112] : memref<272x256xf32, #tpu.memory_space<vmem>>, vector<8x64xf32>
    tpu.vector_store %arg13[%c48_111, %c0_112], %230 {strides = array<i32>} : memref<272x256xf32, #tpu.memory_space<vmem>>, vector<8x64xf32>,
    %233 = vector.extract_strided_slice %221 {offsets = [24, 0], sizes = [8, 64], strides = [1, 1]} : vector<64x64xf32> to vector<8x64xf32>
    %c56_113 = arith.constant 56 : index
    %c0_114 = arith.constant 0 : index
    %234 = vector.load %arg13[%c56_113, %c0_114] : memref<272x256xf32, #tpu.memory_space<vmem>>, vector<8x64xf32>
    tpu.vector_store %arg13[%c56_113, %c0_114], %233 {strides = array<i32>} : memref<272x256xf32, #tpu.memory_space<vmem>>, vector<8x64xf32>,
    %c64_115 = arith.constant 64 : index
    %c0_116 = arith.constant 0 : index
    %235 = vector.load %arg13[%c64_115, %c0_116] : memref<272x256xf32, #tpu.memory_space<vmem>>, vector<8x64xf32>
    tpu.vector_store %arg13[%c64_115, %c0_116], %233 {strides = array<i32>} : memref<272x256xf32, #tpu.memory_space<vmem>>, vector<8x64xf32>,
    %236 = vector.extract_strided_slice %221 {offsets = [32, 0], sizes = [8, 64], strides = [1, 1]} : vector<64x64xf32> to vector<8x64xf32>
    %c72_117 = arith.constant 72 : index
    %c0_118 = arith.constant 0 : index
    %237 = vector.load %arg13[%c72_117, %c0_118] : memref<272x256xf32, #tpu.memory_space<vmem>>, vector<8x64xf32>
    tpu.vector_store %arg13[%c72_117, %c0_118], %236 {strides = array<i32>} : memref<272x256xf32, #tpu.memory_space<vmem>>, vector<8x64xf32>,
    %c80 = arith.constant 80 : index
    %c0_119 = arith.constant 0 : index
    %238 = vector.load %arg13[%c80, %c0_119] : memref<272x256xf32, #tpu.memory_space<vmem>>, vector<8x64xf32>
    tpu.vector_store %arg13[%c80, %c0_119], %236 {strides = array<i32>} : memref<272x256xf32, #tpu.memory_space<vmem>>, vector<8x64xf32>,
    %239 = vector.extract_strided_slice %221 {offsets = [40, 0], sizes = [8, 64], strides = [1, 1]} : vector<64x64xf32> to vector<8x64xf32>
    %c88 = arith.constant 88 : index
    %c0_120 = arith.constant 0 : index
    %240 = vector.load %arg13[%c88, %c0_120] : memref<272x256xf32, #tpu.memory_space<vmem>>, vector<8x64xf32>
    tpu.vector_store %arg13[%c88, %c0_120], %239 {strides = array<i32>} : memref<272x256xf32, #tpu.memory_space<vmem>>, vector<8x64xf32>,
    %c96 = arith.constant 96 : index
    %c0_121 = arith.constant 0 : index
    %241 = vector.load %arg13[%c96, %c0_121] : memref<272x256xf32, #tpu.memory_space<vmem>>, vector<8x64xf32>
    tpu.vector_store %arg13[%c96, %c0_121], %239 {strides = array<i32>} : memref<272x256xf32, #tpu.memory_space<vmem>>, vector<8x64xf32>,
    %242 = vector.extract_strided_slice %221 {offsets = [48, 0], sizes = [8, 64], strides = [1, 1]} : vector<64x64xf32> to vector<8x64xf32>
    %c104 = arith.constant 104 : index
    %c0_122 = arith.constant 0 : index
    %243 = vector.load %arg13[%c104, %c0_122] : memref<272x256xf32, #tpu.memory_space<vmem>>, vector<8x64xf32>
    tpu.vector_store %arg13[%c104, %c0_122], %242 {strides = array<i32>} : memref<272x256xf32, #tpu.memory_space<vmem>>, vector<8x64xf32>,
    %c112 = arith.constant 112 : index
    %c0_123 = arith.constant 0 : index
    %244 = vector.load %arg13[%c112, %c0_123] : memref<272x256xf32, #tpu.memory_space<vmem>>, vector<8x64xf32>
    tpu.vector_store %arg13[%c112, %c0_123], %242 {strides = array<i32>} : memref<272x256xf32, #tpu.memory_space<vmem>>, vector<8x64xf32>,
    %245 = vector.extract_strided_slice %221 {offsets = [56, 0], sizes = [8, 64], strides = [1, 1]} : vector<64x64xf32> to vector<8x64xf32>
    %c120 = arith.constant 120 : index
    %c0_124 = arith.constant 0 : index
    %246 = vector.load %arg13[%c120, %c0_124] : memref<272x256xf32, #tpu.memory_space<vmem>>, vector<8x64xf32>
    tpu.vector_store %arg13[%c120, %c0_124], %245 {strides = array<i32>} : memref<272x256xf32, #tpu.memory_space<vmem>>, vector<8x64xf32>,
    %c128 = arith.constant 128 : index
    %c0_125 = arith.constant 0 : index
    %247 = vector.load %arg13[%c128, %c0_125] : memref<272x256xf32, #tpu.memory_space<vmem>>, vector<8x64xf32>
    tpu.vector_store %arg13[%c128, %c0_125], %245 {strides = array<i32>} : memref<272x256xf32, #tpu.memory_space<vmem>>, vector<8x64xf32>,
    %c136 = arith.constant 136 : index
    %c0_126 = arith.constant 0 : index
    %248 = vector.load %arg13[%c136, %c0_126] : memref<272x256xf32, #tpu.memory_space<vmem>>, vector<8x64xf32>
    tpu.vector_store %arg13[%c136, %c0_126], %222 {strides = array<i32>} : memref<272x256xf32, #tpu.memory_space<vmem>>, vector<8x64xf32>,
    %c0_127 = arith.constant 0 : index
    %c0_128 = arith.constant 0 : index
    %249 = vector.load %arg13[%c0_127, %c0_128] : memref<272x256xf32, #tpu.memory_space<vmem>>, vector<128x64xf32>
    %250 = arith.truncf %249 : vector<128x64xf32> to vector<128x64xbf16>
    %c8_129 = arith.constant 8 : index
    %c0_130 = arith.constant 0 : index
    %251 = vector.load %arg13[%c8_129, %c0_130] : memref<272x256xf32, #tpu.memory_space<vmem>>, vector<128x64xf32>
    %252 = arith.truncf %251 : vector<128x64xf32> to vector<128x64xbf16>
    %c16_131 = arith.constant 16 : index
    %c0_132 = arith.constant 0 : index
    %253 = vector.load %arg13[%c16_131, %c0_132] : memref<272x256xf32, #tpu.memory_space<vmem>>, vector<128x64xf32>
    %254 = arith.truncf %253 : vector<128x64xf32> to vector<128x64xbf16>
    %255 = tpu.concatenate %250, %252, %254 in 1 : vector<128x64xbf16>, vector<128x64xbf16>, vector<128x64xbf16> -> vector<128x192xbf16>
    %c0_133 = arith.constant 0 : index
    %c0_134 = arith.constant 0 : index
    %256 = vector.load %arg8[%c0_133, %c0_134] : memref<192x128xbf16, #tpu.memory_space<vmem>>, vector<192x128xbf16>
    %cst_135 = arith.constant dense<0.000000e+00> : vector<128x128xf32>
    %257 = tpu.matmul %255, %256, %cst_135 {dimension_numbers = #tpu.dot_dimension_numbers<[1], [0], [0], [1], [0, 0, 1, 1], [], []>} : vector<128x192xbf16>, vector<192x128xbf16>, vector<128x128xf32> -> vector<128x128xf32>
    %cst_136 = arith.constant dense<0.000000e+00> : vector<128xf32>
    %258 = vector.multi_reduction <add>, %257, %cst_136 [0] : vector<128x128xf32> to vector<128xf32>
    %259 = vector.shape_cast %258 : vector<128xf32> to vector<1x128xf32>
    %260 = vector.extract_strided_slice %259 {offsets = [0, 0], sizes = [1, 8], strides = [1, 1]} : vector<1x128xf32> to vector<1x8xf32>
    %261 = vector.extract_strided_slice %259 {offsets = [0, 8], sizes = [1, 8], strides = [1, 1]} : vector<1x128xf32> to vector<1x8xf32>
    %262 = arith.addf %260, %261 : vector<1x8xf32>
    %263 = vector.extract_strided_slice %259 {offsets = [0, 16], sizes = [1, 8], strides = [1, 1]} : vector<1x128xf32> to vector<1x8xf32>
    %264 = arith.addf %262, %263 : vector<1x8xf32>
    %265 = vector.extract_strided_slice %259 {offsets = [0, 24], sizes = [1, 8], strides = [1, 1]} : vector<1x128xf32> to vector<1x8xf32>
    %266 = arith.addf %264, %265 : vector<1x8xf32>
    %267 = vector.extract_strided_slice %259 {offsets = [0, 32], sizes = [1, 8], strides = [1, 1]} : vector<1x128xf32> to vector<1x8xf32>
    %268 = arith.addf %266, %267 : vector<1x8xf32>
    %269 = vector.extract_strided_slice %259 {offsets = [0, 40], sizes = [1, 8], strides = [1, 1]} : vector<1x128xf32> to vector<1x8xf32>
    %270 = arith.addf %268, %269 : vector<1x8xf32>
    %271 = vector.extract_strided_slice %259 {offsets = [0, 48], sizes = [1, 8], strides = [1, 1]} : vector<1x128xf32> to vector<1x8xf32>
    %272 = arith.addf %270, %271 : vector<1x8xf32>
    %273 = vector.extract_strided_slice %259 {offsets = [0, 56], sizes = [1, 8], strides = [1, 1]} : vector<1x128xf32> to vector<1x8xf32>
    %274 = arith.addf %272, %273 : vector<1x8xf32>
    %275 = vector.extract_strided_slice %259 {offsets = [0, 64], sizes = [1, 8], strides = [1, 1]} : vector<1x128xf32> to vector<1x8xf32>
    %276 = arith.addf %274, %275 : vector<1x8xf32>
    %277 = vector.extract_strided_slice %259 {offsets = [0, 72], sizes = [1, 8], strides = [1, 1]} : vector<1x128xf32> to vector<1x8xf32>
    %278 = arith.addf %276, %277 : vector<1x8xf32>
    %279 = vector.extract_strided_slice %259 {offsets = [0, 80], sizes = [1, 8], strides = [1, 1]} : vector<1x128xf32> to vector<1x8xf32>
    %280 = arith.addf %278, %279 : vector<1x8xf32>
    %281 = vector.extract_strided_slice %259 {offsets = [0, 88], sizes = [1, 8], strides = [1, 1]} : vector<1x128xf32> to vector<1x8xf32>
    %282 = arith.addf %280, %281 : vector<1x8xf32>
    %283 = vector.extract_strided_slice %259 {offsets = [0, 96], sizes = [1, 8], strides = [1, 1]} : vector<1x128xf32> to vector<1x8xf32>
    %284 = arith.addf %282, %283 : vector<1x8xf32>
    %285 = vector.extract_strided_slice %259 {offsets = [0, 104], sizes = [1, 8], strides = [1, 1]} : vector<1x128xf32> to vector<1x8xf32>
    %286 = arith.addf %284, %285 : vector<1x8xf32>
    %287 = vector.extract_strided_slice %259 {offsets = [0, 112], sizes = [1, 8], strides = [1, 1]} : vector<1x128xf32> to vector<1x8xf32>
    %288 = arith.addf %286, %287 : vector<1x8xf32>
    %289 = vector.extract_strided_slice %259 {offsets = [0, 120], sizes = [1, 8], strides = [1, 1]} : vector<1x128xf32> to vector<1x8xf32>
    %290 = arith.addf %288, %289 : vector<1x8xf32>
    %cst_137 = arith.constant 4.8828125E-4 : f32
    %291 = vector.broadcast %cst_137 : f32 to vector<1x8xf32>
    %292 = arith.mulf %290, %291 : vector<1x8xf32>
    %293 = tpu.concatenate %292, %292, %292, %292, %292, %292, %292, %292, %292, %292, %292, %292, %292, %292, %292, %292 in 1 : vector<1x8xf32>, vector<1x8xf32>, vector<1x8xf32>, vector<1x8xf32>, vector<1x8xf32>, vector<1x8xf32>, vector<1x8xf32>, vector<1x8xf32>, vector<1x8xf32>, vector<1x8xf32>, vector<1x8xf32>, vector<1x8xf32>, vector<1x8xf32>, vector<1x8xf32>, vector<1x8xf32>, vector<1x8xf32> -> vector<1x128xf32>
    %294 = vector.broadcast %293 : vector<1x128xf32> to vector<128x128xf32>
    %295 = arith.subf %257, %294 : vector<128x128xf32>
    %296 = arith.mulf %295, %295 : vector<128x128xf32>
    %cst_138 = arith.constant dense<0.000000e+00> : vector<128xf32>
    %297 = vector.multi_reduction <add>, %296, %cst_138 [0] : vector<128x128xf32> to vector<128xf32>
    %298 = vector.shape_cast %297 : vector<128xf32> to vector<1x128xf32>
    %299 = vector.extract_strided_slice %298 {offsets = [0, 0], sizes = [1, 8], strides = [1, 1]} : vector<1x128xf32> to vector<1x8xf32>
    %300 = vector.extract_strided_slice %298 {offsets = [0, 8], sizes = [1, 8], strides = [1, 1]} : vector<1x128xf32> to vector<1x8xf32>
    %301 = arith.addf %299, %300 : vector<1x8xf32>
    %302 = vector.extract_strided_slice %298 {offsets = [0, 16], sizes = [1, 8], strides = [1, 1]} : vector<1x128xf32> to vector<1x8xf32>
    %303 = arith.addf %301, %302 : vector<1x8xf32>
    %304 = vector.extract_strided_slice %298 {offsets = [0, 24], sizes = [1, 8], strides = [1, 1]} : vector<1x128xf32> to vector<1x8xf32>
    %305 = arith.addf %303, %304 : vector<1x8xf32>
    %306 = vector.extract_strided_slice %298 {offsets = [0, 32], sizes = [1, 8], strides = [1, 1]} : vector<1x128xf32> to vector<1x8xf32>
    %307 = arith.addf %305, %306 : vector<1x8xf32>
    %308 = vector.extract_strided_slice %298 {offsets = [0, 40], sizes = [1, 8], strides = [1, 1]} : vector<1x128xf32> to vector<1x8xf32>
    %309 = arith.addf %307, %308 : vector<1x8xf32>
    %310 = vector.extract_strided_slice %298 {offsets = [0, 48], sizes = [1, 8], strides = [1, 1]} : vector<1x128xf32> to vector<1x8xf32>
    %311 = arith.addf %309, %310 : vector<1x8xf32>
    %312 = vector.extract_strided_slice %298 {offsets = [0, 56], sizes = [1, 8], strides = [1, 1]} : vector<1x128xf32> to vector<1x8xf32>
    %313 = arith.addf %311, %312 : vector<1x8xf32>
    %314 = vector.extract_strided_slice %298 {offsets = [0, 64], sizes = [1, 8], strides = [1, 1]} : vector<1x128xf32> to vector<1x8xf32>
    %315 = arith.addf %313, %314 : vector<1x8xf32>
    %316 = vector.extract_strided_slice %298 {offsets = [0, 72], sizes = [1, 8], strides = [1, 1]} : vector<1x128xf32> to vector<1x8xf32>
    %317 = arith.addf %315, %316 : vector<1x8xf32>
    %318 = vector.extract_strided_slice %298 {offsets = [0, 80], sizes = [1, 8], strides = [1, 1]} : vector<1x128xf32> to vector<1x8xf32>
    %319 = arith.addf %317, %318 : vector<1x8xf32>
    %320 = vector.extract_strided_slice %298 {offsets = [0, 88], sizes = [1, 8], strides = [1, 1]} : vector<1x128xf32> to vector<1x8xf32>
    %321 = arith.addf %319, %320 : vector<1x8xf32>
    %322 = vector.extract_strided_slice %298 {offsets = [0, 96], sizes = [1, 8], strides = [1, 1]} : vector<1x128xf32> to vector<1x8xf32>
    %323 = arith.addf %321, %322 : vector<1x8xf32>
    %324 = vector.extract_strided_slice %298 {offsets = [0, 104], sizes = [1, 8], strides = [1, 1]} : vector<1x128xf32> to vector<1x8xf32>
    %325 = arith.addf %323, %324 : vector<1x8xf32>
    %326 = vector.extract_strided_slice %298 {offsets = [0, 112], sizes = [1, 8], strides = [1, 1]} : vector<1x128xf32> to vector<1x8xf32>
    %327 = arith.addf %325, %326 : vector<1x8xf32>
    %328 = vector.extract_strided_slice %298 {offsets = [0, 120], sizes = [1, 8], strides = [1, 1]} : vector<1x128xf32> to vector<1x8xf32>
    %329 = arith.addf %327, %328 : vector<1x8xf32>
    %cst_139 = arith.constant 4.8828125E-4 : f32
    %330 = vector.broadcast %cst_139 : f32 to vector<1x8xf32>
    %331 = arith.mulf %329, %330 : vector<1x8xf32>
    %cst_140 = arith.constant 9.99999974E-6 : f32
    %332 = vector.broadcast %cst_140 : f32 to vector<1x8xf32>
    %333 = arith.addf %331, %332 : vector<1x8xf32>
    %334 = math.rsqrt %333 : vector<1x8xf32>
    %335 = tpu.concatenate %334, %334, %334, %334, %334, %334, %334, %334, %334, %334, %334, %334, %334, %334, %334, %334 in 1 : vector<1x8xf32>, vector<1x8xf32>, vector<1x8xf32>, vector<1x8xf32>, vector<1x8xf32>, vector<1x8xf32>, vector<1x8xf32>, vector<1x8xf32>, vector<1x8xf32>, vector<1x8xf32>, vector<1x8xf32>, vector<1x8xf32>, vector<1x8xf32>, vector<1x8xf32>, vector<1x8xf32>, vector<1x8xf32> -> vector<1x128xf32>
    %336 = vector.broadcast %335 : vector<1x128xf32> to vector<128x128xf32>
    %337 = arith.mulf %295, %336 : vector<128x128xf32>
    %cst_141 = arith.constant 2.000000e-01 : f32
    %338 = vector.broadcast %cst_141 : f32 to vector<128x128xf32>
    %339 = arith.mulf %338, %337 : vector<128x128xf32>
    %340 = arith.maximumf %337, %339 : vector<128x128xf32>
    %cst_142 = arith.constant 0.000000e+00 : f32
    %341 = vector.broadcast %cst_142 : f32 to vector<8x128xf32>
    %c0_143 = arith.constant 0 : index
    %c0_144 = arith.constant 0 : index
    %342 = vector.load %arg13[%c0_143, %c0_144] : memref<272x256xf32, #tpu.memory_space<vmem>>, vector<8x128xf32>
    tpu.vector_store %arg13[%c0_143, %c0_144], %341 {strides = array<i32>} : memref<272x256xf32, #tpu.memory_space<vmem>>, vector<8x128xf32>,
    %343 = vector.extract_strided_slice %340 {offsets = [0, 0], sizes = [8, 128], strides = [1, 1]} : vector<128x128xf32> to vector<8x128xf32>
    %c8_145 = arith.constant 8 : index
    %c0_146 = arith.constant 0 : index
    %344 = vector.load %arg13[%c8_145, %c0_146] : memref<272x256xf32, #tpu.memory_space<vmem>>, vector<8x128xf32>
    tpu.vector_store %arg13[%c8_145, %c0_146], %343 {strides = array<i32>} : memref<272x256xf32, #tpu.memory_space<vmem>>, vector<8x128xf32>,
    %c16_147 = arith.constant 16 : index
    %c0_148 = arith.constant 0 : index
    %345 = vector.load %arg13[%c16_147, %c0_148] : memref<272x256xf32, #tpu.memory_space<vmem>>, vector<8x128xf32>
    tpu.vector_store %arg13[%c16_147, %c0_148], %343 {strides = array<i32>} : memref<272x256xf32, #tpu.memory_space<vmem>>, vector<8x128xf32>,
    %346 = vector.extract_strided_slice %340 {offsets = [8, 0], sizes = [8, 128], strides = [1, 1]} : vector<128x128xf32> to vector<8x128xf32>
    %c24_149 = arith.constant 24 : index
    %c0_150 = arith.constant 0 : index
    %347 = vector.load %arg13[%c24_149, %c0_150] : memref<272x256xf32, #tpu.memory_space<vmem>>, vector<8x128xf32>
    tpu.vector_store %arg13[%c24_149, %c0_150], %346 {strides = array<i32>} : memref<272x256xf32, #tpu.memory_space<vmem>>, vector<8x128xf32>,
    %c32_151 = arith.constant 32 : index
    %c0_152 = arith.constant 0 : index
    %348 = vector.load %arg13[%c32_151, %c0_152] : memref<272x256xf32, #tpu.memory_space<vmem>>, vector<8x128xf32>
    tpu.vector_store %arg13[%c32_151, %c0_152], %346 {strides = array<i32>} : memref<272x256xf32, #tpu.memory_space<vmem>>, vector<8x128xf32>,
    %349 = vector.extract_strided_slice %340 {offsets = [16, 0], sizes = [8, 128], strides = [1, 1]} : vector<128x128xf32> to vector<8x128xf32>
    %c40_153 = arith.constant 40 : index
    %c0_154 = arith.constant 0 : index
    %350 = vector.load %arg13[%c40_153, %c0_154] : memref<272x256xf32, #tpu.memory_space<vmem>>, vector<8x128xf32>
    tpu.vector_store %arg13[%c40_153, %c0_154], %349 {strides = array<i32>} : memref<272x256xf32, #tpu.memory_space<vmem>>, vector<8x128xf32>,
    %c48_155 = arith.constant 48 : index
    %c0_156 = arith.constant 0 : index
    %351 = vector.load %arg13[%c48_155, %c0_156] : memref<272x256xf32, #tpu.memory_space<vmem>>, vector<8x128xf32>
    tpu.vector_store %arg13[%c48_155, %c0_156], %349 {strides = array<i32>} : memref<272x256xf32, #tpu.memory_space<vmem>>, vector<8x128xf32>,
    %352 = vector.extract_strided_slice %340 {offsets = [24, 0], sizes = [8, 128], strides = [1, 1]} : vector<128x128xf32> to vector<8x128xf32>
    %c56_157 = arith.constant 56 : index
    %c0_158 = arith.constant 0 : index
    %353 = vector.load %arg13[%c56_157, %c0_158] : memref<272x256xf32, #tpu.memory_space<vmem>>, vector<8x128xf32>
    tpu.vector_store %arg13[%c56_157, %c0_158], %352 {strides = array<i32>} : memref<272x256xf32, #tpu.memory_space<vmem>>, vector<8x128xf32>,
    %c64_159 = arith.constant 64 : index
    %c0_160 = arith.constant 0 : index
    %354 = vector.load %arg13[%c64_159, %c0_160] : memref<272x256xf32, #tpu.memory_space<vmem>>, vector<8x128xf32>
    tpu.vector_store %arg13[%c64_159, %c0_160], %352 {strides = array<i32>} : memref<272x256xf32, #tpu.memory_space<vmem>>, vector<8x128xf32>,
    %355 = vector.extract_strided_slice %340 {offsets = [32, 0], sizes = [8, 128], strides = [1, 1]} : vector<128x128xf32> to vector<8x128xf32>
    %c72_161 = arith.constant 72 : index
    %c0_162 = arith.constant 0 : index
    %356 = vector.load %arg13[%c72_161, %c0_162] : memref<272x256xf32, #tpu.memory_space<vmem>>, vector<8x128xf32>
    tpu.vector_store %arg13[%c72_161, %c0_162], %355 {strides = array<i32>} : memref<272x256xf32, #tpu.memory_space<vmem>>, vector<8x128xf32>,
    %c80_163 = arith.constant 80 : index
    %c0_164 = arith.constant 0 : index
    %357 = vector.load %arg13[%c80_163, %c0_164] : memref<272x256xf32, #tpu.memory_space<vmem>>, vector<8x128xf32>
    tpu.vector_store %arg13[%c80_163, %c0_164], %355 {strides = array<i32>} : memref<272x256xf32, #tpu.memory_space<vmem>>, vector<8x128xf32>,
    %358 = vector.extract_strided_slice %340 {offsets = [40, 0], sizes = [8, 128], strides = [1, 1]} : vector<128x128xf32> to vector<8x128xf32>
    %c88_165 = arith.constant 88 : index
    %c0_166 = arith.constant 0 : index
    %359 = vector.load %arg13[%c88_165, %c0_166] : memref<272x256xf32, #tpu.memory_space<vmem>>, vector<8x128xf32>
    tpu.vector_store %arg13[%c88_165, %c0_166], %358 {strides = array<i32>} : memref<272x256xf32, #tpu.memory_space<vmem>>, vector<8x128xf32>,
    %c96_167 = arith.constant 96 : index
    %c0_168 = arith.constant 0 : index
    %360 = vector.load %arg13[%c96_167, %c0_168] : memref<272x256xf32, #tpu.memory_space<vmem>>, vector<8x128xf32>
    tpu.vector_store %arg13[%c96_167, %c0_168], %358 {strides = array<i32>} : memref<272x256xf32, #tpu.memory_space<vmem>>, vector<8x128xf32>,
    %361 = vector.extract_strided_slice %340 {offsets = [48, 0], sizes = [8, 128], strides = [1, 1]} : vector<128x128xf32> to vector<8x128xf32>
    %c104_169 = arith.constant 104 : index
    %c0_170 = arith.constant 0 : index
    %362 = vector.load %arg13[%c104_169, %c0_170] : memref<272x256xf32, #tpu.memory_space<vmem>>, vector<8x128xf32>
    tpu.vector_store %arg13[%c104_169, %c0_170], %361 {strides = array<i32>} : memref<272x256xf32, #tpu.memory_space<vmem>>, vector<8x128xf32>,
    %c112_171 = arith.constant 112 : index
    %c0_172 = arith.constant 0 : index
    %363 = vector.load %arg13[%c112_171, %c0_172] : memref<272x256xf32, #tpu.memory_space<vmem>>, vector<8x128xf32>
    tpu.vector_store %arg13[%c112_171, %c0_172], %361 {strides = array<i32>} : memref<272x256xf32, #tpu.memory_space<vmem>>, vector<8x128xf32>,
    %364 = vector.extract_strided_slice %340 {offsets = [56, 0], sizes = [8, 128], strides = [1, 1]} : vector<128x128xf32> to vector<8x128xf32>
    %c120_173 = arith.constant 120 : index
    %c0_174 = arith.constant 0 : index
    %365 = vector.load %arg13[%c120_173, %c0_174] : memref<272x256xf32, #tpu.memory_space<vmem>>, vector<8x128xf32>
    tpu.vector_store %arg13[%c120_173, %c0_174], %364 {strides = array<i32>} : memref<272x256xf32, #tpu.memory_space<vmem>>, vector<8x128xf32>,
    %c128_175 = arith.constant 128 : index
    %c0_176 = arith.constant 0 : index
    %366 = vector.load %arg13[%c128_175, %c0_176] : memref<272x256xf32, #tpu.memory_space<vmem>>, vector<8x128xf32>
    tpu.vector_store %arg13[%c128_175, %c0_176], %364 {strides = array<i32>} : memref<272x256xf32, #tpu.memory_space<vmem>>, vector<8x128xf32>,
    %367 = vector.extract_strided_slice %340 {offsets = [64, 0], sizes = [8, 128], strides = [1, 1]} : vector<128x128xf32> to vector<8x128xf32>
    %c136_177 = arith.constant 136 : index
    %c0_178 = arith.constant 0 : index
    %368 = vector.load %arg13[%c136_177, %c0_178] : memref<272x256xf32, #tpu.memory_space<vmem>>, vector<8x128xf32>
    tpu.vector_store %arg13[%c136_177, %c0_178], %367 {strides = array<i32>} : memref<272x256xf32, #tpu.memory_space<vmem>>, vector<8x128xf32>,
    %c144 = arith.constant 144 : index
    %c0_179 = arith.constant 0 : index
    %369 = vector.load %arg13[%c144, %c0_179] : memref<272x256xf32, #tpu.memory_space<vmem>>, vector<8x128xf32>
    tpu.vector_store %arg13[%c144, %c0_179], %367 {strides = array<i32>} : memref<272x256xf32, #tpu.memory_space<vmem>>, vector<8x128xf32>,
    %370 = vector.extract_strided_slice %340 {offsets = [72, 0], sizes = [8, 128], strides = [1, 1]} : vector<128x128xf32> to vector<8x128xf32>
    %c152 = arith.constant 152 : index
    %c0_180 = arith.constant 0 : index
    %371 = vector.load %arg13[%c152, %c0_180] : memref<272x256xf32, #tpu.memory_space<vmem>>, vector<8x128xf32>
    tpu.vector_store %arg13[%c152, %c0_180], %370 {strides = array<i32>} : memref<272x256xf32, #tpu.memory_space<vmem>>, vector<8x128xf32>,
    %c160 = arith.constant 160 : index
    %c0_181 = arith.constant 0 : index
    %372 = vector.load %arg13[%c160, %c0_181] : memref<272x256xf32, #tpu.memory_space<vmem>>, vector<8x128xf32>
    tpu.vector_store %arg13[%c160, %c0_181], %370 {strides = array<i32>} : memref<272x256xf32, #tpu.memory_space<vmem>>, vector<8x128xf32>,
    %373 = vector.extract_strided_slice %340 {offsets = [80, 0], sizes = [8, 128], strides = [1, 1]} : vector<128x128xf32> to vector<8x128xf32>
    %c168 = arith.constant 168 : index
    %c0_182 = arith.constant 0 : index
    %374 = vector.load %arg13[%c168, %c0_182] : memref<272x256xf32, #tpu.memory_space<vmem>>, vector<8x128xf32>
    tpu.vector_store %arg13[%c168, %c0_182], %373 {strides = array<i32>} : memref<272x256xf32, #tpu.memory_space<vmem>>, vector<8x128xf32>,
    %c176 = arith.constant 176 : index
    %c0_183 = arith.constant 0 : index
    %375 = vector.load %arg13[%c176, %c0_183] : memref<272x256xf32, #tpu.memory_space<vmem>>, vector<8x128xf32>
    tpu.vector_store %arg13[%c176, %c0_183], %373 {strides = array<i32>} : memref<272x256xf32, #tpu.memory_space<vmem>>, vector<8x128xf32>,
    %376 = vector.extract_strided_slice %340 {offsets = [88, 0], sizes = [8, 128], strides = [1, 1]} : vector<128x128xf32> to vector<8x128xf32>
    %c184 = arith.constant 184 : index
    %c0_184 = arith.constant 0 : index
    %377 = vector.load %arg13[%c184, %c0_184] : memref<272x256xf32, #tpu.memory_space<vmem>>, vector<8x128xf32>
    tpu.vector_store %arg13[%c184, %c0_184], %376 {strides = array<i32>} : memref<272x256xf32, #tpu.memory_space<vmem>>, vector<8x128xf32>,
    %c192 = arith.constant 192 : index
    %c0_185 = arith.constant 0 : index
    %378 = vector.load %arg13[%c192, %c0_185] : memref<272x256xf32, #tpu.memory_space<vmem>>, vector<8x128xf32>
    tpu.vector_store %arg13[%c192, %c0_185], %376 {strides = array<i32>} : memref<272x256xf32, #tpu.memory_space<vmem>>, vector<8x128xf32>,
    %379 = vector.extract_strided_slice %340 {offsets = [96, 0], sizes = [8, 128], strides = [1, 1]} : vector<128x128xf32> to vector<8x128xf32>
    %c200 = arith.constant 200 : index
    %c0_186 = arith.constant 0 : index
    %380 = vector.load %arg13[%c200, %c0_186] : memref<272x256xf32, #tpu.memory_space<vmem>>, vector<8x128xf32>
    tpu.vector_store %arg13[%c200, %c0_186], %379 {strides = array<i32>} : memref<272x256xf32, #tpu.memory_space<vmem>>, vector<8x128xf32>,
    %c208 = arith.constant 208 : index
    %c0_187 = arith.constant 0 : index
    %381 = vector.load %arg13[%c208, %c0_187] : memref<272x256xf32, #tpu.memory_space<vmem>>, vector<8x128xf32>
    tpu.vector_store %arg13[%c208, %c0_187], %379 {strides = array<i32>} : memref<272x256xf32, #tpu.memory_space<vmem>>, vector<8x128xf32>,
    %382 = vector.extract_strided_slice %340 {offsets = [104, 0], sizes = [8, 128], strides = [1, 1]} : vector<128x128xf32> to vector<8x128xf32>
    %c216 = arith.constant 216 : index
    %c0_188 = arith.constant 0 : index
    %383 = vector.load %arg13[%c216, %c0_188] : memref<272x256xf32, #tpu.memory_space<vmem>>, vector<8x128xf32>
    tpu.vector_store %arg13[%c216, %c0_188], %382 {strides = array<i32>} : memref<272x256xf32, #tpu.memory_space<vmem>>, vector<8x128xf32>,
    %c224 = arith.constant 224 : index
    %c0_189 = arith.constant 0 : index
    %384 = vector.load %arg13[%c224, %c0_189] : memref<272x256xf32, #tpu.memory_space<vmem>>, vector<8x128xf32>
    tpu.vector_store %arg13[%c224, %c0_189], %382 {strides = array<i32>} : memref<272x256xf32, #tpu.memory_space<vmem>>, vector<8x128xf32>,
    %385 = vector.extract_strided_slice %340 {offsets = [112, 0], sizes = [8, 128], strides = [1, 1]} : vector<128x128xf32> to vector<8x128xf32>
    %c232 = arith.constant 232 : index
    %c0_190 = arith.constant 0 : index
    %386 = vector.load %arg13[%c232, %c0_190] : memref<272x256xf32, #tpu.memory_space<vmem>>, vector<8x128xf32>
    tpu.vector_store %arg13[%c232, %c0_190], %385 {strides = array<i32>} : memref<272x256xf32, #tpu.memory_space<vmem>>, vector<8x128xf32>,
    %c240 = arith.constant 240 : index
    %c0_191 = arith.constant 0 : index
    %387 = vector.load %arg13[%c240, %c0_191] : memref<272x256xf32, #tpu.memory_space<vmem>>, vector<8x128xf32>
    tpu.vector_store %arg13[%c240, %c0_191], %385 {strides = array<i32>} : memref<272x256xf32, #tpu.memory_space<vmem>>, vector<8x128xf32>,
    %388 = vector.extract_strided_slice %340 {offsets = [120, 0], sizes = [8, 128], strides = [1, 1]} : vector<128x128xf32> to vector<8x128xf32>
    %c248 = arith.constant 248 : index
    %c0_192 = arith.constant 0 : index
    %389 = vector.load %arg13[%c248, %c0_192] : memref<272x256xf32, #tpu.memory_space<vmem>>, vector<8x128xf32>
    tpu.vector_store %arg13[%c248, %c0_192], %388 {strides = array<i32>} : memref<272x256xf32, #tpu.memory_space<vmem>>, vector<8x128xf32>,
    %c256 = arith.constant 256 : index
    %c0_193 = arith.constant 0 : index
    %390 = vector.load %arg13[%c256, %c0_193] : memref<272x256xf32, #tpu.memory_space<vmem>>, vector<8x128xf32>
    tpu.vector_store %arg13[%c256, %c0_193], %388 {strides = array<i32>} : memref<272x256xf32, #tpu.memory_space<vmem>>, vector<8x128xf32>,
    %c264 = arith.constant 264 : index
    %c0_194 = arith.constant 0 : index
    %391 = vector.load %arg13[%c264, %c0_194] : memref<272x256xf32, #tpu.memory_space<vmem>>, vector<8x128xf32>
    tpu.vector_store %arg13[%c264, %c0_194], %341 {strides = array<i32>} : memref<272x256xf32, #tpu.memory_space<vmem>>, vector<8x128xf32>,
    %c0_195 = arith.constant 0 : index
    %c0_196 = arith.constant 0 : index
    %392 = vector.load %arg13[%c0_195, %c0_196] : memref<272x256xf32, #tpu.memory_space<vmem>>, vector<256x128xf32>
    %393 = arith.truncf %392 : vector<256x128xf32> to vector<256x128xbf16>
    %c8_197 = arith.constant 8 : index
    %c0_198 = arith.constant 0 : index
    %394 = vector.load %arg13[%c8_197, %c0_198] : memref<272x256xf32, #tpu.memory_space<vmem>>, vector<256x128xf32>
    %395 = arith.truncf %394 : vector<256x128xf32> to vector<256x128xbf16>
    %c16_199 = arith.constant 16 : index
    %c0_200 = arith.constant 0 : index
    %396 = vector.load %arg13[%c16_199, %c0_200] : memref<272x256xf32, #tpu.memory_space<vmem>>, vector<256x128xf32>
    %397 = arith.truncf %396 : vector<256x128xf32> to vector<256x128xbf16>
    %398 = tpu.concatenate %393, %395, %397 in 1 : vector<256x128xbf16>, vector<256x128xbf16>, vector<256x128xbf16> -> vector<256x384xbf16>
    %c0_201 = arith.constant 0 : index
    %c0_202 = arith.constant 0 : index
    %399 = vector.load %arg9[%c0_201, %c0_202] : memref<384x256xbf16, #tpu.memory_space<vmem>>, vector<384x256xbf16>
    %cst_203 = arith.constant dense<0.000000e+00> : vector<256x256xf32>
    %400 = tpu.matmul %398, %399, %cst_203 {dimension_numbers = #tpu.dot_dimension_numbers<[1], [0], [0], [1], [0, 0, 1, 1], [], []>} : vector<256x384xbf16>, vector<384x256xbf16>, vector<256x256xf32> -> vector<256x256xf32>
    %cst_204 = arith.constant dense<0.000000e+00> : vector<256xf32>
    %401 = vector.multi_reduction <add>, %400, %cst_204 [0] : vector<256x256xf32> to vector<256xf32>
    %402 = vector.shape_cast %401 : vector<256xf32> to vector<1x256xf32>
    %403 = vector.extract_strided_slice %402 {offsets = [0, 0], sizes = [1, 8], strides = [1, 1]} : vector<1x256xf32> to vector<1x8xf32>
    %404 = vector.extract_strided_slice %402 {offsets = [0, 8], sizes = [1, 8], strides = [1, 1]} : vector<1x256xf32> to vector<1x8xf32>
    %405 = arith.addf %403, %404 : vector<1x8xf32>
    %406 = vector.extract_strided_slice %402 {offsets = [0, 16], sizes = [1, 8], strides = [1, 1]} : vector<1x256xf32> to vector<1x8xf32>
    %407 = arith.addf %405, %406 : vector<1x8xf32>
    %408 = vector.extract_strided_slice %402 {offsets = [0, 24], sizes = [1, 8], strides = [1, 1]} : vector<1x256xf32> to vector<1x8xf32>
    %409 = arith.addf %407, %408 : vector<1x8xf32>
    %410 = vector.extract_strided_slice %402 {offsets = [0, 32], sizes = [1, 8], strides = [1, 1]} : vector<1x256xf32> to vector<1x8xf32>
    %411 = arith.addf %409, %410 : vector<1x8xf32>
    %412 = vector.extract_strided_slice %402 {offsets = [0, 40], sizes = [1, 8], strides = [1, 1]} : vector<1x256xf32> to vector<1x8xf32>
    %413 = arith.addf %411, %412 : vector<1x8xf32>
    %414 = vector.extract_strided_slice %402 {offsets = [0, 48], sizes = [1, 8], strides = [1, 1]} : vector<1x256xf32> to vector<1x8xf32>
    %415 = arith.addf %413, %414 : vector<1x8xf32>
    %416 = vector.extract_strided_slice %402 {offsets = [0, 56], sizes = [1, 8], strides = [1, 1]} : vector<1x256xf32> to vector<1x8xf32>
    %417 = arith.addf %415, %416 : vector<1x8xf32>
    %418 = vector.extract_strided_slice %402 {offsets = [0, 64], sizes = [1, 8], strides = [1, 1]} : vector<1x256xf32> to vector<1x8xf32>
    %419 = arith.addf %417, %418 : vector<1x8xf32>
    %420 = vector.extract_strided_slice %402 {offsets = [0, 72], sizes = [1, 8], strides = [1, 1]} : vector<1x256xf32> to vector<1x8xf32>
    %421 = arith.addf %419, %420 : vector<1x8xf32>
    %422 = vector.extract_strided_slice %402 {offsets = [0, 80], sizes = [1, 8], strides = [1, 1]} : vector<1x256xf32> to vector<1x8xf32>
    %423 = arith.addf %421, %422 : vector<1x8xf32>
    %424 = vector.extract_strided_slice %402 {offsets = [0, 88], sizes = [1, 8], strides = [1, 1]} : vector<1x256xf32> to vector<1x8xf32>
    %425 = arith.addf %423, %424 : vector<1x8xf32>
    %426 = vector.extract_strided_slice %402 {offsets = [0, 96], sizes = [1, 8], strides = [1, 1]} : vector<1x256xf32> to vector<1x8xf32>
    %427 = arith.addf %425, %426 : vector<1x8xf32>
    %428 = vector.extract_strided_slice %402 {offsets = [0, 104], sizes = [1, 8], strides = [1, 1]} : vector<1x256xf32> to vector<1x8xf32>
    %429 = arith.addf %427, %428 : vector<1x8xf32>
    %430 = vector.extract_strided_slice %402 {offsets = [0, 112], sizes = [1, 8], strides = [1, 1]} : vector<1x256xf32> to vector<1x8xf32>
    %431 = arith.addf %429, %430 : vector<1x8xf32>
    %432 = vector.extract_strided_slice %402 {offsets = [0, 120], sizes = [1, 8], strides = [1, 1]} : vector<1x256xf32> to vector<1x8xf32>
    %433 = arith.addf %431, %432 : vector<1x8xf32>
    %434 = vector.extract_strided_slice %402 {offsets = [0, 128], sizes = [1, 8], strides = [1, 1]} : vector<1x256xf32> to vector<1x8xf32>
    %435 = arith.addf %433, %434 : vector<1x8xf32>
    %436 = vector.extract_strided_slice %402 {offsets = [0, 136], sizes = [1, 8], strides = [1, 1]} : vector<1x256xf32> to vector<1x8xf32>
    %437 = arith.addf %435, %436 : vector<1x8xf32>
    %438 = vector.extract_strided_slice %402 {offsets = [0, 144], sizes = [1, 8], strides = [1, 1]} : vector<1x256xf32> to vector<1x8xf32>
    %439 = arith.addf %437, %438 : vector<1x8xf32>
    %440 = vector.extract_strided_slice %402 {offsets = [0, 152], sizes = [1, 8], strides = [1, 1]} : vector<1x256xf32> to vector<1x8xf32>
    %441 = arith.addf %439, %440 : vector<1x8xf32>
    %442 = vector.extract_strided_slice %402 {offsets = [0, 160], sizes = [1, 8], strides = [1, 1]} : vector<1x256xf32> to vector<1x8xf32>
    %443 = arith.addf %441, %442 : vector<1x8xf32>
    %444 = vector.extract_strided_slice %402 {offsets = [0, 168], sizes = [1, 8], strides = [1, 1]} : vector<1x256xf32> to vector<1x8xf32>
    %445 = arith.addf %443, %444 : vector<1x8xf32>
    %446 = vector.extract_strided_slice %402 {offsets = [0, 176], sizes = [1, 8], strides = [1, 1]} : vector<1x256xf32> to vector<1x8xf32>
    %447 = arith.addf %445, %446 : vector<1x8xf32>
    %448 = vector.extract_strided_slice %402 {offsets = [0, 184], sizes = [1, 8], strides = [1, 1]} : vector<1x256xf32> to vector<1x8xf32>
    %449 = arith.addf %447, %448 : vector<1x8xf32>
    %450 = vector.extract_strided_slice %402 {offsets = [0, 192], sizes = [1, 8], strides = [1, 1]} : vector<1x256xf32> to vector<1x8xf32>
    %451 = arith.addf %449, %450 : vector<1x8xf32>
    %452 = vector.extract_strided_slice %402 {offsets = [0, 200], sizes = [1, 8], strides = [1, 1]} : vector<1x256xf32> to vector<1x8xf32>
    %453 = arith.addf %451, %452 : vector<1x8xf32>
    %454 = vector.extract_strided_slice %402 {offsets = [0, 208], sizes = [1, 8], strides = [1, 1]} : vector<1x256xf32> to vector<1x8xf32>
    %455 = arith.addf %453, %454 : vector<1x8xf32>
    %456 = vector.extract_strided_slice %402 {offsets = [0, 216], sizes = [1, 8], strides = [1, 1]} : vector<1x256xf32> to vector<1x8xf32>
    %457 = arith.addf %455, %456 : vector<1x8xf32>
    %458 = vector.extract_strided_slice %402 {offsets = [0, 224], sizes = [1, 8], strides = [1, 1]} : vector<1x256xf32> to vector<1x8xf32>
    %459 = arith.addf %457, %458 : vector<1x8xf32>
    %460 = vector.extract_strided_slice %402 {offsets = [0, 232], sizes = [1, 8], strides = [1, 1]} : vector<1x256xf32> to vector<1x8xf32>
    %461 = arith.addf %459, %460 : vector<1x8xf32>
    %462 = vector.extract_strided_slice %402 {offsets = [0, 240], sizes = [1, 8], strides = [1, 1]} : vector<1x256xf32> to vector<1x8xf32>
    %463 = arith.addf %461, %462 : vector<1x8xf32>
    %464 = vector.extract_strided_slice %402 {offsets = [0, 248], sizes = [1, 8], strides = [1, 1]} : vector<1x256xf32> to vector<1x8xf32>
    %465 = arith.addf %463, %464 : vector<1x8xf32>
    %cst_205 = arith.constant 1.22070313E-4 : f32
    %466 = vector.broadcast %cst_205 : f32 to vector<1x8xf32>
    %467 = arith.mulf %465, %466 : vector<1x8xf32>
    %468 = tpu.concatenate %467, %467, %467, %467, %467, %467, %467, %467, %467, %467, %467, %467, %467, %467, %467, %467 in 1 : vector<1x8xf32>, vector<1x8xf32>, vector<1x8xf32>, vector<1x8xf32>, vector<1x8xf32>, vector<1x8xf32>, vector<1x8xf32>, vector<1x8xf32>, vector<1x8xf32>, vector<1x8xf32>, vector<1x8xf32>, vector<1x8xf32>, vector<1x8xf32>, vector<1x8xf32>, vector<1x8xf32>, vector<1x8xf32> -> vector<1x128xf32>
    %469 = tpu.concatenate %467, %467, %467, %467, %467, %467, %467, %467, %467, %467, %467, %467, %467, %467, %467, %467 in 1 : vector<1x8xf32>, vector<1x8xf32>, vector<1x8xf32>, vector<1x8xf32>, vector<1x8xf32>, vector<1x8xf32>, vector<1x8xf32>, vector<1x8xf32>, vector<1x8xf32>, vector<1x8xf32>, vector<1x8xf32>, vector<1x8xf32>, vector<1x8xf32>, vector<1x8xf32>, vector<1x8xf32>, vector<1x8xf32> -> vector<1x128xf32>
    %470 = tpu.concatenate %468, %469 in 1 : vector<1x128xf32>, vector<1x128xf32> -> vector<1x256xf32>
    %471 = vector.broadcast %470 : vector<1x256xf32> to vector<256x256xf32>
    %472 = arith.subf %400, %471 : vector<256x256xf32>
    %473 = arith.mulf %472, %472 : vector<256x256xf32>
    %cst_206 = arith.constant dense<0.000000e+00> : vector<256xf32>
    %474 = vector.multi_reduction <add>, %473, %cst_206 [0] : vector<256x256xf32> to vector<256xf32>
    %475 = vector.shape_cast %474 : vector<256xf32> to vector<1x256xf32>
    %476 = vector.extract_strided_slice %475 {offsets = [0, 0], sizes = [1, 8], strides = [1, 1]} : vector<1x256xf32> to vector<1x8xf32>
    %477 = vector.extract_strided_slice %475 {offsets = [0, 8], sizes = [1, 8], strides = [1, 1]} : vector<1x256xf32> to vector<1x8xf32>
    %478 = arith.addf %476, %477 : vector<1x8xf32>
    %479 = vector.extract_strided_slice %475 {offsets = [0, 16], sizes = [1, 8], strides = [1, 1]} : vector<1x256xf32> to vector<1x8xf32>
    %480 = arith.addf %478, %479 : vector<1x8xf32>
    %481 = vector.extract_strided_slice %475 {offsets = [0, 24], sizes = [1, 8], strides = [1, 1]} : vector<1x256xf32> to vector<1x8xf32>
    %482 = arith.addf %480, %481 : vector<1x8xf32>
    %483 = vector.extract_strided_slice %475 {offsets = [0, 32], sizes = [1, 8], strides = [1, 1]} : vector<1x256xf32> to vector<1x8xf32>
    %484 = arith.addf %482, %483 : vector<1x8xf32>
    %485 = vector.extract_strided_slice %475 {offsets = [0, 40], sizes = [1, 8], strides = [1, 1]} : vector<1x256xf32> to vector<1x8xf32>
    %486 = arith.addf %484, %485 : vector<1x8xf32>
    %487 = vector.extract_strided_slice %475 {offsets = [0, 48], sizes = [1, 8], strides = [1, 1]} : vector<1x256xf32> to vector<1x8xf32>
    %488 = arith.addf %486, %487 : vector<1x8xf32>
    %489 = vector.extract_strided_slice %475 {offsets = [0, 56], sizes = [1, 8], strides = [1, 1]} : vector<1x256xf32> to vector<1x8xf32>
    %490 = arith.addf %488, %489 : vector<1x8xf32>
    %491 = vector.extract_strided_slice %475 {offsets = [0, 64], sizes = [1, 8], strides = [1, 1]} : vector<1x256xf32> to vector<1x8xf32>
    %492 = arith.addf %490, %491 : vector<1x8xf32>
    %493 = vector.extract_strided_slice %475 {offsets = [0, 72], sizes = [1, 8], strides = [1, 1]} : vector<1x256xf32> to vector<1x8xf32>
    %494 = arith.addf %492, %493 : vector<1x8xf32>
    %495 = vector.extract_strided_slice %475 {offsets = [0, 80], sizes = [1, 8], strides = [1, 1]} : vector<1x256xf32> to vector<1x8xf32>
    %496 = arith.addf %494, %495 : vector<1x8xf32>
    %497 = vector.extract_strided_slice %475 {offsets = [0, 88], sizes = [1, 8], strides = [1, 1]} : vector<1x256xf32> to vector<1x8xf32>
    %498 = arith.addf %496, %497 : vector<1x8xf32>
    %499 = vector.extract_strided_slice %475 {offsets = [0, 96], sizes = [1, 8], strides = [1, 1]} : vector<1x256xf32> to vector<1x8xf32>
    %500 = arith.addf %498, %499 : vector<1x8xf32>
    %501 = vector.extract_strided_slice %475 {offsets = [0, 104], sizes = [1, 8], strides = [1, 1]} : vector<1x256xf32> to vector<1x8xf32>
    %502 = arith.addf %500, %501 : vector<1x8xf32>
    %503 = vector.extract_strided_slice %475 {offsets = [0, 112], sizes = [1, 8], strides = [1, 1]} : vector<1x256xf32> to vector<1x8xf32>
    %504 = arith.addf %502, %503 : vector<1x8xf32>
    %505 = vector.extract_strided_slice %475 {offsets = [0, 120], sizes = [1, 8], strides = [1, 1]} : vector<1x256xf32> to vector<1x8xf32>
    %506 = arith.addf %504, %505 : vector<1x8xf32>
    %507 = vector.extract_strided_slice %475 {offsets = [0, 128], sizes = [1, 8], strides = [1, 1]} : vector<1x256xf32> to vector<1x8xf32>
    %508 = arith.addf %506, %507 : vector<1x8xf32>
    %509 = vector.extract_strided_slice %475 {offsets = [0, 136], sizes = [1, 8], strides = [1, 1]} : vector<1x256xf32> to vector<1x8xf32>
    %510 = arith.addf %508, %509 : vector<1x8xf32>
    %511 = vector.extract_strided_slice %475 {offsets = [0, 144], sizes = [1, 8], strides = [1, 1]} : vector<1x256xf32> to vector<1x8xf32>
    %512 = arith.addf %510, %511 : vector<1x8xf32>
    %513 = vector.extract_strided_slice %475 {offsets = [0, 152], sizes = [1, 8], strides = [1, 1]} : vector<1x256xf32> to vector<1x8xf32>
    %514 = arith.addf %512, %513 : vector<1x8xf32>
    %515 = vector.extract_strided_slice %475 {offsets = [0, 160], sizes = [1, 8], strides = [1, 1]} : vector<1x256xf32> to vector<1x8xf32>
    %516 = arith.addf %514, %515 : vector<1x8xf32>
    %517 = vector.extract_strided_slice %475 {offsets = [0, 168], sizes = [1, 8], strides = [1, 1]} : vector<1x256xf32> to vector<1x8xf32>
    %518 = arith.addf %516, %517 : vector<1x8xf32>
    %519 = vector.extract_strided_slice %475 {offsets = [0, 176], sizes = [1, 8], strides = [1, 1]} : vector<1x256xf32> to vector<1x8xf32>
    %520 = arith.addf %518, %519 : vector<1x8xf32>
    %521 = vector.extract_strided_slice %475 {offsets = [0, 184], sizes = [1, 8], strides = [1, 1]} : vector<1x256xf32> to vector<1x8xf32>
    %522 = arith.addf %520, %521 : vector<1x8xf32>
    %523 = vector.extract_strided_slice %475 {offsets = [0, 192], sizes = [1, 8], strides = [1, 1]} : vector<1x256xf32> to vector<1x8xf32>
    %524 = arith.addf %522, %523 : vector<1x8xf32>
    %525 = vector.extract_strided_slice %475 {offsets = [0, 200], sizes = [1, 8], strides = [1, 1]} : vector<1x256xf32> to vector<1x8xf32>
    %526 = arith.addf %524, %525 : vector<1x8xf32>
    %527 = vector.extract_strided_slice %475 {offsets = [0, 208], sizes = [1, 8], strides = [1, 1]} : vector<1x256xf32> to vector<1x8xf32>
    %528 = arith.addf %526, %527 : vector<1x8xf32>
    %529 = vector.extract_strided_slice %475 {offsets = [0, 216], sizes = [1, 8], strides = [1, 1]} : vector<1x256xf32> to vector<1x8xf32>
    %530 = arith.addf %528, %529 : vector<1x8xf32>
    %531 = vector.extract_strided_slice %475 {offsets = [0, 224], sizes = [1, 8], strides = [1, 1]} : vector<1x256xf32> to vector<1x8xf32>
    %532 = arith.addf %530, %531 : vector<1x8xf32>
    %533 = vector.extract_strided_slice %475 {offsets = [0, 232], sizes = [1, 8], strides = [1, 1]} : vector<1x256xf32> to vector<1x8xf32>
    %534 = arith.addf %532, %533 : vector<1x8xf32>
    %535 = vector.extract_strided_slice %475 {offsets = [0, 240], sizes = [1, 8], strides = [1, 1]} : vector<1x256xf32> to vector<1x8xf32>
    %536 = arith.addf %534, %535 : vector<1x8xf32>
    %537 = vector.extract_strided_slice %475 {offsets = [0, 248], sizes = [1, 8], strides = [1, 1]} : vector<1x256xf32> to vector<1x8xf32>
    %538 = arith.addf %536, %537 : vector<1x8xf32>
    %cst_207 = arith.constant 1.22070313E-4 : f32
    %539 = vector.broadcast %cst_207 : f32 to vector<1x8xf32>
    %540 = arith.mulf %538, %539 : vector<1x8xf32>
    %cst_208 = arith.constant 9.99999974E-6 : f32
    %541 = vector.broadcast %cst_208 : f32 to vector<1x8xf32>
    %542 = arith.addf %540, %541 : vector<1x8xf32>
    %543 = math.rsqrt %542 : vector<1x8xf32>
    %544 = tpu.concatenate %543, %543, %543, %543, %543, %543, %543, %543, %543, %543, %543, %543, %543, %543, %543, %543 in 1 : vector<1x8xf32>, vector<1x8xf32>, vector<1x8xf32>, vector<1x8xf32>, vector<1x8xf32>, vector<1x8xf32>, vector<1x8xf32>, vector<1x8xf32>, vector<1x8xf32>, vector<1x8xf32>, vector<1x8xf32>, vector<1x8xf32>, vector<1x8xf32>, vector<1x8xf32>, vector<1x8xf32>, vector<1x8xf32> -> vector<1x128xf32>
    %545 = tpu.concatenate %543, %543, %543, %543, %543, %543, %543, %543, %543, %543, %543, %543, %543, %543, %543, %543 in 1 : vector<1x8xf32>, vector<1x8xf32>, vector<1x8xf32>, vector<1x8xf32>, vector<1x8xf32>, vector<1x8xf32>, vector<1x8xf32>, vector<1x8xf32>, vector<1x8xf32>, vector<1x8xf32>, vector<1x8xf32>, vector<1x8xf32>, vector<1x8xf32>, vector<1x8xf32>, vector<1x8xf32>, vector<1x8xf32> -> vector<1x128xf32>
    %546 = tpu.concatenate %544, %545 in 1 : vector<1x128xf32>, vector<1x128xf32> -> vector<1x256xf32>
    %547 = vector.broadcast %546 : vector<1x256xf32> to vector<256x256xf32>
    %548 = arith.mulf %472, %547 : vector<256x256xf32>
    %cst_209 = arith.constant 2.000000e-01 : f32
    %549 = vector.broadcast %cst_209 : f32 to vector<256x256xf32>
    %550 = arith.mulf %549, %548 : vector<256x256xf32>
    %551 = arith.maximumf %548, %550 : vector<256x256xf32>
    %cst_210 = arith.constant 0.000000e+00 : f32
    %552 = vector.broadcast %cst_210 : f32 to vector<8x256xf32>
    %c0_211 = arith.constant 0 : index
    %c0_212 = arith.constant 0 : index
    %553 = vector.load %arg13[%c0_211, %c0_212] : memref<272x256xf32, #tpu.memory_space<vmem>>, vector<8x256xf32>
    tpu.vector_store %arg13[%c0_211, %c0_212], %552 {strides = array<i32>} : memref<272x256xf32, #tpu.memory_space<vmem>>, vector<8x256xf32>,
    %c8_213 = arith.constant 8 : index
    %c0_214 = arith.constant 0 : index
    %554 = vector.load %arg13[%c8_213, %c0_214] : memref<272x256xf32, #tpu.memory_space<vmem>>, vector<256x256xf32>
    tpu.vector_store %arg13[%c8_213, %c0_214], %551 {strides = array<i32>} : memref<272x256xf32, #tpu.memory_space<vmem>>, vector<256x256xf32>,
    %c264_215 = arith.constant 264 : index
    %c0_216 = arith.constant 0 : index
    %555 = vector.load %arg13[%c264_215, %c0_216] : memref<272x256xf32, #tpu.memory_space<vmem>>, vector<8x256xf32>
    tpu.vector_store %arg13[%c264_215, %c0_216], %552 {strides = array<i32>} : memref<272x256xf32, #tpu.memory_space<vmem>>, vector<8x256xf32>,
    %c0_217 = arith.constant 0 : index
    %c0_218 = arith.constant 0 : index
    %556 = vector.load %arg13[%c0_217, %c0_218] : memref<272x256xf32, #tpu.memory_space<vmem>>, vector<256x256xf32>
    %557 = arith.truncf %556 : vector<256x256xf32> to vector<256x256xbf16>
    %c8_219 = arith.constant 8 : index
    %c0_220 = arith.constant 0 : index
    %558 = vector.load %arg13[%c8_219, %c0_220] : memref<272x256xf32, #tpu.memory_space<vmem>>, vector<256x256xf32>
    %559 = arith.truncf %558 : vector<256x256xf32> to vector<256x256xbf16>
    %c16_221 = arith.constant 16 : index
    %c0_222 = arith.constant 0 : index
    %560 = vector.load %arg13[%c16_221, %c0_222] : memref<272x256xf32, #tpu.memory_space<vmem>>, vector<256x256xf32>
    %561 = arith.truncf %560 : vector<256x256xf32> to vector<256x256xbf16>
    %562 = tpu.concatenate %557, %559, %561 in 1 : vector<256x256xbf16>, vector<256x256xbf16>, vector<256x256xbf16> -> vector<256x768xbf16>
    %c0_223 = arith.constant 0 : index
    %c0_224 = arith.constant 0 : index
    %563 = vector.load %arg10[%c0_223, %c0_224] : memref<768x128xbf16, #tpu.memory_space<vmem>>, vector<768x128xbf16>
    %cst_225 = arith.constant dense<0.000000e+00> : vector<256x128xf32>
    %564 = tpu.matmul %562, %563, %cst_225 {dimension_numbers = #tpu.dot_dimension_numbers<[1], [0], [0], [1], [0, 0, 1, 1], [], []>} : vector<256x768xbf16>, vector<768x128xbf16>, vector<256x128xf32> -> vector<256x128xf32>
    %c0_226 = arith.constant 0 : index
    %c0_227 = arith.constant 0 : index
    %565 = vector.load %arg11[%c0_226, %c0_227] : memref<1x128xf32, #tpu.memory_space<vmem>>, vector<1x128xf32>
    %566 = vector.broadcast %565 : vector<1x128xf32> to vector<256x128xf32>
    %567 = arith.addf %564, %566 : vector<256x128xf32>
    %568 = arith.negf %567 : vector<256x128xf32>
    %569 = math.exp %568 : vector<256x128xf32>
    %cst_228 = arith.constant 1.000000e+00 : f32
    %570 = vector.broadcast %cst_228 : f32 to vector<256x128xf32>
    %571 = arith.addf %570, %569 : vector<256x128xf32>
    %572 = arith.divf %570, %571 : vector<256x128xf32>
    %c0_229 = arith.constant 0 : index
    %c0_230 = arith.constant 0 : index
    %573 = vector.load %arg12[%c0_229, %c0_230] : memref<256x128xf32, #tpu.memory_space<vmem>>, vector<256x128xf32>
    tpu.vector_store %arg12[%c0_229, %c0_230], %572 {strides = array<i32>} : memref<256x128xf32, #tpu.memory_space<vmem>>, vector<256x128xf32>,
    return
  }
}

</mosaic_0001>

<bundles_post_ra>
// kernel: generator_forward.1
= control target key start
LH: loop header
LB: loop body
LE: loop exit
PB: predicated region body
PF: predicated region fallthrough
CT: control target
= control target key end

     0   :  { %17 = vsyncpa [#allocation4], 0  ;;  %s10267_s0 = inlined_call_operand.vmem [shape: f32[8,64], index: 0, kind: input, shape index: {}]   ;;  %s10268_s1 = inlined_call_operand.hbm [shape: f32[64,64], index: 1, kind: input, shape index: {}]   ;;  %s10269_s2 = inlined_call_operand.hbm [shape: f32[1,64], index: 2, kind: input, shape index: {}]   ;;  %s10270_s3 = inlined_call_operand.hbm [shape: f32[32,64], index: 3, kind: input, shape index: {}]   ;;  %s10271_s4 = inlined_call_operand.hbm [shape: f32[1,64], index: 4, kind: input, shape index: {}]   ;;  %s10272_s5 = inlined_call_operand.vmem [shape: bf16[96,32], index: 5, kind: input, shape index: {}]   ;;  %s10273_s6 = inlined_call_operand.vmem [shape: bf16[96,64], index: 6, kind: input, shape index: {}]   ;;  %s10274_s7 = inlined_call_operand.vmem [shape: bf16[192,64], index: 7, kind: input, shape index: {}]   ;;  %s10275_s8 = inlined_call_operand.hbm [shape: bf16[192,128], index: 8, kind: input, shape index: {}]   ;;  %s10276_s9 = inlined_call_operand.hbm [shape: bf16[384,256], index: 9, kind: input, shape index: {}]   ;;  %s10277_s10 = inlined_call_operand.hbm [shape: bf16[768,128], index: 10, kind: input, shape index: {}]   ;;  %s10278_s11 = inlined_call_operand.hbm [shape: f32[1,128], index: 11, kind: input, shape index: {}]   ;;  %s10279_s12 = inlined_call_operand.vmem [shape: f32[256,128], index: 12, kind: output, shape index: {}]  }
   0x1   :  { %18 = vsyncpa [#allocation6], 0 }
   0x2   :  { %19 = vsyncpa [#allocation9], 0 }
   0x3   :  { %20 = vsyncpa [#allocation12], 0  ;;  %s42_s23 = sshll.u32 %s10269_s2, 4  ;;  %s43_s23 = int_to_ptr.hbm [resolvable:$true] %s42_s23 }
   0x4   :  { %21 = vsyncpa [#allocation15], 0  ;;  %s7131_s24 = smov [#allocation5]   ;;  %s66_s28 = sshll.u32 %s10271_s4, 4  ;;  %s67_s28 = int_to_ptr.hbm [resolvable:$true] %s66_s28 }
   0x5   :  { %s44_s25 = sshll.u32 %s7131_s24, 4  ;;  %s7132_s29 = smov [#allocation8]   ;;  %s45_s25 = int_to_ptr.vmem [resolvable:$true] %s44_s25 }
   0x6   :  { %47 = dma.hbm_to_vmem [thread:$0]  %s43_s23, 16, %s45_s25, [#allocation6]  }
   0x7   :  { %s68_s30 = sshll.u32 %s7132_s29, 4  ;;  %s95_s15 = sshll.u32 %s10276_s9, 4  ;;  %s69_s30 = int_to_ptr.vmem [resolvable:$true] %s68_s30  ;;  %s96_s15 = int_to_ptr.hbm [resolvable:$true] %s95_s15 }
   0x8   :  { %71 = dma.hbm_to_vmem [thread:$0]  %s67_s28, 16, %s69_s30, [#allocation9]  }
   0x9   :  { %s7133_s2 = smov [#allocation11]   ;;  %s28_s19 = sshll.u32 %s10268_s1, 4  ;;  %s29_s19 = int_to_ptr.hbm [resolvable:$true] %s28_s19 }
   0xa   :  { %s97_s16 = sshll.u32 %s7133_s2, 4  ;;  %s7134_s20 = smov 128   ;;  %s98_s16 = int_to_ptr.vmem [resolvable:$true] %s97_s16 }
   0xb   :  { %s7135_s4 = smov 8   ;;  %s7136_s21 = smov [#allocation3]  }
   0xc   :  { %103 = dma.hbm_to_vmem [thread:$0]  %s96_s15, 6144, %s98_s16, [#allocation12], %s7134_s20, %s7134_s20, %s7135_s4  }
   0xd   :  { %s30_s22 = sshll.u32 %s7136_s21, 4  ;;  %s52_s25 = sshll.u32 %s10270_s3, 4  ;;  %s31_s22 = int_to_ptr.vmem [resolvable:$true] %s30_s22  ;;  %s53_s25 = int_to_ptr.hbm [resolvable:$true] %s52_s25 }
   0xe   :  { %36 = dma.hbm_to_vmem [thread:$0]  %s29_s19, 1024, %s31_s22, [#allocation4], %s7134_s20, %s7134_s20, %s7135_s4  }
   0xf   :  { %s82_s27 = sshll.u32 %s10275_s8, 4  ;;  %s7137_s1 = smov [#allocation7]   ;;  %s83_s27 = int_to_ptr.hbm [resolvable:$true] %s82_s27 }
  0x10   :  { %s54_s28 = sshll.u32 %s7137_s1, 4  ;;  %s7138_s29 = smov [#allocation10]   ;;  %s55_s28 = int_to_ptr.vmem [resolvable:$true] %s54_s28 }
  0x11   :  { %60 = dma.hbm_to_vmem [thread:$0]  %s53_s25, 512, %s55_s28, [#allocation6], %s7134_s20, %s7134_s20, %s7135_s4  }
  0x12   :  { %s84_s30 = sshll.u32 %s7138_s29, 4  ;;  %s7139_s13 = smov 64   ;;  %s85_s30 = int_to_ptr.vmem [resolvable:$true] %s84_s30 }
  0x13   :  { %s7140_s14 = smov 4   ;;  %s108_s2 = sshll.u32 %s10277_s10, 4  ;;  %s109_s2 = int_to_ptr.hbm [resolvable:$true] %s108_s2 }
  0x14   :  { %90 = dma.hbm_to_vmem [thread:$0]  %s83_s27, 1536, %s85_s30, [#allocation9], %s7139_s13, %s7139_s13, %s7140_s14  }
  0x15   :  { %s7141_s8 = smov [#allocation13]   ;;  %s122_s19 = sshll.u32 %s10278_s11, 4  ;;  %s123_s19 = int_to_ptr.hbm [resolvable:$true] %s122_s19 }
  0x16   :  { %s110_s16 = sshll.u32 %s7141_s8, 4  ;;  %s7142_s20 = smov [#allocation14]   ;;  %s111_s16 = int_to_ptr.vmem [resolvable:$true] %s110_s16 }
  0x17   :  { %116 = dma.hbm_to_vmem [thread:$0]  %s109_s2, 6144, %s111_s16, [#allocation12], %s7139_s13, %s7139_s13, %s7140_s14  }
  0x18   :  { %s124_s21 = sshll.u32 %s7142_s20, 4  ;;  %s125_s21 = int_to_ptr.vmem [resolvable:$true] %s124_s21 }
  0x19   :  { %127 = dma.hbm_to_vmem [thread:$0]  %s123_s19, 16, %s125_s21, [#allocation15]  }
  0x1a   :  { %7121 = dma.done.wait [#allocation4], 1024  }
  0x1b   :  { %7122 = vsyncadd [#allocation4], 4294966272 }
  0x1c   :  { %7123 = dma.done.wait [#allocation6], 528  }
  0x1d   :  { %7124 = vsyncadd [#allocation6], 4294966768 }
  0x1e   :  { %7125 = dma.done.wait [#allocation9], 1552  }
  0x1f   :  { %7126 = vsyncadd [#allocation9], 4294965744 }
  0x20   :  { %7127 = dma.done.wait [#allocation12], 12288  }
  0x21   :  { %7128 = vsyncadd [#allocation12], 4294955008 }
  0x22   :  { %7129 = dma.done.wait [#allocation15], 16  }
  0x23   :  { %7130 = vsyncadd [#allocation15], 4294967280  ;;  %v7143_v0 = vmov 8.0   ;;  %v207_v2 = vld [vmem:[#allocation3 + $0x38] sm:$0xff]  ;;  %v206_v3 = vld [vmem:[#allocation3 + $0x30] sm:$0xff]  ;;  %vm162_vm0 = vcmask 523264   ;;  %v235_v46 = vlaneseq }
  0x24   :  { %6783 = vrcp.f32 %v7143_v0  ;;  %223 = vmatpush.msra.mxu0 %v207_v2  ;;  %v205_v5 = vld [vmem:[#allocation3 + $0x28] sm:$0xff]  ;;  %v161_v6 = vld [vmem:[%s10267_s0] sm:$0xff]  ;;  %v203_v12 = vld [vmem:[#allocation3 + $0x18] sm:$0xff]  ;;  %s7144_s0 = smov 96   ;;  %vm263_vm7 = vcmask 261120   ;;  %v7145_v56 = vmov 0.0  }
  0x25   :  { %v163_v7 = vsel %vm162_vm0, %v161_v6, 0.0  ;;  %v204_v9 = vld [vmem:[#allocation3 + $0x20] sm:$0xff]  ;;  %v202_v14 = vld [vmem:[#allocation3 + $0x10] sm:$0xff]  ;;  %v201_v17 = vld [vmem:[#allocation3 + $0x8] sm:$0xff]  ;;  %v236_v47 = vshrl.u32 %v235_v46, 7  ;;  %287 = vst.msk [vmem:[#allocation2] sm:$0xff] %vm263_vm7, %v7145_v56 }
  0x26   :  { %224 = vmatpush.msra.mxu0 %v206_v3  ;;  %v164_v10 = vrot.slane %v163_v7, 4  ;;  %v200_v19 = vld [vmem:[#allocation3] sm:$0xff]  ;;  %v257_v44 = vld [vmem:[#allocation7 + $0x10] sm:$0xff]  ;;  %v256_v45 = vld [vmem:[#allocation7 + $0x8] sm:$0xff]  ;;  %294 = vst.msk [vmem:[#allocation2 + $0x30] sm:$0xff] %vm263_vm7, %v7145_v56  ;;  %s7146_s28 = smov 32  }
  0x27   :  { %v258_v43 = vld [vmem:[#allocation7 + $0x18] sm:$0xff]  ;;  %vm244_vm5 = vcmp.ge.s32.totalorder %v236_v47, 4  ;;  %vm238_vm6 = vcmp.lt.s32.totalorder %v236_v47, 4  ;;  %v255_v53 = vld [vmem:[#allocation7] sm:$0xff]  ;;  %457 = vst.msk [vmem:[#allocation2 + $0x50] sm:$0xff] %vm263_vm7, %v7145_v56  ;;  %vm371_vm8 = vcmask 785408  }
  0x28   :  { %225 = vmatpush.msra.mxu0 %v205_v5  ;;  %v165_v13 = vadd.f32 %v164_v10, %v163_v7  ;;  %279 = vmatpush.msra.mxu1 %v258_v43  ;;  %v6780_v48 = vld [vmem:[#allocation5] ss:$0 sm:$0xff]  ;;  %699 = vst.msk [vmem:[#allocation2 + $0x90] sm:$0xff] %vm162_vm0, %v7145_v56  ;;  %v6781_v58 = vld [vmem:[#allocation8] ss:$0 sm:$0xff]  ;;  %v6618_v61 = vld [vmem:[%s10272_s5 + $0x28] sm:$0xff] }
  0x29   :  { %1170 = vst.msk [vmem:[#allocation2 + $0x110] sm:$0xff] %vm162_vm0, %v7145_v56  ;;  %376 = vmatpush.bf16.msra.mxu2 %v6618_v61  ;;  %v6617_v62 = vld [vmem:[%s10272_s5 + $0x20] sm:$0xff]  ;;  %v6616_v63 = vld [vmem:[%s10272_s5 + $0x18] sm:$0xff]  ;;  %s7148_s15 = smov 16   ;;  %vm407_vm9 = vcmask 130048   ;;  %s7150_s24 = smov 48  }
  0x2a   :  { %v6784_v1 = vpop.eup %6783  ;;  %226 = vmatpush.msra.mxu0 %v204_v9  ;;  %v166_v15 = vrot.slane %v165_v13, 2  ;;  %280 = vmatpush.msra.mxu1 %v257_v44  ;;  %3816 = vst [vmem:[#allocation2 + $0x8] sm:$0xff] %v7145_v56  ;;  %vm615_vm13 = vcmask 392192   ;;  %s7152_s27 = smov 120   ;;  %s7153_s1 = smov 88  }
  0x2b   :  { %v171_v4 = vmul.f32 8.0, %v6784_v1  ;;  %vm175_vm1 = vweird.f32 %v6784_v1  ;;  %s7154_s29 = smov 72   ;;  %s7155_s30 = smov 24  }
  0x2c   :  { %227 = vmatpush.msra.mxu0 %v203_v12  ;;  %v167_v18 = vadd.f32 %v166_v15, %v165_v13  ;;  %281 = vmatpush.msra.mxu1 %v256_v45  ;;  %v295_v57 = vld [vmem:[#allocation2] sm:$0xff]  ;;  %v6614_v13 = vld [vmem:[%s10272_s5 + $0x8] sm:$0xff]  ;;  %s7156_s14 = smov 40   ;;  %s7157_s3 = smov 56  }
  0x2d   :  { %v172_v8 = vsub.f32 1.0, %v171_v4  ;;  %452 = vst.msk [vmem:[#allocation2] sm:$0xff] %vm263_vm7, %v7145_v56  ;;  %377 = vmatpush.bf16.msra.mxu2 %v6617_v62  ;;  %v297_v15 = vpack.c.bf16 %v295_v57, %v295_v57 }
  0x2e   :  { %228 = vmatpush.msra.mxu0 %v202_v14  ;;  %v168_v20 = vrot.slane %v167_v18, 1  ;;  %282 = vmatpush.msra.mxu1 %v255_v53  ;;  %v6613_v14 = vld [vmem:[%s10272_s5] sm:$0xff] }
  0x2f   :  { %v173_v11 = vmul.f32 %v6784_v1, %v172_v8 }
  0x30   :  { %229 = vmatpush.msra.mxu0 %v201_v17  ;;  %v169_v22 = vadd.f32 %v168_v20, %v167_v18  ;;  %v305_v17 = vunpack.c.l.b16 %v297_v15 }
  0x31   :  { %v174_v16 = vadd.f32 %v6784_v1, %v173_v11  ;;  %378 = vmatpush.bf16.msra.mxu2 %v6616_v63 }
  0x32   :  { %230 = vmatpush.msra.mxu0 %v200_v19 }
  0x33   :  { %v176_v21 = vsel %vm175_vm1, %v6784_v1, %v174_v16  ;;  %v6615_v1 = vld [vmem:[%s10272_s5 + $0x10] sm:$0xff]  ;;  %s7147_s5 = smov 112  }
  0x34   :  { %v177_v23 = vmul.f32 %v176_v21, %v169_v22 }
  0x35   :  { %379 = vmatpush.bf16.msra.mxu2 %v6615_v1 }
  0x36   :  { %v178_v24 = vsub.f32 %v161_v6, %v177_v23  ;;  %v301_v6 = vld [vmem:[#allocation2 + $0x30] sm:$0xff] }
  0x37   :  { %v302_v10 = vpack.c.bf16 %v301_v6, %v301_v6 }
  0x38   :  { %v179_v25 = vmul.f32 %v178_v24, %v178_v24 }
  0x39   :  { %v314_v11 = vunpack.c.l.b16 %v302_v10  ;;  %380 = vmatpush.bf16.msra.mxu2 %v6614_v13 }
  0x3a   :  { %v180_v26 = vsel %vm162_vm0, %v179_v25, 0.0 }
  0x3b   :  { %v181_v27 = vrot.slane %v180_v26, 4 }
  0x3d   :  { %v182_v28 = vadd.f32 %v181_v27, %v180_v26  ;;  %381 = vmatpush.bf16.msra.mxu2 %v6613_v14 }
  0x3f   :  { %v183_v29 = vrot.slane %v182_v28, 2 }
  0x41   :  { %v184_v30 = vadd.f32 %v183_v29, %v182_v28 }
  0x43   :  { %v185_v31 = vrot.slane %v184_v30, 1 }
  0x45   :  { %v186_v32 = vadd.f32 %v185_v31, %v184_v30 }
  0x47   :  { %v187_v33 = vmul.f32 %v186_v32, %v176_v21 }
  0x49   :  { %v188_v34 = vadd.f32 1e-05, %v187_v33 }
  0x4b   :  { %6785 = vrsqrt.f32 %v188_v34  ;;  %vm195_vm2 = vweird.f32 %v188_v34 }
  0x51   :  { %v6786_v35 = vpop.eup %6785 }
  0x52   :  { %v190_v36 = vmul.f32 %v6786_v35, %v188_v34  ;;  %vm196_vm3 = vweird.f32 %v6786_v35 }
  0x53   :  { %vm197_vm4 = vmor %vm195_vm2, %vm196_vm3  ;;  %vm1009_vm2 = vcmask 64512   ;;  %vm1012_vm3 = vcmask 195584  }
  0x54   :  { %v191_v37 = vmul.f32 %v6786_v35, %v190_v36 }
  0x56   :  { %v192_v38 = vmul.f32 0.5, %v191_v37 }
  0x58   :  { %v193_v39 = vsub.f32 1.5, %v192_v38 }
  0x5a   :  { %v194_v40 = vmul.f32 %v6786_v35, %v193_v39 }
  0x5c   :  { %v198_v41 = vsel %vm197_vm4, %v6786_v35, %v194_v40  ;;  %vm1015_vm4 = vcmask 326656  }
  0x5d   :  { %v199_v42 = vmul.f32 %v198_v41, %v178_v24 }
  0x5f   :  { %6036 = vmatmul.msk.f32.vlgmr.msra.gmra.mxu0 %vm162_vm0, %v199_v42 }
  0xdc   :  { %v232_v49 = vpop.f32.mrf.mxu0 }
  0xdd   :  { %v233_v50 = vadd.f32 %v6780_v48, %v232_v49 }
  0xdf   :  { %v249_v51 = vsel %vm244_vm5, %v233_v50, 0.0  ;;  %v242_v52 = vsel %vm238_vm6, %v233_v50, 0.0  ;;  %vm1018_vm5 = vcmask 457728  }
  0xe0   :  { %251 = vrot.lane.b32.xlu0 %v249_v51, %s7144_s0 }
 0x152   :  { %v252_v54 = vpop.permute.xlu0 %251 }
 0x153   :  { %v254_v55 = vadd.f32 %v252_v54, %v242_v52 }
 0x155   :  { %6037 = vmatmul.msk.f32.vlgmr.msra.gmra.mxu1 %vm263_vm7, %v254_v55 }
 0x1d2   :  { %v284_v59 = vpop.f32.mrf.mxu1 }
 0x1d3   :  { %v285_v60 = vadd.f32 %v6781_v58, %v284_v59 }
 0x1d5   :  { %288 = vst.msk [vmem:[#allocation2 + $0x10] sm:$0xff] %vm263_vm7, %v285_v60  ;;  %290 = vrot.lane.b32.xlu0 %v285_v60, %s7144_s0 }
 0x1dc   :  { %v296_v2 = vld [vmem:[#allocation2 + $0x10] sm:$0xff] }
 0x1dd   :  { %v298_v3 = vpack.c.bf16 %v296_v2, %v296_v2 }
 0x1df   :  { %v306_v7 = vunpack.c.l.b16 %v298_v3 }
 0x1e1   :  { %v307_v18 = vpack.c.b16 %v306_v7, %v305_v17 }
 0x247   :  { %v291_v0 = vpop.permute.xlu0 %290 }
 0x248   :  { %293 = vst.msk [vmem:[#allocation2 + $0x20] sm:$0xff] %vm263_vm7, %v291_v0  ;;  %v458_v0 = vld [vmem:[#allocation2] sm:$0xff] }
 0x249   :  { %690 = vst.msk [vmem:[#allocation2] sm:$0xff] %vm162_vm0, %v7145_v56  ;;  %v462_v10 = vpack.c.bf16 %v458_v0, %v458_v0 }
 0x24b   :  { %v474_v14 = vunpack.c.l.b16 %v462_v10 }
 0x24f   :  { %v299_v4 = vld [vmem:[#allocation2 + $0x20] sm:$0xff] }
 0x250   :  { %v300_v5 = vpack.c.bf16 %v299_v4, %v299_v4 }
 0x252   :  { %v309_v8 = vunpack.c.l.b16 %v300_v5 }
 0x254   :  { %v310_v9 = vpack.c.b16 %v309_v8, %v306_v7  ;;  %v315_v12 = vpack.c.b16 %v314_v11, %v309_v8 }
 0x256   :  { %311 = vrot.lane.b32.xlu1 %v310_v9, %s7146_s28 }
 0x25e   :  { %316 = vrot.lane.b32.xlu1 %v315_v12, %s7139_s13 }
 0x2c8   :  { %v312_v16 = vpop.permute.xlu1 %311 }
 0x2c9   :  { %v320_v19 = vsel %vm263_vm7, %v307_v18, %v312_v16 }
 0x2d0   :  { %v317_v20 = vpop.permute.xlu1 %316 }
 0x2d1   :  { %v322_v21 = vsel %vm162_vm0, %v320_v19, %v317_v20  ;;  %v468_v20 = vld [vmem:[#allocation2 + $0x50] sm:$0xff] }
 0x2d2   :  { %6062 = vmatmul.msk.bf16.vlgmr.msra.gmra.mxu2 %vm371_vm8, %v322_v21 }
 0x355   :  { %v383_v22 = vpop.f32.mrf.mxu2 }
 0x356   :  { %v388_v24 = vsel %vm263_vm7, %v383_v22, 0.0 }
 0x35d   :  { %v385_v23 = vpop.f32.mrf.mxu2 }
 0x35e   :  { %v389_v25 = vsel %vm263_vm7, %v385_v23, 0.0 }
 0x35f   :  { %v390_v26 = vadd.f32 %v389_v25, %v388_v24 }
 0x361   :  { %v391_v27 = vrot.slane %v390_v26, 4 }
 0x363   :  { %v392_v28 = vadd.f32 %v391_v27, %v390_v26  ;;  %v469_v27 = vpack.c.bf16 %v468_v20, %v468_v20 }
 0x365   :  { %v393_v29 = vrot.slane %v392_v28, 2 }
 0x367   :  { %v394_v30 = vadd.f32 %v393_v29, %v392_v28 }
 0x369   :  { %v395_v31 = vrot.slane %v394_v30, 1 }
 0x36b   :  { %v396_v32 = vadd.f32 %v395_v31, %v394_v30  ;;  %v489_v30 = vunpack.c.l.b16 %v469_v27 }
 0x36d   :  { %398 = vrot.lane.b32.xlu2 %v396_v32, %s7147_s5 }
 0x3c7   :  { %v399_v33 = vpop.permute.xlu2 %398 }
 0x3c8   :  { %v401_v34 = vadd.f32 %v399_v33, %v396_v32  ;;  %v6624_v32 = vld [vmem:[%s10273_s6 + $0x28] sm:$0xff]  ;;  %v6623_v33 = vld [vmem:[%s10273_s6 + $0x20] sm:$0xff] }
 0x3c9   :  { %559 = vmatpush.bf16.msrb.mxu1 %v6624_v32 }
 0x3ca   :  { %v402_v35 = vmul.f32 0.03125, %v401_v34  ;;  %v6622_v34 = vld [vmem:[%s10273_s6 + $0x18] sm:$0xff] }
 0x3cc   :  { %404 = vrot.lane.b32.xlu2 %v402_v35, %s7148_s15 }
 0x3cd   :  { %560 = vmatpush.bf16.msrb.mxu1 %v6623_v33 }
 0x3d1   :  { %561 = vmatpush.bf16.msrb.mxu1 %v6622_v34 }
 0x426   :  { %v405_v36 = vpop.permute.xlu2 %404 }
 0x427   :  { %v408_v37 = vsel %vm407_vm9, %v402_v35, %v405_v36  ;;  %v6621_v35 = vld [vmem:[%s10273_s6 + $0x10] sm:$0xff]  ;;  %v6620_v36 = vld [vmem:[%s10273_s6 + $0x8] sm:$0xff] }
 0x428   :  { %v409_v38 = vperm.slane %v408_v37, 0  ;;  %562 = vmatpush.bf16.msrb.mxu1 %v6621_v35  ;;  %v6619_v37 = vld [vmem:[%s10273_s6] sm:$0xff]  ;;  %s7149_s6 = smov 80  }
 0x42a   :  { %v410_v39 = vsub.f32 %v383_v22, %v409_v38  ;;  %v411_v40 = vsub.f32 %v385_v23, %v409_v38 }
 0x42c   :  { %v412_v41 = vmul.f32 %v410_v39, %v410_v39  ;;  %v413_v42 = vmul.f32 %v411_v40, %v411_v40  ;;  %563 = vmatpush.bf16.msrb.mxu1 %v6620_v36 }
 0x42e   :  { %v414_v43 = vsel %vm263_vm7, %v412_v41, 0.0  ;;  %v415_v44 = vsel %vm263_vm7, %v413_v42, 0.0 }
 0x42f   :  { %v416_v45 = vadd.f32 %v415_v44, %v414_v43 }
 0x430   :  { %564 = vmatpush.bf16.msrb.mxu1 %v6619_v37 }
 0x431   :  { %v417_v46 = vrot.slane %v416_v45, 4 }
 0x433   :  { %v418_v47 = vadd.f32 %v417_v46, %v416_v45 }
 0x435   :  { %v419_v48 = vrot.slane %v418_v47, 2 }
 0x437   :  { %v420_v49 = vadd.f32 %v419_v48, %v418_v47 }
 0x439   :  { %v421_v50 = vrot.slane %v420_v49, 1 }
 0x43b   :  { %v422_v51 = vadd.f32 %v421_v50, %v420_v49 }
 0x43d   :  { %424 = vrot.lane.b32.xlu0 %v422_v51, %s7147_s5 }
 0x4af   :  { %v425_v52 = vpop.permute.xlu0 %424 }
 0x4b0   :  { %v427_v53 = vadd.f32 %v425_v52, %v422_v51 }
 0x4b2   :  { %v428_v54 = vmul.f32 0.03125, %v427_v53 }
 0x4b4   :  { %v429_v55 = vadd.f32 1e-05, %v428_v54 }
 0x4b6   :  { %6787 = vrsqrt.f32 %v429_v55  ;;  %vm436_vm11 = vweird.f32 %v429_v55 }
 0x4bc   :  { %v6788_v57 = vpop.eup %6787 }
 0x4bd   :  { %v431_v58 = vmul.f32 %v6788_v57, %v429_v55  ;;  %vm437_vm10 = vweird.f32 %v6788_v57 }
 0x4be   :  { %vm438_vm12 = vmor %vm436_vm11, %vm437_vm10 }
 0x4bf   :  { %v432_v59 = vmul.f32 %v6788_v57, %v431_v58 }
 0x4c1   :  { %v433_v60 = vmul.f32 0.5, %v432_v59 }
 0x4c3   :  { %v434_v61 = vsub.f32 1.5, %v433_v60 }
 0x4c5   :  { %v435_v62 = vmul.f32 %v6788_v57, %v434_v61 }
 0x4c7   :  { %v439_v63 = vsel %vm438_vm12, %v6788_v57, %v435_v62  ;;  %vm1656_vm12 = vcmask 588800  }
 0x4c8   :  { %441 = vrot.lane.b32.xlu1 %v439_v63, %s7148_s15 }
 0x53a   :  { %v442_v1 = vpop.permute.xlu1 %441 }
 0x53b   :  { %v444_v2 = vsel %vm407_vm9, %v439_v63, %v442_v1 }
 0x53c   :  { %v445_v3 = vperm.slane %v444_v2, 0 }
 0x53e   :  { %v446_v4 = vmul.f32 %v445_v3, %v410_v39  ;;  %v447_v5 = vmul.f32 %v445_v3, %v411_v40 }
 0x540   :  { %v448_v6 = vmul.f32 0.2, %v446_v4  ;;  %v449_v7 = vmul.f32 0.2, %v447_v5 }
 0x542   :  { %v450_v8 = vmax.f32 %v446_v4, %v448_v6  ;;  %v451_v9 = vmax.f32 %v447_v5, %v449_v7 }
 0x544   :  { %453 = vst.msk [vmem:[#allocation2 + $0x10] sm:$0xff] %vm263_vm7, %v450_v8 }
 0x545   :  { %454 = vst.msk [vmem:[#allocation2 + $0x20] sm:$0xff] %vm263_vm7, %v450_v8 }
 0x546   :  { %455 = vst.msk [vmem:[#allocation2 + $0x30] sm:$0xff] %vm263_vm7, %v451_v9 }
 0x547   :  { %456 = vst.msk [vmem:[#allocation2 + $0x40] sm:$0xff] %vm263_vm7, %v451_v9 }
 0x54b   :  { %v459_v11 = vld [vmem:[#allocation2 + $0x10] sm:$0xff] }
 0x54c   :  { %v460_v12 = vld [vmem:[#allocation2 + $0x20] sm:$0xff]  ;;  %v463_v13 = vpack.c.bf16 %v459_v11, %v459_v11 }
 0x54d   :  { %v461_v15 = vld [vmem:[#allocation2 + $0x30] sm:$0xff]  ;;  %v464_v16 = vpack.c.bf16 %v460_v12, %v460_v12 }
 0x54e   :  { %v465_v17 = vpack.c.bf16 %v461_v15, %v461_v15  ;;  %v466_v18 = vld [vmem:[#allocation2 + $0x40] sm:$0xff]  ;;  %v475_v19 = vunpack.c.l.b16 %v463_v13 }
 0x54f   :  { %v467_v21 = vpack.c.bf16 %v466_v18, %v466_v18  ;;  %v476_v22 = vunpack.c.l.b16 %v464_v16 }
 0x550   :  { %v477_v23 = vunpack.c.l.b16 %v465_v17  ;;  %v478_v24 = vpack.c.b16 %v475_v19, %v474_v14 }
 0x551   :  { %v481_v25 = vunpack.c.l.b16 %v467_v21  ;;  %v482_v26 = vpack.c.b16 %v476_v22, %v475_v19 }
 0x552   :  { %v479_v28 = vpack.c.b16 %v477_v23, %v476_v22 }
 0x553   :  { %v483_v29 = vpack.c.b16 %v481_v25, %v477_v23  ;;  %484 = vrot.lane.b32.xlu2 %v482_v26, %s7146_s28  ;;  %v490_v31 = vpack.c.b16 %v489_v30, %v481_v25 }
 0x554   :  { %491 = vrot.lane.b32.xlu0 %v479_v28, %s7139_s13 }
 0x555   :  { %486 = vrot.lane.b32.xlu1 %v483_v29, %s7146_s28 }
 0x55b   :  { %493 = vrot.lane.b32.xlu2 %v490_v31, %s7139_s13 }
 0x5ad   :  { %v485_v38 = vpop.permute.xlu2 %484 }
 0x5ae   :  { %v497_v39 = vsel %vm263_vm7, %v478_v24, %v485_v38 }
 0x5b5   :  { %v494_v44 = vpop.permute.xlu2 %493 }
 0x5c6   :  { %v492_v40 = vpop.permute.xlu0 %491 }
 0x5c7   :  { %v502_v41 = vsel %vm162_vm0, %v497_v39, %v492_v40  ;;  %v487_v42 = vpop.permute.xlu1 %486 }
 0x5c8   :  { %6087 = vmatmul.msk.bf16.vlgmr.msrb.gmra.mxu1 %vm371_vm8, %v502_v41  ;;  %v500_v43 = vsel %vm263_vm7, %v479_v28, %v487_v42 }
 0x5c9   :  { %v504_v45 = vsel %vm162_vm0, %v500_v43, %v494_v44 }
 0x5d8   :  { %6088 = vmatmul.msk.bf16.gmra.mxu1 %vm371_vm8, %v504_v45 }
 0x645   :  { %v566_v46 = vpop.f32.mrf.mxu1 }
 0x646   :  { %v576_v50 = vsel %vm162_vm0, %v566_v46, 0.0 }
 0x64d   :  { %v568_v47 = vpop.f32.mrf.mxu1 }
 0x64e   :  { %v577_v49 = vsel %vm162_vm0, %v568_v47, 0.0 }
 0x64f   :  { %v578_v52 = vadd.f32 %v577_v49, %v576_v50  ;;  %v6636_v50 = vld [vmem:[%s10274_s7 + $0x58] sm:$0xff] }
 0x650   :  { %911 = vmatpush.bf16.msrb.mxu0 %v6636_v50  ;;  %v6630_v50 = vld [vmem:[%s10274_s7 + $0x28] sm:$0xff] }
 0x655   :  { %v571_v48 = vpop.f32.mrf.mxu1 }
 0x656   :  { %v579_v51 = vsel %vm162_vm0, %v571_v48, 0.0 }
 0x657   :  { %v580_v53 = vadd.f32 %v579_v51, %v578_v52  ;;  %v6635_v51 = vld [vmem:[%s10274_s7 + $0x50] sm:$0xff]  ;;  %v6634_v52 = vld [vmem:[%s10274_s7 + $0x48] sm:$0xff] }
 0x658   :  { %912 = vmatpush.bf16.msrb.mxu0 %v6635_v51  ;;  %v6629_v51 = vld [vmem:[%s10274_s7 + $0x20] sm:$0xff] }
 0x65c   :  { %913 = vmatpush.bf16.msrb.mxu0 %v6634_v52  ;;  %v6628_v52 = vld [vmem:[%s10274_s7 + $0x18] sm:$0xff] }
 0x65d   :  { %v573_v54 = vpop.f32.mrf.mxu1 }
 0x65e   :  { %v581_v55 = vsel %vm162_vm0, %v573_v54, 0.0 }
 0x65f   :  { %v582_v57 = vadd.f32 %v581_v55, %v580_v53  ;;  %v6633_v53 = vld [vmem:[%s10274_s7 + $0x40] sm:$0xff] }
 0x660   :  { %914 = vmatpush.bf16.msrb.mxu0 %v6633_v53  ;;  %v6627_v53 = vld [vmem:[%s10274_s7 + $0x10] sm:$0xff] }
 0x661   :  { %v583_v58 = vrot.slane %v582_v57, 4 }
 0x663   :  { %v584_v59 = vadd.f32 %v583_v58, %v582_v57 }
 0x665   :  { %v585_v60 = vrot.slane %v584_v59, 2 }
 0x667   :  { %v586_v61 = vadd.f32 %v585_v60, %v584_v59 }
 0x669   :  { %v587_v62 = vrot.slane %v586_v61, 1 }
 0x66b   :  { %v588_v63 = vadd.f32 %v587_v62, %v586_v61 }
 0x66d   :  { %598 = vrot.lane.b32.xlu2 %v588_v63, %s7149_s6  ;;  %594 = vrot.lane.b32.xlu1 %v588_v63, %s7144_s0 }
 0x66e   :  { %590 = vrot.lane.b32.xlu0 %v588_v63, %s7147_s5 }
 0x6c7   :  { %v599_v4 = vpop.permute.xlu2 %598 }
 0x6df   :  { %v595_v2 = vpop.permute.xlu1 %594 }
 0x6e0   :  { %v591_v0 = vpop.permute.xlu0 %590 }
 0x6e1   :  { %v593_v1 = vadd.f32 %v591_v0, %v588_v63 }
 0x6e3   :  { %v597_v3 = vadd.f32 %v595_v2, %v593_v1 }
 0x6e5   :  { %v601_v5 = vadd.f32 %v599_v4, %v597_v3 }
 0x6e7   :  { %v602_v6 = vmul.f32 0.0078125, %v601_v5 }
 0x6e9   :  { %610 = vrot.lane.b32.xlu2 %v602_v6, %s7150_s24  ;;  %607 = vrot.lane.b32.xlu1 %v602_v6, %s7146_s28 }
 0x6ea   :  { %604 = vrot.lane.b32.xlu0 %v602_v6, %s7148_s15 }
 0x743   :  { %v611_v10 = vpop.permute.xlu2 %610 }
 0x75b   :  { %v608_v7 = vpop.permute.xlu1 %607 }
 0x75c   :  { %v605_v8 = vpop.permute.xlu0 %604 }
 0x75d   :  { %v613_v9 = vsel %vm407_vm9, %v602_v6, %v605_v8 }
 0x75e   :  { %v614_v11 = vsel %vm263_vm7, %v613_v9, %v608_v7 }
 0x75f   :  { %v616_v12 = vsel %vm615_vm13, %v614_v11, %v611_v10 }
 0x760   :  { %v617_v13 = vperm.slane %v616_v12, 0 }
 0x762   :  { %v7358_v14 = vsub.f32 %v566_v46, %v617_v13  ;;  %v7360_v15 = vsub.f32 %v568_v47, %v617_v13  ;;  %v7362_v16 = vsub.f32 %v571_v48, %v617_v13  ;;  %v7364_v17 = vsub.f32 %v573_v54, %v617_v13  ;;  %v700_v54 = vld [vmem:[#allocation2] sm:$0xff] }
 0x763   :  { %1153 = vst.msk [vmem:[#allocation2] sm:$0xff] %vm162_vm0, %v7145_v56  ;;  %v708_v10 = vpack.c.bf16 %v700_v54, %v700_v54  ;;  %v6626_v54 = vld [vmem:[%s10274_s7 + $0x8] sm:$0xff] }
 0x764   :  { %v622_v18 = vmul.f32 %v7358_v14, %v7358_v14  ;;  %v623_v19 = vmul.f32 %v7360_v15, %v7360_v15  ;;  %v624_v20 = vmul.f32 %v7362_v16, %v7362_v16  ;;  %v625_v21 = vmul.f32 %v7364_v17, %v7364_v17 }
 0x766   :  { %v626_v22 = vsel %vm162_vm0, %v622_v18, 0.0  ;;  %v627_v23 = vsel %vm162_vm0, %v623_v19, 0.0  ;;  %v629_v25 = vsel %vm162_vm0, %v624_v20, 0.0  ;;  %v631_v27 = vsel %vm162_vm0, %v625_v21, 0.0 }
 0x767   :  { %v628_v24 = vadd.f32 %v627_v23, %v626_v22 }
 0x769   :  { %v630_v26 = vadd.f32 %v629_v25, %v628_v24 }
 0x76b   :  { %v632_v28 = vadd.f32 %v631_v27, %v630_v26 }
 0x76d   :  { %v633_v29 = vrot.slane %v632_v28, 4 }
 0x76f   :  { %v634_v30 = vadd.f32 %v633_v29, %v632_v28 }
 0x771   :  { %v635_v31 = vrot.slane %v634_v30, 2 }
 0x773   :  { %v636_v32 = vadd.f32 %v635_v31, %v634_v30 }
 0x775   :  { %v637_v33 = vrot.slane %v636_v32, 1 }
 0x777   :  { %v638_v34 = vadd.f32 %v637_v33, %v636_v32 }
 0x779   :  { %648 = vrot.lane.b32.xlu2 %v638_v34, %s7149_s6  ;;  %644 = vrot.lane.b32.xlu1 %v638_v34, %s7144_s0 }
 0x77a   :  { %640 = vrot.lane.b32.xlu0 %v638_v34, %s7147_s5 }
 0x7d3   :  { %v649_v39 = vpop.permute.xlu2 %648 }
 0x7eb   :  { %v645_v37 = vpop.permute.xlu1 %644 }
 0x7ec   :  { %v641_v35 = vpop.permute.xlu0 %640 }
 0x7ed   :  { %v643_v36 = vadd.f32 %v641_v35, %v638_v34 }
 0x7ef   :  { %v647_v38 = vadd.f32 %v645_v37, %v643_v36 }
 0x7f1   :  { %v651_v40 = vadd.f32 %v649_v39, %v647_v38 }
 0x7f3   :  { %v652_v41 = vmul.f32 0.0078125, %v651_v40 }
 0x7f5   :  { %v653_v42 = vadd.f32 1e-05, %v652_v41 }
 0x7f7   :  { %6789 = vrsqrt.f32 %v653_v42  ;;  %vm660_vm15 = vweird.f32 %v653_v42 }
 0x7fd   :  { %v6790_v43 = vpop.eup %6789 }
 0x7fe   :  { %v655_v44 = vmul.f32 %v6790_v43, %v653_v42  ;;  %vm661_vm14 = vweird.f32 %v6790_v43 }
 0x7ff   :  { %vm662_vm1 = vmor %vm660_vm15, %vm661_vm14  ;;  %vm1658_vm14 = vcmask 654336   ;;  %vm1660_vm15 = vcmask 719872  }
 0x800   :  { %v656_v45 = vmul.f32 %v6790_v43, %v655_v44  ;;  %v6631_v44 = vld [vmem:[%s10274_s7 + $0x30] sm:$0xff] }
 0x802   :  { %v657_v46 = vmul.f32 0.5, %v656_v45 }
 0x804   :  { %v658_v47 = vsub.f32 1.5, %v657_v46  ;;  %v718_v46 = vld [vmem:[#allocation2 + $0x90] sm:$0xff] }
 0x806   :  { %v659_v48 = vmul.f32 %v6790_v43, %v658_v47  ;;  %v719_v47 = vpack.c.bf16 %v718_v46, %v718_v46 }
 0x808   :  { %v663_v49 = vsel %vm662_vm1, %v6790_v43, %v659_v48  ;;  %v6632_v43 = vld [vmem:[%s10274_s7 + $0x38] sm:$0xff]  ;;  %v755_v48 = vunpack.c.l.b16 %v719_v47  ;;  %vm1663_vm1 = vcmask 850944  }
 0x809   :  { %671 = vrot.lane.b32.xlu2 %v663_v49, %s7150_s24  ;;  %668 = vrot.lane.b32.xlu1 %v663_v49, %s7146_s28 }
 0x80a   :  { %665 = vrot.lane.b32.xlu0 %v663_v49, %s7148_s15  ;;  %878 = vmatpush.bf16.msra.mxu1 %v6632_v43 }
 0x80e   :  { %879 = vmatpush.bf16.msra.mxu1 %v6631_v44 }
 0x812   :  { %880 = vmatpush.bf16.msra.mxu1 %v6630_v50 }
 0x816   :  { %881 = vmatpush.bf16.msra.mxu1 %v6629_v51 }
 0x81a   :  { %882 = vmatpush.bf16.msra.mxu1 %v6628_v52 }
 0x81e   :  { %883 = vmatpush.bf16.msra.mxu1 %v6627_v53 }
 0x822   :  { %884 = vmatpush.bf16.msra.mxu1 %v6626_v54 }
 0x863   :  { %v672_v59 = vpop.permute.xlu2 %671 }
 0x87b   :  { %v669_v55 = vpop.permute.xlu1 %668 }
 0x87c   :  { %v666_v57 = vpop.permute.xlu0 %665 }
 0x87d   :  { %v674_v58 = vsel %vm407_vm9, %v663_v49, %v666_v57 }
 0x87e   :  { %v675_v60 = vsel %vm263_vm7, %v674_v58, %v669_v55  ;;  %v6625_v55 = vld [vmem:[%s10274_s7] sm:$0xff]  ;;  %s7151_s7 = smov 104  }
 0x87f   :  { %v676_v61 = vsel %vm615_vm13, %v675_v60, %v672_v59  ;;  %885 = vmatpush.bf16.msra.mxu1 %v6625_v55 }
 0x880   :  { %v677_v62 = vperm.slane %v676_v61, 0 }
 0x882   :  { %v678_v63 = vmul.f32 %v677_v62, %v7358_v14  ;;  %v679_v0 = vmul.f32 %v677_v62, %v7360_v15  ;;  %v680_v1 = vmul.f32 %v677_v62, %v7362_v16  ;;  %v681_v2 = vmul.f32 %v677_v62, %v7364_v17 }
 0x883   :  { %v728_v14 = vunpack.c.l.b16 %v708_v10 }
 0x884   :  { %v682_v56 = vmul.f32 0.2, %v678_v63  ;;  %v683_v3 = vmul.f32 0.2, %v679_v0  ;;  %v684_v4 = vmul.f32 0.2, %v680_v1 }
 0x885   :  { %v685_v5 = vmul.f32 0.2, %v681_v2 }
 0x886   :  { %v686_v6 = vmax.f32 %v678_v63, %v682_v56  ;;  %v687_v7 = vmax.f32 %v679_v0, %v683_v3  ;;  %v688_v8 = vmax.f32 %v680_v1, %v684_v4 }
 0x887   :  { %v689_v9 = vmax.f32 %v681_v2, %v685_v5 }
 0x888   :  { %691 = vst.msk [vmem:[#allocation2 + $0x10] sm:$0xff] %vm162_vm0, %v686_v6 }
 0x889   :  { %692 = vst.msk [vmem:[#allocation2 + $0x20] sm:$0xff] %vm162_vm0, %v686_v6 }
 0x88a   :  { %693 = vst.msk [vmem:[#allocation2 + $0x30] sm:$0xff] %vm162_vm0, %v687_v7 }
 0x88b   :  { %694 = vst.msk [vmem:[#allocation2 + $0x40] sm:$0xff] %vm162_vm0, %v687_v7 }
 0x88c   :  { %695 = vst.msk [vmem:[#allocation2 + $0x50] sm:$0xff] %vm162_vm0, %v688_v8 }
 0x88d   :  { %696 = vst.msk [vmem:[#allocation2 + $0x60] sm:$0xff] %vm162_vm0, %v688_v8 }
 0x88e   :  { %697 = vst.msk [vmem:[#allocation2 + $0x70] sm:$0xff] %vm162_vm0, %v689_v9 }
 0x88f   :  { %698 = vst.msk [vmem:[#allocation2 + $0x80] sm:$0xff] %vm162_vm0, %v689_v9  ;;  %v701_v11 = vld [vmem:[#allocation2 + $0x10] sm:$0xff] }
 0x890   :  { %v702_v12 = vld [vmem:[#allocation2 + $0x20] sm:$0xff]  ;;  %v709_v13 = vpack.c.bf16 %v701_v11, %v701_v11 }
 0x891   :  { %v703_v15 = vld [vmem:[#allocation2 + $0x30] sm:$0xff]  ;;  %v710_v16 = vpack.c.bf16 %v702_v12, %v702_v12 }
 0x892   :  { %v704_v17 = vld [vmem:[#allocation2 + $0x40] sm:$0xff]  ;;  %v711_v18 = vpack.c.bf16 %v703_v15, %v703_v15  ;;  %v729_v19 = vunpack.c.l.b16 %v709_v13 }
 0x893   :  { %v705_v20 = vld [vmem:[#allocation2 + $0x50] sm:$0xff]  ;;  %v712_v21 = vpack.c.bf16 %v704_v17, %v704_v17  ;;  %v730_v22 = vunpack.c.l.b16 %v710_v16 }
 0x894   :  { %v706_v23 = vld [vmem:[#allocation2 + $0x60] sm:$0xff]  ;;  %v713_v24 = vpack.c.bf16 %v705_v20, %v705_v20  ;;  %v731_v25 = vunpack.c.l.b16 %v711_v18  ;;  %v736_v26 = vpack.c.b16 %v729_v19, %v728_v14 }
 0x895   :  { %v714_v27 = vpack.c.bf16 %v706_v23, %v706_v23  ;;  %v732_v28 = vunpack.c.l.b16 %v712_v21  ;;  %v742_v29 = vpack.c.b16 %v730_v22, %v729_v19  ;;  %v707_v30 = vld [vmem:[#allocation2 + $0x70] sm:$0xff] }
 0x896   :  { %v733_v31 = vunpack.c.l.b16 %v713_v24  ;;  %v737_v32 = vpack.c.b16 %v731_v25, %v730_v22  ;;  %v715_v33 = vpack.c.bf16 %v707_v30, %v707_v30  ;;  %v716_v34 = vld [vmem:[#allocation2 + $0x80] sm:$0xff] }
 0x897   :  { %v734_v35 = vunpack.c.l.b16 %v714_v27  ;;  %v743_v36 = vpack.c.b16 %v732_v28, %v731_v25  ;;  %746 = vrot.lane.b32.xlu0 %v742_v29, %s7139_s13  ;;  %v717_v37 = vpack.c.bf16 %v716_v34, %v716_v34 }
 0x898   :  { %6137 = vmatmul.msk.bf16.vlgmr.msrb.gmra.mxu0 %vm162_vm0, %v737_v32  ;;  %v735_v39 = vunpack.c.l.b16 %v715_v33  ;;  %v738_v42 = vpack.c.b16 %v733_v31, %v732_v28 }
 0x899   :  { %v744_v38 = vpack.c.b16 %v734_v35, %v733_v31  ;;  %748 = vrot.lane.b32.xlu1 %v743_v36, %s7139_s13  ;;  %v741_v40 = vunpack.c.l.b16 %v717_v37 }
 0x89a   :  { %v739_v45 = vpack.c.b16 %v735_v39, %v734_v35 }
 0x89b   :  { %750 = vrot.lane.b32.xlu2 %v744_v38, %s7139_s13  ;;  %v745_v41 = vpack.c.b16 %v741_v40, %v735_v39  ;;  %v756_v49 = vpack.c.b16 %v755_v48, %v741_v40 }
 0x89f   :  { %752 = vrot.lane.b32.xlu0 %v745_v41, %s7139_s13 }
 0x8a8   :  { %6138 = vmatmul.msk.bf16.gmra.mxu0 %vm162_vm0, %v738_v42 }
 0x8b8   :  { %6139 = vmatmul.msk.bf16.gmra.mxu0 %vm162_vm0, %v739_v45 }
 0x8c8   :  { %6140 = vmatmul.msk.bf16.gmra.mxu0 %vm162_vm0, %v756_v49 }
 0x8f5   :  { %v751_v61 = vpop.permute.xlu2 %750 }
 0x8f6   :  { %v767_v62 = vsel %vm162_vm0, %v738_v42, %v751_v61 }
 0x909   :  { %v747_v57 = vpop.permute.xlu0 %746 }
 0x90a   :  { %v759_v58 = vsel %vm162_vm0, %v736_v26, %v747_v57 }
 0x90b   :  { %886 = vmatmul.bf16.vlgmr.msra.gmra.mxu1 %v759_v58  ;;  %v749_v59 = vpop.permute.xlu1 %748 }
 0x90c   :  { %v763_v60 = vsel %vm162_vm0, %v737_v32, %v749_v59 }
 0x911   :  { %v753_v63 = vpop.permute.xlu0 %752 }
 0x912   :  { %v771_v0 = vsel %vm162_vm0, %v739_v45, %v753_v63 }
 0x915   :  { %v916_v1 = vpop.f32.mrf.mxu0 }
 0x91b   :  { %891 = vmatmul.bf16.gmra.mxu1 %v763_v60 }
 0x91d   :  { %v918_v2 = vpop.f32.mrf.mxu0 }
 0x925   :  { %v921_v3 = vpop.f32.mrf.mxu0 }
 0x92b   :  { %896 = vmatmul.bf16.gmra.mxu1 %v767_v62 }
 0x92d   :  { %v923_v5 = vpop.f32.mrf.mxu0 }
 0x935   :  { %v926_v8 = vpop.f32.mrf.mxu0 }
 0x93b   :  { %901 = vmatmul.bf16.gmra.mxu1 %v771_v0 }
 0x93d   :  { %v928_v10 = vpop.f32.mrf.mxu0 }
 0x945   :  { %v931_v17 = vpop.f32.mrf.mxu0 }
 0x94d   :  { %v933_v32 = vpop.f32.mrf.mxu0 }
 0x988   :  { %v887_v56 = vpop.f32.mrf.mxu1 }
 0x989   :  { %v7451_v13 = vadd.f32 %v916_v1, %v887_v56 }
 0x98b   :  { %v936_v18 = vsel %vm162_vm0, %v7451_v13, 0.0 }
 0x990   :  { %v889_v4 = vpop.f32.mrf.mxu1 }
 0x991   :  { %v7449_v12 = vadd.f32 %v918_v2, %v889_v4 }
 0x993   :  { %v937_v15 = vsel %vm162_vm0, %v7449_v12, 0.0 }
 0x994   :  { %v938_v21 = vadd.f32 %v937_v15, %v936_v18 }
 0x998   :  { %v892_v6 = vpop.f32.mrf.mxu1 }
 0x999   :  { %v7453_v14 = vadd.f32 %v921_v3, %v892_v6 }
 0x99b   :  { %v939_v19 = vsel %vm162_vm0, %v7453_v14, 0.0 }
 0x99c   :  { %v940_v25 = vadd.f32 %v939_v19, %v938_v21 }
 0x9a0   :  { %v894_v7 = vpop.f32.mrf.mxu1 }
 0x9a1   :  { %v7457_v16 = vadd.f32 %v923_v5, %v894_v7 }
 0x9a3   :  { %v941_v23 = vsel %vm162_vm0, %v7457_v16, 0.0 }
 0x9a4   :  { %v942_v28 = vadd.f32 %v941_v23, %v940_v25 }
 0x9a8   :  { %v897_v9 = vpop.f32.mrf.mxu1 }
 0x9a9   :  { %v7463_v20 = vadd.f32 %v926_v8, %v897_v9 }
 0x9ab   :  { %v943_v26 = vsel %vm162_vm0, %v7463_v20, 0.0 }
 0x9ac   :  { %v944_v30 = vadd.f32 %v943_v26, %v942_v28 }
 0x9b0   :  { %v899_v11 = vpop.f32.mrf.mxu1 }
 0x9b1   :  { %v7467_v24 = vadd.f32 %v928_v10, %v899_v11 }
 0x9b3   :  { %v945_v29 = vsel %vm162_vm0, %v7467_v24, 0.0 }
 0x9b4   :  { %v946_v33 = vadd.f32 %v945_v29, %v944_v30 }
 0x9b8   :  { %v902_v22 = vpop.f32.mrf.mxu1 }
 0x9b9   :  { %v7471_v27 = vadd.f32 %v931_v17, %v902_v22 }
 0x9bb   :  { %v947_v31 = vsel %vm162_vm0, %v7471_v27, 0.0 }
 0x9bc   :  { %v948_v36 = vadd.f32 %v947_v31, %v946_v33 }
 0x9c0   :  { %v904_v34 = vpop.f32.mrf.mxu1 }
 0x9c1   :  { %v7477_v35 = vadd.f32 %v933_v32, %v904_v34 }
 0x9c3   :  { %v949_v37 = vsel %vm162_vm0, %v7477_v35, 0.0 }
 0x9c4   :  { %v950_v38 = vadd.f32 %v949_v37, %v948_v36 }
 0x9c6   :  { %v951_v39 = vrot.slane %v950_v38, 4 }
 0x9c8   :  { %v952_v40 = vadd.f32 %v951_v39, %v950_v38 }
 0x9ca   :  { %v953_v41 = vrot.slane %v952_v40, 2 }
 0x9cc   :  { %v954_v42 = vadd.f32 %v953_v41, %v952_v40 }
 0x9ce   :  { %v955_v43 = vrot.slane %v954_v42, 1 }
 0x9d0   :  { %v956_v44 = vadd.f32 %v955_v43, %v954_v42 }
 0x9d2   :  { %966 = vrot.lane.b32.xlu0 %v956_v44, %s7151_s7  ;;  %962 = vrot.lane.b32.xlu2 %v956_v44, %s7147_s5 }
 0x9d3   :  { %958 = vrot.lane.b32.xlu1 %v956_v44, %s7152_s27 }
 0x9da   :  { %978 = vrot.lane.b32.xlu0 %v956_v44, %s7149_s6  ;;  %974 = vrot.lane.b32.xlu2 %v956_v44, %s7153_s1 }
 0x9db   :  { %970 = vrot.lane.b32.xlu1 %v956_v44, %s7144_s0 }
 0x9e3   :  { %982 = vrot.lane.b32.xlu1 %v956_v44, %s7154_s29 }
 0xa2c   :  { %v963_v45 = vpop.permute.xlu2 %962 }
 0xa34   :  { %v975_v53 = vpop.permute.xlu2 %974 }
 0xa44   :  { %v967_v49 = vpop.permute.xlu0 %966 }
 0xa45   :  { %v959_v46 = vpop.permute.xlu1 %958 }
 0xa46   :  { %v961_v47 = vadd.f32 %v959_v46, %v956_v44 }
 0xa48   :  { %v965_v48 = vadd.f32 %v963_v45, %v961_v47 }
 0xa4a   :  { %v969_v50 = vadd.f32 %v967_v49, %v965_v48 }
 0xa4c   :  { %v979_v55 = vpop.permute.xlu0 %978 }
 0xa4d   :  { %v971_v51 = vpop.permute.xlu1 %970 }
 0xa4e   :  { %v973_v52 = vadd.f32 %v971_v51, %v969_v50 }
 0xa50   :  { %v977_v54 = vadd.f32 %v975_v53, %v973_v52 }
 0xa52   :  { %v981_v57 = vadd.f32 %v979_v55, %v977_v54 }
 0xa55   :  { %v983_v58 = vpop.permute.xlu1 %982 }
 0xa56   :  { %v985_v59 = vadd.f32 %v983_v58, %v981_v57 }
 0xa58   :  { %v986_v60 = vmul.f32 0.001953125, %v985_v59 }
 0xa5a   :  { %994 = vrot.lane.b32.xlu1 %v986_v60, %s7155_s30  ;;  %991 = vrot.lane.b32.xlu0 %v986_v60, %s7148_s15 }
 0xa5b   :  { %988 = vrot.lane.b32.xlu2 %v986_v60, %s7135_s4 }
 0xa62   :  { %1003 = vrot.lane.b32.xlu1 %v986_v60, %s7150_s24  ;;  %1000 = vrot.lane.b32.xlu0 %v986_v60, %s7156_s14 }
 0xa63   :  { %997 = vrot.lane.b32.xlu2 %v986_v60, %s7146_s28 }
 0xa6b   :  { %1006 = vrot.lane.b32.xlu2 %v986_v60, %s7157_s3 }
 0xab5   :  { %v989_v61 = vpop.permute.xlu2 %988 }
 0xab6   :  { %v1010_v1 = vsel %vm1009_vm2, %v986_v60, %v989_v61 }
 0xabd   :  { %v998_v62 = vpop.permute.xlu2 %997 }
 0xac5   :  { %v1007_v7 = vpop.permute.xlu2 %1006 }
 0xacc   :  { %v995_v63 = vpop.permute.xlu1 %994  ;;  %v992_v0 = vpop.permute.xlu0 %991 }
 0xacd   :  { %v1011_v2 = vsel %vm407_vm9, %v1010_v1, %v992_v0 }
 0xace   :  { %v1013_v56 = vsel %vm1012_vm3, %v1011_v2, %v995_v63 }
 0xacf   :  { %v1014_v5 = vsel %vm263_vm7, %v1013_v56, %v998_v62 }
 0xad4   :  { %v1004_v3 = vpop.permute.xlu1 %1003  ;;  %v1001_v4 = vpop.permute.xlu0 %1000 }
 0xad5   :  { %v1016_v6 = vsel %vm1015_vm4, %v1014_v5, %v1001_v4 }
 0xad6   :  { %v1017_v8 = vsel %vm615_vm13, %v1016_v6, %v1004_v3 }
 0xad7   :  { %v1019_v9 = vsel %vm1018_vm5, %v1017_v8, %v1007_v7 }
 0xad8   :  { %v1020_v10 = vperm.slane %v1019_v9, 0 }
 0xada   :  { %v7503_v11 = vsub.f32 %v7451_v13, %v1020_v10  ;;  %v7506_v15 = vsub.f32 %v7449_v12, %v1020_v10  ;;  %v7509_v17 = vsub.f32 %v7453_v14, %v1020_v10  ;;  %v7512_v18 = vsub.f32 %v7457_v16, %v1020_v10 }
 0xadb   :  { %v7515_v19 = vsub.f32 %v7463_v20, %v1020_v10  ;;  %v7524_v12 = vsub.f32 %v7467_v24, %v1020_v10  ;;  %v7531_v25 = vsub.f32 %v7471_v27, %v1020_v10  ;;  %v7537_v24 = vsub.f32 %v7477_v35, %v1020_v10 }
 0xadc   :  { %v1029_v21 = vmul.f32 %v7503_v11, %v7503_v11  ;;  %v1030_v22 = vmul.f32 %v7506_v15, %v7506_v15  ;;  %v1031_v13 = vmul.f32 %v7509_v17, %v7509_v17  ;;  %v1032_v14 = vmul.f32 %v7512_v18, %v7512_v18 }
 0xadd   :  { %v1033_v26 = vmul.f32 %v7515_v19, %v7515_v19  ;;  %v1034_v30 = vmul.f32 %v7524_v12, %v7524_v12  ;;  %v1035_v33 = vmul.f32 %v7531_v25, %v7531_v25  ;;  %v1036_v36 = vmul.f32 %v7537_v24, %v7537_v24 }
 0xade   :  { %v1037_v16 = vsel %vm162_vm0, %v1029_v21, 0.0  ;;  %v1038_v20 = vsel %vm162_vm0, %v1030_v22, 0.0  ;;  %v1040_v28 = vsel %vm162_vm0, %v1031_v13, 0.0  ;;  %v1042_v31 = vsel %vm162_vm0, %v1032_v14, 0.0  ;;  %v6648_v22 = vld [vmem:[#allocation10 + $0x58] sm:$0xff] }
 0xadf   :  { %v1039_v23 = vadd.f32 %v1038_v20, %v1037_v16  ;;  %v1044_v27 = vsel %vm162_vm0, %v1033_v26, 0.0  ;;  %v1046_v37 = vsel %vm162_vm0, %v1034_v30, 0.0  ;;  %v1048_v35 = vsel %vm162_vm0, %v1035_v33, 0.0  ;;  %1474 = vmatpush.bf16.msra.mxu3 %v6648_v22  ;;  %v6647_v16 = vld [vmem:[#allocation10 + $0x50] sm:$0xff]  ;;  %v6646_v26 = vld [vmem:[#allocation10 + $0x48] sm:$0xff]  ;;  %v1171_v33 = vld [vmem:[#allocation2] sm:$0xff] }
 0xae0   :  { %v1050_v40 = vsel %vm162_vm0, %v1036_v36, 0.0 }
 0xae1   :  { %v1041_v29 = vadd.f32 %v1040_v28, %v1039_v23 }
 0xae3   :  { %v1043_v32 = vadd.f32 %v1042_v31, %v1041_v29  ;;  %1475 = vmatpush.bf16.msra.mxu3 %v6647_v16 }
 0xae5   :  { %v1045_v34 = vadd.f32 %v1044_v27, %v1043_v32  ;;  %v6645_v32 = vld [vmem:[#allocation10 + $0x40] sm:$0xff] }
 0xae7   :  { %v1047_v38 = vadd.f32 %v1046_v37, %v1045_v34  ;;  %1476 = vmatpush.bf16.msra.mxu3 %v6646_v26  ;;  %v6925_v34 = vld [vmem:[#allocation2 + $0x8] sm:$0xff] }
 0xae8   :  { %3815 = vst [vmem:[#allocation2] sm:$0xff] %v6925_v34 }
 0xae9   :  { %v1049_v39 = vadd.f32 %v1048_v35, %v1047_v38 }
 0xaeb   :  { %v1051_v41 = vadd.f32 %v1050_v40, %v1049_v39  ;;  %1477 = vmatpush.bf16.msra.mxu3 %v6645_v32 }
 0xaed   :  { %v1052_v42 = vrot.slane %v1051_v41, 4 }
 0xaef   :  { %v1053_v43 = vadd.f32 %v1052_v42, %v1051_v41 }
 0xaf1   :  { %v1054_v44 = vrot.slane %v1053_v43, 2 }
 0xaf3   :  { %v1055_v45 = vadd.f32 %v1054_v44, %v1053_v43 }
 0xaf5   :  { %v1056_v46 = vrot.slane %v1055_v45, 1 }
 0xaf7   :  { %v1057_v47 = vadd.f32 %v1056_v46, %v1055_v45 }
 0xaf9   :  { %1067 = vrot.lane.b32.xlu2 %v1057_v47, %s7151_s7  ;;  %1063 = vrot.lane.b32.xlu1 %v1057_v47, %s7147_s5 }
 0xafa   :  { %1059 = vrot.lane.b32.xlu0 %v1057_v47, %s7152_s27 }
 0xb01   :  { %1079 = vrot.lane.b32.xlu2 %v1057_v47, %s7149_s6  ;;  %1075 = vrot.lane.b32.xlu1 %v1057_v47, %s7153_s1 }
 0xb02   :  { %1071 = vrot.lane.b32.xlu0 %v1057_v47, %s7144_s0 }
 0xb0a   :  { %1083 = vrot.lane.b32.xlu0 %v1057_v47, %s7154_s29 }
 0xb53   :  { %v1068_v52 = vpop.permute.xlu2 %1067 }
 0xb5b   :  { %v1080_v59 = vpop.permute.xlu2 %1079 }
 0xb6b   :  { %v1064_v48 = vpop.permute.xlu1 %1063 }
 0xb6c   :  { %v1060_v49 = vpop.permute.xlu0 %1059 }
 0xb6d   :  { %v1062_v50 = vadd.f32 %v1060_v49, %v1057_v47 }
 0xb6f   :  { %v1066_v51 = vadd.f32 %v1064_v48, %v1062_v50  ;;  %v1187_v50 = vpack.c.bf16 %v1171_v33, %v1171_v33 }
 0xb71   :  { %v1070_v53 = vadd.f32 %v1068_v52, %v1066_v51 }
 0xb73   :  { %v1076_v57 = vpop.permute.xlu1 %1075 }
 0xb74   :  { %v1072_v54 = vpop.permute.xlu0 %1071 }
 0xb75   :  { %v1074_v55 = vadd.f32 %v1072_v54, %v1070_v53 }
 0xb77   :  { %v1078_v58 = vadd.f32 %v1076_v57, %v1074_v55  ;;  %v7588_v55 = vunpack.c.l.b16 %v1187_v50  ;;  %v6644_v50 = vld [vmem:[#allocation10 + $0x38] sm:$0xff] }
 0xb78   :  { %6745 = vmatpush.bf16.msrb.mxu2 %v6644_v50  ;;  %1421 = vmatpush.bf16.msra.mxu0 %v6644_v50 }
 0xb79   :  { %v1082_v60 = vadd.f32 %v1080_v59, %v1078_v58 }
 0xb7c   :  { %v1084_v61 = vpop.permute.xlu0 %1083 }
 0xb7d   :  { %v1086_v62 = vadd.f32 %v1084_v61, %v1082_v60 }
 0xb7f   :  { %v1087_v63 = vmul.f32 0.001953125, %v1086_v62 }
 0xb81   :  { %v1088_v0 = vadd.f32 1e-05, %v1087_v63 }
 0xb83   :  { %6791 = vrsqrt.f32 %v1088_v0  ;;  %vm1095_vm10 = vweird.f32 %v1088_v0 }
 0xb89   :  { %v6792_v1 = vpop.eup %6791 }
 0xb8a   :  { %v1090_v2 = vmul.f32 %v6792_v1, %v1088_v0  ;;  %vm1096_vm6 = vweird.f32 %v6792_v1 }
 0xb8b   :  { %vm1097_vm11 = vmor %vm1095_vm10, %vm1096_vm6  ;;  %vm10281_vm6 = vcmask 916480   ;;  %vm10280_vm10 = vcmask 982016  }
 0xb8c   :  { %v1091_v56 = vmul.f32 %v6792_v1, %v1090_v2 }
 0xb8e   :  { %v1092_v3 = vmul.f32 0.5, %v1091_v56 }
 0xb90   :  { %v1093_v4 = vsub.f32 1.5, %v1092_v3 }
 0xb92   :  { %v1094_v5 = vmul.f32 %v6792_v1, %v1093_v4 }
 0xb94   :  { %v1098_v6 = vsel %vm1097_vm11, %v6792_v1, %v1094_v5 }
 0xb95   :  { %1106 = vrot.lane.b32.xlu0 %v1098_v6, %s7155_s30  ;;  %1103 = vrot.lane.b32.xlu2 %v1098_v6, %s7148_s15 }
 0xb96   :  { %1100 = vrot.lane.b32.xlu1 %v1098_v6, %s7135_s4 }
 0xb9d   :  { %1115 = vrot.lane.b32.xlu0 %v1098_v6, %s7150_s24  ;;  %1112 = vrot.lane.b32.xlu2 %v1098_v6, %s7156_s14 }
 0xb9e   :  { %1109 = vrot.lane.b32.xlu1 %v1098_v6, %s7146_s28 }
 0xba6   :  { %1118 = vrot.lane.b32.xlu1 %v1098_v6, %s7157_s3 }
 0xbef   :  { %v1104_v8 = vpop.permute.xlu2 %1103 }
 0xbf7   :  { %v1113_v23 = vpop.permute.xlu2 %1112 }
 0xc07   :  { %v1107_v10 = vpop.permute.xlu0 %1106 }
 0xc08   :  { %v1101_v7 = vpop.permute.xlu1 %1100 }
 0xc09   :  { %v1121_v9 = vsel %vm1009_vm2, %v1098_v6, %v1101_v7 }
 0xc0a   :  { %v1122_v21 = vsel %vm407_vm9, %v1121_v9, %v1104_v8 }
 0xc0b   :  { %v1123_v14 = vsel %vm1012_vm3, %v1122_v21, %v1107_v10 }
 0xc0f   :  { %v1116_v29 = vpop.permute.xlu0 %1115 }
 0xc10   :  { %v1110_v13 = vpop.permute.xlu1 %1109 }
 0xc11   :  { %v1124_v20 = vsel %vm263_vm7, %v1123_v14, %v1110_v13 }
 0xc12   :  { %v1125_v28 = vsel %vm1015_vm4, %v1124_v20, %v1113_v23 }
 0xc13   :  { %v1126_v30 = vsel %vm615_vm13, %v1125_v28, %v1116_v29 }
 0xc18   :  { %v1119_v31 = vpop.permute.xlu1 %1118 }
 0xc19   :  { %v1127_v27 = vsel %vm1018_vm5, %v1126_v30, %v1119_v31 }
 0xc1a   :  { %v1128_v36 = vperm.slane %v1127_v27, 0 }
 0xc1c   :  { %v1129_v37 = vmul.f32 %v1128_v36, %v7503_v11  ;;  %v1130_v38 = vmul.f32 %v1128_v36, %v7506_v15  ;;  %v1131_v35 = vmul.f32 %v1128_v36, %v7509_v17  ;;  %v1132_v39 = vmul.f32 %v1128_v36, %v7512_v18 }
 0xc1d   :  { %v1133_v40 = vmul.f32 %v1128_v36, %v7515_v19  ;;  %v1134_v44 = vmul.f32 %v1128_v36, %v7524_v12  ;;  %v1135_v48 = vmul.f32 %v1128_v36, %v7531_v25  ;;  %v1136_v15 = vmul.f32 %v1128_v36, %v7537_v24 }
 0xc1e   :  { %v1137_v41 = vmul.f32 0.2, %v1129_v37  ;;  %v1138_v42 = vmul.f32 0.2, %v1130_v38  ;;  %v1139_v43 = vmul.f32 0.2, %v1131_v35 }
 0xc1f   :  { %v1140_v45 = vmul.f32 0.2, %v1132_v39  ;;  %v1141_v11 = vmul.f32 0.2, %v1133_v40  ;;  %v1142_v17 = vmul.f32 0.2, %v1134_v44 }
 0xc20   :  { %v1145_v46 = vmax.f32 %v1129_v37, %v1137_v41  ;;  %v1146_v47 = vmax.f32 %v1130_v38, %v1138_v42  ;;  %v1147_v49 = vmax.f32 %v1131_v35, %v1139_v43  ;;  %v1143_v19 = vmul.f32 0.2, %v1135_v48 }
 0xc21   :  { %v1148_v18 = vmax.f32 %v1132_v39, %v1140_v45  ;;  %v1149_v12 = vmax.f32 %v1133_v40, %v1141_v11  ;;  %v1144_v25 = vmul.f32 0.2, %v1136_v15  ;;  %v1150_v51 = vmax.f32 %v1134_v44, %v1142_v17 }
 0xc22   :  { %1154 = vst.msk [vmem:[#allocation2 + $0x10] sm:$0xff] %vm162_vm0, %v1145_v46  ;;  %v1151_v52 = vmax.f32 %v1135_v48, %v1143_v19 }
 0xc23   :  { %1155 = vst.msk [vmem:[#allocation2 + $0x20] sm:$0xff] %vm162_vm0, %v1145_v46  ;;  %v1152_v59 = vmax.f32 %v1136_v15, %v1144_v25 }
 0xc24   :  { %1156 = vst.msk [vmem:[#allocation2 + $0x30] sm:$0xff] %vm162_vm0, %v1146_v47 }
 0xc25   :  { %1157 = vst.msk [vmem:[#allocation2 + $0x40] sm:$0xff] %vm162_vm0, %v1146_v47 }
 0xc26   :  { %1158 = vst.msk [vmem:[#allocation2 + $0x50] sm:$0xff] %vm162_vm0, %v1147_v49 }
 0xc27   :  { %1159 = vst.msk [vmem:[#allocation2 + $0x60] sm:$0xff] %vm162_vm0, %v1147_v49 }
 0xc28   :  { %1160 = vst.msk [vmem:[#allocation2 + $0x70] sm:$0xff] %vm162_vm0, %v1148_v18 }
 0xc29   :  { %1161 = vst.msk [vmem:[#allocation2 + $0x80] sm:$0xff] %vm162_vm0, %v1148_v18  ;;  %v1172_v24 = vld [vmem:[#allocation2 + $0x10] sm:$0xff] }
 0xc2a   :  { %1162 = vst.msk [vmem:[#allocation2 + $0x90] sm:$0xff] %vm162_vm0, %v1149_v12  ;;  %v1173_v53 = vld [vmem:[#allocation2 + $0x20] sm:$0xff]  ;;  %v1188_v54 = vpack.c.bf16 %v1172_v24, %v1172_v24 }
 0xc2b   :  { %1163 = vst.msk [vmem:[#allocation2 + $0xa0] sm:$0xff] %vm162_vm0, %v1149_v12  ;;  %v1174_v57 = vld [vmem:[#allocation2 + $0x30] sm:$0xff]  ;;  %v1189_v58 = vpack.c.bf16 %v1173_v53, %v1173_v53 }
 0xc2c   :  { %1164 = vst.msk [vmem:[#allocation2 + $0xb0] sm:$0xff] %vm162_vm0, %v1150_v51  ;;  %v1190_v60 = vpack.c.bf16 %v1174_v57, %v1174_v57  ;;  %v7592_v61 = vunpack.c.l.b16 %v1188_v54  ;;  %v1175_v30 = vld [vmem:[#allocation2 + $0x40] sm:$0xff]  ;;  %v6642_v53 = vld [vmem:[#allocation10 + $0x28] sm:$0xff] }
 0xc2d   :  { %1165 = vst.msk [vmem:[#allocation2 + $0xc0] sm:$0xff] %vm162_vm0, %v1150_v51  ;;  %v1176_v62 = vld [vmem:[#allocation2 + $0x50] sm:$0xff]  ;;  %v1225_v63 = vunpack.c.l.b16 %v1189_v58  ;;  %v1191_v37 = vpack.c.bf16 %v1175_v30, %v1175_v30  ;;  %v6641_v54 = vld [vmem:[#allocation10 + $0x20] sm:$0xff]  ;;  %v6640_v57 = vld [vmem:[#allocation10 + $0x18] sm:$0xff] }
 0xc2e   :  { %1166 = vst.msk [vmem:[#allocation2 + $0xd0] sm:$0xff] %vm162_vm0, %v1151_v52  ;;  %v1177_v0 = vld [vmem:[#allocation2 + $0x60] sm:$0xff]  ;;  %v1192_v1 = vpack.c.bf16 %v1176_v62, %v1176_v62  ;;  %v1226_v2 = vunpack.c.l.b16 %v1190_v60  ;;  %v1239_v56 = vpack.c.b16 %v7592_v61, %v7588_v55  ;;  %v6638_v60 = vld [vmem:[#allocation10 + $0x8] sm:$0xff] }
 0xc2f   :  { %1167 = vst.msk [vmem:[#allocation2 + $0xe0] sm:$0xff] %vm162_vm0, %v1151_v52  ;;  %v1178_v3 = vld [vmem:[#allocation2 + $0x70] sm:$0xff]  ;;  %v1193_v4 = vpack.c.bf16 %v1177_v0, %v1177_v0  ;;  %v1227_v46 = vunpack.c.l.b16 %v1191_v37  ;;  %v1249_v47 = vpack.c.b16 %v1225_v63, %v7592_v61  ;;  %v6637_v62 = vld [vmem:[#allocation10] sm:$0xff] }
 0xc30   :  { %1168 = vst.msk [vmem:[#allocation2 + $0xf0] sm:$0xff] %vm162_vm0, %v1152_v59  ;;  %v1179_v5 = vld [vmem:[#allocation2 + $0x80] sm:$0xff]  ;;  %v1194_v6 = vpack.c.bf16 %v1178_v3, %v1178_v3  ;;  %v1228_v7 = vunpack.c.l.b16 %v1192_v1  ;;  %v7600_v8 = vpack.c.b16 %v1226_v2, %v1225_v63  ;;  %v6643_v52 = vld [vmem:[#allocation10 + $0x30] sm:$0xff] }
 0xc31   :  { %1169 = vst.msk [vmem:[#allocation2 + $0x100] sm:$0xff] %vm162_vm0, %v1152_v59  ;;  %v1180_v9 = vld [vmem:[#allocation2 + $0x90] sm:$0xff]  ;;  %v1195_v10 = vpack.c.bf16 %v1179_v5, %v1179_v5  ;;  %v1229_v21 = vunpack.c.l.b16 %v1193_v4  ;;  %v1250_v17 = vpack.c.b16 %v1227_v46, %v1226_v2  ;;  %6746 = vmatpush.bf16.msrb.mxu2 %v6643_v52  ;;  %1422 = vmatpush.bf16.msra.mxu0 %v6643_v52 }
 0xc32   :  { %v1181_v22 = vld [vmem:[#allocation2 + $0xa0] sm:$0xff]  ;;  %v1196_v13 = vpack.c.bf16 %v1180_v9, %v1180_v9  ;;  %v1230_v14 = vunpack.c.l.b16 %v1194_v6  ;;  %6189 = vmatmul.msk.bf16.vlgmr.msra.gmra.mxu3 %vm162_vm0, %v7600_v8  ;;  %v1241_v19 = vpack.c.b16 %v1228_v7, %v1227_v46  ;;  %v6639_v59 = vld [vmem:[#allocation10 + $0x10] sm:$0xff] }
 0xc33   :  { %v1197_v16 = vpack.c.bf16 %v1181_v22, %v1181_v22  ;;  %v1231_v20 = vunpack.c.l.b16 %v1195_v10  ;;  %v1251_v23 = vpack.c.b16 %v1229_v21, %v1228_v7  ;;  %v1182_v26 = vld [vmem:[#allocation2 + $0xb0] sm:$0xff] }
 0xc34   :  { %v1232_v28 = vunpack.c.l.b16 %v1196_v13  ;;  %v1183_v29 = vld [vmem:[#allocation2 + $0xc0] sm:$0xff]  ;;  %v1198_v33 = vpack.c.bf16 %v1182_v26, %v1182_v26  ;;  %v1242_v24 = vpack.c.b16 %v1230_v14, %v1229_v21  ;;  %v1205_v3 = vld [vmem:[#allocation2 + $0x110] sm:$0xff] }
 0xc35   :  { %v7605_v31 = vunpack.c.l.b16 %v1197_v16  ;;  %v1252_v32 = vpack.c.b16 %v1231_v20, %v1230_v14  ;;  %1261 = vrot.lane.b32.xlu2 %v1251_v23, %s7139_s13  ;;  %v1199_v27 = vpack.c.bf16 %v1183_v29, %v1183_v29  ;;  %v1184_v40 = vld [vmem:[#allocation2 + $0xd0] sm:$0xff]  ;;  %6747 = vmatpush.bf16.msrb.mxu2 %v6642_v53  ;;  %v1206_v6 = vpack.c.bf16 %v1205_v3, %v1205_v3 }
 0xc36   :  { %v1185_v34 = vld [vmem:[#allocation2 + $0xe0] sm:$0xff]  ;;  %v1234_v41 = vunpack.c.l.b16 %v1198_v33  ;;  %v1200_v48 = vpack.c.bf16 %v1184_v40, %v1184_v40  ;;  %1423 = vmatpush.bf16.msra.mxu0 %v6642_v53  ;;  %v1243_v58 = vpack.c.b16 %v1232_v28, %v1231_v20 }
 0xc37   :  { %v1253_v36 = vpack.c.b16 %v7605_v31, %v1232_v28  ;;  %1263 = vrot.lane.b32.xlu0 %v1252_v32, %s7139_s13  ;;  %v1186_v38 = vld [vmem:[#allocation2 + $0xf0] sm:$0xff]  ;;  %v1201_v35 = vpack.c.bf16 %v1185_v34, %v1185_v34  ;;  %v1235_v42 = vunpack.c.l.b16 %v1199_v27  ;;  %v1274_v7 = vunpack.c.l.b16 %v1206_v6 }
 0xc38   :  { %v1202_v39 = vpack.c.bf16 %v1186_v38, %v1186_v38  ;;  %v1203_v44 = vld [vmem:[#allocation2 + $0x100] sm:$0xff]  ;;  %v1236_v18 = vunpack.c.l.b16 %v1200_v48  ;;  %v1244_v63 = vpack.c.b16 %v1234_v41, %v7605_v31 }
 0xc39   :  { %1265 = vrot.lane.b32.xlu1 %v1253_v36, %s7139_s13  ;;  %v1237_v43 = vunpack.c.l.b16 %v1201_v35  ;;  %v1254_v49 = vpack.c.b16 %v1235_v42, %v1234_v41  ;;  %v1204_v15 = vpack.c.bf16 %v1203_v44, %v1203_v44  ;;  %6748 = vmatpush.bf16.msrb.mxu2 %v6641_v54 }
 0xc3a   :  { %v1238_v45 = vunpack.c.l.b16 %v1202_v39  ;;  %1424 = vmatpush.bf16.msra.mxu0 %v6641_v54  ;;  %v1245_v0 = vpack.c.b16 %v1236_v18, %v1235_v42 }
 0xc3b   :  { %v1248_v12 = vunpack.c.l.b16 %v1204_v15  ;;  %v1255_v25 = vpack.c.b16 %v1237_v43, %v1236_v18 }
 0xc3c   :  { %v7612_v11 = vpack.c.b16 %v1238_v45, %v1237_v43 }
 0xc3d   :  { %1257 = vrot.lane.b32.xlu2 %v1249_v47, %s7139_s13  ;;  %v1256_v51 = vpack.c.b16 %v1248_v12, %v1238_v45  ;;  %6749 = vmatpush.bf16.msrb.mxu2 %v6640_v57  ;;  %v1275_v9 = vpack.c.b16 %v1274_v7, %v1248_v12 }
 0xc3e   :  { %1425 = vmatpush.bf16.msra.mxu0 %v6640_v57 }
 0xc3f   :  { %1267 = vrot.lane.b32.xlu0 %v1254_v49, %s7139_s13 }
 0xc41   :  { %1259 = vrot.lane.b32.xlu1 %v1250_v17, %s7139_s13  ;;  %6750 = vmatpush.bf16.msrb.mxu2 %v6639_v59 }
 0xc42   :  { %6190 = vmatmul.msk.bf16.gmra.mxu3 %vm162_vm0, %v1241_v19  ;;  %1426 = vmatpush.bf16.msra.mxu0 %v6639_v59 }
 0xc45   :  { %1269 = vrot.lane.b32.xlu2 %v1255_v25, %s7139_s13  ;;  %6751 = vmatpush.bf16.msrb.mxu2 %v6638_v60 }
 0xc46   :  { %1427 = vmatpush.bf16.msra.mxu0 %v6638_v60 }
 0xc47   :  { %1271 = vrot.lane.b32.xlu0 %v1256_v51, %s7139_s13 }
 0xc49   :  { %6752 = vmatpush.bf16.msrb.mxu2 %v6637_v62 }
 0xc4a   :  { %1428 = vmatpush.bf16.msra.mxu0 %v6637_v62 }
 0xc52   :  { %6191 = vmatmul.msk.bf16.gmra.mxu3 %vm162_vm0, %v1242_v24 }
 0xc62   :  { %6192 = vmatmul.msk.bf16.gmra.mxu3 %vm162_vm0, %v1243_v58 }
 0xc72   :  { %6193 = vmatmul.msk.bf16.gmra.mxu3 %vm162_vm0, %v1244_v63 }
 0xc82   :  { %6194 = vmatmul.msk.bf16.gmra.mxu3 %vm162_vm0, %v1245_v0 }
 0xc8f   :  { %v1262_v1 = vpop.permute.xlu2 %1261 }
 0xc90   :  { %v1286_v2 = vsel %vm162_vm0, %v1241_v19, %v1262_v1 }
 0xc91   :  { %1439 = vmatmul.bf16.vlgmr.msrb.gmra.mxu2 %v1286_v2 }
 0xc92   :  { %6195 = vmatmul.msk.bf16.gmra.mxu3 %vm162_vm0, %v7612_v11 }
 0xc97   :  { %v1258_v4 = vpop.permute.xlu2 %1257 }
 0xc98   :  { %v1278_v5 = vsel %vm162_vm0, %v1239_v56, %v1258_v4 }
 0xc99   :  { %1429 = vmatmul.bf16.vlgmr.msra.gmra.mxu0 %v1278_v5 }
 0xc9f   :  { %v1270_v16 = vpop.permute.xlu2 %1269 }
 0xca0   :  { %v1302_v20 = vsel %vm162_vm0, %v1245_v0, %v1270_v16 }
 0xca2   :  { %6196 = vmatmul.msk.bf16.gmra.mxu3 %vm162_vm0, %v1275_v9 }
 0xca9   :  { %v1264_v10 = vpop.permute.xlu0 %1263 }
 0xcaa   :  { %v1290_v21 = vsel %vm162_vm0, %v1242_v24, %v1264_v10 }
 0xcab   :  { %v1266_v22 = vpop.permute.xlu1 %1265  ;;  %1444 = vmatmul.bf16.gmra.mxu2 %v1290_v21 }
 0xcac   :  { %v1294_v55 = vsel %vm162_vm0, %v1243_v58, %v1266_v22 }
 0xcb1   :  { %v1268_v61 = vpop.permute.xlu0 %1267 }
 0xcb2   :  { %v1298_v56 = vsel %vm162_vm0, %v1244_v63, %v1268_v61 }
 0xcb3   :  { %v1260_v13 = vpop.permute.xlu1 %1259 }
 0xcb4   :  { %v1282_v14 = vsel %vm162_vm0, %v7600_v8, %v1260_v13 }
 0xcb5   :  { %1434 = vmatmul.bf16.gmra.mxu0 %v1282_v14  ;;  %v1479_v23 = vpop.f32.mrf.mxu3 }
 0xcb9   :  { %v1272_v26 = vpop.permute.xlu0 %1271 }
 0xcba   :  { %v1306_v29 = vsel %vm162_vm0, %v7612_v11, %v1272_v26 }
 0xcbb   :  { %1449 = vmatmul.bf16.gmra.mxu2 %v1294_v55 }
 0xcbd   :  { %v1481_v28 = vpop.f32.mrf.mxu3 }
 0xcc5   :  { %v1484_v8 = vpop.f32.mrf.mxu3 }
 0xccb   :  { %1454 = vmatmul.bf16.gmra.mxu2 %v1298_v56 }
 0xccd   :  { %v1486_v30 = vpop.f32.mrf.mxu3 }
 0xcd5   :  { %v1489_v31 = vpop.f32.mrf.mxu3 }
 0xcdb   :  { %1459 = vmatmul.bf16.gmra.mxu2 %v1302_v20 }
 0xcdd   :  { %v1491_v32 = vpop.f32.mrf.mxu3 }
 0xce5   :  { %v1494_v34 = vpop.f32.mrf.mxu3 }
 0xceb   :  { %1464 = vmatmul.bf16.gmra.mxu2 %v1306_v29 }
 0xced   :  { %v1496_v36 = vpop.f32.mrf.mxu3 }
 0xcf5   :  { %v1499_v35 = vpop.f32.mrf.mxu3 }
 0xcfd   :  { %v1501_v41 = vpop.f32.mrf.mxu3 }
 0xd05   :  { %v1504_v44 = vpop.f32.mrf.mxu3 }
 0xd0d   :  { %v1506_v47 = vpop.f32.mrf.mxu3 }
 0xd14   :  { %v1440_v33 = vpop.f32.mrf.mxu2 }
 0xd15   :  { %v7641_v27 = vadd.f32 %v1489_v31, %v1440_v33  ;;  %v1509_v51 = vpop.f32.mrf.mxu3 }
 0xd16   :  { %v1430_v39 = vpop.f32.mrf.mxu0 }
 0xd17   :  { %v7645_v15 = vadd.f32 %v1479_v23, %v1430_v39 }
 0xd1c   :  { %v1442_v37 = vpop.f32.mrf.mxu2 }
 0xd1d   :  { %v7656_v52 = vadd.f32 %v1491_v32, %v1442_v37  ;;  %v1511_v58 = vpop.f32.mrf.mxu3 }
 0xd1e   :  { %v1432_v42 = vpop.f32.mrf.mxu0 }
 0xd1f   :  { %v7643_v11 = vadd.f32 %v1481_v28, %v1432_v42 }
 0xd21   :  { %v1519_v18 = vadd.f32 %v7643_v11, %v7645_v15 }
 0xd25   :  { %v1514_v4 = vpop.f32.mrf.mxu3 }
 0xd2d   :  { %v1516_v61 = vpop.f32.mrf.mxu3 }
 0xd2e   :  { %v1445_v38 = vpop.f32.mrf.mxu2 }
 0xd2f   :  { %v7659_v57 = vadd.f32 %v1494_v34, %v1445_v38 }
 0xd32   :  { %v1435_v45 = vpop.f32.mrf.mxu0 }
 0xd33   :  { %v7647_v17 = vadd.f32 %v1484_v8, %v1435_v45 }
 0xd35   :  { %v1520_v12 = vadd.f32 %v1519_v18, %v7647_v17 }
 0xd36   :  { %v1447_v40 = vpop.f32.mrf.mxu2 }
 0xd37   :  { %v7662_v60 = vadd.f32 %v1496_v36, %v1447_v40 }
 0xd3a   :  { %v1437_v49 = vpop.f32.mrf.mxu0 }
 0xd3b   :  { %v7651_v19 = vadd.f32 %v1486_v30, %v1437_v49 }
 0xd3d   :  { %v1521_v25 = vadd.f32 %v1520_v12, %v7651_v19 }
 0xd3e   :  { %v1450_v43 = vpop.f32.mrf.mxu2 }
 0xd3f   :  { %v1522_v24 = vadd.f32 %v1521_v25, %v7641_v27  ;;  %v7665_v0 = vadd.f32 %v1499_v35, %v1450_v43 }
 0xd41   :  { %v1523_v54 = vadd.f32 %v1522_v24, %v7656_v52 }
 0xd43   :  { %v1524_v59 = vadd.f32 %v1523_v54, %v7659_v57 }
 0xd45   :  { %v1525_v63 = vadd.f32 %v1524_v59, %v7662_v60 }
 0xd46   :  { %v1452_v46 = vpop.f32.mrf.mxu2 }
 0xd47   :  { %v7667_v1 = vadd.f32 %v1501_v41, %v1452_v46  ;;  %v1526_v2 = vadd.f32 %v1525_v63, %v7665_v0 }
 0xd49   :  { %v1527_v5 = vadd.f32 %v1526_v2, %v7667_v1 }
 0xd4e   :  { %v1455_v48 = vpop.f32.mrf.mxu2 }
 0xd4f   :  { %v7670_v3 = vadd.f32 %v1504_v44, %v1455_v48 }
 0xd51   :  { %v1528_v9 = vadd.f32 %v1527_v5, %v7670_v3 }
 0xd56   :  { %v1457_v50 = vpop.f32.mrf.mxu2 }
 0xd57   :  { %v7673_v6 = vadd.f32 %v1506_v47, %v1457_v50 }
 0xd59   :  { %v1529_v21 = vadd.f32 %v1528_v9, %v7673_v6 }
 0xd5e   :  { %v1460_v53 = vpop.f32.mrf.mxu2 }
 0xd5f   :  { %v7676_v10 = vadd.f32 %v1509_v51, %v1460_v53 }
 0xd61   :  { %v1530_v13 = vadd.f32 %v1529_v21, %v7676_v10 }
 0xd66   :  { %v1462_v62 = vpop.f32.mrf.mxu2 }
 0xd67   :  { %v7679_v22 = vadd.f32 %v1511_v58, %v1462_v62 }
 0xd69   :  { %v1531_v55 = vadd.f32 %v1530_v13, %v7679_v22 }
 0xd6e   :  { %v1465_v7 = vpop.f32.mrf.mxu2 }
 0xd6f   :  { %v7682_v14 = vadd.f32 %v1514_v4, %v1465_v7 }
 0xd71   :  { %v1532_v16 = vadd.f32 %v1531_v55, %v7682_v14 }
 0xd76   :  { %v1467_v56 = vpop.f32.mrf.mxu2 }
 0xd77   :  { %v7686_v20 = vadd.f32 %v1516_v61, %v1467_v56 }
 0xd79   :  { %v1533_v23 = vadd.f32 %v1532_v16, %v7686_v20 }
 0xd7b   :  { %v1534_v26 = vrot.slane %v1533_v23, 4 }
 0xd7d   :  { %v1535_v28 = vadd.f32 %v1534_v26, %v1533_v23 }
 0xd7f   :  { %v1536_v29 = vrot.slane %v1535_v28, 2 }
 0xd81   :  { %v1537_v8 = vadd.f32 %v1536_v29, %v1535_v28 }
 0xd83   :  { %v1538_v30 = vrot.slane %v1537_v8, 1 }
 0xd85   :  { %v1539_v31 = vadd.f32 %v1538_v30, %v1537_v8 }
 0xd87   :  { %1549 = vrot.lane.b32.xlu0 %v1539_v31, %s7151_s7  ;;  %1545 = vrot.lane.b32.xlu2 %v1539_v31, %s7147_s5 }
 0xd88   :  { %1541 = vrot.lane.b32.xlu1 %v1539_v31, %s7152_s27 }
 0xd8f   :  { %1561 = vrot.lane.b32.xlu0 %v1539_v31, %s7149_s6  ;;  %1557 = vrot.lane.b32.xlu2 %v1539_v31, %s7153_s1 }
 0xd90   :  { %1553 = vrot.lane.b32.xlu1 %v1539_v31, %s7144_s0 }
 0xd97   :  { %1573 = vrot.lane.b32.xlu0 %v1539_v31, %s7157_s3  ;;  %1569 = vrot.lane.b32.xlu2 %v1539_v31, %s7139_s13 }
 0xd98   :  { %1565 = vrot.lane.b32.xlu1 %v1539_v31, %s7154_s29 }
 0xd9f   :  { %1585 = vrot.lane.b32.xlu0 %v1539_v31, %s7146_s28  ;;  %1581 = vrot.lane.b32.xlu2 %v1539_v31, %s7156_s14 }
 0xda0   :  { %1577 = vrot.lane.b32.xlu1 %v1539_v31, %s7150_s24 }
 0xda7   :  { %1597 = vrot.lane.b32.xlu0 %v1539_v31, %s7135_s4  ;;  %1593 = vrot.lane.b32.xlu2 %v1539_v31, %s7148_s15 }
 0xda8   :  { %1589 = vrot.lane.b32.xlu1 %v1539_v31, %s7155_s30 }
 0xde1   :  { %v1546_v32 = vpop.permute.xlu2 %1545 }
 0xde9   :  { %v1558_v38 = vpop.permute.xlu2 %1557 }
 0xdf1   :  { %v1570_v43 = vpop.permute.xlu2 %1569 }
 0xdf9   :  { %v1550_v33 = vpop.permute.xlu0 %1549  ;;  %v1582_v18 = vpop.permute.xlu2 %1581 }
 0xdfa   :  { %v1542_v34 = vpop.permute.xlu1 %1541 }
 0xdfb   :  { %v1544_v36 = vadd.f32 %v1542_v34, %v1539_v31 }
 0xdfd   :  { %v1548_v37 = vadd.f32 %v1546_v32, %v1544_v36 }
 0xdff   :  { %v1552_v39 = vadd.f32 %v1550_v33, %v1548_v37 }
 0xe01   :  { %v1562_v35 = vpop.permute.xlu0 %1561  ;;  %v1594_v58 = vpop.permute.xlu2 %1593 }
 0xe02   :  { %v1554_v40 = vpop.permute.xlu1 %1553 }
 0xe03   :  { %v1556_v41 = vadd.f32 %v1554_v40, %v1552_v39 }
 0xe05   :  { %v1560_v42 = vadd.f32 %v1558_v38, %v1556_v41 }
 0xe07   :  { %v1564_v44 = vadd.f32 %v1562_v35, %v1560_v42 }
 0xe09   :  { %v1574_v45 = vpop.permute.xlu0 %1573 }
 0xe0a   :  { %v1566_v46 = vpop.permute.xlu1 %1565 }
 0xe0b   :  { %v1568_v47 = vadd.f32 %v1566_v46, %v1564_v44 }
 0xe0d   :  { %v1572_v48 = vadd.f32 %v1570_v43, %v1568_v47 }
 0xe0f   :  { %v1576_v49 = vadd.f32 %v1574_v45, %v1572_v48 }
 0xe11   :  { %v1586_v25 = vpop.permute.xlu0 %1585 }
 0xe12   :  { %v1578_v12 = vpop.permute.xlu1 %1577 }
 0xe13   :  { %v1580_v50 = vadd.f32 %v1578_v12, %v1576_v49 }
 0xe15   :  { %v1584_v51 = vadd.f32 %v1582_v18, %v1580_v50 }
 0xe17   :  { %v1588_v24 = vadd.f32 %v1586_v25, %v1584_v51 }
 0xe19   :  { %v1598_v62 = vpop.permute.xlu0 %1597 }
 0xe1a   :  { %v1590_v53 = vpop.permute.xlu1 %1589 }
 0xe1b   :  { %v1592_v54 = vadd.f32 %v1590_v53, %v1588_v24 }
 0xe1d   :  { %v1596_v59 = vadd.f32 %v1594_v58, %v1592_v54 }
 0xe1f   :  { %v1600_v63 = vadd.f32 %v1598_v62, %v1596_v59 }
 0xe21   :  { %v1601_v2 = vmul.f32 0.00048828125, %v1600_v63 }
 0xe23   :  { %1609 = vrot.lane.b32.xlu0 %v1601_v2, %s7155_s30  ;;  %1606 = vrot.lane.b32.xlu2 %v1601_v2, %s7148_s15 }
 0xe24   :  { %1603 = vrot.lane.b32.xlu1 %v1601_v2, %s7135_s4 }
 0xe2b   :  { %1618 = vrot.lane.b32.xlu0 %v1601_v2, %s7150_s24  ;;  %1615 = vrot.lane.b32.xlu2 %v1601_v2, %s7156_s14 }
 0xe2c   :  { %1612 = vrot.lane.b32.xlu1 %v1601_v2, %s7146_s28 }
 0xe33   :  { %1627 = vrot.lane.b32.xlu0 %v1601_v2, %s7154_s29  ;;  %1624 = vrot.lane.b32.xlu2 %v1601_v2, %s7139_s13 }
 0xe34   :  { %1621 = vrot.lane.b32.xlu1 %v1601_v2, %s7157_s3 }
 0xe3b   :  { %1636 = vrot.lane.b32.xlu0 %v1601_v2, %s7144_s0  ;;  %1633 = vrot.lane.b32.xlu2 %v1601_v2, %s7153_s1 }
 0xe3c   :  { %1630 = vrot.lane.b32.xlu1 %v1601_v2, %s7149_s6 }
 0xe43   :  { %1645 = vrot.lane.b32.xlu0 %v1601_v2, %s7152_s27  ;;  %1642 = vrot.lane.b32.xlu2 %v1601_v2, %s7147_s5 }
 0xe44   :  { %1639 = vrot.lane.b32.xlu1 %v1601_v2, %s7151_s7 }
 0xe7d   :  { %v1607_v4 = vpop.permute.xlu2 %1606 }
 0xe85   :  { %v1616_v9 = vpop.permute.xlu2 %1615 }
 0xe8d   :  { %v1625_v23 = vpop.permute.xlu2 %1624 }
 0xe95   :  { %v1610_v5 = vpop.permute.xlu0 %1609  ;;  %v1634_v32 = vpop.permute.xlu2 %1633 }
 0xe96   :  { %v1604_v7 = vpop.permute.xlu1 %1603 }
 0xe97   :  { %v1648_v21 = vsel %vm1009_vm2, %v1601_v2, %v1604_v7 }
 0xe98   :  { %v1649_v55 = vsel %vm407_vm9, %v1648_v21, %v1607_v4 }
 0xe99   :  { %v1650_v56 = vsel %vm1012_vm3, %v1649_v55, %v1610_v5 }
 0xe9d   :  { %v1619_v13 = vpop.permute.xlu0 %1618  ;;  %v1643_v40 = vpop.permute.xlu2 %1642 }
 0xe9e   :  { %v1613_v61 = vpop.permute.xlu1 %1612 }
 0xe9f   :  { %v1651_v16 = vsel %vm263_vm7, %v1650_v56, %v1613_v61 }
 0xea0   :  { %v1652_v26 = vsel %vm1015_vm4, %v1651_v16, %v1616_v9 }
 0xea1   :  { %v1653_v8 = vsel %vm615_vm13, %v1652_v26, %v1619_v13 }
 0xea5   :  { %v1628_v28 = vpop.permute.xlu0 %1627 }
 0xea6   :  { %v1622_v29 = vpop.permute.xlu1 %1621 }
 0xea7   :  { %v1654_v30 = vsel %vm1018_vm5, %v1653_v8, %v1622_v29 }
 0xea8   :  { %v1655_v31 = vsel %vm162_vm0, %v1654_v30, %v1625_v23 }
 0xea9   :  { %v1657_v36 = vsel %vm1656_vm12, %v1655_v31, %v1628_v28 }
 0xead   :  { %v1637_v33 = vpop.permute.xlu0 %1636 }
 0xeae   :  { %v1631_v34 = vpop.permute.xlu1 %1630 }
 0xeaf   :  { %v1659_v37 = vsel %vm1658_vm14, %v1657_v36, %v1631_v34 }
 0xeb0   :  { %v1661_v38 = vsel %vm1660_vm15, %v1659_v37, %v1634_v32 }
 0xeb1   :  { %v1662_v35 = vsel %vm371_vm8, %v1661_v38, %v1637_v33 }
 0xeb5   :  { %v1646_v42 = vpop.permute.xlu0 %1645 }
 0xeb6   :  { %v1640_v39 = vpop.permute.xlu1 %1639 }
 0xeb7   :  { %v1664_v41 = vsel %vm1663_vm1, %v1662_v35, %v1640_v39 }
 0xeb8   :  { %v1666_v43 = vsel %vm10281_vm6, %v1664_v41, %v1643_v40 }
 0xeb9   :  { %v1668_v44 = vsel %vm10280_vm10, %v1666_v43, %v1646_v42 }
 0xeba   :  { %v1669_v45 = vperm.slane %v1668_v44, 0 }
 0xebc   :  { %v7735_v46 = vsub.f32 %v7645_v15, %v1669_v45  ;;  %v7738_v47 = vsub.f32 %v7643_v11, %v1669_v45  ;;  %v7741_v48 = vsub.f32 %v7647_v17, %v1669_v45  ;;  %v7748_v12 = vsub.f32 %v7651_v19, %v1669_v45 }
 0xebd   :  { %v7751_v50 = vsub.f32 %v7641_v27, %v1669_v45  ;;  %v7756_v25 = vsub.f32 %v7656_v52, %v1669_v45  ;;  %v7761_v24 = vsub.f32 %v7659_v57, %v1669_v45  ;;  %v7766_v27 = vsub.f32 %v7662_v60, %v1669_v45 }
 0xebe   :  { %v1686_v49 = vmul.f32 %v7735_v46, %v7735_v46  ;;  %v1687_v18 = vmul.f32 %v7738_v47, %v7738_v47  ;;  %v1688_v15 = vmul.f32 %v7741_v48, %v7741_v48  ;;  %v1689_v17 = vmul.f32 %v7748_v12, %v7748_v12 }
 0xebf   :  { %v1690_v19 = vmul.f32 %v7751_v50, %v7751_v50  ;;  %v1691_v54 = vmul.f32 %v7756_v25, %v7756_v25  ;;  %v7771_v52 = vsub.f32 %v7665_v0, %v1669_v45  ;;  %v1692_v59 = vmul.f32 %v7761_v24, %v7761_v24 }
 0xec0   :  { %v1702_v11 = vadd.f32 %v1687_v18, %v1686_v49  ;;  %v7776_v57 = vsub.f32 %v7667_v1, %v1669_v45  ;;  %v1693_v63 = vmul.f32 %v7766_v27, %v7766_v27  ;;  %v7781_v60 = vsub.f32 %v7670_v3, %v1669_v45 }
 0xec1   :  { %v1694_v4 = vmul.f32 %v7771_v52, %v7771_v52  ;;  %v7786_v0 = vsub.f32 %v7673_v6, %v1669_v45  ;;  %v7791_v1 = vsub.f32 %v7676_v10, %v1669_v45  ;;  %v7796_v3 = vsub.f32 %v7679_v22, %v1669_v45 }
 0xec2   :  { %v1703_v51 = vadd.f32 %v1702_v11, %v1688_v15  ;;  %v1695_v7 = vmul.f32 %v7776_v57, %v7776_v57  ;;  %v1696_v21 = vmul.f32 %v7781_v60, %v7781_v60  ;;  %v7801_v6 = vsub.f32 %v7682_v14, %v1669_v45 }
 0xec3   :  { %v1697_v55 = vmul.f32 %v7786_v0, %v7786_v0  ;;  %v1698_v56 = vmul.f32 %v7791_v1, %v7791_v1  ;;  %v7806_v10 = vsub.f32 %v7686_v20, %v1669_v45  ;;  %v1699_v23 = vmul.f32 %v7796_v3, %v7796_v3 }
 0xec4   :  { %v1704_v53 = vadd.f32 %v1703_v51, %v1689_v17  ;;  %v1700_v22 = vmul.f32 %v7801_v6, %v7801_v6 }
 0xec5   :  { %v1701_v29 = vmul.f32 %v7806_v10, %v7806_v10 }
 0xec6   :  { %v1705_v58 = vadd.f32 %v1704_v53, %v1690_v19 }
 0xec8   :  { %v1706_v62 = vadd.f32 %v1705_v58, %v1691_v54 }
 0xeca   :  { %v1707_v2 = vadd.f32 %v1706_v62, %v1692_v59 }
 0xecc   :  { %v1708_v5 = vadd.f32 %v1707_v2, %v1693_v63 }
 0xece   :  { %v1709_v9 = vadd.f32 %v1708_v5, %v1694_v4 }
 0xed0   :  { %v1710_v13 = vadd.f32 %v1709_v9, %v1695_v7 }
 0xed2   :  { %v1711_v61 = vadd.f32 %v1710_v13, %v1696_v21 }
 0xed4   :  { %v1712_v16 = vadd.f32 %v1711_v61, %v1697_v55 }
 0xed6   :  { %v1713_v26 = vadd.f32 %v1712_v16, %v1698_v56 }
 0xed8   :  { %v1714_v28 = vadd.f32 %v1713_v26, %v1699_v23 }
 0xeda   :  { %v1715_v14 = vadd.f32 %v1714_v28, %v1700_v22 }
 0xedc   :  { %v1716_v8 = vadd.f32 %v1715_v14, %v1701_v29  ;;  %v6319_v29 = vld [vmem:[#allocation11 + $0xf0] sm:$0xf]  ;;  %v6680_v14 = vld [vmem:[#allocation11 + $0xf4] sm:$0xf0] }
 0xede   :  { %v1717_v30 = vrot.slane %v1716_v8, 4 }
 0xee0   :  { %v1718_v31 = vadd.f32 %v1717_v30, %v1716_v8  ;;  %v6320_v8 = vor.u32 %v6680_v14, %v6319_v29  ;;  %v6311_v30 = vld [vmem:[#allocation11 + $0xe0] sm:$0xf]  ;;  %v6690_v29 = vld [vmem:[#allocation11 + $0x144] sm:$0xf0]  ;;  %v6657_v14 = vld [vmem:[#allocation11 + $0x44] sm:$0xf] }
 0xee2   :  { %v1719_v32 = vrot.slane %v1718_v31, 2  ;;  %2519 = vmatpush.bf16.msrb.mxu1 %v6320_v8  ;;  %v6233_v8 = vld [vmem:[#allocation11 + $0x48] sm:$0xf0] }
 0xee4   :  { %v1720_v33 = vadd.f32 %v1719_v32, %v1718_v31  ;;  %v6678_v31 = vld [vmem:[#allocation11 + $0xe4] sm:$0xf0] }
 0xee5   :  { %v6312_v32 = vor.u32 %v6678_v31, %v6311_v30 }
 0xee6   :  { %v1721_v34 = vrot.slane %v1720_v33, 1 }
 0xee7   :  { %2520 = vmatpush.bf16.msrb.mxu1 %v6312_v32  ;;  %v6236_v32 = vor.u32 %v6657_v14, %v6233_v8  ;;  %v6650_v14 = vld [vmem:[#allocation11 + $0x4] sm:$0xf0]  ;;  %v6327_v8 = vld [vmem:[#allocation11 + $0x100] sm:$0xf] }
 0xee8   :  { %v1722_v20 = vadd.f32 %v1721_v34, %v1720_v33  ;;  %v6303_v33 = vld [vmem:[#allocation11 + $0xd0] sm:$0xf]  ;;  %v6676_v34 = vld [vmem:[#allocation11 + $0xd4] sm:$0xf0] }
 0xeea   :  { %1732 = vrot.lane.b32.xlu0 %v1722_v20, %s7151_s7  ;;  %1728 = vrot.lane.b32.xlu2 %v1722_v20, %s7147_s5 }
 0xeeb   :  { %1724 = vrot.lane.b32.xlu1 %v1722_v20, %s7152_s27 }
 0xef2   :  { %1744 = vrot.lane.b32.xlu0 %v1722_v20, %s7149_s6  ;;  %1740 = vrot.lane.b32.xlu2 %v1722_v20, %s7153_s1 }
 0xef3   :  { %1736 = vrot.lane.b32.xlu1 %v1722_v20, %s7144_s0 }
 0xefa   :  { %1756 = vrot.lane.b32.xlu0 %v1722_v20, %s7157_s3  ;;  %1752 = vrot.lane.b32.xlu2 %v1722_v20, %s7139_s13 }
 0xefb   :  { %1748 = vrot.lane.b32.xlu1 %v1722_v20, %s7154_s29 }
 0xf02   :  { %1768 = vrot.lane.b32.xlu0 %v1722_v20, %s7146_s28  ;;  %1764 = vrot.lane.b32.xlu2 %v1722_v20, %s7156_s14 }
 0xf03   :  { %1760 = vrot.lane.b32.xlu1 %v1722_v20, %s7150_s24 }
 0xf0a   :  { %1780 = vrot.lane.b32.xlu0 %v1722_v20, %s7135_s4  ;;  %1776 = vrot.lane.b32.xlu2 %v1722_v20, %s7148_s15 }
 0xf0b   :  { %1772 = vrot.lane.b32.xlu1 %v1722_v20, %s7155_s30 }
 0xf44   :  { %v1729_v36 = vpop.permute.xlu2 %1728 }
 0xf4c   :  { %v1741_v40 = vpop.permute.xlu2 %1740 }
 0xf54   :  { %v1753_v49 = vpop.permute.xlu2 %1752 }
 0xf5c   :  { %v1733_v37 = vpop.permute.xlu0 %1732  ;;  %v1765_v53 = vpop.permute.xlu2 %1764 }
 0xf5d   :  { %v1725_v38 = vpop.permute.xlu1 %1724 }
 0xf5e   :  { %v1727_v35 = vadd.f32 %v1725_v38, %v1722_v20  ;;  %v6304_v20 = vor.u32 %v6676_v34, %v6303_v33  ;;  %v6383_v38 = vld [vmem:[#allocation11 + $0x170] sm:$0xf] }
 0xf5f   :  { %v6223_v34 = vld [vmem:[#allocation11 + $0x30] sm:$0xf] }
 0xf60   :  { %v1731_v39 = vadd.f32 %v1729_v36, %v1727_v35  ;;  %2521 = vmatpush.bf16.msrb.mxu1 %v6304_v20  ;;  %v6255_v36 = vld [vmem:[#allocation11 + $0x70] sm:$0xf]  ;;  %v6295_v35 = vld [vmem:[#allocation11 + $0xc0] sm:$0xf]  ;;  %v6656_v20 = vld [vmem:[#allocation11 + $0x34] sm:$0xf0] }
 0xf62   :  { %v1735_v42 = vadd.f32 %v1733_v37, %v1731_v39  ;;  %v6664_v37 = vld [vmem:[#allocation11 + $0x74] sm:$0xf0]  ;;  %v6674_v39 = vld [vmem:[#allocation11 + $0xc4] sm:$0xf0] }
 0xf64   :  { %v1745_v41 = vpop.permute.xlu0 %1744  ;;  %v1777_v5 = vpop.permute.xlu2 %1776 }
 0xf65   :  { %v1737_v43 = vpop.permute.xlu1 %1736 }
 0xf66   :  { %v1739_v44 = vadd.f32 %v1737_v43, %v1735_v42  ;;  %v6296_v42 = vor.u32 %v6674_v39, %v6295_v35  ;;  %v6655_v35 = vld [vmem:[#allocation11 + $0x34] sm:$0xf]  ;;  %v6225_v39 = vld [vmem:[#allocation11 + $0x38] sm:$0xf0] }
 0xf68   :  { %v1743_v45 = vadd.f32 %v1741_v40, %v1739_v44  ;;  %v6256_v40 = vor.u32 %v6664_v37, %v6255_v36  ;;  %v6663_v44 = vld [vmem:[#allocation11 + $0x74] sm:$0xf]  ;;  %2522 = vmatpush.bf16.msrb.mxu1 %v6296_v42  ;;  %v6351_v36 = vld [vmem:[#allocation11 + $0x130] sm:$0xf]  ;;  %v6224_v37 = vor.u32 %v6656_v20, %v6223_v34  ;;  %v6228_v42 = vor.u32 %v6655_v35, %v6225_v39  ;;  %v6201_v34 = vld [vmem:[#allocation11 + $0x8] sm:$0xf0] }
 0xf6a   :  { %v1747_v18 = vadd.f32 %v1745_v41, %v1743_v45  ;;  %v6696_v41 = vld [vmem:[#allocation11 + $0x174] sm:$0xf0]  ;;  %v6257_v45 = vld [vmem:[#allocation11 + $0x78] sm:$0xf0]  ;;  %2430 = vmatpush.bf16.msrb.mxu0 %v6256_v40 }
 0xf6b   :  { %v6384_v43 = vor.u32 %v6696_v41, %v6383_v38  ;;  %v6688_v38 = vld [vmem:[#allocation11 + $0x134] sm:$0xf0] }
 0xf6c   :  { %v1757_v15 = vpop.permute.xlu0 %1756  ;;  %v6352_v41 = vor.u32 %v6688_v38, %v6351_v36 }
 0xf6d   :  { %v1749_v11 = vpop.permute.xlu1 %1748  ;;  %2608 = vmatpush.bf16.msra.mxu2 %v6384_v43  ;;  %v6279_v43 = vld [vmem:[#allocation11 + $0xa0] sm:$0xf] }
 0xf6e   :  { %v1751_v17 = vadd.f32 %v1749_v11, %v1747_v18  ;;  %v6247_v18 = vld [vmem:[#allocation11 + $0x60] sm:$0xf] }
 0xf6f   :  { %v6375_v11 = vld [vmem:[#allocation11 + $0x160] sm:$0xf] }
 0xf70   :  { %v1755_v51 = vadd.f32 %v1753_v49, %v1751_v17  ;;  %v6260_v49 = vor.u32 %v6663_v44, %v6257_v45  ;;  %v6670_v44 = vld [vmem:[#allocation11 + $0xa4] sm:$0xf0]  ;;  %v6271_v45 = vld [vmem:[#allocation11 + $0x90] sm:$0xf] }
 0xf72   :  { %v1759_v19 = vadd.f32 %v1757_v15, %v1755_v51  ;;  %v6662_v15 = vld [vmem:[#allocation11 + $0x64] sm:$0xf0]  ;;  %2697 = vmatpush.bf16.msrb.mxu3 %v6260_v49 }
 0xf73   :  { %v6248_v17 = vor.u32 %v6662_v15, %v6247_v18  ;;  %v6694_v51 = vld [vmem:[#allocation11 + $0x164] sm:$0xf0]  ;;  %v6280_v18 = vor.u32 %v6670_v44, %v6279_v43  ;;  %v6668_v15 = vld [vmem:[#allocation11 + $0x94] sm:$0xf0]  ;;  %v6679_v44 = vld [vmem:[#allocation11 + $0xf4] sm:$0xf] }
 0xf74   :  { %v1769_v59 = vpop.permute.xlu0 %1768 }
 0xf75   :  { %v1761_v54 = vpop.permute.xlu1 %1760  ;;  %2431 = vmatpush.bf16.msrb.mxu0 %v6248_v17  ;;  %v6654_v17 = vld [vmem:[#allocation11 + $0x24] sm:$0xf0] }
 0xf76   :  { %v1763_v58 = vadd.f32 %v1761_v54, %v1759_v19  ;;  %v6661_v19 = vld [vmem:[#allocation11 + $0x64] sm:$0xf]  ;;  %v6376_v54 = vor.u32 %v6694_v51, %v6375_v11  ;;  %v6215_v11 = vld [vmem:[#allocation11 + $0x20] sm:$0xf] }
 0xf77   :  { %v6216_v51 = vor.u32 %v6654_v17, %v6215_v11 }
 0xf78   :  { %v1767_v62 = vadd.f32 %v1765_v53, %v1763_v58  ;;  %v6249_v53 = vld [vmem:[#allocation11 + $0x68] sm:$0xf0]  ;;  %2609 = vmatpush.bf16.msra.mxu2 %v6376_v54  ;;  %v6653_v54 = vld [vmem:[#allocation11 + $0x24] sm:$0xf] }
 0xf79   :  { %v6252_v58 = vor.u32 %v6661_v19, %v6249_v53  ;;  %v6343_v19 = vld [vmem:[#allocation11 + $0x120] sm:$0xf]  ;;  %v6686_v53 = vld [vmem:[#allocation11 + $0x124] sm:$0xf0] }
 0xf7a   :  { %v1771_v63 = vadd.f32 %v1769_v59, %v1767_v62  ;;  %v6239_v62 = vld [vmem:[#allocation11 + $0x50] sm:$0xf] }
 0xf7b   :  { %2698 = vmatpush.bf16.msrb.mxu3 %v6252_v58 }
 0xf7c   :  { %v1781_v9 = vpop.permute.xlu0 %1780 }
 0xf7d   :  { %v1773_v2 = vpop.permute.xlu1 %1772 }
 0xf7e   :  { %v1775_v4 = vadd.f32 %v1773_v2, %v1771_v63  ;;  %v6660_v63 = vld [vmem:[#allocation11 + $0x54] sm:$0xf0]  ;;  %v6367_v2 = vld [vmem:[#allocation11 + $0x150] sm:$0xf] }
 0xf80   :  { %v1779_v7 = vadd.f32 %v1777_v5, %v1775_v4  ;;  %v6287_v4 = vld [vmem:[#allocation11 + $0xb0] sm:$0xf]  ;;  %v6672_v5 = vld [vmem:[#allocation11 + $0xb4] sm:$0xf0] }
 0xf82   :  { %v1783_v21 = vadd.f32 %v1781_v9, %v1779_v7  ;;  %v6240_v7 = vor.u32 %v6660_v63, %v6239_v62  ;;  %v6692_v9 = vld [vmem:[#allocation11 + $0x154] sm:$0xf0]  ;;  %v6272_v62 = vor.u32 %v6668_v15, %v6271_v45  ;;  %v6344_v63 = vor.u32 %v6686_v53, %v6343_v19  ;;  %v6321_v45 = vld [vmem:[#allocation11 + $0xf8] sm:$0xf0] }
 0xf83   :  { %v6385_v15 = vld [vmem:[#allocation11 + $0x178] sm:$0xf0] }
 0xf84   :  { %v1784_v13 = vmul.f32 0.00048828125, %v1783_v21  ;;  %v6288_v21 = vor.u32 %v6672_v5, %v6287_v4  ;;  %2432 = vmatpush.bf16.msrb.mxu0 %v6240_v7  ;;  %v6207_v4 = vld [vmem:[#allocation11 + $0x10] sm:$0xf]  ;;  %v6652_v5 = vld [vmem:[#allocation11 + $0x14] sm:$0xf0] }
 0xf86   :  { %v1785_v55 = vadd.f32 1e-05, %v1784_v13  ;;  %v6368_v13 = vor.u32 %v6692_v9, %v6367_v2  ;;  %2523 = vmatpush.bf16.msrb.mxu1 %v6288_v21  ;;  %v6217_v2 = vld [vmem:[#allocation11 + $0x28] sm:$0xf0]  ;;  %v6208_v21 = vor.u32 %v6652_v5, %v6207_v4 }
 0xf87   :  { %v6220_v9 = vor.u32 %v6653_v54, %v6217_v2 }
 0xf88   :  { %6793 = vrsqrt.f32 %v1785_v55  ;;  %vm1792_vm10 = vweird.f32 %v1785_v55  ;;  %2610 = vmatpush.bf16.msra.mxu2 %v6368_v13  ;;  %v6335_v13 = vld [vmem:[#allocation11 + $0x110] sm:$0xf] }
 0xf8a   :  { %2524 = vmatpush.bf16.msrb.mxu1 %v6280_v18  ;;  %v6324_v18 = vor.u32 %v6679_v44, %v6321_v45 }
 0xf8e   :  { %v6794_v61 = vpop.eup %6793  ;;  %2525 = vmatpush.bf16.msrb.mxu1 %v6272_v62 }
 0xf8f   :  { %v1787_v56 = vmul.f32 %v6794_v61, %v1785_v55  ;;  %vm1793_vm11 = vweird.f32 %v6794_v61  ;;  %v6659_v55 = vld [vmem:[#allocation11 + $0x54] sm:$0xf] }
 0xf90   :  { %vm1794_vm6 = vmor %vm1792_vm10, %vm1793_vm11  ;;  %vm10409_vm10 = vcmask 982016  }
 0xf91   :  { %v1788_v16 = vmul.f32 %v6794_v61, %v1787_v56 }
 0xf93   :  { %v1789_v23 = vmul.f32 0.5, %v1788_v16  ;;  %v6231_v16 = vld [vmem:[#allocation11 + $0x40] sm:$0xf] }
 0xf95   :  { %v1790_v26 = vsub.f32 1.5, %v1789_v23  ;;  %v6658_v23 = vld [vmem:[#allocation11 + $0x44] sm:$0xf0] }
 0xf97   :  { %v1791_v22 = vmul.f32 %v6794_v61, %v1790_v26  ;;  %v6359_v26 = vld [vmem:[#allocation11 + $0x140] sm:$0xf] }
 0xf98   :  { %v6360_v31 = vor.u32 %v6690_v29, %v6359_v26  ;;  %v6666_v26 = vld [vmem:[#allocation11 + $0x84] sm:$0xf0]  ;;  %v6199_v29 = vld [vmem:[#allocation11] sm:$0xf] }
 0xf99   :  { %v7829_v28 = vsel %vm1794_vm6, %v6794_v61, %v1791_v22  ;;  %v6241_v61 = vld [vmem:[#allocation11 + $0x58] sm:$0xf0]  ;;  %v6232_v22 = vor.u32 %v6658_v23, %v6231_v16  ;;  %v6263_v23 = vld [vmem:[#allocation11 + $0x80] sm:$0xf]  ;;  %v6200_v36 = vor.u32 %v6650_v14, %v6199_v29  ;;  %vm10408_vm6 = vcmask 916480  }
 0xf9a   :  { %1803 = vrot.lane.b32.xlu0 %v7829_v28, %s7155_s30  ;;  %1800 = vrot.lane.b32.xlu2 %v7829_v28, %s7148_s15  ;;  %v6244_v56 = vor.u32 %v6659_v55, %v6241_v61  ;;  %v6684_v55 = vld [vmem:[#allocation11 + $0x114] sm:$0xf0]  ;;  %v6651_v61 = vld [vmem:[#allocation11 + $0x14] sm:$0xf]  ;;  %v6209_v16 = vld [vmem:[#allocation11 + $0x18] sm:$0xf0] }
 0xf9b   :  { %1797 = vrot.lane.b32.xlu1 %v7829_v28, %s7135_s4  ;;  %2433 = vmatpush.bf16.msrb.mxu0 %v6232_v22  ;;  %v6212_v22 = vor.u32 %v6651_v61, %v6209_v16  ;;  %v6926_v61 = vld [vmem:[#allocation2 + $0x8] sm:$0xff]  ;;  %vm10474_vm11 = vmmov %vm10408_vm6 }
 0xf9c   :  { %2699 = vmatpush.bf16.msrb.mxu3 %v6244_v56  ;;  %2611 = vmatpush.bf16.msra.mxu2 %v6360_v31  ;;  %v6336_v56 = vor.u32 %v6684_v55, %v6335_v13 }
 0xf9f   :  { %2434 = vmatpush.bf16.msrb.mxu0 %v6224_v37 }
 0xfa0   :  { %2700 = vmatpush.bf16.msrb.mxu3 %v6236_v32  ;;  %2612 = vmatpush.bf16.msra.mxu2 %v6352_v41  ;;  %v6682_v32 = vld [vmem:[#allocation11 + $0x104] sm:$0xf0] }
 0xfa1   :  { %v6328_v38 = vor.u32 %v6682_v32, %v6327_v8 }
 0xfa2   :  { %1812 = vrot.lane.b32.xlu0 %v7829_v28, %s7150_s24  ;;  %1809 = vrot.lane.b32.xlu2 %v7829_v28, %s7156_s14 }
 0xfa3   :  { %1806 = vrot.lane.b32.xlu1 %v7829_v28, %s7146_s28  ;;  %2435 = vmatpush.bf16.msrb.mxu0 %v6216_v51 }
 0xfa4   :  { %2701 = vmatpush.bf16.msrb.mxu3 %v6228_v42  ;;  %2613 = vmatpush.bf16.msra.mxu2 %v6344_v63 }
 0xfa7   :  { %2436 = vmatpush.bf16.msrb.mxu0 %v6208_v21 }
 0xfa8   :  { %2702 = vmatpush.bf16.msrb.mxu3 %v6220_v9  ;;  %2614 = vmatpush.bf16.msra.mxu2 %v6336_v56  ;;  %v1972_v56 = vpack.c.bf16 %v6926_v61, %v6926_v61 }
 0xfaa   :  { %1821 = vrot.lane.b32.xlu0 %v7829_v28, %s7154_s29  ;;  %1818 = vrot.lane.b32.xlu2 %v7829_v28, %s7139_s13  ;;  %v2040_v29 = vunpack.c.l.b16 %v1972_v56 }
 0xfab   :  { %1815 = vrot.lane.b32.xlu1 %v7829_v28, %s7157_s3  ;;  %2437 = vmatpush.bf16.msrb.mxu0 %v6200_v36  ;;  %v6693_v36 = vld [vmem:[#allocation11 + $0x164] sm:$0xf] }
 0xfac   :  { %2703 = vmatpush.bf16.msrb.mxu3 %v6212_v22  ;;  %2615 = vmatpush.bf16.msra.mxu2 %v6328_v38  ;;  %v6377_v38 = vld [vmem:[#allocation11 + $0x168] sm:$0xf0] }
 0xfaf   :  { %2786 = vmatpush.bf16.msra.mxu0 %v6324_v18 }
 0xfb2   :  { %1830 = vrot.lane.b32.xlu0 %v7829_v28, %s7144_s0  ;;  %1827 = vrot.lane.b32.xlu2 %v7829_v28, %s7153_s1 }
 0xfb3   :  { %1824 = vrot.lane.b32.xlu1 %v7829_v28, %s7149_s6 }
 0xfba   :  { %1839 = vrot.lane.b32.xlu0 %v7829_v28, %s7152_s27  ;;  %1836 = vrot.lane.b32.xlu2 %v7829_v28, %s7147_s5 }
 0xfbb   :  { %1833 = vrot.lane.b32.xlu1 %v7829_v28, %s7151_s7 }
 0xff4   :  { %v7861_v59 = vpop.permute.xlu2 %1800 }
 0xffc   :  { %v1810_v40 = vpop.permute.xlu2 %1809 }
0x1004   :  { %v1819_v37 = vpop.permute.xlu2 %1818 }
0x100c   :  { %v1804_v30 = vpop.permute.xlu0 %1803 }
0x100d   :  { %v1798_v33 = vpop.permute.xlu1 %1797 }
0x100e   :  { %v1842_v49 = vsel %vm1009_vm2, %v7829_v28, %v1798_v33  ;;  %v6649_v33 = vld [vmem:[#allocation11 + $0x4] sm:$0xf] }
0x100f   :  { %v1843_v28 = vsel %vm407_vm9, %v1842_v49, %v7861_v59  ;;  %v6264_v59 = vor.u32 %v6666_v26, %v6263_v23  ;;  %v6204_v35 = vor.u32 %v6649_v33, %v6201_v34  ;;  %v6695_v49 = vld [vmem:[#allocation11 + $0x174] sm:$0xf]  ;;  %v6677_v34 = vld [vmem:[#allocation11 + $0xe4] sm:$0xf] }
0x1010   :  { %v1844_v31 = vsel %vm1012_vm3, %v1843_v28, %v1804_v30  ;;  %v6388_v11 = vor.u32 %v6695_v49, %v6385_v15 }
0x1011   :  { %2526 = vmatpush.bf16.msrb.mxu1 %v6264_v59  ;;  %2704 = vmatpush.bf16.msrb.mxu3 %v6204_v35  ;;  %v6380_v35 = vor.u32 %v6693_v36, %v6377_v38 }
0x1014   :  { %v1813_v58 = vpop.permute.xlu0 %1812 }
0x1015   :  { %v1807_v7 = vpop.permute.xlu1 %1806  ;;  %2875 = vmatpush.bf16.msra.mxu1 %v6388_v11 }
0x1016   :  { %v1845_v20 = vsel %vm263_vm7, %v1844_v31, %v1807_v7 }
0x1017   :  { %v1846_v39 = vsel %vm1015_vm4, %v1845_v20, %v1810_v40  ;;  %v1828_v40 = vpop.permute.xlu2 %1827  ;;  %v6313_v20 = vld [vmem:[#allocation11 + $0xe8] sm:$0xf0] }
0x1018   :  { %v1847_v30 = vsel %vm615_vm13, %v1846_v39, %v1813_v58 }
0x1019   :  { %2876 = vmatpush.bf16.msra.mxu1 %v6380_v35 }
0x101c   :  { %v1822_v41 = vpop.permute.xlu0 %1821 }
0x101d   :  { %v1816_v42 = vpop.permute.xlu1 %1815 }
0x101e   :  { %v1848_v43 = vsel %vm1018_vm5, %v1847_v30, %v1816_v42 }
0x101f   :  { %v1849_v17 = vsel %vm162_vm0, %v1848_v43, %v1819_v37  ;;  %v1837_v2 = vpop.permute.xlu2 %1836  ;;  %v6316_v37 = vor.u32 %v6677_v34, %v6313_v20 }
0x1020   :  { %v1850_v53 = vsel %vm1656_vm12, %v1849_v17, %v1822_v41 }
0x1021   :  { %2787 = vmatpush.bf16.msra.mxu0 %v6316_v37 }
0x1024   :  { %v1831_v51 = vpop.permute.xlu0 %1830 }
0x1025   :  { %v1825_v19 = vpop.permute.xlu1 %1824 }
0x1026   :  { %v1851_v54 = vsel %vm1658_vm14, %v1850_v53, %v1825_v19 }
0x1027   :  { %v1852_v58 = vsel %vm1660_vm15, %v1851_v54, %v1828_v40 }
0x1028   :  { %v1853_v62 = vsel %vm371_vm8, %v1852_v58, %v1831_v51  ;;  %v6675_v58 = vld [vmem:[#allocation11 + $0xd4] sm:$0xf] }
0x102c   :  { %v1840_v5 = vpop.permute.xlu0 %1839 }
0x102d   :  { %v1834_v63 = vpop.permute.xlu1 %1833 }
0x102e   :  { %v1854_v4 = vsel %vm1663_vm1, %v1853_v62, %v1834_v63  ;;  %v6305_v62 = vld [vmem:[#allocation11 + $0xd8] sm:$0xf0]  ;;  %v6691_v63 = vld [vmem:[#allocation11 + $0x154] sm:$0xf] }
0x102f   :  { %v1855_v28 = vsel %vm10408_vm6, %v1854_v4, %v1837_v2  ;;  %v6308_v2 = vor.u32 %v6675_v58, %v6305_v62  ;;  %v6369_v4 = vld [vmem:[#allocation11 + $0x158] sm:$0xf0]  ;;  %vm10475_vm6 = vmmov %vm10409_vm10 }
0x1030   :  { %v1856_v7 = vsel %vm10409_vm10, %v1855_v28, %v1840_v5 }
0x1031   :  { %v7880_v9 = vperm.slane %v1856_v7, 0  ;;  %2788 = vmatpush.bf16.msra.mxu0 %v6308_v2 }
0x1033   :  { %v1858_v21 = vmul.f32 %v7880_v9, %v7735_v46  ;;  %v1859_v13 = vmul.f32 %v7880_v9, %v7738_v47  ;;  %v1860_v8 = vmul.f32 %v7880_v9, %v7741_v48  ;;  %v1873_v39 = vmul.f32 %v7880_v9, %v7806_v10 }
0x1034   :  { %v1861_v44 = vmul.f32 %v7880_v9, %v7748_v12  ;;  %v1862_v51 = vmul.f32 %v7880_v9, %v7751_v50  ;;  %v6372_v50 = vor.u32 %v6691_v63, %v6369_v4  ;;  %v1865_v36 = vmul.f32 %v7880_v9, %v7766_v27 }
0x1035   :  { %v1874_v55 = vmul.f32 0.2, %v1858_v21  ;;  %v1875_v16 = vmul.f32 0.2, %v1859_v13  ;;  %v1876_v47 = vmul.f32 0.2, %v1860_v8  ;;  %v1867_v58 = vmul.f32 %v7880_v9, %v7776_v57 }
0x1036   :  { %v1889_v42 = vmul.f32 0.2, %v1873_v39  ;;  %v1877_v15 = vmul.f32 0.2, %v1861_v44  ;;  %v1878_v54 = vmul.f32 0.2, %v1862_v51  ;;  %2877 = vmatpush.bf16.msra.mxu1 %v6372_v50 }
0x1037   :  { %v1890_v23 = vmax.f32 %v1858_v21, %v1874_v55  ;;  %v1891_v26 = vmax.f32 %v1859_v13, %v1875_v16  ;;  %v1892_v48 = vmax.f32 %v1860_v8, %v1876_v47  ;;  %v1863_v21 = vmul.f32 %v7880_v9, %v7756_v25  ;;  %v6297_v8 = vld [vmem:[#allocation11 + $0xc8] sm:$0xf0] }
0x1038   :  { %v1905_v30 = vmax.f32 %v1873_v39, %v1889_v42  ;;  %v1893_v10 = vmax.f32 %v1861_v44, %v1877_v15  ;;  %v1894_v5 = vmax.f32 %v1862_v51, %v1878_v54  ;;  %v1866_v42 = vmul.f32 %v7880_v9, %v7771_v52  ;;  %v6671_v44 = vld [vmem:[#allocation11 + $0xb4] sm:$0xf] }
0x1039   :  { %v1973_v22 = vpack.c.bf16 %v1890_v23, %v1890_v23  ;;  %v1975_v14 = vpack.c.bf16 %v1891_v26, %v1891_v26  ;;  %v1977_v41 = vpack.c.bf16 %v1892_v48, %v1892_v48  ;;  %v1879_v61 = vmul.f32 0.2, %v1863_v21  ;;  %v6687_v15 = vld [vmem:[#allocation11 + $0x134] sm:$0xf] }
0x103a   :  { %v2003_v45 = vpack.c.bf16 %v1905_v30, %v1905_v30  ;;  %v1979_v12 = vpack.c.bf16 %v1893_v10, %v1893_v10  ;;  %v1981_v28 = vpack.c.bf16 %v1894_v5, %v1894_v5  ;;  %v1864_v26 = vmul.f32 %v7880_v9, %v7761_v24 }
0x103b   :  { %v2041_v31 = vunpack.c.l.b16 %v1973_v22  ;;  %v2043_v59 = vunpack.c.l.b16 %v1975_v14  ;;  %v2045_v43 = vunpack.c.l.b16 %v1977_v41  ;;  %v1895_v56 = vmax.f32 %v1863_v21, %v1879_v61  ;;  %v6673_v14 = vld [vmem:[#allocation11 + $0xc4] sm:$0xf] }
0x103c   :  { %v7904_v11 = vunpack.c.l.b16 %v2003_v45  ;;  %v2047_v40 = vunpack.c.l.b16 %v1979_v12  ;;  %v2049_v7 = vunpack.c.l.b16 %v1981_v28  ;;  %v1881_v48 = vmul.f32 0.2, %v1865_v36  ;;  %v6289_v45 = vld [vmem:[#allocation11 + $0xb8] sm:$0xf0] }
0x103d   :  { %v2072_v32 = vpack.c.b16 %v2041_v31, %v2040_v29  ;;  %v7888_v33 = vpack.c.b16 %v2041_v31, %v2041_v31  ;;  %v7890_v46 = vpack.c.b16 %v2043_v59, %v2041_v31  ;;  %v7898_v49 = vpack.c.b16 %v2043_v59, %v2043_v59  ;;  %v6689_v31 = vld [vmem:[#allocation11 + $0x144] sm:$0xf]  ;;  %v6353_v12 = vld [vmem:[#allocation11 + $0x138] sm:$0xf0] }
0x103e   :  { %v7900_v18 = vpack.c.b16 %v2045_v43, %v2043_v59  ;;  %v7909_v17 = vpack.c.b16 %v2040_v29, %v7904_v11  ;;  %v7913_v19 = vpack.c.b16 %v2045_v43, %v2045_v43  ;;  %v7915_v53 = vpack.c.b16 %v2047_v40, %v2045_v43 }
0x103f   :  { %2438 = vmatmul.bf16.vlgmr.msrb.gmra.mxu0 %v2072_v32  ;;  %2527 = vmatmul.bf16.vlgmr.msrb.gmra.mxu1 %v7888_v33  ;;  %v7923_v13 = vpack.c.b16 %v2047_v40, %v2047_v40  ;;  %v7925_v55 = vpack.c.b16 %v2049_v7, %v2047_v40  ;;  %v1983_v16 = vpack.c.bf16 %v1895_v56, %v1895_v56  ;;  %v1880_v29 = vmul.f32 0.2, %v1864_v26 }
0x1040   :  { %2616 = vmatmul.bf16.vlgmr.msra.gmra.mxu2 %v7890_v46  ;;  %2705 = vmatmul.bf16.vlgmr.msrb.gmra.mxu3 %v2072_v32  ;;  %10410 = vst [vmem:[#allocation21_spill] sm:$0xff] %v7909_v17  ;;  %v7933_v25 = vpack.c.b16 %v2049_v7, %v2049_v7  ;;  %v6300_v59 = vor.u32 %v6673_v14, %v6297_v8  ;;  %v6361_v32 = vld [vmem:[#allocation11 + $0x148] sm:$0xf0]  ;;  %v1882_v43 = vmul.f32 0.2, %v1866_v42 }
0x1041   :  { %v2051_v23 = vunpack.c.l.b16 %v1983_v16  ;;  %v1896_v47 = vmax.f32 %v1864_v26, %v1880_v29  ;;  %v6364_v24 = vor.u32 %v6689_v31, %v6361_v32  ;;  %v1897_v35 = vmax.f32 %v1865_v36, %v1881_v48  ;;  %v6281_v26 = vld [vmem:[#allocation11 + $0xa8] sm:$0xf0]  ;;  %v6685_v29 = vld [vmem:[#allocation11 + $0x124] sm:$0xf] }
0x1042   :  { %2789 = vmatpush.bf16.msra.mxu0 %v6300_v59  ;;  %v6292_v10 = vor.u32 %v6671_v44, %v6289_v45  ;;  %v1898_v40 = vmax.f32 %v1866_v42, %v1882_v43  ;;  %v6356_v52 = vor.u32 %v6687_v15, %v6353_v12  ;;  %v1883_v2 = vmul.f32 0.2, %v1867_v58  ;;  %v6345_v14 = vld [vmem:[#allocation11 + $0x128] sm:$0xf0] }
0x1043   :  { %v7935_v22 = vpack.c.b16 %v2051_v23, %v2049_v7  ;;  %2878 = vmatpush.bf16.msra.mxu1 %v6364_v24  ;;  %v1985_v34 = vpack.c.bf16 %v1896_v47, %v1896_v47  ;;  %v7943_v37 = vpack.c.b16 %v2051_v23, %v2051_v23  ;;  %v1987_v39 = vpack.c.bf16 %v1897_v35, %v1897_v35 }
0x1044   :  { %v1989_v51 = vpack.c.bf16 %v1898_v40, %v1898_v40  ;;  %v1899_v4 = vmax.f32 %v1867_v58, %v1883_v2  ;;  %v1868_v28 = vmul.f32 %v7880_v9, %v7781_v60  ;;  %v6348_v31 = vor.u32 %v6685_v29, %v6345_v14 }
0x1045   :  { %v2053_v20 = vunpack.c.l.b16 %v1985_v34  ;;  %v2055_v41 = vunpack.c.l.b16 %v1987_v39  ;;  %v1869_v48 = vmul.f32 %v7880_v9, %v7786_v0  ;;  %v1870_v2 = vmul.f32 %v7880_v9, %v7791_v1  ;;  %v6667_v1 = vld [vmem:[#allocation11 + $0x94] sm:$0xf] }
0x1046   :  { %2790 = vmatpush.bf16.msra.mxu0 %v6292_v10  ;;  %v2057_v54 = vunpack.c.l.b16 %v1989_v51  ;;  %v1991_v5 = vpack.c.bf16 %v1899_v4, %v1899_v4  ;;  %v1884_v16 = vmul.f32 0.2, %v1868_v28 }
0x1047   :  { %v7945_v38 = vpack.c.b16 %v2053_v20, %v2051_v23  ;;  %v7953_v27 = vpack.c.b16 %v2053_v20, %v2053_v20  ;;  %v7955_v30 = vpack.c.b16 %v2055_v41, %v2053_v20  ;;  %2879 = vmatpush.bf16.msra.mxu1 %v6356_v52  ;;  %v7963_v62 = vpack.c.b16 %v2055_v41, %v2055_v41  ;;  %v6669_v23 = vld [vmem:[#allocation11 + $0xa4] sm:$0xf] }
0x1048   :  { %v7965_v63 = vpack.c.b16 %v2057_v54, %v2055_v41  ;;  %v2059_v50 = vunpack.c.l.b16 %v1991_v5  ;;  %v7973_v61 = vpack.c.b16 %v2057_v54, %v2057_v54  ;;  %v6284_v60 = vor.u32 %v6669_v23, %v6281_v26  ;;  %v6273_v23 = vld [vmem:[#allocation11 + $0x98] sm:$0xf0]  ;;  %v6683_v26 = vld [vmem:[#allocation11 + $0x114] sm:$0xf] }
0x1049   :  { %v1900_v8 = vmax.f32 %v1868_v28, %v1884_v16  ;;  %v1885_v15 = vmul.f32 0.2, %v1869_v48  ;;  %v1886_v16 = vmul.f32 0.2, %v1870_v2  ;;  %v6276_v29 = vor.u32 %v6667_v1, %v6273_v23 }
0x104a   :  { %v7975_v56 = vpack.c.b16 %v2059_v50, %v2057_v54  ;;  %2791 = vmatpush.bf16.msra.mxu0 %v6284_v60  ;;  %v7987_v44 = vpack.c.b16 %v2059_v50, %v2059_v50  ;;  %v6337_v60 = vld [vmem:[#allocation11 + $0x118] sm:$0xf0] }
0x104b   :  { %2880 = vmatpush.bf16.msra.mxu1 %v6348_v31  ;;  %v1993_v20 = vpack.c.bf16 %v1900_v8, %v1900_v8  ;;  %v1901_v0 = vmax.f32 %v1869_v48, %v1885_v15  ;;  %v1902_v14 = vmax.f32 %v1870_v2, %v1886_v16  ;;  %v6340_v8 = vor.u32 %v6683_v26, %v6337_v60 }
0x104c   :  { %v1872_v16 = vmul.f32 %v7880_v9, %v7801_v6  ;;  %v6665_v6 = vld [vmem:[#allocation11 + $0x84] sm:$0xf] }
0x104d   :  { %v2061_v36 = vunpack.c.l.b16 %v1993_v20  ;;  %v1995_v54 = vpack.c.bf16 %v1901_v0, %v1901_v0  ;;  %v1997_v20 = vpack.c.bf16 %v1902_v14, %v1902_v14 }
0x104e   :  { %2792 = vmatpush.bf16.msra.mxu0 %v6276_v29 }
0x104f   :  { %2443 = vmatmul.bf16.gmra.mxu0 %v7890_v46  ;;  %2532 = vmatmul.bf16.gmra.mxu1 %v7898_v49  ;;  %v7989_v45 = vpack.c.b16 %v2061_v36, %v2059_v50  ;;  %v2063_v58 = vunpack.c.l.b16 %v1995_v54  ;;  %v2065_v48 = vunpack.c.l.b16 %v1997_v20  ;;  %v6329_v20 = vld [vmem:[#allocation11 + $0x108] sm:$0xf0] }
0x1050   :  { %2621 = vmatmul.bf16.gmra.mxu2 %v7900_v18  ;;  %2710 = vmatmul.bf16.gmra.mxu3 %v7890_v46 }
0x1051   :  { %2881 = vmatpush.bf16.msra.mxu1 %v6340_v8  ;;  %v8035_v8 = vpack.c.b16 %v2065_v48, %v2065_v48 }
0x1053   :  { %10418 = vst [vmem:[#allocation29_spill] sm:$0xff] %v8035_v8 }
0x105f   :  { %2448 = vmatmul.bf16.gmra.mxu0 %v7900_v18  ;;  %2537 = vmatmul.bf16.gmra.mxu1 %v7913_v19 }
0x1060   :  { %2626 = vmatmul.bf16.gmra.mxu2 %v7915_v53  ;;  %2715 = vmatmul.bf16.gmra.mxu3 %v7900_v18 }
0x106f   :  { %2453 = vmatmul.bf16.gmra.mxu0 %v7915_v53  ;;  %2542 = vmatmul.bf16.gmra.mxu1 %v7923_v13 }
0x1070   :  { %2631 = vmatmul.bf16.gmra.mxu2 %v7925_v55  ;;  %2720 = vmatmul.bf16.gmra.mxu3 %v7915_v53 }
0x107f   :  { %2458 = vmatmul.bf16.gmra.mxu0 %v7925_v55  ;;  %2547 = vmatmul.bf16.gmra.mxu1 %v7933_v25 }
0x1080   :  { %2636 = vmatmul.bf16.gmra.mxu2 %v7935_v22  ;;  %2725 = vmatmul.bf16.gmra.mxu3 %v7925_v55 }
0x108f   :  { %2463 = vmatmul.bf16.gmra.mxu0 %v7935_v22  ;;  %2552 = vmatmul.bf16.gmra.mxu1 %v7943_v37 }
0x1090   :  { %2641 = vmatmul.bf16.gmra.mxu2 %v7945_v38  ;;  %2730 = vmatmul.bf16.gmra.mxu3 %v7935_v22 }
0x109f   :  { %2468 = vmatmul.bf16.gmra.mxu0 %v7945_v38  ;;  %2557 = vmatmul.bf16.gmra.mxu1 %v7953_v27 }
0x10a0   :  { %2646 = vmatmul.bf16.gmra.mxu2 %v7955_v30  ;;  %2735 = vmatmul.bf16.gmra.mxu3 %v7945_v38 }
0x10af   :  { %2473 = vmatmul.bf16.gmra.mxu0 %v7955_v30  ;;  %2562 = vmatmul.bf16.gmra.mxu1 %v7963_v62 }
0x10b0   :  { %2651 = vmatmul.bf16.gmra.mxu2 %v7965_v63  ;;  %2740 = vmatmul.bf16.gmra.mxu3 %v7955_v30 }
0x10bc   :  { %v2439_v57 = vpop.f32.mrf.mxu0  ;;  %v2528_v7 = vpop.f32.mrf.mxu1 }
0x10bd   :  { %v2529_v21 = vadd.f32 %v2528_v7, %v2439_v57  ;;  %v8001_v7 = vpack.c.b16 %v2061_v36, %v2061_v36 }
0x10bf   :  { %2478 = vmatmul.bf16.gmra.mxu0 %v7965_v63  ;;  %2567 = vmatmul.bf16.gmra.mxu1 %v7973_v61  ;;  %10412 = vst [vmem:[#allocation23_spill] sm:$0xff] %v8001_v7 }
0x10c0   :  { %2656 = vmatmul.bf16.gmra.mxu2 %v7975_v56  ;;  %2745 = vmatmul.bf16.gmra.mxu3 %v7965_v63 }
0x10c3   :  { %v2617_v59 = vpop.f32.mrf.mxu2 }
0x10c4   :  { %v7981_v32 = vadd.f32 %v2617_v59, %v2529_v21  ;;  %v2441_v47 = vpop.f32.mrf.mxu0  ;;  %v2530_v24 = vpop.f32.mrf.mxu1  ;;  %v8003_v21 = vpack.c.b16 %v2063_v58, %v2061_v36 }
0x10c5   :  { %v2531_v34 = vadd.f32 %v2530_v24, %v2441_v47  ;;  %v8011_v36 = vpop.f32.mrf.mxu3 }
0x10c6   :  { %10413 = vst [vmem:[#allocation24_spill] sm:$0xff] %v8003_v21 }
0x10cb   :  { %v2619_v35 = vpop.f32.mrf.mxu2 }
0x10cc   :  { %v7985_v39 = vadd.f32 %v2619_v35, %v2531_v34  ;;  %v2444_v41 = vpop.f32.mrf.mxu0  ;;  %v2533_v42 = vpop.f32.mrf.mxu1  ;;  %v1871_v35 = vmul.f32 %v7880_v9, %v7796_v3  ;;  %v6265_v9 = vld [vmem:[#allocation11 + $0x88] sm:$0xf0] }
0x10cd   :  { %v2534_v43 = vadd.f32 %v2533_v42, %v2444_v41 }
0x10ce   :  { %10411 = vst [vmem:[#allocation22_spill] sm:$0xff] %v7985_v39 }
0x10cf   :  { %2483 = vmatmul.bf16.gmra.mxu0 %v7975_v56  ;;  %2572 = vmatmul.bf16.gmra.mxu1 %v7987_v44 }
0x10d0   :  { %2661 = vmatmul.bf16.gmra.mxu2 %v7989_v45  ;;  %2750 = vmatmul.bf16.gmra.mxu3 %v7975_v56 }
0x10d3   :  { %v2622_v10 = vpop.f32.mrf.mxu2 }
0x10d4   :  { %v7995_v12 = vadd.f32 %v2622_v10, %v2534_v43  ;;  %v2446_v40 = vpop.f32.mrf.mxu0  ;;  %v2535_v52 = vpop.f32.mrf.mxu1  ;;  %v8017_v10 = vpack.c.b16 %v2063_v58, %v2063_v58 }
0x10d5   :  { %v2536_v51 = vadd.f32 %v2535_v52, %v2446_v40  ;;  %v8019_v40 = vpack.c.b16 %v2065_v48, %v2063_v58  ;;  %v1887_v52 = vmul.f32 0.2, %v1871_v35 }
0x10d6   :  { %10414 = vst [vmem:[#allocation25_spill] sm:$0xff] %v8017_v10 }
0x10d7   :  { %10415 = vst [vmem:[#allocation26_spill] sm:$0xff] %v8019_v40  ;;  %v1903_v3 = vmax.f32 %v1871_v35, %v1887_v52 }
0x10d9   :  { %v1999_v58 = vpack.c.bf16 %v1903_v3, %v1903_v3 }
0x10db   :  { %v2624_v4 = vpop.f32.mrf.mxu2 }
0x10dc   :  { %v7999_v5 = vadd.f32 %v2624_v4, %v2536_v51  ;;  %v2449_v50 = vpop.f32.mrf.mxu0  ;;  %v2538_v28 = vpop.f32.mrf.mxu1 }
0x10dd   :  { %v2539_v57 = vadd.f32 %v2538_v28, %v2449_v50  ;;  %v8025_v51 = vpop.f32.mrf.mxu3 }
0x10df   :  { %2488 = vmatmul.bf16.gmra.mxu0 %v7989_v45  ;;  %2577 = vmatmul.bf16.gmra.mxu1 %v8001_v7 }
0x10e0   :  { %2666 = vmatmul.bf16.gmra.mxu2 %v8003_v21  ;;  %2755 = vmatmul.bf16.gmra.mxu3 %v7989_v45 }
0x10e3   :  { %v2627_v31 = vpop.f32.mrf.mxu2 }
0x10e4   :  { %v8009_v59 = vadd.f32 %v2627_v31, %v2539_v57  ;;  %v2451_v47 = vpop.f32.mrf.mxu0  ;;  %v2540_v24 = vpop.f32.mrf.mxu1  ;;  %v2067_v57 = vunpack.c.l.b16 %v1999_v58 }
0x10e5   :  { %v2541_v34 = vadd.f32 %v2540_v24, %v2451_v47  ;;  %v8033_v60 = vpop.f32.mrf.mxu3  ;;  %v1888_v47 = vmul.f32 0.2, %v1872_v16  ;;  %v6681_v24 = vld [vmem:[#allocation11 + $0x104] sm:$0xf] }
0x10e6   :  { %v8037_v31 = vpack.c.b16 %v2067_v57, %v2065_v48 }
0x10e7   :  { %v1904_v35 = vmax.f32 %v1872_v16, %v1888_v47  ;;  %v8051_v16 = vpack.c.b16 %v2067_v57, %v2067_v57 }
0x10e8   :  { %10419 = vst [vmem:[#allocation30_spill] sm:$0xff] %v8037_v31 }
0x10e9   :  { %v2001_v3 = vpack.c.bf16 %v1904_v35, %v1904_v35  ;;  %10422 = vst [vmem:[#allocation33_spill] sm:$0xff] %v8051_v16 }
0x10eb   :  { %v2629_v41 = vpop.f32.mrf.mxu2 }
0x10ec   :  { %v8015_v42 = vadd.f32 %v2629_v41, %v2541_v34  ;;  %v2454_v43 = vpop.f32.mrf.mxu0  ;;  %v2543_v15 = vpop.f32.mrf.mxu1  ;;  %v6268_v34 = vor.u32 %v6665_v6, %v6265_v9  ;;  %v6332_v41 = vor.u32 %v6681_v24, %v6329_v20 }
0x10ed   :  { %v2544_v0 = vadd.f32 %v2543_v15, %v2454_v43 }
0x10ee   :  { %2793 = vmatpush.bf16.msra.mxu0 %v6268_v34  ;;  %2882 = vmatpush.bf16.msra.mxu1 %v6332_v41 }
0x10ef   :  { %2493 = vmatmul.bf16.gmra.mxu0 %v8003_v21  ;;  %2582 = vmatmul.bf16.gmra.mxu1 %v8017_v10 }
0x10f0   :  { %2671 = vmatmul.bf16.gmra.mxu2 %v8019_v40  ;;  %2760 = vmatmul.bf16.gmra.mxu3 %v8003_v21 }
0x10f3   :  { %v2632_v54 = vpop.f32.mrf.mxu2 }
0x10f4   :  { %v8027_v2 = vadd.f32 %v2632_v54, %v2544_v0  ;;  %v2456_v4 = vpop.f32.mrf.mxu0  ;;  %v2545_v50 = vpop.f32.mrf.mxu1 }
0x10f5   :  { %v2546_v28 = vadd.f32 %v2545_v50, %v2456_v4  ;;  %v8047_v54 = vpop.f32.mrf.mxu3  ;;  %v2069_v4 = vunpack.c.l.b16 %v2001_v3 }
0x10f6   :  { %10416 = vst [vmem:[#allocation27_spill] sm:$0xff] %v8027_v2 }
0x10f7   :  { %10421 = vst [vmem:[#allocation32_spill] sm:$0xff] %v8047_v54 }
0x10fb   :  { %v2634_v1 = vpop.f32.mrf.mxu2 }
0x10fc   :  { %v8031_v23 = vadd.f32 %v2634_v1, %v2546_v28  ;;  %v2459_v26 = vpop.f32.mrf.mxu0  ;;  %v2548_v29 = vpop.f32.mrf.mxu1 }
0x10fd   :  { %v2549_v14 = vadd.f32 %v2548_v29, %v2459_v26  ;;  %v8053_v26 = vpack.c.b16 %v2069_v4, %v2067_v57  ;;  %v8059_v29 = vpop.f32.mrf.mxu3 }
0x10fe   :  { %10417 = vst [vmem:[#allocation28_spill] sm:$0xff] %v8031_v23 }
0x10ff   :  { %2498 = vmatmul.bf16.gmra.mxu0 %v8019_v40  ;;  %2587 = vmatmul.bf16.gmra.mxu1 %v8035_v8  ;;  %10423 = vst [vmem:[#allocation34_spill] sm:$0xff] %v8053_v26 }
0x1100   :  { %2676 = vmatmul.bf16.gmra.mxu2 %v8037_v31  ;;  %2765 = vmatmul.bf16.gmra.mxu3 %v8019_v40  ;;  %10424 = vst [vmem:[#allocation35_spill] sm:$0xff] %v8059_v29 }
0x1103   :  { %v2637_v43 = vpop.f32.mrf.mxu2 }
0x1104   :  { %v8043_v48 = vadd.f32 %v2637_v43, %v2549_v14  ;;  %v2461_v15 = vpop.f32.mrf.mxu0  ;;  %v2550_v0 = vpop.f32.mrf.mxu1  ;;  %v8069_v43 = vpack.c.b16 %v2069_v4, %v2069_v4 }
0x1105   :  { %v8045_v52 = vadd.f32 %v2550_v0, %v2461_v15  ;;  %v8065_v34 = vpop.f32.mrf.mxu3  ;;  %v8072_v15 = vpack.c.b16 %v7904_v11, %v2069_v4 }
0x1106   :  { %10420 = vst [vmem:[#allocation31_spill] sm:$0xff] %v8043_v48 }
0x1107   :  { %10426 = vst [vmem:[#allocation37_spill] sm:$0xff] %v8065_v34 }
0x1108   :  { %10427 = vst [vmem:[#allocation38_spill] sm:$0xff] %v8069_v43 }
0x1109   :  { %10428 = vst [vmem:[#allocation39_spill] sm:$0xff] %v8072_v15 }
0x110b   :  { %v8049_v50 = vpop.f32.mrf.mxu2 }
0x110c   :  { %v2464_v28 = vpop.f32.mrf.mxu0  ;;  %v2553_v58 = vpop.f32.mrf.mxu1 }
0x110d   :  { %v2554_v1 = vadd.f32 %v2553_v58, %v2464_v28 }
0x110f   :  { %2503 = vmatmul.bf16.gmra.mxu0 %v8037_v31  ;;  %2592 = vmatmul.bf16.gmra.mxu1 %v8051_v16 }
0x1110   :  { %2681 = vmatmul.bf16.gmra.mxu2 %v8053_v26  ;;  %2770 = vmatmul.bf16.gmra.mxu3 %v8037_v31 }
0x1113   :  { %v2642_v14 = vpop.f32.mrf.mxu2 }
0x1114   :  { %v8061_v47 = vadd.f32 %v2642_v14, %v2554_v1  ;;  %v2466_v6 = vpop.f32.mrf.mxu0  ;;  %v2555_v9 = vpop.f32.mrf.mxu1 }
0x1115   :  { %v8063_v24 = vadd.f32 %v2555_v9, %v2466_v6  ;;  %v8082_v14 = vpop.f32.mrf.mxu3 }
0x1116   :  { %10425 = vst [vmem:[#allocation36_spill] sm:$0xff] %v8061_v47 }
0x1117   :  { %10430 = vst [vmem:[#allocation41_spill] sm:$0xff] %v8082_v14 }
0x111b   :  { %v8067_v57 = vpop.f32.mrf.mxu2 }
0x111c   :  { %v2469_v20 = vpop.f32.mrf.mxu0  ;;  %v2558_v35 = vpop.f32.mrf.mxu1 }
0x111d   :  { %v2559_v41 = vadd.f32 %v2558_v35, %v2469_v20  ;;  %v8088_v35 = vpack.c.b16 %v7904_v11, %v7904_v11 }
0x111f   :  { %2508 = vmatmul.bf16.gmra.mxu0 %v8053_v26  ;;  %2597 = vmatmul.bf16.gmra.mxu1 %v8069_v43  ;;  %10431 = vst [vmem:[#allocation42_spill] sm:$0xff] %v8088_v35 }
0x1120   :  { %2686 = vmatmul.bf16.gmra.mxu2 %v8072_v15  ;;  %2775 = vmatmul.bf16.gmra.mxu3 %v8053_v26 }
0x1123   :  { %v2647_v0 = vpop.f32.mrf.mxu2 }
0x1124   :  { %v8078_v3 = vadd.f32 %v2647_v0, %v2559_v41  ;;  %v2471_v28 = vpop.f32.mrf.mxu0  ;;  %v2560_v58 = vpop.f32.mrf.mxu1 }
0x1125   :  { %v8080_v1 = vadd.f32 %v2560_v58, %v2471_v28  ;;  %v8092_v41 = vpop.f32.mrf.mxu3 }
0x1126   :  { %10429 = vst [vmem:[#allocation40_spill] sm:$0xff] %v8078_v3 }
0x1127   :  { %10432 = vst [vmem:[#allocation43_spill] sm:$0xff] %v8092_v41 }
0x112b   :  { %v8084_v6 = vpop.f32.mrf.mxu2 }
0x112c   :  { %v2474_v4 = vpop.f32.mrf.mxu0  ;;  %v2563_v9 = vpop.f32.mrf.mxu1 }
0x112d   :  { %v2564_v20 = vadd.f32 %v2563_v9, %v2474_v4 }
0x112f   :  { %2513 = vmatmul.bf16.gmra.mxu0 %v8072_v15  ;;  %2602 = vmatmul.bf16.gmra.mxu1 %v8088_v35 }
0x1130   :  { %2691 = vmatmul.bf16.gmra.mxu2 %v7909_v17  ;;  %2780 = vmatmul.bf16.gmra.mxu3 %v8072_v15 }
0x1133   :  { %v2652_v0 = vpop.f32.mrf.mxu2 }
0x1134   :  { %v8096_v28 = vadd.f32 %v2652_v0, %v2564_v20  ;;  %v2476_v58 = vpop.f32.mrf.mxu0  ;;  %v2565_v43 = vpop.f32.mrf.mxu1 }
0x1135   :  { %v8098_v4 = vadd.f32 %v2565_v43, %v2476_v58 }
0x1136   :  { %10433 = vst [vmem:[#allocation44_spill] sm:$0xff] %v8096_v28 }
0x113b   :  { %v8100_v9 = vpop.f32.mrf.mxu2 }
0x113c   :  { %v2479_v11 = vpop.f32.mrf.mxu0  ;;  %v2568_v26 = vpop.f32.mrf.mxu1 }
0x113d   :  { %v2569_v16 = vadd.f32 %v2568_v26, %v2479_v11 }
0x113f   :  { %2794 = vmatmul.bf16.vlgmr.msra.gmra.mxu0 %v7888_v33  ;;  %2883 = vmatmul.bf16.vlgmr.msra.gmra.mxu1 %v7890_v46 }
0x1143   :  { %v2657_v35 = vpop.f32.mrf.mxu2 }
0x1144   :  { %v8104_v17 = vadd.f32 %v2657_v35, %v2569_v16  ;;  %v2481_v15 = vpop.f32.mrf.mxu0  ;;  %v2570_v31 = vpop.f32.mrf.mxu1 }
0x1145   :  { %v8106_v20 = vadd.f32 %v2570_v31, %v2481_v15 }
0x1146   :  { %10434 = vst [vmem:[#allocation45_spill] sm:$0xff] %v8104_v17 }
0x114b   :  { %v8108_v0 = vpop.f32.mrf.mxu2 }
0x114c   :  { %v2484_v43 = vpop.f32.mrf.mxu0  ;;  %v2573_v58 = vpop.f32.mrf.mxu1 }
0x114d   :  { %v2574_v8 = vadd.f32 %v2573_v58, %v2484_v43 }
0x114f   :  { %2799 = vmatmul.bf16.gmra.mxu0 %v7898_v49  ;;  %2888 = vmatmul.bf16.gmra.mxu1 %v7900_v18 }
0x1153   :  { %v2662_v26 = vpop.f32.mrf.mxu2 }
0x1154   :  { %v8112_v33 = vadd.f32 %v2662_v26, %v2574_v8  ;;  %v2486_v46 = vpop.f32.mrf.mxu0  ;;  %v2575_v11 = vpop.f32.mrf.mxu1 }
0x1155   :  { %v2576_v16 = vadd.f32 %v2575_v11, %v2486_v46 }
0x1156   :  { %10435 = vst [vmem:[#allocation46_spill] sm:$0xff] %v8112_v33 }
0x115b   :  { %v2664_v35 = vpop.f32.mrf.mxu2 }
0x115c   :  { %v2489_v41 = vpop.f32.mrf.mxu0  ;;  %v2578_v40 = vpop.f32.mrf.mxu1 }
0x115d   :  { %v2579_v31 = vadd.f32 %v2578_v40, %v2489_v41 }
0x115f   :  { %2804 = vmatmul.bf16.gmra.mxu0 %v7913_v19  ;;  %2893 = vmatmul.bf16.gmra.mxu1 %v7915_v53  ;;  %v2964_v53 = vadd.f32 %v7985_v39, %v7981_v32  ;;  %v8132_v39 = vadd.f32 %v8049_v50, %v8045_v52 }
0x1161   :  { %10437 = vst [vmem:[#allocation48_spill] sm:$0xff] %v8132_v39 }
0x1163   :  { %v2667_v15 = vpop.f32.mrf.mxu2 }
0x1164   :  { %v8116_v43 = vadd.f32 %v2667_v15, %v2579_v31  ;;  %v2491_v49 = vpop.f32.mrf.mxu0  ;;  %v2580_v58 = vpop.f32.mrf.mxu1  ;;  %v2965_v15 = vadd.f32 %v2964_v53, %v7995_v12 }
0x1166   :  { %10436 = vst [vmem:[#allocation47_spill] sm:$0xff] %v8116_v43 }
0x116b   :  { %v2669_v18 = vpop.f32.mrf.mxu2 }
0x116c   :  { %v2494_v10 = vpop.f32.mrf.mxu0  ;;  %v2583_v8 = vpop.f32.mrf.mxu1 }
0x116f   :  { %2809 = vmatmul.bf16.gmra.mxu0 %v7923_v13  ;;  %2898 = vmatmul.bf16.gmra.mxu1 %v7925_v55  ;;  %v2966_v55 = vadd.f32 %v2965_v15, %v7999_v5 }
0x1171   :  { %v2967_v34 = vadd.f32 %v2966_v55, %v8009_v59 }
0x1173   :  { %v2672_v26 = vpop.f32.mrf.mxu2  ;;  %v2968_v21 = vadd.f32 %v2967_v34, %v8015_v42  ;;  %v8140_v34 = vadd.f32 %v8067_v57, %v8063_v24 }
0x1174   :  { %v2496_v46 = vpop.f32.mrf.mxu0  ;;  %v2585_v11 = vpop.f32.mrf.mxu1 }
0x1175   :  { %v2969_v29 = vadd.f32 %v2968_v21, %v8027_v2  ;;  %10438 = vst [vmem:[#allocation49_spill] sm:$0xff] %v8140_v34 }
0x117b   :  { %v2674_v40 = vpop.f32.mrf.mxu2 }
0x117c   :  { %v2499_v41 = vpop.f32.mrf.mxu0  ;;  %v2588_v19 = vpop.f32.mrf.mxu1 }
0x117f   :  { %2814 = vmatmul.bf16.gmra.mxu0 %v7933_v25  ;;  %2903 = vmatmul.bf16.gmra.mxu1 %v7935_v22  ;;  %v2970_v22 = vadd.f32 %v2969_v29, %v8031_v23 }
0x1181   :  { %v2971_v53 = vadd.f32 %v2970_v22, %v8043_v48  ;;  %v8152_v22 = vadd.f32 %v8100_v9, %v8098_v4  ;;  %v8164_v4 = vadd.f32 %v2664_v35, %v2576_v16  ;;  %v2589_v35 = vadd.f32 %v2588_v19, %v2499_v41 }
0x1183   :  { %v2677_v31 = vpop.f32.mrf.mxu2  ;;  %v2972_v15 = vadd.f32 %v2971_v53, %v8132_v39  ;;  %10440 = vst [vmem:[#allocation51_spill] sm:$0xff] %v8152_v22 }
0x1184   :  { %v2501_v14 = vpop.f32.mrf.mxu0  ;;  %v2590_v13 = vpop.f32.mrf.mxu1  ;;  %10442 = vst [vmem:[#allocation53_spill] sm:$0xff] %v8164_v4 }
0x1185   :  { %v2973_v55 = vadd.f32 %v2972_v15, %v8061_v47 }
0x1187   :  { %v2974_v52 = vadd.f32 %v2973_v55, %v8140_v34  ;;  %v8158_v55 = vadd.f32 %v8108_v0, %v8106_v20  ;;  %v2584_v0 = vadd.f32 %v2583_v8, %v2494_v10 }
0x1189   :  { %10441 = vst [vmem:[#allocation52_spill] sm:$0xff] %v8158_v55 }
0x118b   :  { %v2679_v7 = vpop.f32.mrf.mxu2 }
0x118c   :  { %v2504_v25 = vpop.f32.mrf.mxu0  ;;  %v2593_v54 = vpop.f32.mrf.mxu1 }
0x118f   :  { %2819 = vmatmul.bf16.gmra.mxu0 %v7943_v37  ;;  %2908 = vmatmul.bf16.gmra.mxu1 %v7945_v38  ;;  %v8146_v37 = vadd.f32 %v8084_v6, %v8080_v1  ;;  %v2975_v38 = vadd.f32 %v2974_v52, %v8078_v3 }
0x1191   :  { %10439 = vst [vmem:[#allocation50_spill] sm:$0xff] %v8146_v37  ;;  %v2976_v50 = vadd.f32 %v2975_v38, %v8146_v37  ;;  %v2581_v38 = vadd.f32 %v2580_v58, %v2491_v49  ;;  %v8177_v58 = vadd.f32 %v2677_v31, %v2589_v35 }
0x1193   :  { %v2682_v21 = vpop.f32.mrf.mxu2  ;;  %v2977_v57 = vadd.f32 %v2976_v50, %v8096_v28  ;;  %v8168_v20 = vadd.f32 %v2669_v18, %v2581_v38  ;;  %10446 = vst [vmem:[#allocation57_spill] sm:$0xff] %v8177_v58 }
0x1194   :  { %v2506_v29 = vpop.f32.mrf.mxu0  ;;  %v2595_v23 = vpop.f32.mrf.mxu1 }
0x1195   :  { %v2978_v47 = vadd.f32 %v2977_v57, %v8152_v22  ;;  %10443 = vst [vmem:[#allocation54_spill] sm:$0xff] %v8168_v20 }
0x1197   :  { %v2979_v1 = vadd.f32 %v2978_v47, %v8104_v17  ;;  %v2586_v47 = vadd.f32 %v2585_v11, %v2496_v46 }
0x1199   :  { %v2980_v6 = vadd.f32 %v2979_v1, %v8158_v55  ;;  %v8174_v16 = vadd.f32 %v2674_v40, %v2586_v47  ;;  %v2596_v40 = vadd.f32 %v2595_v23, %v2506_v29 }
0x119b   :  { %v2684_v24 = vpop.f32.mrf.mxu2  ;;  %v2981_v52 = vadd.f32 %v2980_v6, %v8112_v33  ;;  %10445 = vst [vmem:[#allocation56_spill] sm:$0xff] %v8174_v16  ;;  %v2591_v6 = vadd.f32 %v2590_v13, %v2501_v14 }
0x119c   :  { %v2509_v53 = vpop.f32.mrf.mxu0  ;;  %v2598_v15 = vpop.f32.mrf.mxu1  ;;  %v8188_v19 = vadd.f32 %v2684_v24, %v2596_v40 }
0x119d   :  { %v2982_v22 = vadd.f32 %v2981_v52, %v8164_v4  ;;  %v8180_v8 = vadd.f32 %v2679_v7, %v2591_v6  ;;  %v2599_v14 = vadd.f32 %v2598_v15, %v2509_v53 }
0x119e   :  { %10449 = vst [vmem:[#allocation60_spill] sm:$0xff] %v8188_v19 }
0x119f   :  { %2824 = vmatmul.bf16.gmra.mxu0 %v7953_v27  ;;  %2913 = vmatmul.bf16.gmra.mxu1 %v7955_v30  ;;  %v2983_v27 = vadd.f32 %v2982_v22, %v8116_v43  ;;  %v8171_v30 = vadd.f32 %v2672_v26, %v2584_v0  ;;  %10447 = vst [vmem:[#allocation58_spill] sm:$0xff] %v8180_v8 }
0x11a0   :  { %v2594_v26 = vadd.f32 %v2593_v54, %v2504_v25 }
0x11a1   :  { %10444 = vst [vmem:[#allocation55_spill] sm:$0xff] %v8171_v30  ;;  %v2984_v1 = vadd.f32 %v2983_v27, %v8168_v20 }
0x11a2   :  { %v8185_v11 = vadd.f32 %v2682_v21, %v2594_v26 }
0x11a3   :  { %v2687_v9 = vpop.f32.mrf.mxu2  ;;  %v2985_v49 = vadd.f32 %v2984_v1, %v8171_v30 }
0x11a4   :  { %v2511_v50 = vpop.f32.mrf.mxu0  ;;  %v2600_v57 = vpop.f32.mrf.mxu1  ;;  %10448 = vst [vmem:[#allocation59_spill] sm:$0xff] %v8185_v11  ;;  %v8191_v7 = vadd.f32 %v2687_v9, %v2599_v14 }
0x11a5   :  { %v2986_v10 = vadd.f32 %v2985_v49, %v8174_v16  ;;  %v2601_v54 = vadd.f32 %v2600_v57, %v2511_v50 }
0x11a6   :  { %10450 = vst [vmem:[#allocation61_spill] sm:$0xff] %v8191_v7 }
0x11a7   :  { %v2987_v46 = vadd.f32 %v2986_v10, %v8177_v58 }
0x11a9   :  { %v2988_v41 = vadd.f32 %v2987_v46, %v8180_v8  ;;  %v2726_v46 = vpop.f32.mrf.mxu3 }
0x11ab   :  { %v2689_v55 = vpop.f32.mrf.mxu2  ;;  %v2989_v13 = vadd.f32 %v2988_v41, %v8185_v11 }
0x11ac   :  { %v2514_v52 = vpop.f32.mrf.mxu0  ;;  %v2603_v18 = vpop.f32.mrf.mxu1  ;;  %v8194_v22 = vadd.f32 %v2689_v55, %v2601_v54 }
0x11ad   :  { %v2604_v21 = vadd.f32 %v2603_v18, %v2514_v52 }
0x11ae   :  { %10451 = vst [vmem:[#allocation62_spill] sm:$0xff] %v8194_v22 }
0x11af   :  { %2829 = vmatmul.bf16.gmra.mxu0 %v7963_v62  ;;  %2918 = vmatmul.bf16.gmra.mxu1 %v7965_v63  ;;  %v2990_v63 = vadd.f32 %v2989_v13, %v8188_v19 }
0x11b1   :  { %v2991_v23 = vadd.f32 %v2990_v63, %v8191_v7 }
0x11b3   :  { %v2692_v31 = vpop.f32.mrf.mxu2  ;;  %v2992_v24 = vadd.f32 %v2991_v23, %v8194_v22  ;;  %v10459_v23 = vld [vmem:[#allocation24_spill] sm:$0xff] }
0x11b4   :  { %v2516_v25 = vpop.f32.mrf.mxu0  ;;  %v2605_v62 = vpop.f32.mrf.mxu1  ;;  %v8197_v29 = vadd.f32 %v2692_v31, %v2604_v21  ;;  %v10454_v31 = vld [vmem:[#allocation32_spill] sm:$0xff]  ;;  %v10458_v21 = vld [vmem:[#allocation23_spill] sm:$0xff] }
0x11b5   :  { %v2606_v53 = vadd.f32 %v2605_v62, %v2516_v25  ;;  %v10456_v25 = vld [vmem:[#allocation35_spill] sm:$0xff] }
0x11b6   :  { %10452 = vst [vmem:[#allocation63_spill] sm:$0xff] %v8197_v29  ;;  %v2993_v38 = vadd.f32 %v2992_v24, %v8197_v29 }
0x11bb   :  { %v2694_v15 = vpop.f32.mrf.mxu2 }
0x11bc   :  { %v8201_v9 = vadd.f32 %v2694_v15, %v2606_v53  ;;  %v2795_v50 = vpop.f32.mrf.mxu0  ;;  %v2884_v57 = vpop.f32.mrf.mxu1 }
0x11bd   :  { %v2796_v0 = vadd.f32 %v2795_v50, %v8011_v36 }
0x11be   :  { %10453 = vst [vmem:[#allocation64_spill] sm:$0xff] %v8201_v9  ;;  %v2994_v55 = vadd.f32 %v2993_v38, %v8201_v9  ;;  %v10460_v38 = vld [vmem:[#allocation37_spill] sm:$0xff] }
0x11bf   :  { %v8205_v27 = vadd.f32 %v2884_v57, %v2796_v0  ;;  %2834 = vmatmul.bf16.gmra.mxu0 %v7973_v61  ;;  %2923 = vmatmul.bf16.gmra.mxu1 %v7975_v56 }
0x11c0   :  { %v2995_v47 = vrot.slane %v2994_v55, 4 }
0x11c2   :  { %v2996_v1 = vadd.f32 %v2995_v47, %v2994_v55 }
0x11c4   :  { %v2997_v35 = vrot.slane %v2996_v1, 2  ;;  %v2797_v49 = vpop.f32.mrf.mxu0  ;;  %v2886_v6 = vpop.f32.mrf.mxu1 }
0x11c5   :  { %v2798_v52 = vadd.f32 %v2797_v49, %v8025_v51 }
0x11c6   :  { %v2998_v18 = vadd.f32 %v2997_v35, %v2996_v1  ;;  %v10462_v1 = vld [vmem:[#allocation41_spill] sm:$0xff] }
0x11c7   :  { %v8210_v10 = vadd.f32 %v2886_v6, %v2798_v52  ;;  %v10463_v6 = vld [vmem:[#allocation25_spill] sm:$0xff]  ;;  %v10464_v52 = vld [vmem:[#allocation26_spill] sm:$0xff] }
0x11c8   :  { %v2999_v26 = vrot.slane %v2998_v18, 1 }
0x11ca   :  { %v8212_v36 = vadd.f32 %v2999_v26, %v2998_v18 }
0x11cc   :  { %3047 = vrot.lane.b32.xlu0 %v8212_v36, %s7151_s7  ;;  %3043 = vrot.lane.b32.xlu2 %v8212_v36, %s7147_s5  ;;  %v2800_v61 = vpop.f32.mrf.mxu0  ;;  %v2889_v56 = vpop.f32.mrf.mxu1 }
0x11cd   :  { %3039 = vrot.lane.b32.xlu1 %v8212_v36, %s7152_s27  ;;  %v2801_v51 = vadd.f32 %v2800_v61, %v8033_v60  ;;  %v8232_v60 = vpop.f32.mrf.mxu3 }
0x11cf   :  { %v8221_v40 = vadd.f32 %v2889_v56, %v2801_v51  ;;  %2839 = vmatmul.bf16.gmra.mxu0 %v7987_v44  ;;  %2928 = vmatmul.bf16.gmra.mxu1 %v7989_v45  ;;  %v10465_v56 = vld [vmem:[#allocation43_spill] sm:$0xff] }
0x11d4   :  { %3059 = vrot.lane.b32.xlu0 %v8212_v36, %s7149_s6  ;;  %3055 = vrot.lane.b32.xlu2 %v8212_v36, %s7153_s1  ;;  %v2802_v41 = vpop.f32.mrf.mxu0  ;;  %v2891_v14 = vpop.f32.mrf.mxu1 }
0x11d5   :  { %3051 = vrot.lane.b32.xlu1 %v8212_v36, %s7144_s0  ;;  %v2803_v13 = vadd.f32 %v2802_v41, %v10454_v31  ;;  %v2731_v24 = vpop.f32.mrf.mxu3 }
0x11d7   :  { %v8234_v54 = vadd.f32 %v2891_v14, %v2803_v13 }
0x11d9   :  { %10455 = vst [vmem:[#allocation32_spill] sm:$0xff] %v8234_v54 }
0x11dc   :  { %3071 = vrot.lane.b32.xlu0 %v8212_v36, %s7157_s3  ;;  %3067 = vrot.lane.b32.xlu2 %v8212_v36, %s7139_s13  ;;  %v2805_v44 = vpop.f32.mrf.mxu0  ;;  %v2894_v45 = vpop.f32.mrf.mxu1 }
0x11dd   :  { %3063 = vrot.lane.b32.xlu1 %v8212_v36, %s7154_s29  ;;  %v2806_v62 = vadd.f32 %v2805_v44, %v10456_v25  ;;  %v8256_v0 = vpop.f32.mrf.mxu3  ;;  %v10466_v25 = vld [vmem:[#allocation29_spill] sm:$0xff] }
0x11df   :  { %v8243_v63 = vadd.f32 %v2894_v45, %v2806_v62  ;;  %2844 = vmatmul.bf16.gmra.mxu0 %v10458_v21  ;;  %2933 = vmatmul.bf16.gmra.mxu1 %v10459_v23  ;;  %v10467_v62 = vld [vmem:[#allocation30_spill] sm:$0xff] }
0x11e1   :  { %10457 = vst [vmem:[#allocation35_spill] sm:$0xff] %v8243_v63 }
0x11e4   :  { %3083 = vrot.lane.b32.xlu0 %v8212_v36, %s7146_s28  ;;  %3079 = vrot.lane.b32.xlu2 %v8212_v36, %s7156_s14  ;;  %v2807_v53 = vpop.f32.mrf.mxu0  ;;  %v2896_v15 = vpop.f32.mrf.mxu1 }
0x11e5   :  { %3075 = vrot.lane.b32.xlu1 %v8212_v36, %s7150_s24  ;;  %v2808_v50 = vadd.f32 %v2807_v53, %v10460_v38  ;;  %v2736_v61 = vpop.f32.mrf.mxu3 }
0x11e7   :  { %v8254_v57 = vadd.f32 %v2896_v15, %v2808_v50 }
0x11e9   :  { %10461 = vst [vmem:[#allocation23_spill] sm:$0xff] %v8254_v57 }
0x11ec   :  { %3095 = vrot.lane.b32.xlu0 %v8212_v36, %s7135_s4  ;;  %3091 = vrot.lane.b32.xlu2 %v8212_v36, %s7148_s15  ;;  %v2810_v55 = vpop.f32.mrf.mxu0  ;;  %v2899_v47 = vpop.f32.mrf.mxu1 }
0x11ed   :  { %3087 = vrot.lane.b32.xlu1 %v8212_v36, %s7155_s30  ;;  %v2811_v35 = vadd.f32 %v2810_v55, %v10462_v1  ;;  %v8272_v44 = vpop.f32.mrf.mxu3 }
0x11ef   :  { %v8265_v49 = vadd.f32 %v2899_v47, %v2811_v35  ;;  %2849 = vmatmul.bf16.gmra.mxu0 %v10463_v6  ;;  %2938 = vmatmul.bf16.gmra.mxu1 %v10464_v52  ;;  %v10468_v47 = vld [vmem:[#allocation33_spill] sm:$0xff] }
0x11f4   :  { %v2812_v18 = vpop.f32.mrf.mxu0  ;;  %v2901_v26 = vpop.f32.mrf.mxu1 }
0x11f5   :  { %v2813_v51 = vadd.f32 %v2812_v18, %v10465_v56  ;;  %v2741_v53 = vpop.f32.mrf.mxu3 }
0x11f7   :  { %v8270_v41 = vadd.f32 %v2901_v26, %v2813_v51 }
0x11fc   :  { %v2815_v14 = vpop.f32.mrf.mxu0  ;;  %v2904_v31 = vpop.f32.mrf.mxu1 }
0x11fd   :  { %v2816_v13 = vadd.f32 %v2815_v14, %v2726_v46  ;;  %v10469_v46 = vld [vmem:[#allocation34_spill] sm:$0xff]  ;;  %v8286_v1 = vpop.f32.mrf.mxu3 }
0x11fe   :  { %v10470_v14 = vld [vmem:[#allocation38_spill] sm:$0xff] }
0x11ff   :  { %v8274_v45 = vadd.f32 %v2904_v31, %v2816_v13  ;;  %2854 = vmatmul.bf16.gmra.mxu0 %v10466_v25  ;;  %2943 = vmatmul.bf16.gmra.mxu1 %v10467_v62 }
0x1204   :  { %v8278_v21 = vpop.f32.mrf.mxu0  ;;  %v8280_v23 = vpop.f32.mrf.mxu1 }
0x1205   :  { %v2746_v26 = vpop.f32.mrf.mxu3  ;;  %v2818_v34 = vadd.f32 %v8278_v21, %v8232_v60 }
0x1207   :  { %v8323_v2 = vadd.f32 %v8280_v23, %v2818_v34 }
0x120c   :  { %v2820_v15 = vpop.f32.mrf.mxu0  ;;  %v2909_v38 = vpop.f32.mrf.mxu1 }
0x120d   :  { %v2821_v50 = vadd.f32 %v2820_v15, %v2731_v24  ;;  %v10471_v24 = vld [vmem:[#allocation39_spill] sm:$0xff]  ;;  %v8298_v25 = vpop.f32.mrf.mxu3 }
0x120f   :  { %v8282_v55 = vadd.f32 %v2909_v38, %v2821_v50  ;;  %2859 = vmatmul.bf16.gmra.mxu0 %v10468_v47  ;;  %2948 = vmatmul.bf16.gmra.mxu1 %v10469_v46  ;;  %v10472_v47 = vld [vmem:[#allocation42_spill] sm:$0xff]  ;;  %v10473_v46 = vld [vmem:[#allocation21_spill] sm:$0xff] }
0x1214   :  { %v8288_v35 = vpop.f32.mrf.mxu0  ;;  %v8290_v6 = vpop.f32.mrf.mxu1 }
0x121c   :  { %v2825_v52 = vpop.f32.mrf.mxu0  ;;  %v2914_v18 = vpop.f32.mrf.mxu1 }
0x121d   :  { %v2826_v56 = vadd.f32 %v2825_v52, %v2736_v61  ;;  %v2751_v61 = vpop.f32.mrf.mxu3 }
0x121f   :  { %v8292_v51 = vadd.f32 %v2914_v18, %v2826_v56  ;;  %2864 = vmatmul.bf16.gmra.mxu0 %v10470_v14  ;;  %2953 = vmatmul.bf16.gmra.mxu1 %v10471_v24 }
0x1224   :  { %v2827_v31 = vpop.f32.mrf.mxu0  ;;  %v8296_v13 = vpop.f32.mrf.mxu1 }
0x1225   :  { %v8304_v56 = vpop.f32.mrf.mxu3 }
0x122c   :  { %v2830_v62 = vpop.f32.mrf.mxu0  ;;  %v2919_v15 = vpop.f32.mrf.mxu1 }
0x122d   :  { %v2831_v38 = vadd.f32 %v2830_v62, %v2741_v53  ;;  %v2756_v19 = vpop.f32.mrf.mxu3 }
0x122f   :  { %v8300_v50 = vadd.f32 %v2919_v15, %v2831_v38  ;;  %2869 = vmatmul.bf16.gmra.mxu0 %v10472_v47  ;;  %2958 = vmatmul.bf16.gmra.mxu1 %v10473_v46 }
0x1234   :  { %v2832_v52 = vpop.f32.mrf.mxu0  ;;  %v2921_v18 = vpop.f32.mrf.mxu1 }
0x1235   :  { %v2758_v38 = vpop.f32.mrf.mxu3 }
0x123c   :  { %v2835_v14 = vpop.f32.mrf.mxu0  ;;  %v2924_v24 = vpop.f32.mrf.mxu1 }
0x123d   :  { %v2836_v9 = vadd.f32 %v2835_v14, %v2746_v26  ;;  %v2761_v8 = vpop.f32.mrf.mxu3 }
0x123f   :  { %v8306_v29 = vadd.f32 %v2924_v24, %v2836_v9 }
0x1244   :  { %v2837_v22 = vpop.f32.mrf.mxu0  ;;  %v2926_v7 = vpop.f32.mrf.mxu1 }
0x1245   :  { %v2763_v26 = vpop.f32.mrf.mxu3 }
0x124c   :  { %v2840_v53 = vpop.f32.mrf.mxu0  ;;  %v2929_v62 = vpop.f32.mrf.mxu1 }
0x124d   :  { %v2841_v15 = vadd.f32 %v2840_v53, %v2751_v61  ;;  %v2766_v4 = vpop.f32.mrf.mxu3 }
0x124f   :  { %v8308_v47 = vadd.f32 %v2929_v62, %v2841_v15  ;;  %v3001_v15 = vadd.f32 %v8210_v10, %v8205_v27 }
0x1251   :  { %v3002_v28 = vadd.f32 %v3001_v15, %v8221_v40  ;;  %v2823_v15 = vadd.f32 %v8288_v35, %v8256_v0  ;;  %v2833_v0 = vadd.f32 %v2832_v52, %v8286_v1 }
0x1254   :  { %v2842_v46 = vpop.f32.mrf.mxu0  ;;  %v2931_v11 = vpop.f32.mrf.mxu1 }
0x1255   :  { %v2768_v61 = vpop.f32.mrf.mxu3 }
0x125c   :  { %v2845_v58 = vpop.f32.mrf.mxu0  ;;  %v2934_v16 = vpop.f32.mrf.mxu1 }
0x125d   :  { %v2846_v30 = vadd.f32 %v2845_v58, %v2756_v19  ;;  %v2771_v37 = vpop.f32.mrf.mxu3 }
0x125f   :  { %v8310_v20 = vadd.f32 %v2934_v16, %v2846_v30  ;;  %v3003_v30 = vadd.f32 %v3002_v28, %v8234_v54 }
0x1261   :  { %v3004_v16 = vadd.f32 %v3003_v30, %v8243_v63 }
0x1263   :  { %v3005_v3 = vadd.f32 %v3004_v16, %v8254_v57  ;;  %v8330_v57 = vadd.f32 %v8290_v6, %v2823_v15  ;;  %v2838_v6 = vadd.f32 %v2837_v22, %v8298_v25 }
0x1264   :  { %v2847_v9 = vpop.f32.mrf.mxu0  ;;  %v2936_v14 = vpop.f32.mrf.mxu1 }
0x1265   :  { %v3006_v39 = vadd.f32 %v3005_v3, %v8265_v49  ;;  %v2773_v28 = vpop.f32.mrf.mxu3  ;;  %v2828_v3 = vadd.f32 %v2827_v31, %v8272_v44 }
0x1267   :  { %v3007_v48 = vadd.f32 %v3006_v39, %v8270_v41  ;;  %v8336_v60 = vadd.f32 %v8296_v13, %v2828_v3  ;;  %v2843_v13 = vadd.f32 %v2842_v46, %v8304_v56 }
0x1269   :  { %v3008_v30 = vadd.f32 %v3007_v48, %v8274_v45 }
0x126b   :  { %v3009_v16 = vadd.f32 %v3008_v30, %v8323_v2  ;;  %v8341_v30 = vadd.f32 %v2921_v18, %v2833_v0  ;;  %v2848_v18 = vadd.f32 %v2847_v9, %v2758_v38 }
0x126c   :  { %v2850_v24 = vpop.f32.mrf.mxu0  ;;  %v2939_v43 = vpop.f32.mrf.mxu1 }
0x126d   :  { %v3010_v39 = vadd.f32 %v3009_v16, %v8282_v55  ;;  %v2776_v44 = vpop.f32.mrf.mxu3  ;;  %v8346_v16 = vadd.f32 %v2926_v7, %v2838_v6  ;;  %v2851_v25 = vadd.f32 %v2850_v24, %v2761_v8 }
0x126f   :  { %v3011_v34 = vadd.f32 %v3010_v39, %v8330_v57  ;;  %v8358_v46 = vadd.f32 %v2939_v43, %v2851_v25 }
0x1271   :  { %v3012_v48 = vadd.f32 %v3011_v34, %v8292_v51  ;;  %v8351_v34 = vadd.f32 %v2931_v11, %v2843_v13 }
0x1273   :  { %v3013_v35 = vadd.f32 %v3012_v48, %v8336_v60 }
0x1274   :  { %v2852_v33 = vpop.f32.mrf.mxu0  ;;  %v2941_v17 = vpop.f32.mrf.mxu1 }
0x1275   :  { %v3014_v31 = vadd.f32 %v3013_v35, %v8300_v50  ;;  %v2778_v0 = vpop.f32.mrf.mxu3  ;;  %v8355_v35 = vadd.f32 %v2936_v14, %v2848_v18  ;;  %v2853_v7 = vadd.f32 %v2852_v33, %v2763_v26 }
0x1277   :  { %v3015_v15 = vadd.f32 %v3014_v31, %v8341_v30  ;;  %v8361_v13 = vadd.f32 %v2941_v17, %v2853_v7 }
0x1279   :  { %v3016_v1 = vadd.f32 %v3015_v15, %v8306_v29 }
0x127b   :  { %v3017_v39 = vadd.f32 %v3016_v1, %v8346_v16 }
0x127c   :  { %v2855_v53 = vpop.f32.mrf.mxu0  ;;  %v2944_v62 = vpop.f32.mrf.mxu1 }
0x127d   :  { %v3018_v22 = vadd.f32 %v3017_v39, %v8308_v47  ;;  %v2856_v6 = vadd.f32 %v2855_v53, %v2766_v4  ;;  %v2781_v43 = vpop.f32.mrf.mxu3 }
0x127f   :  { %v3019_v48 = vadd.f32 %v3018_v22, %v8351_v34  ;;  %v8364_v9 = vadd.f32 %v2944_v62, %v2856_v6 }
0x1281   :  { %v3020_v56 = vadd.f32 %v3019_v48, %v8310_v20 }
0x1283   :  { %v3021_v11 = vadd.f32 %v3020_v56, %v8355_v35 }
0x1284   :  { %v2857_v58 = vpop.f32.mrf.mxu0  ;;  %v2946_v19 = vpop.f32.mrf.mxu1 }
0x1285   :  { %v2858_v38 = vadd.f32 %v2857_v58, %v2768_v61  ;;  %v3022_v8 = vadd.f32 %v3021_v11, %v8358_v46 }
0x1287   :  { %v3023_v14 = vadd.f32 %v3022_v8, %v8361_v13  ;;  %v8367_v33 = vadd.f32 %v2946_v19, %v2858_v38  ;;  %v3044_v38 = vpop.permute.xlu2 %3043  ;;  %v3040_v8 = vpop.permute.xlu1 %3039 }
0x1289   :  { %v3024_v4 = vadd.f32 %v3023_v14, %v8364_v9  ;;  %v3048_v14 = vpop.permute.xlu0 %3047 }
0x128b   :  { %v3025_v61 = vadd.f32 %v3024_v4, %v8367_v33 }
0x128c   :  { %v2860_v63 = vpop.f32.mrf.mxu0  ;;  %v2949_v54 = vpop.f32.mrf.mxu1 }
0x128d   :  { %v2861_v24 = vadd.f32 %v2860_v63, %v2771_v37 }
0x128f   :  { %v8370_v53 = vadd.f32 %v2949_v54, %v2861_v24  ;;  %v3042_v24 = vadd.f32 %v3040_v8, %v8212_v36  ;;  %v3052_v4 = vpop.permute.xlu1 %3051 }
0x1291   :  { %v3026_v37 = vadd.f32 %v3025_v61, %v8370_v53 }
0x1294   :  { %v2862_v21 = vpop.f32.mrf.mxu0  ;;  %v2951_v23 = vpop.f32.mrf.mxu1 }
0x1295   :  { %v2863_v26 = vadd.f32 %v2862_v21, %v2773_v28 }
0x1297   :  { %v8373_v58 = vadd.f32 %v2951_v23, %v2863_v26  ;;  %v3046_v26 = vadd.f32 %v3044_v38, %v3042_v24 }
0x1299   :  { %v3027_v28 = vadd.f32 %v3026_v37, %v8373_v58  ;;  %v3064_v37 = vpop.permute.xlu1 %3063 }
0x129c   :  { %v2865_v52 = vpop.f32.mrf.mxu0  ;;  %v2954_v3 = vpop.f32.mrf.mxu1 }
0x129d   :  { %v2866_v1 = vadd.f32 %v2865_v52, %v2776_v44  ;;  %v2783_v44 = vpop.f32.mrf.mxu3 }
0x129f   :  { %v8376_v63 = vadd.f32 %v2954_v3, %v2866_v1  ;;  %v3050_v1 = vadd.f32 %v3048_v14, %v3046_v26 }
0x12a1   :  { %v3028_v54 = vadd.f32 %v3027_v28, %v8376_v63 }
0x12a4   :  { %v2867_v31 = vpop.f32.mrf.mxu0  ;;  %v2956_v15 = vpop.f32.mrf.mxu1 }
0x12a5   :  { %v2868_v62 = vadd.f32 %v2867_v31, %v2778_v0 }
0x12a7   :  { %v8379_v21 = vadd.f32 %v2956_v15, %v2868_v62 }
0x12a9   :  { %v3029_v22 = vadd.f32 %v3028_v54, %v8379_v21 }
0x12ac   :  { %v2870_v39 = vpop.f32.mrf.mxu0  ;;  %v2959_v17 = vpop.f32.mrf.mxu1 }
0x12ad   :  { %v2871_v19 = vadd.f32 %v2870_v39, %v2781_v43  ;;  %v3056_v43 = vpop.permute.xlu2 %3055  ;;  %v3054_v39 = vadd.f32 %v3052_v4, %v3050_v1 }
0x12af   :  { %v8382_v18 = vadd.f32 %v2959_v17, %v2871_v19  ;;  %v3060_v17 = vpop.permute.xlu0 %3059  ;;  %v3058_v61 = vadd.f32 %v3056_v43, %v3054_v39 }
0x12b1   :  { %v3030_v0 = vadd.f32 %v3029_v22, %v8382_v18  ;;  %v3062_v19 = vadd.f32 %v3060_v17, %v3058_v61  ;;  %v3076_v22 = vpop.permute.xlu1 %3075 }
0x12b3   :  { %v3066_v28 = vadd.f32 %v3064_v37, %v3062_v19 }
0x12b4   :  { %v2872_v52 = vpop.f32.mrf.mxu0  ;;  %v2961_v25 = vpop.f32.mrf.mxu1 }
0x12b5   :  { %v2873_v23 = vadd.f32 %v2872_v52, %v2783_v44  ;;  %v3068_v62 = vpop.permute.xlu2 %3067 }
0x12b6   :  { %v3070_v44 = vadd.f32 %v3068_v62, %v3066_v28 }
0x12b7   :  { %v8386_v48 = vadd.f32 %v2961_v25, %v2873_v23  ;;  %v3072_v54 = vpop.permute.xlu0 %3071 }
0x12b8   :  { %v3074_v23 = vadd.f32 %v3072_v54, %v3070_v44 }
0x12b9   :  { %v3031_v3 = vadd.f32 %v3030_v0, %v8386_v48 }
0x12ba   :  { %v3078_v25 = vadd.f32 %v3076_v22, %v3074_v23 }
0x12bb   :  { %v3032_v7 = vrot.slane %v3031_v3, 4 }
0x12bd   :  { %v3033_v56 = vadd.f32 %v3032_v7, %v3031_v3  ;;  %v3080_v52 = vpop.permute.xlu2 %3079  ;;  %v3088_v7 = vpop.permute.xlu1 %3087 }
0x12be   :  { %v3082_v36 = vadd.f32 %v3080_v52, %v3078_v25 }
0x12bf   :  { %v3034_v6 = vrot.slane %v3033_v56, 2  ;;  %v3084_v0 = vpop.permute.xlu0 %3083 }
0x12c1   :  { %v3035_v31 = vadd.f32 %v3034_v6, %v3033_v56  ;;  %v3086_v56 = vadd.f32 %v3084_v0, %v3082_v36 }
0x12c3   :  { %v3036_v15 = vrot.slane %v3035_v31, 1  ;;  %v3090_v6 = vadd.f32 %v3088_v7, %v3086_v56 }
0x12c5   :  { %v3037_v11 = vadd.f32 %v3036_v15, %v3035_v31  ;;  %v3092_v3 = vpop.permute.xlu2 %3091 }
0x12c6   :  { %v3094_v15 = vadd.f32 %v3092_v3, %v3090_v6 }
0x12c7   :  { %3109 = vrot.lane.b32.xlu0 %v3037_v11, %s7151_s7  ;;  %3105 = vrot.lane.b32.xlu2 %v3037_v11, %s7147_s5  ;;  %v3096_v31 = vpop.permute.xlu0 %3095 }
0x12c8   :  { %3101 = vrot.lane.b32.xlu1 %v3037_v11, %s7152_s27  ;;  %v3098_v8 = vadd.f32 %v3096_v31, %v3094_v15 }
0x12ca   :  { %v3099_v14 = vadd.f32 %v3098_v8, %v3037_v11 }
0x12cf   :  { %3121 = vrot.lane.b32.xlu0 %v3037_v11, %s7149_s6  ;;  %3117 = vrot.lane.b32.xlu2 %v3037_v11, %s7153_s1 }
0x12d0   :  { %3113 = vrot.lane.b32.xlu1 %v3037_v11, %s7144_s0 }
0x12d7   :  { %3133 = vrot.lane.b32.xlu0 %v3037_v11, %s7157_s3  ;;  %3129 = vrot.lane.b32.xlu2 %v3037_v11, %s7139_s13 }
0x12d8   :  { %3125 = vrot.lane.b32.xlu1 %v3037_v11, %s7154_s29 }
0x12df   :  { %3145 = vrot.lane.b32.xlu0 %v3037_v11, %s7146_s28  ;;  %3141 = vrot.lane.b32.xlu2 %v3037_v11, %s7156_s14 }
0x12e0   :  { %3137 = vrot.lane.b32.xlu1 %v3037_v11, %s7150_s24 }
0x12e7   :  { %3157 = vrot.lane.b32.xlu0 %v3037_v11, %s7135_s4  ;;  %3153 = vrot.lane.b32.xlu2 %v3037_v11, %s7148_s15 }
0x12e8   :  { %3149 = vrot.lane.b32.xlu1 %v3037_v11, %s7155_s30 }
0x1321   :  { %v3106_v38 = vpop.permute.xlu2 %3105 }
0x1329   :  { %v3118_v1 = vpop.permute.xlu2 %3117 }
0x1331   :  { %v3130_v19 = vpop.permute.xlu2 %3129 }
0x1339   :  { %v3110_v24 = vpop.permute.xlu0 %3109  ;;  %v3142_v25 = vpop.permute.xlu2 %3141 }
0x133a   :  { %v3102_v26 = vpop.permute.xlu1 %3101 }
0x133b   :  { %v3104_v43 = vadd.f32 %v3102_v26, %v3099_v14 }
0x133d   :  { %v3108_v4 = vadd.f32 %v3106_v38, %v3104_v43 }
0x133f   :  { %v3112_v17 = vadd.f32 %v3110_v24, %v3108_v4 }
0x1341   :  { %v3122_v39 = vpop.permute.xlu0 %3121  ;;  %v3154_v31 = vpop.permute.xlu2 %3153 }
0x1342   :  { %v3114_v61 = vpop.permute.xlu1 %3113 }
0x1343   :  { %v3116_v62 = vadd.f32 %v3114_v61, %v3112_v17 }
0x1345   :  { %v3120_v37 = vadd.f32 %v3118_v1, %v3116_v62 }
0x1347   :  { %v3124_v28 = vadd.f32 %v3122_v39, %v3120_v37 }
0x1349   :  { %v3134_v54 = vpop.permute.xlu0 %3133 }
0x134a   :  { %v3126_v44 = vpop.permute.xlu1 %3125 }
0x134b   :  { %v3128_v52 = vadd.f32 %v3126_v44, %v3124_v28 }
0x134d   :  { %v3132_v22 = vadd.f32 %v3130_v19, %v3128_v52 }
0x134f   :  { %v3136_v23 = vadd.f32 %v3134_v54, %v3132_v22 }
0x1351   :  { %v3146_v11 = vpop.permute.xlu0 %3145 }
0x1352   :  { %v3138_v0 = vpop.permute.xlu1 %3137 }
0x1353   :  { %v3140_v36 = vadd.f32 %v3138_v0, %v3136_v23 }
0x1355   :  { %v3144_v3 = vadd.f32 %v3142_v25, %v3140_v36 }
0x1357   :  { %v3148_v7 = vadd.f32 %v3146_v11, %v3144_v3 }
0x1359   :  { %v3158_v38 = vpop.permute.xlu0 %3157 }
0x135a   :  { %v3150_v56 = vpop.permute.xlu1 %3149 }
0x135b   :  { %v3152_v6 = vadd.f32 %v3150_v56, %v3148_v7 }
0x135d   :  { %v3156_v15 = vadd.f32 %v3154_v31, %v3152_v6 }
0x135f   :  { %v3160_v8 = vadd.f32 %v3158_v38, %v3156_v15 }
0x1361   :  { %v3161_v24 = vmul.f32 0.00012207031, %v3160_v8 }
0x1363   :  { %3169 = vrot.lane.b32.xlu0 %v3161_v24, %s7155_s30  ;;  %3166 = vrot.lane.b32.xlu2 %v3161_v24, %s7148_s15 }
0x1364   :  { %3163 = vrot.lane.b32.xlu1 %v3161_v24, %s7135_s4 }
0x136b   :  { %3178 = vrot.lane.b32.xlu0 %v3161_v24, %s7150_s24  ;;  %3175 = vrot.lane.b32.xlu2 %v3161_v24, %s7156_s14 }
0x136c   :  { %3172 = vrot.lane.b32.xlu1 %v3161_v24, %s7146_s28 }
0x1373   :  { %3187 = vrot.lane.b32.xlu0 %v3161_v24, %s7154_s29  ;;  %3184 = vrot.lane.b32.xlu2 %v3161_v24, %s7139_s13 }
0x1374   :  { %3181 = vrot.lane.b32.xlu1 %v3161_v24, %s7157_s3 }
0x137b   :  { %3196 = vrot.lane.b32.xlu0 %v3161_v24, %s7144_s0  ;;  %3193 = vrot.lane.b32.xlu2 %v3161_v24, %s7153_s1 }
0x137c   :  { %3190 = vrot.lane.b32.xlu1 %v3161_v24, %s7149_s6 }
0x1383   :  { %3205 = vrot.lane.b32.xlu0 %v3161_v24, %s7152_s27  ;;  %3202 = vrot.lane.b32.xlu2 %v3161_v24, %s7147_s5 }
0x1384   :  { %3199 = vrot.lane.b32.xlu1 %v3161_v24, %s7151_s7 }
0x13bd   :  { %v3167_v26 = vpop.permute.xlu2 %3166 }
0x13c5   :  { %v3176_v1 = vpop.permute.xlu2 %3175 }
0x13cd   :  { %v3185_v28 = vpop.permute.xlu2 %3184 }
0x13d5   :  { %v3170_v43 = vpop.permute.xlu0 %3169  ;;  %v3194_v0 = vpop.permute.xlu2 %3193 }
0x13d6   :  { %v3164_v14 = vpop.permute.xlu1 %3163 }
0x13d7   :  { %v3208_v39 = vsel %vm1009_vm2, %v3161_v24, %v3164_v14 }
0x13d8   :  { %v3209_v17 = vsel %vm407_vm9, %v3208_v39, %v3167_v26 }
0x13d9   :  { %v3210_v37 = vsel %vm1012_vm3, %v3209_v17, %v3170_v43  ;;  %v10476_v43 = vld [vmem:[#allocation22_spill] sm:$0xff] }
0x13dd   :  { %v3179_v61 = vpop.permute.xlu0 %3178  ;;  %v3203_v15 = vpop.permute.xlu2 %3202 }
0x13de   :  { %v3173_v4 = vpop.permute.xlu1 %3172 }
0x13df   :  { %v3211_v19 = vsel %vm263_vm7, %v3210_v37, %v3173_v4 }
0x13e0   :  { %v3212_v54 = vsel %vm1015_vm4, %v3211_v19, %v3176_v1 }
0x13e1   :  { %v3213_v52 = vsel %vm615_vm13, %v3212_v54, %v3179_v61  ;;  %v10477_v54 = vld [vmem:[#allocation27_spill] sm:$0xff] }
0x13e5   :  { %v3188_v44 = vpop.permute.xlu0 %3187 }
0x13e6   :  { %v3182_v62 = vpop.permute.xlu1 %3181 }
0x13e7   :  { %v3214_v22 = vsel %vm1018_vm5, %v3213_v52, %v3182_v62 }
0x13e8   :  { %v3215_v25 = vsel %vm162_vm0, %v3214_v22, %v3185_v28 }
0x13e9   :  { %v3216_v36 = vsel %vm1656_vm12, %v3215_v25, %v3188_v44 }
0x13ed   :  { %v3197_v3 = vpop.permute.xlu0 %3196 }
0x13ee   :  { %v3191_v23 = vpop.permute.xlu1 %3190 }
0x13ef   :  { %v3217_v11 = vsel %vm1658_vm14, %v3216_v36, %v3191_v23  ;;  %v10478_v23 = vld [vmem:[#allocation28_spill] sm:$0xff] }
0x13f0   :  { %v3218_v7 = vsel %vm1660_vm15, %v3217_v11, %v3194_v0  ;;  %v10479_v11 = vld [vmem:[#allocation32_spill] sm:$0xff] }
0x13f1   :  { %v3219_v6 = vsel %vm371_vm8, %v3218_v7, %v3197_v3 }
0x13f5   :  { %v3206_v8 = vpop.permute.xlu0 %3205 }
0x13f6   :  { %v3200_v56 = vpop.permute.xlu1 %3199 }
0x13f7   :  { %v3220_v31 = vsel %vm1663_vm1, %v3219_v6, %v3200_v56 }
0x13f8   :  { %v3221_v38 = vsel %vm10474_vm11, %v3220_v31, %v3203_v15  ;;  %v10481_v31 = vld [vmem:[#allocation35_spill] sm:$0xff] }
0x13f9   :  { %v3222_v24 = vsel %vm10475_vm6, %v3221_v38, %v3206_v8 }
0x13fa   :  { %v8435_v14 = vperm.slane %v3222_v24, 0  ;;  %v10482_v24 = vld [vmem:[#allocation48_spill] sm:$0xff] }
0x13fc   :  { %v8439_v26 = vsub.f32 %v7981_v32, %v8435_v14  ;;  %v8443_v4 = vsub.f32 %v10476_v43, %v8435_v14  ;;  %v8447_v1 = vsub.f32 %v7995_v12, %v8435_v14  ;;  %v8455_v61 = vsub.f32 %v7999_v5, %v8435_v14 }
0x13fd   :  { %v8459_v32 = vsub.f32 %v8009_v59, %v8435_v14  ;;  %v8465_v12 = vsub.f32 %v8205_v27, %v8435_v14  ;;  %v8469_v19 = vsub.f32 %v8210_v10, %v8435_v14  ;;  %v8473_v5 = vsub.f32 %v8015_v42, %v8435_v14 }
0x13fe   :  { %v3288_v39 = vmul.f32 %v8439_v26, %v8439_v26  ;;  %v3290_v17 = vmul.f32 %v8443_v4, %v8443_v4  ;;  %v3292_v62 = vmul.f32 %v8447_v1, %v8447_v1  ;;  %v3294_v59 = vmul.f32 %v8455_v61, %v8455_v61 }
0x13ff   :  { %v8479_v44 = vsub.f32 %v10477_v54, %v8435_v14  ;;  %v3296_v27 = vmul.f32 %v8459_v32, %v8459_v32  ;;  %v8485_v10 = vsub.f32 %v8221_v40, %v8435_v14  ;;  %v3289_v42 = vmul.f32 %v8465_v12, %v8465_v12  ;;  %v10480_v40 = vld [vmem:[#allocation31_spill] sm:$0xff]  ;;  %v10484_v54 = vld [vmem:[#allocation36_spill] sm:$0xff] }
0x1400   :  { %v3352_v37 = vadd.f32 %v3290_v17, %v3288_v39  ;;  %v3291_v22 = vmul.f32 %v8469_v19, %v8469_v19  ;;  %v8493_v25 = vsub.f32 %v10478_v23, %v8435_v14  ;;  %v3298_v0 = vmul.f32 %v8473_v5, %v8473_v5 }
0x1401   :  { %v8499_v3 = vsub.f32 %v10479_v11, %v8435_v14  ;;  %v8503_v7 = vsub.f32 %v10480_v40, %v8435_v14  ;;  %v3300_v56 = vmul.f32 %v8479_v44, %v8479_v44  ;;  %v8509_v15 = vsub.f32 %v10481_v31, %v8435_v14 }
0x1402   :  { %v3353_v28 = vadd.f32 %v3352_v37, %v3292_v62  ;;  %v3293_v38 = vmul.f32 %v8485_v10, %v8485_v10  ;;  %v3389_v8 = vadd.f32 %v3291_v22, %v3289_v42  ;;  %v8515_v43 = vsub.f32 %v10482_v24, %v8435_v14  ;;  %v10483_v62 = vld [vmem:[#allocation23_spill] sm:$0xff] }
0x1403   :  { %v3302_v39 = vmul.f32 %v8493_v25, %v8493_v25  ;;  %v8521_v37 = vsub.f32 %v10483_v62, %v8435_v14  ;;  %v8533_v22 = vsub.f32 %v8265_v49, %v8435_v14  ;;  %v3297_v23 = vmul.f32 %v8509_v15, %v8509_v15 }
0x1404   :  { %v3354_v52 = vadd.f32 %v3353_v28, %v3294_v59  ;;  %v3295_v59 = vmul.f32 %v8499_v3, %v8499_v3  ;;  %v3390_v28 = vadd.f32 %v3389_v8, %v3293_v38  ;;  %v3306_v40 = vmul.f32 %v8515_v43, %v8515_v43  ;;  %v10486_v38 = vld [vmem:[#allocation40_spill] sm:$0xff] }
0x1405   :  { %v3299_v49 = vmul.f32 %v8521_v37, %v8521_v37  ;;  %v8551_v8 = vsub.f32 %v10486_v38, %v8435_v14  ;;  %v10490_v38 = vld [vmem:[#allocation51_spill] sm:$0xff] }
0x1406   :  { %v3355_v36 = vadd.f32 %v3354_v52, %v3296_v27  ;;  %v8527_v27 = vsub.f32 %v10484_v54, %v8435_v14  ;;  %v3304_v52 = vmul.f32 %v8503_v7, %v8503_v7 }
0x1408   :  { %v3356_v6 = vadd.f32 %v3355_v36, %v3298_v0  ;;  %v3391_v0 = vadd.f32 %v3390_v28, %v3295_v59  ;;  %v10485_v36 = vld [vmem:[#allocation49_spill] sm:$0xff]  ;;  %v3308_v24 = vmul.f32 %v8527_v27, %v8527_v27  ;;  %v10487_v59 = vld [vmem:[#allocation50_spill] sm:$0xff] }
0x1409   :  { %v8539_v11 = vsub.f32 %v10485_v36, %v8435_v14  ;;  %v8563_v28 = vsub.f32 %v10487_v59, %v8435_v14 }
0x140a   :  { %v3357_v17 = vadd.f32 %v3356_v6, %v3300_v56  ;;  %v8545_v6 = vsub.f32 %v8270_v41, %v8435_v14  ;;  %v3392_v31 = vadd.f32 %v3391_v0, %v3297_v23  ;;  %v3301_v41 = vmul.f32 %v8533_v22, %v8533_v22  ;;  %v10488_v0 = vld [vmem:[#allocation44_spill] sm:$0xff] }
0x140b   :  { %v3310_v54 = vmul.f32 %v8539_v11, %v8539_v11  ;;  %v8575_v36 = vsub.f32 %v10488_v0, %v8435_v14  ;;  %v8605_v0 = vsub.f32 %v8292_v51, %v8435_v14 }
0x140c   :  { %v3358_v42 = vadd.f32 %v3357_v17, %v3302_v39  ;;  %v8557_v17 = vsub.f32 %v8274_v45, %v8435_v14  ;;  %v3393_v62 = vadd.f32 %v3392_v31, %v3299_v49  ;;  %v3303_v45 = vmul.f32 %v8545_v6, %v8545_v6 }
0x140d   :  { %10489 = vst [vmem:[#allocation24_spill] sm:$0xff] %v8575_v36  ;;  %v8581_v49 = vsub.f32 %v8282_v55, %v8435_v14 }
0x140e   :  { %v3359_v56 = vadd.f32 %v3358_v42, %v3304_v52  ;;  %v8569_v42 = vsub.f32 %v8323_v2, %v8435_v14  ;;  %v3394_v23 = vadd.f32 %v3393_v62, %v3301_v41  ;;  %v3305_v2 = vmul.f32 %v8557_v17, %v8557_v17 }
0x140f   :  { %v8593_v62 = vsub.f32 %v8330_v57, %v8435_v14  ;;  %v3309_v57 = vmul.f32 %v8581_v49, %v8581_v49 }
0x1410   :  { %v3360_v39 = vadd.f32 %v3359_v56, %v3306_v40  ;;  %v3312_v40 = vmul.f32 %v8551_v8, %v8551_v8  ;;  %v3395_v31 = vadd.f32 %v3394_v23, %v3303_v45  ;;  %v3307_v55 = vmul.f32 %v8569_v42, %v8569_v42 }
0x1411   :  { %v3316_v45 = vmul.f32 %v8575_v36, %v8575_v36  ;;  %v3311_v51 = vmul.f32 %v8593_v62, %v8593_v62 }
0x1412   :  { %v3361_v52 = vadd.f32 %v3360_v39, %v3308_v24  ;;  %v8587_v24 = vsub.f32 %v10490_v38, %v8435_v14  ;;  %v3314_v39 = vmul.f32 %v8563_v28, %v8563_v28  ;;  %v3396_v59 = vadd.f32 %v3395_v31, %v3305_v2 }
0x1414   :  { %v3362_v56 = vadd.f32 %v3361_v52, %v3310_v54  ;;  %10491 = vst [vmem:[#allocation37_spill] sm:$0xff] %v8587_v24  ;;  %v10492_v54 = vld [vmem:[#allocation45_spill] sm:$0xff]  ;;  %v3318_v2 = vmul.f32 %v8587_v24, %v8587_v24 }
0x1415   :  { %v8599_v52 = vsub.f32 %v10492_v54, %v8435_v14  ;;  %v8617_v54 = vsub.f32 %v8336_v60, %v8435_v14  ;;  %v3313_v60 = vmul.f32 %v8605_v0, %v8605_v0 }
0x1416   :  { %v3363_v41 = vadd.f32 %v3362_v56, %v3312_v40  ;;  %v3397_v40 = vadd.f32 %v3396_v59, %v3307_v55  ;;  %v10494_v56 = vld [vmem:[#allocation52_spill] sm:$0xff] }
0x1417   :  { %10493 = vst [vmem:[#allocation41_spill] sm:$0xff] %v8599_v52  ;;  %v8611_v38 = vsub.f32 %v10494_v56, %v8435_v14  ;;  %v3320_v55 = vmul.f32 %v8599_v52, %v8599_v52  ;;  %v8629_v56 = vsub.f32 %v8300_v50, %v8435_v14  ;;  %v3315_v50 = vmul.f32 %v8617_v54, %v8617_v54 }
0x1418   :  { %v3364_v23 = vadd.f32 %v3363_v41, %v3314_v39  ;;  %v3398_v39 = vadd.f32 %v3397_v40, %v3309_v57  ;;  %v10496_v41 = vld [vmem:[#allocation46_spill] sm:$0xff] }
0x1419   :  { %10495 = vst [vmem:[#allocation25_spill] sm:$0xff] %v8611_v38  ;;  %v8623_v36 = vsub.f32 %v10496_v41, %v8435_v14  ;;  %v3322_v57 = vmul.f32 %v8611_v38, %v8611_v38  ;;  %v8641_v41 = vsub.f32 %v8341_v30, %v8435_v14  ;;  %v3317_v30 = vmul.f32 %v8629_v56, %v8629_v56 }
0x141a   :  { %v3365_v31 = vadd.f32 %v3364_v23, %v3316_v45  ;;  %v3399_v45 = vadd.f32 %v3398_v39, %v3311_v51  ;;  %v10498_v23 = vld [vmem:[#allocation53_spill] sm:$0xff] }
0x141b   :  { %10497 = vst [vmem:[#allocation26_spill] sm:$0xff] %v8623_v36  ;;  %v8635_v24 = vsub.f32 %v10498_v23, %v8435_v14  ;;  %v3324_v51 = vmul.f32 %v8623_v36, %v8623_v36  ;;  %v8653_v23 = vsub.f32 %v8306_v29, %v8435_v14  ;;  %v3319_v29 = vmul.f32 %v8641_v41, %v8641_v41 }
0x141c   :  { %v3366_v59 = vadd.f32 %v3365_v31, %v3318_v2  ;;  %v3400_v2 = vadd.f32 %v3399_v45, %v3313_v60  ;;  %v10500_v31 = vld [vmem:[#allocation47_spill] sm:$0xff] }
0x141d   :  { %10499 = vst [vmem:[#allocation43_spill] sm:$0xff] %v8635_v24  ;;  %v8647_v52 = vsub.f32 %v10500_v31, %v8435_v14  ;;  %v3326_v60 = vmul.f32 %v8635_v24, %v8635_v24  ;;  %v8665_v31 = vsub.f32 %v8346_v16, %v8435_v14  ;;  %v3321_v16 = vmul.f32 %v8653_v23, %v8653_v23 }
0x141e   :  { %v3367_v40 = vadd.f32 %v3366_v59, %v3320_v55  ;;  %v3401_v55 = vadd.f32 %v3400_v2, %v3315_v50  ;;  %v10502_v59 = vld [vmem:[#allocation54_spill] sm:$0xff] }
0x141f   :  { %10501 = vst [vmem:[#allocation29_spill] sm:$0xff] %v8647_v52  ;;  %v8659_v38 = vsub.f32 %v10502_v59, %v8435_v14  ;;  %v3328_v50 = vmul.f32 %v8647_v52, %v8647_v52  ;;  %v8677_v59 = vsub.f32 %v8308_v47, %v8435_v14  ;;  %v3323_v47 = vmul.f32 %v8665_v31, %v8665_v31 }
0x1420   :  { %v3368_v39 = vadd.f32 %v3367_v40, %v3322_v57  ;;  %v3402_v57 = vadd.f32 %v3401_v55, %v3317_v30  ;;  %v10504_v40 = vld [vmem:[#allocation55_spill] sm:$0xff] }
0x1421   :  { %10503 = vst [vmem:[#allocation30_spill] sm:$0xff] %v8659_v38  ;;  %v8671_v36 = vsub.f32 %v10504_v40, %v8435_v14  ;;  %v3330_v30 = vmul.f32 %v8659_v38, %v8659_v38  ;;  %v8689_v40 = vsub.f32 %v8351_v34, %v8435_v14  ;;  %v3325_v34 = vmul.f32 %v8677_v59, %v8677_v59 }
0x1422   :  { %v3369_v45 = vadd.f32 %v3368_v39, %v3324_v51  ;;  %v3403_v51 = vadd.f32 %v3402_v57, %v3319_v29  ;;  %v10506_v39 = vld [vmem:[#allocation56_spill] sm:$0xff] }
0x1423   :  { %10505 = vst [vmem:[#allocation33_spill] sm:$0xff] %v8671_v36  ;;  %v8683_v24 = vsub.f32 %v10506_v39, %v8435_v14  ;;  %v3332_v29 = vmul.f32 %v8671_v36, %v8671_v36  ;;  %v8701_v39 = vsub.f32 %v8310_v20, %v8435_v14  ;;  %v3327_v20 = vmul.f32 %v8689_v40, %v8689_v40 }
0x1424   :  { %v3370_v2 = vadd.f32 %v3369_v45, %v3326_v60  ;;  %v3404_v60 = vadd.f32 %v3403_v51, %v3321_v16  ;;  %v10508_v45 = vld [vmem:[#allocation57_spill] sm:$0xff] }
0x1425   :  { %10507 = vst [vmem:[#allocation34_spill] sm:$0xff] %v8683_v24  ;;  %v8695_v52 = vsub.f32 %v10508_v45, %v8435_v14  ;;  %v3334_v16 = vmul.f32 %v8683_v24, %v8683_v24  ;;  %v8713_v45 = vsub.f32 %v8355_v35, %v8435_v14  ;;  %v8727_v35 = vsub.f32 %v8358_v46, %v8435_v14 }
0x1426   :  { %v3371_v55 = vadd.f32 %v3370_v2, %v3328_v50  ;;  %v3405_v50 = vadd.f32 %v3404_v60, %v3323_v47  ;;  %v10510_v2 = vld [vmem:[#allocation58_spill] sm:$0xff] }
0x1427   :  { %10509 = vst [vmem:[#allocation38_spill] sm:$0xff] %v8695_v52  ;;  %v8707_v38 = vsub.f32 %v10510_v2, %v8435_v14  ;;  %v3336_v47 = vmul.f32 %v8695_v52, %v8695_v52  ;;  %v3329_v2 = vmul.f32 %v8701_v39, %v8701_v39 }
0x1428   :  { %v3372_v57 = vadd.f32 %v3371_v55, %v3330_v30  ;;  %v3406_v30 = vadd.f32 %v3405_v50, %v3325_v34  ;;  %v10512_v55 = vld [vmem:[#allocation59_spill] sm:$0xff] }
0x1429   :  { %10511 = vst [vmem:[#allocation39_spill] sm:$0xff] %v8707_v38  ;;  %v8719_v36 = vsub.f32 %v10512_v55, %v8435_v14  ;;  %v3338_v34 = vmul.f32 %v8707_v38, %v8707_v38  ;;  %v3331_v55 = vmul.f32 %v8713_v45, %v8713_v45  ;;  %v10518_v38 = vld [vmem:[#allocation62_spill] sm:$0xff] }
0x142a   :  { %v3373_v51 = vadd.f32 %v3372_v57, %v3332_v29  ;;  %v3407_v29 = vadd.f32 %v3406_v30, %v3327_v20  ;;  %v10514_v57 = vld [vmem:[#allocation60_spill] sm:$0xff]  ;;  %v8745_v30 = vsub.f32 %v8361_v13, %v8435_v14 }
0x142b   :  { %10513 = vst [vmem:[#allocation42_spill] sm:$0xff] %v8719_v36  ;;  %v8731_v24 = vsub.f32 %v10514_v57, %v8435_v14  ;;  %v3340_v46 = vmul.f32 %v8719_v36, %v8719_v36 }
0x142c   :  { %v3374_v60 = vadd.f32 %v3373_v51, %v3334_v16  ;;  %v3408_v16 = vadd.f32 %v3407_v29, %v3329_v2  ;;  %v10516_v51 = vld [vmem:[#allocation61_spill] sm:$0xff]  ;;  %v3333_v29 = vmul.f32 %v8727_v35, %v8727_v35 }
0x142d   :  { %10515 = vst [vmem:[#allocation21_spill] sm:$0xff] %v8731_v24  ;;  %v8739_v52 = vsub.f32 %v10516_v51, %v8435_v14  ;;  %v10520_v51 = vld [vmem:[#allocation63_spill] sm:$0xff] }
0x142e   :  { %v3375_v50 = vadd.f32 %v3374_v60, %v3336_v47  ;;  %v3409_v57 = vadd.f32 %v3408_v16, %v3331_v55  ;;  %v8749_v47 = vsub.f32 %v10518_v38, %v8435_v14  ;;  %v3342_v60 = vmul.f32 %v8731_v24, %v8731_v24  ;;  %v10523_v55 = vld [vmem:[#allocation64_spill] sm:$0xff]  ;;  %v6703_v24 = vld [vmem:[#allocation13 + $0x30] sm:$0xff] }
0x142f   :  { %10517 = vst [vmem:[#allocation22_spill] sm:$0xff] %v8739_v52  ;;  %v8757_v36 = vsub.f32 %v10520_v51, %v8435_v14  ;;  %v3344_v13 = vmul.f32 %v8739_v52, %v8739_v52  ;;  %v8763_v38 = vsub.f32 %v8364_v9, %v8435_v14  ;;  %v8767_v16 = vsub.f32 %v10523_v55, %v8435_v14 }
0x1430   :  { %v3376_v20 = vadd.f32 %v3375_v50, %v3338_v34  ;;  %10519 = vst [vmem:[#allocation27_spill] sm:$0xff] %v8749_v47  ;;  %v3410_v50 = vadd.f32 %v3409_v57, %v3333_v29  ;;  %v3335_v51 = vmul.f32 %v8745_v30, %v8745_v30  ;;  %v8777_v9 = vsub.f32 %v8367_v33, %v8435_v14 }
0x1431   :  { %10521 = vst [vmem:[#allocation28_spill] sm:$0xff] %v8757_v36  ;;  %v3348_v52 = vmul.f32 %v8757_v36, %v8757_v36  ;;  %v3337_v55 = vmul.f32 %v8763_v38, %v8763_v38 }
0x1432   :  { %v3377_v2 = vadd.f32 %v3376_v20, %v3340_v46  ;;  %10522 = vst [vmem:[#allocation32_spill] sm:$0xff] %v8763_v38  ;;  %v3346_v46 = vmul.f32 %v8749_v47, %v8749_v47  ;;  %v3411_v57 = vadd.f32 %v3410_v50, %v3335_v51  ;;  %v8785_v47 = vsub.f32 %v8370_v53, %v8435_v14 }
0x1433   :  { %10524 = vst [vmem:[#allocation31_spill] sm:$0xff] %v8767_v16  ;;  %v3339_v50 = vmul.f32 %v8777_v9, %v8777_v9  ;;  %v8797_v53 = vsub.f32 %v8376_v63, %v8435_v14 }
0x1434   :  { %v3378_v34 = vadd.f32 %v3377_v2, %v3342_v60  ;;  %10525 = vst [vmem:[#allocation35_spill] sm:$0xff] %v8777_v9  ;;  %v3350_v2 = vmul.f32 %v8767_v16, %v8767_v16  ;;  %v3341_v51 = vmul.f32 %v8785_v47, %v8785_v47 }
0x1435   :  { %10526 = vst [vmem:[#allocation48_spill] sm:$0xff] %v8785_v47 }
0x1436   :  { %v3379_v20 = vadd.f32 %v3378_v34, %v3344_v13  ;;  %v3412_v34 = vadd.f32 %v3411_v57, %v3337_v55  ;;  %10528 = vst [vmem:[#allocation36_spill] sm:$0xff] %v8797_v53 }
0x1438   :  { %v3380_v60 = vadd.f32 %v3379_v20, %v3346_v46  ;;  %v3413_v33 = vadd.f32 %v3412_v34, %v3339_v50  ;;  %v8791_v20 = vsub.f32 %v8373_v58, %v8435_v14  ;;  %v8803_v58 = vsub.f32 %v8379_v21, %v8435_v14 }
0x1439   :  { %v8812_v34 = vsub.f32 %v8382_v18, %v8435_v14  ;;  %v8818_v21 = vsub.f32 %v8386_v48, %v8435_v14 }
0x143a   :  { %v3381_v29 = vadd.f32 %v3380_v60, %v3348_v52  ;;  %10527 = vst [vmem:[#allocation23_spill] sm:$0xff] %v8791_v20  ;;  %v3414_v57 = vadd.f32 %v3413_v33, %v3341_v51  ;;  %v3347_v50 = vmul.f32 %v8803_v58, %v8803_v58 }
0x143b   :  { %10529 = vst [vmem:[#allocation49_spill] sm:$0xff] %v8803_v58  ;;  %v3349_v33 = vmul.f32 %v8812_v34, %v8812_v34  ;;  %v3351_v18 = vmul.f32 %v8818_v21, %v8818_v21 }
0x143c   :  { %v3382_v13 = vadd.f32 %v3381_v29, %v3350_v2  ;;  %v3343_v29 = vmul.f32 %v8791_v20, %v8791_v20  ;;  %10530 = vst [vmem:[#allocation40_spill] sm:$0xff] %v8812_v34 }
0x143d   :  { %10531 = vst [vmem:[#allocation50_spill] sm:$0xff] %v8818_v21 }
0x143e   :  { %v3383_v36 = vrot.slane %v3382_v13, 4  ;;  %v3415_v55 = vadd.f32 %v3414_v57, %v3343_v29 }
0x1440   :  { %v3384_v46 = vadd.f32 %v3383_v36, %v3382_v13  ;;  %v3345_v13 = vmul.f32 %v8797_v53, %v8797_v53 }
0x1442   :  { %v3385_v52 = vrot.slane %v3384_v46, 2  ;;  %v3416_v63 = vadd.f32 %v3415_v55, %v3345_v13  ;;  %v6704_v13 = vld [vmem:[#allocation13 + $0x38] sm:$0xff] }
0x1443   :  { %4853 = vmatpush.bf16.msrb.mxu2 %v6704_v13  ;;  %v6711_v13 = vld [vmem:[#allocation13 + $0x70] sm:$0xff] }
0x1444   :  { %v3386_v60 = vadd.f32 %v3385_v52, %v3384_v46  ;;  %v3417_v46 = vadd.f32 %v3416_v63, %v3347_v50  ;;  %v6712_v63 = vld [vmem:[#allocation13 + $0x78] sm:$0xff] }
0x1445   :  { %4942 = vmatpush.bf16.msra.mxu3 %v6712_v63 }
0x1446   :  { %v3387_v2 = vrot.slane %v3386_v60, 1  ;;  %v3418_v52 = vadd.f32 %v3417_v46, %v3349_v33 }
0x1447   :  { %4854 = vmatpush.bf16.msrb.mxu2 %v6703_v24 }
0x1448   :  { %v3388_v36 = vadd.f32 %v3387_v2, %v3386_v60  ;;  %v3419_v51 = vadd.f32 %v3418_v52, %v3351_v18 }
0x1449   :  { %4943 = vmatpush.bf16.msra.mxu3 %v6711_v13 }
0x144a   :  { %3435 = vrot.lane.b32.xlu0 %v3388_v36, %s7151_s7  ;;  %3431 = vrot.lane.b32.xlu2 %v3388_v36, %s7147_s5  ;;  %v3420_v48 = vrot.slane %v3419_v51, 4 }
0x144b   :  { %3427 = vrot.lane.b32.xlu1 %v3388_v36, %s7152_s27 }
0x144c   :  { %v3421_v14 = vadd.f32 %v3420_v48, %v3419_v51 }
0x144e   :  { %v3422_v60 = vrot.slane %v3421_v14, 2 }
0x1450   :  { %v3423_v57 = vadd.f32 %v3422_v60, %v3421_v14 }
0x1452   :  { %3447 = vrot.lane.b32.xlu0 %v3388_v36, %s7149_s6  ;;  %3443 = vrot.lane.b32.xlu2 %v3388_v36, %s7153_s1  ;;  %v3424_v2 = vrot.slane %v3423_v57, 1 }
0x1453   :  { %3439 = vrot.lane.b32.xlu1 %v3388_v36, %s7144_s0 }
0x1454   :  { %v3425_v29 = vadd.f32 %v3424_v2, %v3423_v57 }
0x145a   :  { %3459 = vrot.lane.b32.xlu0 %v3388_v36, %s7157_s3  ;;  %3455 = vrot.lane.b32.xlu2 %v3388_v36, %s7139_s13 }
0x145b   :  { %3451 = vrot.lane.b32.xlu1 %v3388_v36, %s7154_s29 }
0x1462   :  { %3471 = vrot.lane.b32.xlu0 %v3388_v36, %s7146_s28  ;;  %3467 = vrot.lane.b32.xlu2 %v3388_v36, %s7156_s14 }
0x1463   :  { %3463 = vrot.lane.b32.xlu1 %v3388_v36, %s7150_s24 }
0x146a   :  { %3483 = vrot.lane.b32.xlu0 %v3388_v36, %s7135_s4  ;;  %3479 = vrot.lane.b32.xlu2 %v3388_v36, %s7148_s15 }
0x146b   :  { %3475 = vrot.lane.b32.xlu1 %v3388_v36, %s7155_s30 }
0x1472   :  { %3497 = vrot.lane.b32.xlu0 %v3425_v29, %s7151_s7  ;;  %3493 = vrot.lane.b32.xlu2 %v3425_v29, %s7147_s5 }
0x1473   :  { %3489 = vrot.lane.b32.xlu1 %v3425_v29, %s7152_s27 }
0x147a   :  { %3509 = vrot.lane.b32.xlu0 %v3425_v29, %s7149_s6  ;;  %3505 = vrot.lane.b32.xlu2 %v3425_v29, %s7153_s1 }
0x147b   :  { %3501 = vrot.lane.b32.xlu1 %v3425_v29, %s7144_s0 }
0x1482   :  { %3521 = vrot.lane.b32.xlu0 %v3425_v29, %s7157_s3  ;;  %3517 = vrot.lane.b32.xlu2 %v3425_v29, %s7139_s13 }
0x1483   :  { %3513 = vrot.lane.b32.xlu1 %v3425_v29, %s7154_s29 }
0x148a   :  { %3533 = vrot.lane.b32.xlu0 %v3425_v29, %s7146_s28  ;;  %3529 = vrot.lane.b32.xlu2 %v3425_v29, %s7156_s14 }
0x148b   :  { %3525 = vrot.lane.b32.xlu1 %v3425_v29, %s7150_s24 }
0x1492   :  { %3545 = vrot.lane.b32.xlu0 %v3425_v29, %s7135_s4  ;;  %3541 = vrot.lane.b32.xlu2 %v3425_v29, %s7148_s15 }
0x1493   :  { %3537 = vrot.lane.b32.xlu1 %v3425_v29, %s7155_s30 }
0x14a4   :  { %v3432_v55 = vpop.permute.xlu2 %3431 }
0x14ac   :  { %v3444_v50 = vpop.permute.xlu2 %3443 }
0x14b4   :  { %v3456_v51 = vpop.permute.xlu2 %3455 }
0x14bc   :  { %v3436_v46 = vpop.permute.xlu0 %3435  ;;  %v3468_v21 = vpop.permute.xlu2 %3467 }
0x14bd   :  { %v3428_v33 = vpop.permute.xlu1 %3427 }
0x14be   :  { %v3430_v52 = vadd.f32 %v3428_v33, %v3388_v36 }
0x14c0   :  { %v3434_v18 = vadd.f32 %v3432_v55, %v3430_v52 }
0x14c2   :  { %v3438_v14 = vadd.f32 %v3436_v46, %v3434_v18 }
0x14c4   :  { %v3448_v48 = vpop.permute.xlu0 %3447  ;;  %v3480_v36 = vpop.permute.xlu2 %3479 }
0x14c5   :  { %v3440_v60 = vpop.permute.xlu1 %3439 }
0x14c6   :  { %v3442_v57 = vadd.f32 %v3440_v60, %v3438_v14 }
0x14c8   :  { %v3446_v2 = vadd.f32 %v3444_v50, %v3442_v57 }
0x14ca   :  { %v3450_v34 = vadd.f32 %v3448_v48, %v3446_v2 }
0x14cc   :  { %v3460_v16 = vpop.permute.xlu0 %3459  ;;  %v3494_v60 = vpop.permute.xlu2 %3493 }
0x14cd   :  { %v3452_v58 = vpop.permute.xlu1 %3451 }
0x14ce   :  { %v3454_v53 = vadd.f32 %v3452_v58, %v3450_v34 }
0x14d0   :  { %v3458_v20 = vadd.f32 %v3456_v51, %v3454_v53 }
0x14d2   :  { %v3462_v47 = vadd.f32 %v3460_v16, %v3458_v20 }
0x14d4   :  { %v3472_v63 = vpop.permute.xlu0 %3471  ;;  %v3506_v24 = vpop.permute.xlu2 %3505 }
0x14d5   :  { %v3464_v55 = vpop.permute.xlu1 %3463 }
0x14d6   :  { %v3466_v33 = vadd.f32 %v3464_v55, %v3462_v47 }
0x14d8   :  { %v3470_v52 = vadd.f32 %v3468_v21, %v3466_v33 }
0x14da   :  { %v3474_v18 = vadd.f32 %v3472_v63, %v3470_v52 }
0x14dc   :  { %v3484_v46 = vpop.permute.xlu0 %3483  ;;  %v3518_v47 = vpop.permute.xlu2 %3517 }
0x14dd   :  { %v3476_v14 = vpop.permute.xlu1 %3475 }
0x14de   :  { %v3478_v50 = vadd.f32 %v3476_v14, %v3474_v18 }
0x14e0   :  { %v3482_v57 = vadd.f32 %v3480_v36, %v3478_v50 }
0x14e2   :  { %v3486_v48 = vadd.f32 %v3484_v46, %v3482_v57  ;;  %v6702_v57 = vld [vmem:[#allocation13 + $0x28] sm:$0xff] }
0x14e3   :  { %4855 = vmatpush.bf16.msrb.mxu2 %v6702_v57  ;;  %v6697_v57 = vld [vmem:[#allocation13] sm:$0xff] }
0x14e4   :  { %v3498_v2 = vpop.permute.xlu0 %3497  ;;  %v3487_v58 = vadd.f32 %v3486_v48, %v3425_v29  ;;  %v3530_v36 = vpop.permute.xlu2 %3529 }
0x14e5   :  { %v3490_v53 = vpop.permute.xlu1 %3489 }
0x14e6   :  { %v3492_v34 = vadd.f32 %v3490_v53, %v3487_v58 }
0x14e8   :  { %v3496_v51 = vadd.f32 %v3494_v60, %v3492_v34  ;;  %v6710_v60 = vld [vmem:[#allocation13 + $0x68] sm:$0xff] }
0x14e9   :  { %4944 = vmatpush.bf16.msra.mxu3 %v6710_v60  ;;  %v6720_v60 = vld [vmem:[#allocation13 + $0xb8] sm:$0xff] }
0x14ea   :  { %v3500_v9 = vadd.f32 %v3498_v2, %v3496_v51  ;;  %v6701_v51 = vld [vmem:[#allocation13 + $0x20] sm:$0xff]  ;;  %5031 = vmatpush.bf16.msrb.mxu0 %v6720_v60 }
0x14eb   :  { %4856 = vmatpush.bf16.msrb.mxu2 %v6701_v51  ;;  %v6718_v51 = vld [vmem:[#allocation13 + $0xa8] sm:$0xff] }
0x14ec   :  { %v3510_v13 = vpop.permute.xlu0 %3509  ;;  %v3542_v58 = vpop.permute.xlu2 %3541 }
0x14ed   :  { %v3502_v16 = vpop.permute.xlu1 %3501 }
0x14ee   :  { %v3504_v20 = vadd.f32 %v3502_v16, %v3500_v9 }
0x14f0   :  { %v3508_v38 = vadd.f32 %v3506_v24, %v3504_v20  ;;  %v6709_v24 = vld [vmem:[#allocation13 + $0x60] sm:$0xff] }
0x14f1   :  { %4945 = vmatpush.bf16.msra.mxu3 %v6709_v24 }
0x14f2   :  { %v3512_v21 = vadd.f32 %v3510_v13, %v3508_v38 }
0x14f4   :  { %v3522_v55 = vpop.permute.xlu0 %3521 }
0x14f5   :  { %v3514_v63 = vpop.permute.xlu1 %3513 }
0x14f6   :  { %v3516_v33 = vadd.f32 %v3514_v63, %v3512_v21 }
0x14f8   :  { %v3520_v52 = vadd.f32 %v3518_v47, %v3516_v33 }
0x14fa   :  { %v3524_v18 = vadd.f32 %v3522_v55, %v3520_v52 }
0x14fc   :  { %v3534_v29 = vpop.permute.xlu0 %3533 }
0x14fd   :  { %v3526_v46 = vpop.permute.xlu1 %3525 }
0x14fe   :  { %v3528_v14 = vadd.f32 %v3526_v46, %v3524_v18  ;;  %v6700_v18 = vld [vmem:[#allocation13 + $0x18] sm:$0xff]  ;;  %v6699_v46 = vld [vmem:[#allocation13 + $0x10] sm:$0xff] }
0x14ff   :  { %4857 = vmatpush.bf16.msrb.mxu2 %v6700_v18 }
0x1500   :  { %v3532_v50 = vadd.f32 %v3530_v36, %v3528_v14  ;;  %v6708_v36 = vld [vmem:[#allocation13 + $0x58] sm:$0xff]  ;;  %v6707_v14 = vld [vmem:[#allocation13 + $0x50] sm:$0xff] }
0x1501   :  { %4946 = vmatpush.bf16.msra.mxu3 %v6708_v36 }
0x1502   :  { %v3536_v48 = vadd.f32 %v3534_v29, %v3532_v50  ;;  %v6698_v29 = vld [vmem:[#allocation13 + $0x8] sm:$0xff] }
0x1503   :  { %4858 = vmatpush.bf16.msrb.mxu2 %v6699_v46  ;;  %v6706_v50 = vld [vmem:[#allocation13 + $0x48] sm:$0xff] }
0x1504   :  { %v3546_v38 = vpop.permute.xlu0 %3545 }
0x1505   :  { %v3538_v2 = vpop.permute.xlu1 %3537  ;;  %4947 = vmatpush.bf16.msra.mxu3 %v6707_v14  ;;  %v6726_v14 = vld [vmem:[#allocation13 + $0xe8] sm:$0xff] }
0x1506   :  { %v3540_v9 = vadd.f32 %v3538_v2, %v3536_v48  ;;  %v6728_v48 = vld [vmem:[#allocation13 + $0xf8] sm:$0xff]  ;;  %v6705_v2 = vld [vmem:[#allocation13 + $0x40] sm:$0xff] }
0x1507   :  { %4859 = vmatpush.bf16.msrb.mxu2 %v6698_v29  ;;  %5120 = vmatpush.bf16.msrb.mxu1 %v6728_v48 }
0x1508   :  { %v3544_v53 = vadd.f32 %v3542_v58, %v3540_v9  ;;  %v6719_v9 = vld [vmem:[#allocation13 + $0xb0] sm:$0xff] }
0x1509   :  { %4948 = vmatpush.bf16.msra.mxu3 %v6706_v50  ;;  %v6727_v58 = vld [vmem:[#allocation13 + $0xf0] sm:$0xff]  ;;  %5032 = vmatpush.bf16.msrb.mxu0 %v6719_v9 }
0x150a   :  { %v3548_v34 = vadd.f32 %v3546_v38, %v3544_v53 }
0x150b   :  { %4860 = vmatpush.bf16.msrb.mxu2 %v6697_v57  ;;  %5121 = vmatpush.bf16.msrb.mxu1 %v6727_v58 }
0x150c   :  { %v3549_v13 = vmul.f32 0.00012207031, %v3548_v34 }
0x150d   :  { %4949 = vmatpush.bf16.msra.mxu3 %v6705_v2  ;;  %5033 = vmatpush.bf16.msrb.mxu0 %v6718_v51 }
0x150e   :  { %v3550_v16 = vadd.f32 1e-05, %v3549_v13 }
0x150f   :  { %5122 = vmatpush.bf16.msrb.mxu1 %v6726_v14 }
0x1510   :  { %6795 = vrsqrt.f32 %v3550_v16  ;;  %vm3557_vm11 = vweird.f32 %v3550_v16 }
0x1516   :  { %v6796_v20 = vpop.eup %6795 }
0x1517   :  { %v3552_v47 = vmul.f32 %v6796_v20, %v3550_v16  ;;  %vm3558_vm10 = vweird.f32 %v6796_v20 }
0x1518   :  { %vm3559_vm6 = vmor %vm3557_vm11, %vm3558_vm10 }
0x1519   :  { %v3553_v21 = vmul.f32 %v6796_v20, %v3552_v47 }
0x151b   :  { %v3554_v55 = vmul.f32 0.5, %v3553_v21 }
0x151d   :  { %v3555_v63 = vsub.f32 1.5, %v3554_v55 }
0x151f   :  { %v3556_v33 = vmul.f32 %v6796_v20, %v3555_v63 }
0x1521   :  { %v3560_v52 = vsel %vm3559_vm6, %v6796_v20, %v3556_v33 }
0x1522   :  { %3568 = vrot.lane.b32.xlu0 %v3560_v52, %s7155_s30  ;;  %3565 = vrot.lane.b32.xlu2 %v3560_v52, %s7148_s15 }
0x1523   :  { %3562 = vrot.lane.b32.xlu1 %v3560_v52, %s7135_s4 }
0x152a   :  { %3577 = vrot.lane.b32.xlu0 %v3560_v52, %s7150_s24  ;;  %3574 = vrot.lane.b32.xlu2 %v3560_v52, %s7156_s14 }
0x152b   :  { %3571 = vrot.lane.b32.xlu1 %v3560_v52, %s7146_s28 }
0x1532   :  { %3586 = vrot.lane.b32.xlu0 %v3560_v52, %s7154_s29  ;;  %3583 = vrot.lane.b32.xlu2 %v3560_v52, %s7139_s13 }
0x1533   :  { %3580 = vrot.lane.b32.xlu1 %v3560_v52, %s7157_s3 }
0x153a   :  { %3595 = vrot.lane.b32.xlu0 %v3560_v52, %s7144_s0  ;;  %3592 = vrot.lane.b32.xlu2 %v3560_v52, %s7153_s1 }
0x153b   :  { %3589 = vrot.lane.b32.xlu1 %v3560_v52, %s7149_s6 }
0x1542   :  { %3604 = vrot.lane.b32.xlu0 %v3560_v52, %s7152_s27  ;;  %3601 = vrot.lane.b32.xlu2 %v3560_v52, %s7147_s5 }
0x1543   :  { %3598 = vrot.lane.b32.xlu1 %v3560_v52, %s7151_s7 }
0x157c   :  { %v3566_v38 = vpop.permute.xlu2 %3565 }
0x1584   :  { %v3575_v13 = vpop.permute.xlu2 %3574 }
0x158c   :  { %v3584_v33 = vpop.permute.xlu2 %3583 }
0x1594   :  { %v3569_v34 = vpop.permute.xlu0 %3568  ;;  %v3593_v57 = vpop.permute.xlu2 %3592 }
0x1595   :  { %v3563_v53 = vpop.permute.xlu1 %3562 }
0x1596   :  { %v3607_v16 = vsel %vm1009_vm2, %v3560_v52, %v3563_v53  ;;  %v6717_v53 = vld [vmem:[#allocation13 + $0xa0] sm:$0xff] }
0x1597   :  { %v3608_v20 = vsel %vm407_vm9, %v3607_v16, %v3566_v38  ;;  %5034 = vmatpush.bf16.msrb.mxu0 %v6717_v53 }
0x1598   :  { %v3609_v55 = vsel %vm1012_vm3, %v3608_v20, %v3569_v34 }
0x159c   :  { %v3578_v47 = vpop.permute.xlu0 %3577  ;;  %v3602_v51 = vpop.permute.xlu2 %3601 }
0x159d   :  { %v3572_v24 = vpop.permute.xlu1 %3571 }
0x159e   :  { %v3610_v63 = vsel %vm263_vm7, %v3609_v55, %v3572_v24  ;;  %vm10532_vm7 = vcmask 916480  }
0x159f   :  { %v3611_v18 = vsel %vm1015_vm4, %v3610_v63, %v3575_v13 }
0x15a0   :  { %v3612_v46 = vsel %vm615_vm13, %v3611_v18, %v3578_v47 }
0x15a4   :  { %v3587_v36 = vpop.permute.xlu0 %3586 }
0x15a5   :  { %v3581_v21 = vpop.permute.xlu1 %3580 }
0x15a6   :  { %v3613_v29 = vsel %vm1018_vm5, %v3612_v46, %v3581_v21  ;;  %v10545_v46 = vld [vmem:[#allocation41_spill] sm:$0xff] }
0x15a7   :  { %v3614_v52 = vsel %vm162_vm0, %v3613_v29, %v3584_v33  ;;  %vm10533_vm0 = vcmask 982016   ;;  %v10547_v29 = vld [vmem:[#allocation25_spill] sm:$0xff] }
0x15a8   :  { %v3615_v60 = vsel %vm1656_vm12, %v3614_v52, %v3587_v36  ;;  %v10543_v36 = vld [vmem:[#allocation37_spill] sm:$0xff]  ;;  %v10549_v52 = vld [vmem:[#allocation26_spill] sm:$0xff] }
0x15ac   :  { %v3596_v2 = vpop.permute.xlu0 %3595 }
0x15ad   :  { %v3590_v50 = vpop.permute.xlu1 %3589 }
0x15ae   :  { %v3616_v48 = vsel %vm1658_vm14, %v3615_v60, %v3590_v50  ;;  %v10551_v60 = vld [vmem:[#allocation43_spill] sm:$0xff] }
0x15af   :  { %v3617_v9 = vsel %vm1660_vm15, %v3616_v48, %v3593_v57 }
0x15b0   :  { %v3618_v38 = vsel %vm371_vm8, %v3617_v9, %v3596_v2  ;;  %v10554_v2 = vld [vmem:[#allocation29_spill] sm:$0xff] }
0x15b4   :  { %v3605_v13 = vpop.permute.xlu0 %3604 }
0x15b5   :  { %v3599_v58 = vpop.permute.xlu1 %3598 }
0x15b6   :  { %v3619_v34 = vsel %vm1663_vm1, %v3618_v38, %v3599_v58  ;;  %v10557_v58 = vld [vmem:[#allocation30_spill] sm:$0xff] }
0x15b7   :  { %v3620_v24 = vsel %vm10532_vm7, %v3619_v34, %v3602_v51  ;;  %v10561_v34 = vld [vmem:[#allocation33_spill] sm:$0xff] }
0x15b8   :  { %v3621_v16 = vsel %vm10533_vm0, %v3620_v24, %v3605_v13 }
0x15b9   :  { %v8881_v20 = vperm.slane %v3621_v16, 0 }
0x15bb   :  { %v3623_v47 = vmul.f32 %v8881_v20, %v8439_v26  ;;  %v8887_v21 = vmul.f32 %v8881_v20, %v8465_v12  ;;  %v8891_v55 = vmul.f32 %v8881_v20, %v8443_v4  ;;  %v8895_v63 = vmul.f32 %v8881_v20, %v8469_v19 }
0x15bc   :  { %v8899_v33 = vmul.f32 %v8881_v20, %v8447_v1  ;;  %v8903_v18 = vmul.f32 %v8881_v20, %v8485_v10  ;;  %v8907_v26 = vmul.f32 %v8881_v20, %v8455_v61  ;;  %v8911_v4 = vmul.f32 %v8881_v20, %v8499_v3 }
0x15bd   :  { %10534 = vst [vmem:[#allocation44_spill] sm:$0xff] %v8887_v21  ;;  %v8915_v12 = vmul.f32 %v8881_v20, %v8459_v32  ;;  %v8919_v1 = vmul.f32 %v8881_v20, %v8509_v15  ;;  %v8923_v19 = vmul.f32 %v8881_v20, %v8473_v5  ;;  %v8927_v61 = vmul.f32 %v8881_v20, %v8521_v37 }
0x15be   :  { %v8931_v10 = vmul.f32 %v8881_v20, %v8479_v44  ;;  %v8935_v32 = vmul.f32 %v8881_v20, %v8533_v22  ;;  %v8939_v3 = vmul.f32 %v8881_v20, %v8493_v25  ;;  %v8943_v5 = vmul.f32 %v8881_v20, %v8545_v6 }
0x15bf   :  { %v8947_v15 = vmul.f32 %v8881_v20, %v8503_v7  ;;  %v8951_v44 = vmul.f32 %v8881_v20, %v8557_v17  ;;  %v8955_v37 = vmul.f32 %v8881_v20, %v8515_v43  ;;  %v8959_v25 = vmul.f32 %v8881_v20, %v8569_v42 }
0x15c0   :  { %10535 = vst [vmem:[#allocation51_spill] sm:$0xff] %v8943_v5  ;;  %v8963_v22 = vmul.f32 %v8881_v20, %v8527_v27  ;;  %v8967_v7 = vmul.f32 %v8881_v20, %v8581_v49  ;;  %v8971_v6 = vmul.f32 %v8881_v20, %v8539_v11  ;;  %v8975_v43 = vmul.f32 %v8881_v20, %v8593_v62  ;;  %v10541_v49 = vld [vmem:[#allocation24_spill] sm:$0xff] }
0x15c1   :  { %10536 = vst [vmem:[#allocation45_spill] sm:$0xff] %v8947_v15  ;;  %v8979_v17 = vmul.f32 %v8881_v20, %v8551_v8  ;;  %v8983_v27 = vmul.f32 %v8881_v20, %v8605_v0  ;;  %v8987_v42 = vmul.f32 %v8881_v20, %v8563_v28  ;;  %v8991_v11 = vmul.f32 %v8881_v20, %v8617_v54 }
0x15c2   :  { %10537 = vst [vmem:[#allocation52_spill] sm:$0xff] %v8959_v25  ;;  %v8995_v62 = vmul.f32 %v8881_v20, %v10541_v49  ;;  %v8999_v8 = vmul.f32 %v8881_v20, %v8629_v56  ;;  %v9003_v0 = vmul.f32 %v8881_v20, %v10543_v36  ;;  %v9007_v28 = vmul.f32 %v8881_v20, %v8641_v41 }
0x15c3   :  { %10538 = vst [vmem:[#allocation46_spill] sm:$0xff] %v8971_v6  ;;  %v9011_v54 = vmul.f32 %v8881_v20, %v10545_v46  ;;  %v9015_v14 = vmul.f32 %v8881_v20, %v8653_v23  ;;  %v9019_v56 = vmul.f32 %v8881_v20, %v10547_v29  ;;  %v9023_v50 = vmul.f32 %v8881_v20, %v8665_v31  ;;  %v10564_v46 = vld [vmem:[#allocation34_spill] sm:$0xff] }
0x15c4   :  { %10539 = vst [vmem:[#allocation53_spill] sm:$0xff] %v8979_v17  ;;  %v9027_v41 = vmul.f32 %v8881_v20, %v10549_v52  ;;  %v9031_v57 = vmul.f32 %v8881_v20, %v8677_v59  ;;  %v9035_v23 = vmul.f32 %v8881_v20, %v10551_v60  ;;  %v9039_v48 = vmul.f32 %v8881_v20, %v8689_v40 }
0x15c5   :  { %10540 = vst [vmem:[#allocation47_spill] sm:$0xff] %v8987_v42  ;;  %v9043_v31 = vmul.f32 %v8881_v20, %v10554_v2  ;;  %v9047_v9 = vmul.f32 %v8881_v20, %v8701_v39  ;;  %v9051_v59 = vmul.f32 %v8881_v20, %v10557_v58  ;;  %v9055_v53 = vmul.f32 %v8881_v20, %v8713_v45 }
0x15c6   :  { %10542 = vst [vmem:[#allocation54_spill] sm:$0xff] %v8995_v62  ;;  %v3687_v38 = vmul.f32 0.2, %v3623_v47  ;;  %v9058_v40 = vmul.f32 0.2, %v8887_v21  ;;  %v9062_v51 = vmul.f32 %v8881_v20, %v10561_v34  ;;  %v9069_v16 = vmul.f32 %v8881_v20, %v8727_v35 }
0x15c7   :  { %10544 = vst [vmem:[#allocation55_spill] sm:$0xff] %v9003_v0  ;;  %v3689_v24 = vmul.f32 0.2, %v8891_v55  ;;  %v3690_v39 = vmul.f32 0.2, %v8895_v63  ;;  %v9076_v29 = vmul.f32 %v8881_v20, %v10564_v46  ;;  %v9123_v21 = vmul.f32 %v8881_v20, %v8745_v30 }
0x15c8   :  { %10546 = vst [vmem:[#allocation56_spill] sm:$0xff] %v9011_v54  ;;  %v3691_v13 = vmul.f32 0.2, %v8899_v33  ;;  %v3692_v45 = vmul.f32 0.2, %v8903_v18 }
0x15c9   :  { %10548 = vst [vmem:[#allocation57_spill] sm:$0xff] %v9019_v56  ;;  %v3693_v49 = vmul.f32 0.2, %v8907_v26  ;;  %v3694_v36 = vmul.f32 0.2, %v8911_v4 }
0x15ca   :  { %10550 = vst [vmem:[#allocation58_spill] sm:$0xff] %v9027_v41  ;;  %v3695_v52 = vmul.f32 0.2, %v8915_v12  ;;  %v3696_v60 = vmul.f32 0.2, %v8919_v1 }
0x15cb   :  { %10552 = vst [vmem:[#allocation59_spill] sm:$0xff] %v9035_v23  ;;  %v3697_v2 = vmul.f32 0.2, %v8923_v19  ;;  %v3698_v58 = vmul.f32 0.2, %v8927_v61 }
0x15cc   :  { %10553 = vst [vmem:[#allocation60_spill] sm:$0xff] %v9039_v48  ;;  %v3699_v35 = vmul.f32 0.2, %v8931_v10  ;;  %v3700_v34 = vmul.f32 0.2, %v8935_v32 }
0x15cd   :  { %10555 = vst [vmem:[#allocation61_spill] sm:$0xff] %v9043_v31  ;;  %v9090_v46 = vmul.f32 0.2, %v8943_v5  ;;  %v9110_v5 = vmul.f32 0.2, %v8963_v22 }
0x15ce   :  { %10556 = vst [vmem:[#allocation62_spill] sm:$0xff] %v9047_v9  ;;  %v9101_v9 = vmul.f32 0.2, %v8955_v37  ;;  %v9143_v30 = vmul.f32 0.2, %v8987_v42 }
0x15cf   :  { %10558 = vst [vmem:[#allocation63_spill] sm:$0xff] %v9051_v59  ;;  %v9098_v59 = vmul.f32 0.2, %v8951_v44 }
0x15d0   :  { %10559 = vst [vmem:[#allocation64_spill] sm:$0xff] %v9055_v53  ;;  %v9116_v53 = vmul.f32 0.2, %v8971_v6  ;;  %v10572_v6 = vld [vmem:[#allocation38_spill] sm:$0xff] }
0x15d1   :  { %10560 = vst [vmem:[#allocation24_spill] sm:$0xff] %v9058_v40  ;;  %v9119_v40 = vmax.f32 %v8895_v63, %v3690_v39  ;;  %v9140_v63 = vmul.f32 0.2, %v8983_v27  ;;  %v9146_v39 = vmax.f32 %v8903_v18, %v3692_v45  ;;  %v9167_v18 = vmul.f32 0.2, %v8999_v8 }
0x15d2   :  { %10562 = vst [vmem:[#allocation37_spill] sm:$0xff] %v9062_v51  ;;  %v9087_v51 = vmul.f32 0.2, %v8939_v3  ;;  %v9173_v45 = vmax.f32 %v8911_v4, %v3694_v36  ;;  %v9195_v36 = vmul.f32 0.2, %v9015_v14 }
0x15d3   :  { %10563 = vst [vmem:[#allocation41_spill] sm:$0xff] %v9069_v16  ;;  %v9084_v16 = vmax.f32 %v3623_v47, %v3687_v38  ;;  %v9104_v47 = vmul.f32 0.2, %v8959_v25  ;;  %v9107_v38 = vmax.f32 %v8891_v55, %v3689_v24  ;;  %v9126_v25 = vmul.f32 0.2, %v8975_v43 }
0x15d4   :  { %10565 = vst [vmem:[#allocation25_spill] sm:$0xff] %v9076_v29  ;;  %v9093_v29 = vmul.f32 0.2, %v8947_v15  ;;  %v9113_v15 = vmul.f32 0.2, %v8967_v7  ;;  %v9132_v24 = vmax.f32 %v8899_v33, %v3691_v13 }
0x15d5   :  { %10566 = vst [vmem:[#allocation26_spill] sm:$0xff] %v9084_v16  ;;  %v9129_v55 = vmul.f32 0.2, %v8979_v17  ;;  %v10575_v17 = vld [vmem:[#allocation32_spill] sm:$0xff]  ;;  %v9153_v33 = vmul.f32 0.2, %v8991_v11 }
0x15d6   :  { %10567 = vst [vmem:[#allocation43_spill] sm:$0xff] %v9107_v38  ;;  %v9156_v13 = vmul.f32 0.2, %v8995_v62  ;;  %v10580_v62 = vld [vmem:[#allocation35_spill] sm:$0xff] }
0x15d7   :  { %10568 = vst [vmem:[#allocation29_spill] sm:$0xff] %v9116_v53  ;;  %v9137_v53 = vmul.f32 %v8881_v20, %v10572_v6  ;;  %v9159_v6 = vmax.f32 %v8907_v26, %v3693_v49  ;;  %v9178_v26 = vmul.f32 %v8881_v20, %v10580_v62  ;;  %v9181_v49 = vmul.f32 0.2, %v9007_v28 }
0x15d8   :  { %10569 = vst [vmem:[#allocation30_spill] sm:$0xff] %v9119_v40  ;;  %v9198_v62 = vmul.f32 0.2, %v9019_v56  ;;  %v10588_v56 = vld [vmem:[#allocation21_spill] sm:$0xff] }
0x15d9   :  { %10570 = vst [vmem:[#allocation33_spill] sm:$0xff] %v9129_v55  ;;  %v9150_v55 = vmul.f32 %v8881_v20, %v10575_v17  ;;  %v9170_v17 = vmul.f32 0.2, %v9003_v0  ;;  %v10583_v0 = vld [vmem:[#allocation42_spill] sm:$0xff] }
0x15da   :  { %10571 = vst [vmem:[#allocation34_spill] sm:$0xff] %v9132_v24  ;;  %v9192_v4 = vmul.f32 %v8881_v20, %v10583_v0  ;;  %v9212_v0 = vmul.f32 0.2, %v9027_v41  ;;  %v10592_v41 = vld [vmem:[#allocation23_spill] sm:$0xff] }
0x15db   :  { %3817 = vst [vmem:[#allocation2 + $0x10] sm:$0xff] %v9084_v16  ;;  %v10577_v16 = vld [vmem:[#allocation39_spill] sm:$0xff] }
0x15dc   :  { %10573 = vst [vmem:[#allocation38_spill] sm:$0xff] %v9137_v53  ;;  %v9164_v42 = vmul.f32 %v8881_v20, %v10577_v16  ;;  %v9184_v16 = vmul.f32 0.2, %v9011_v54  ;;  %v10586_v54 = vld [vmem:[#allocation48_spill] sm:$0xff] }
0x15dd   :  { %10574 = vst [vmem:[#allocation65_spill] sm:$0xff] %v9146_v39 }
0x15de   :  { %10576 = vst [vmem:[#allocation32_spill] sm:$0xff] %v9159_v6 }
0x15df   :  { %3819 = vst [vmem:[#allocation2 + $0x20] sm:$0xff] %v9107_v38  ;;  %v9187_v38 = vmax.f32 %v8915_v12, %v3695_v52  ;;  %v9206_v12 = vmul.f32 %v8881_v20, %v10586_v54  ;;  %v9209_v52 = vmul.f32 0.2, %v9023_v50  ;;  %v9226_v54 = vmul.f32 0.2, %v9035_v23  ;;  %v10595_v23 = vld [vmem:[#allocation22_spill] sm:$0xff] }
0x15e0   :  { %10578 = vst [vmem:[#allocation39_spill] sm:$0xff] %v9164_v42 }
0x15e1   :  { %10579 = vst [vmem:[#allocation66_spill] sm:$0xff] %v9173_v45 }
0x15e2   :  { %3820 = vst [vmem:[#allocation2 + $0x28] sm:$0xff] %v9119_v40  ;;  %v9201_v40 = vmax.f32 %v8919_v1, %v3696_v60  ;;  %v9220_v1 = vmul.f32 %v8881_v20, %v10588_v56  ;;  %v9223_v60 = vmul.f32 0.2, %v9031_v57  ;;  %v9240_v56 = vmul.f32 0.2, %v9043_v31  ;;  %v10601_v31 = vld [vmem:[#allocation36_spill] sm:$0xff] }
0x15e3   :  { %10581 = vst [vmem:[#allocation35_spill] sm:$0xff] %v9178_v26 }
0x15e4   :  { %10582 = vst [vmem:[#allocation67_spill] sm:$0xff] %v9187_v38 }
0x15e5   :  { %3821 = vst [vmem:[#allocation2 + $0x30] sm:$0xff] %v9132_v24  ;;  %v9215_v24 = vmax.f32 %v8923_v19, %v3697_v2  ;;  %v9234_v19 = vmul.f32 %v8881_v20, %v10592_v41  ;;  %v9237_v2 = vmul.f32 0.2, %v9039_v48  ;;  %v10598_v41 = vld [vmem:[#allocation63_spill] sm:$0xff]  ;;  %v9257_v48 = vmax.f32 %v8935_v32, %v3700_v34 }
0x15e6   :  { %10584 = vst [vmem:[#allocation42_spill] sm:$0xff] %v9192_v4  ;;  %v10605_v32 = vld [vmem:[#allocation27_spill] sm:$0xff] }
0x15e7   :  { %10585 = vst [vmem:[#allocation68_spill] sm:$0xff] %v9201_v40  ;;  %v9277_v34 = vmul.f32 %v8881_v20, %v10605_v32  ;;  %v9298_v32 = vmul.f32 0.2, %v9137_v53  ;;  %v9317_v53 = vmax.f32 %v8951_v44, %v9098_v59  ;;  %v10619_v44 = vld [vmem:[#allocation31_spill] sm:$0xff] }
0x15e8   :  { %3822 = vst [vmem:[#allocation2 + $0x38] sm:$0xff] %v9146_v39  ;;  %v9229_v39 = vmax.f32 %v8927_v61, %v3698_v58  ;;  %v9248_v61 = vmul.f32 %v8881_v20, %v10595_v23  ;;  %v10597_v58 = vld [vmem:[#allocation62_spill] sm:$0xff]  ;;  %v10603_v23 = vld [vmem:[#allocation37_spill] sm:$0xff]  ;;  %v9337_v59 = vmul.f32 %v8881_v20, %v10619_v44 }
0x15e9   :  { %10587 = vst [vmem:[#allocation48_spill] sm:$0xff] %v9215_v24 }
0x15ea   :  { %3823 = vst [vmem:[#allocation2 + $0x40] sm:$0xff] %v9159_v6  ;;  %v9243_v6 = vmax.f32 %v8931_v10, %v3699_v35  ;;  %v9262_v10 = vmul.f32 %v8881_v20, %v10601_v31  ;;  %v10602_v35 = vld [vmem:[#allocation64_spill] sm:$0xff]  ;;  %v10608_v31 = vld [vmem:[#allocation25_spill] sm:$0xff]  ;;  %v9358_v44 = vmul.f32 0.2, %v9248_v61 }
0x15eb   :  { %10589 = vst [vmem:[#allocation21_spill] sm:$0xff] %v9220_v1 }
0x15ec   :  { %10590 = vst [vmem:[#allocation69_spill] sm:$0xff] %v9226_v54  ;;  %v9254_v54 = vmul.f32 0.2, %v10598_v41 }
0x15ed   :  { %10591 = vst [vmem:[#allocation70_spill] sm:$0xff] %v9229_v39 }
0x15ee   :  { %3824 = vst [vmem:[#allocation2 + $0x48] sm:$0xff] %v9173_v45  ;;  %v9251_v45 = vmul.f32 0.2, %v10597_v58  ;;  %v9272_v58 = vmax.f32 %v8939_v3, %v9087_v51  ;;  %v10611_v3 = vld [vmem:[#allocation49_spill] sm:$0xff] }
0x15ef   :  { %10593 = vst [vmem:[#allocation23_spill] sm:$0xff] %v9240_v56  ;;  %v9268_v56 = vmul.f32 0.2, %v10603_v23  ;;  %v9292_v51 = vmul.f32 %v8881_v20, %v10611_v3  ;;  %v9313_v3 = vmul.f32 0.2, %v9164_v42  ;;  %v9332_v42 = vmax.f32 %v8955_v37, %v9101_v9  ;;  %v10623_v37 = vld [vmem:[#allocation50_spill] sm:$0xff] }
0x15f0   :  { %10594 = vst [vmem:[#allocation71_spill] sm:$0xff] %v9243_v6  ;;  %v9352_v9 = vmul.f32 %v8881_v20, %v10623_v37 }
0x15f1   :  { %3825 = vst [vmem:[#allocation2 + $0x50] sm:$0xff] %v9187_v38  ;;  %v9265_v38 = vmul.f32 0.2, %v10602_v35  ;;  %v10609_v35 = vld [vmem:[#allocation51_spill] sm:$0xff]  ;;  %v9377_v37 = vmul.f32 0.2, %v9292_v51 }
0x15f2   :  { %10596 = vst [vmem:[#allocation22_spill] sm:$0xff] %v9248_v61  ;;  %v9287_v23 = vmax.f32 %v10609_v35, %v9090_v46  ;;  %v10614_v46 = vld [vmem:[#allocation28_spill] sm:$0xff] }
0x15f3   :  { %10599 = vst [vmem:[#allocation72_spill] sm:$0xff] %v9254_v54  ;;  %v9283_v54 = vmul.f32 0.2, %v10608_v31  ;;  %v9307_v35 = vmul.f32 %v8881_v20, %v10614_v46  ;;  %v9328_v46 = vmul.f32 0.2, %v9192_v4 }
0x15f4   :  { %10600 = vst [vmem:[#allocation73_spill] sm:$0xff] %v9257_v48 }
0x15f5   :  { %3826 = vst [vmem:[#allocation2 + $0x58] sm:$0xff] %v9201_v40  ;;  %v10607_v40 = vld [vmem:[#allocation41_spill] sm:$0xff] }
0x15f6   :  { %10604 = vst [vmem:[#allocation36_spill] sm:$0xff] %v9272_v58  ;;  %v9280_v41 = vmul.f32 0.2, %v10607_v40  ;;  %v10612_v40 = vld [vmem:[#allocation45_spill] sm:$0xff] }
0x15f7   :  { %3827 = vst [vmem:[#allocation2 + $0x60] sm:$0xff] %v9215_v24  ;;  %v9295_v24 = vmul.f32 0.2, %v9123_v21  ;;  %v9302_v31 = vmax.f32 %v10612_v40, %v9093_v29  ;;  %v10617_v40 = vld [vmem:[#allocation40_spill] sm:$0xff] }
0x15f8   :  { %10606 = vst [vmem:[#allocation27_spill] sm:$0xff] %v9277_v34  ;;  %v9322_v29 = vmul.f32 %v8881_v20, %v10617_v40  ;;  %v9343_v40 = vmul.f32 0.2, %v9220_v1  ;;  %v9362_v1 = vmax.f32 %v8963_v22, %v9110_v5  ;;  %v9373_v20 = vmax.f32 %v8967_v7, %v9113_v15  ;;  %v10625_v22 = vld [vmem:[#allocation29_spill] sm:$0xff] }
0x15f9   :  { %10610 = vst [vmem:[#allocation51_spill] sm:$0xff] %v9287_v23  ;;  %v9380_v5 = vmul.f32 0.2, %v9307_v35  ;;  %v9389_v15 = vmul.f32 0.2, %v9337_v59  ;;  %v9393_v7 = vmax.f32 %v8975_v43, %v9126_v25  ;;  %v10629_v25 = vld [vmem:[#allocation47_spill] sm:$0xff] }
0x15fa   :  { %3828 = vst [vmem:[#allocation2 + $0x68] sm:$0xff] %v9229_v39  ;;  %v9310_v39 = vmul.f32 0.2, %v9150_v55  ;;  %v9410_v43 = vmax.f32 %v10629_v25, %v9143_v30  ;;  %v9431_v30 = vmax.f32 %v9007_v28, %v9181_v49  ;;  %v9448_v28 = vmax.f32 %v9023_v50, %v9209_v52  ;;  %v6715_v50 = vld [vmem:[#allocation13 + $0x90] sm:$0xff]  ;;  %v10639_v25 = vld [vmem:[#allocation61_spill] sm:$0xff] }
0x15fb   :  { %10613 = vst [vmem:[#allocation49_spill] sm:$0xff] %v9302_v31  ;;  %v9457_v49 = vmax.f32 %v9031_v57, %v9223_v60  ;;  %v6723_v52 = vld [vmem:[#allocation13 + $0xd0] sm:$0xff]  ;;  %v10641_v60 = vld [vmem:[#allocation72_spill] sm:$0xff] }
0x15fc   :  { %3829 = vst [vmem:[#allocation2 + $0x70] sm:$0xff] %v9243_v6  ;;  %v9325_v6 = vmul.f32 0.2, %v9178_v26  ;;  %v10621_v26 = vld [vmem:[#allocation52_spill] sm:$0xff] }
0x15fd   :  { %10615 = vst [vmem:[#allocation45_spill] sm:$0xff] %v9307_v35  ;;  %v9347_v4 = vmax.f32 %v10621_v26, %v9104_v47  ;;  %v6725_v47 = vld [vmem:[#allocation13 + $0xe0] sm:$0xff]  ;;  %v9366_v26 = vmul.f32 0.2, %v9262_v10 }
0x15fe   :  { %10616 = vst [vmem:[#allocation28_spill] sm:$0xff] %v9317_v53  ;;  %5123 = vmatpush.bf16.msrb.mxu1 %v6725_v47  ;;  %v10627_v35 = vld [vmem:[#allocation33_spill] sm:$0xff]  ;;  %v6716_v47 = vld [vmem:[#allocation13 + $0x98] sm:$0xff] }
0x15ff   :  { %3830 = vst [vmem:[#allocation2 + $0x78] sm:$0xff] %v9257_v48  ;;  %v9340_v48 = vmul.f32 0.2, %v9206_v12  ;;  %5035 = vmatpush.bf16.msrb.mxu0 %v6716_v47  ;;  %v10638_v47 = vld [vmem:[#allocation23_spill] sm:$0xff] }
0x1600   :  { %10618 = vst [vmem:[#allocation40_spill] sm:$0xff] %v9332_v42 }
0x1601   :  { %3831 = vst [vmem:[#allocation2 + $0x80] sm:$0xff] %v9272_v58  ;;  %v9355_v58 = vmul.f32 0.2, %v9234_v19 }
0x1602   :  { %10620 = vst [vmem:[#allocation31_spill] sm:$0xff] %v9337_v59  ;;  %v9406_v59 = vmax.f32 %v8983_v27, %v9140_v63  ;;  %v10631_v27 = vld [vmem:[#allocation55_spill] sm:$0xff] }
0x1603   :  { %10622 = vst [vmem:[#allocation52_spill] sm:$0xff] %v9347_v4  ;;  %v9427_v63 = vmax.f32 %v10631_v27, %v9170_v17  ;;  %v10640_v27 = vld [vmem:[#allocation62_spill] sm:$0xff]  ;;  %5036 = vmatpush.bf16.msrb.mxu0 %v6715_v50  ;;  %v10649_v50 = vld [vmem:[#allocation35_spill] sm:$0xff] }
0x1604   :  { %3832 = vst [vmem:[#allocation2 + $0x88] sm:$0xff] %v9287_v23  ;;  %v9369_v23 = vmul.f32 0.2, %v9277_v34  ;;  %v3748_v34 = vmul.f32 0.2, %v9322_v29  ;;  %v9474_v57 = vmax.f32 %v10640_v27, %v9251_v45  ;;  %v10646_v45 = vld [vmem:[#allocation25_spill] sm:$0xff] }
0x1605   :  { %10624 = vst [vmem:[#allocation50_spill] sm:$0xff] %v9352_v9  ;;  %v10647_v27 = vld [vmem:[#allocation38_spill] sm:$0xff] }
0x1606   :  { %3833 = vst [vmem:[#allocation2 + $0x90] sm:$0xff] %v9302_v31  ;;  %v10626_v31 = vld [vmem:[#allocation46_spill] sm:$0xff] }
0x1607   :  { %3834 = vst [vmem:[#allocation2 + $0x98] sm:$0xff] %v9317_v53  ;;  %v9384_v61 = vmax.f32 %v10626_v31, %v10625_v22  ;;  %v9397_v53 = vmul.f32 0.2, %v9352_v9  ;;  %v10628_v31 = vld [vmem:[#allocation53_spill] sm:$0xff]  ;;  %v10630_v9 = vld [vmem:[#allocation54_spill] sm:$0xff] }
0x1608   :  { %3835 = vst [vmem:[#allocation2 + $0xa0] sm:$0xff] %v9332_v42  ;;  %v9401_v22 = vmax.f32 %v10628_v31, %v10627_v35  ;;  %v6724_v42 = vld [vmem:[#allocation13 + $0xd8] sm:$0xff]  ;;  %v9418_v35 = vmax.f32 %v10630_v9, %v9156_v13  ;;  %v9423_v31 = vmax.f32 %v8999_v8, %v9167_v18  ;;  %v9440_v8 = vmax.f32 %v9015_v14, %v9195_v36  ;;  %v10633_v13 = vld [vmem:[#allocation57_spill] sm:$0xff] }
0x1609   :  { %3836 = vst [vmem:[#allocation2 + $0xa8] sm:$0xff] %v9347_v4  ;;  %v9414_v4 = vmax.f32 %v8991_v11, %v9153_v33  ;;  %5124 = vmatpush.bf16.msrb.mxu1 %v6724_v42  ;;  %v10632_v11 = vld [vmem:[#allocation56_spill] sm:$0xff]  ;;  %v9444_v18 = vmax.f32 %v10633_v13, %v9198_v62  ;;  %v10634_v42 = vld [vmem:[#allocation58_spill] sm:$0xff]  ;;  %v10635_v14 = vld [vmem:[#allocation69_spill] sm:$0xff] }
0x160a   :  { %3837 = vst [vmem:[#allocation2 + $0xb0] sm:$0xff] %v9362_v1  ;;  %v9436_v33 = vmax.f32 %v10632_v11, %v9184_v16  ;;  %v9453_v17 = vmax.f32 %v10634_v42, %v9212_v0  ;;  %v10636_v16 = vld [vmem:[#allocation59_spill] sm:$0xff]  ;;  %v10637_v62 = vld [vmem:[#allocation60_spill] sm:$0xff]  ;;  %v9470_v0 = vmax.f32 %v10639_v25, %v10638_v47  ;;  %v9495_v25 = vmax.f32 %v10646_v45, %v9283_v54  ;;  %v10660_v45 = vld [vmem:[#allocation26_spill] sm:$0xff] }
0x160b   :  { %3838 = vst [vmem:[#allocation2 + $0xb8] sm:$0xff] %v9373_v20  ;;  %v9461_v36 = vmax.f32 %v10636_v16, %v10635_v14  ;;  %v9465_v9 = vmax.f32 %v10637_v62, %v9237_v2  ;;  %v10642_v11 = vld [vmem:[#allocation63_spill] sm:$0xff]  ;;  %v10643_v42 = vld [vmem:[#allocation64_spill] sm:$0xff]  ;;  %v10644_v14 = vld [vmem:[#allocation37_spill] sm:$0xff] }
0x160c   :  { %3839 = vst [vmem:[#allocation2 + $0xc0] sm:$0xff] %v9384_v61  ;;  %v9478_v13 = vmax.f32 %v10642_v11, %v10641_v60  ;;  %v9482_v2 = vmax.f32 %v10643_v42, %v9265_v38  ;;  %v9487_v16 = vmax.f32 %v10644_v14, %v9268_v56  ;;  %v10645_v62 = vld [vmem:[#allocation41_spill] sm:$0xff]  ;;  %v9500_v38 = vmax.f32 %v9123_v21, %v9295_v24  ;;  %v10648_v60 = vld [vmem:[#allocation39_spill] sm:$0xff]  ;;  %v10650_v21 = vld [vmem:[#allocation42_spill] sm:$0xff] }
0x160d   :  { %3840 = vst [vmem:[#allocation2 + $0xc8] sm:$0xff] %v9393_v7  ;;  %v9491_v47 = vmax.f32 %v10645_v62, %v9280_v41  ;;  %5125 = vmatpush.bf16.msrb.mxu1 %v6723_v52  ;;  %v9504_v56 = vmax.f32 %v10647_v27, %v9298_v32  ;;  %v9508_v41 = vmax.f32 %v9150_v55, %v9310_v39  ;;  %v10651_v55 = vld [vmem:[#allocation21_spill] sm:$0xff]  ;;  %v10652_v42 = vld [vmem:[#allocation22_spill] sm:$0xff] }
0x160e   :  { %3841 = vst [vmem:[#allocation2 + $0xd0] sm:$0xff] %v9401_v22  ;;  %v9512_v54 = vmax.f32 %v10648_v60, %v9313_v3  ;;  %v9517_v52 = vmax.f32 %v10649_v50, %v9325_v6  ;;  %v9521_v24 = vmax.f32 %v10650_v21, %v9328_v46  ;;  %v9525_v32 = vmax.f32 %v9206_v12, %v9340_v48  ;;  %v6714_v3 = vld [vmem:[#allocation13 + $0x88] sm:$0xff]  ;;  %v10654_v12 = vld [vmem:[#allocation27_spill] sm:$0xff] }
0x160f   :  { %3842 = vst [vmem:[#allocation2 + $0xd8] sm:$0xff] %v9406_v59  ;;  %v9529_v39 = vmax.f32 %v10651_v55, %v9343_v40  ;;  %v6722_v11 = vld [vmem:[#allocation13 + $0xc8] sm:$0xff]  ;;  %v9534_v6 = vmax.f32 %v9234_v19, %v9355_v58  ;;  %v9538_v46 = vmax.f32 %v10652_v42, %v9358_v44  ;;  %v9542_v48 = vmax.f32 %v9262_v10, %v9366_v26  ;;  %v6713_v10 = vld [vmem:[#allocation13 + $0x80] sm:$0xff] }
0x1610   :  { %3843 = vst [vmem:[#allocation2 + $0xe0] sm:$0xff] %v9410_v43  ;;  %v9546_v40 = vmax.f32 %v10654_v12, %v9369_v23  ;;  %v9551_v14 = vmax.f32 %v9292_v51, %v9377_v37  ;;  %v10657_v19 = vld [vmem:[#allocation45_spill] sm:$0xff]  ;;  %v9558_v44 = vmax.f32 %v9322_v29, %v3748_v34  ;;  %5037 = vmatpush.bf16.msrb.mxu0 %v6714_v3  ;;  %v10661_v51 = vld [vmem:[#allocation44_spill] sm:$0xff]  ;;  %v10665_v50 = vld [vmem:[#allocation30_spill] sm:$0xff] }
0x1611   :  { %3844 = vst [vmem:[#allocation2 + $0xe8] sm:$0xff] %v9414_v4  ;;  %v9555_v58 = vmax.f32 %v10657_v19, %v9380_v5  ;;  %5126 = vmatpush.bf16.msrb.mxu1 %v6722_v11  ;;  %v6721_v23 = vld [vmem:[#allocation13 + $0xc0] sm:$0xff]  ;;  %v10664_v5 = vld [vmem:[#allocation43_spill] sm:$0xff]  ;;  %v10666_v29 = vld [vmem:[#allocation34_spill] sm:$0xff] }
0x1612   :  { %3845 = vst [vmem:[#allocation2 + $0xf0] sm:$0xff] %v9418_v35  ;;  %v6927_v26 = vld [vmem:[#allocation2 + $0x8] sm:$0xff]  ;;  %v10662_v37 = vld [vmem:[#allocation24_spill] sm:$0xff]  ;;  %v3949_v21 = vpack.c.bf16 %v10665_v50, %v10664_v5 }
0x1613   :  { %10653 = vst [vmem:[#allocation29_spill] sm:$0xff] %v9542_v48  ;;  %v3947_v62 = vpack.c.bf16 %v6927_v26, %v6927_v26  ;;  %v10663_v27 = vmax.f32 %v10661_v51, %v10662_v37  ;;  %v6736_v34 = vld [vmem:[#allocation13 + $0x138] sm:$0xff]  ;;  %v10667_v55 = vld [vmem:[#allocation65_spill] sm:$0xff]  ;;  %v10669_v12 = vld [vmem:[#allocation66_spill] sm:$0xff] }
0x1614   :  { %10655 = vst [vmem:[#allocation46_spill] sm:$0xff] %v9546_v40  ;;  %v3950_v42 = vpack.c.bf16 %v10667_v55, %v10666_v29  ;;  %v6744_v3 = vld [vmem:[#allocation13 + $0x178] sm:$0xff]  ;;  %v10673_v51 = vld [vmem:[#allocation70_spill] sm:$0xff]  ;;  %5209 = vmatpush.bf16.msra.mxu2 %v6736_v34  ;;  %5038 = vmatpush.bf16.msrb.mxu0 %v6713_v10 }
0x1615   :  { %3846 = vst [vmem:[#allocation2 + $0xf8] sm:$0xff] %v9423_v31  ;;  %v3948_v60 = vpack.c.bf16 %v10663_v27, %v10660_v45  ;;  %v10668_v11 = vld [vmem:[#allocation32_spill] sm:$0xff]  ;;  %v10674_v37 = vld [vmem:[#allocation71_spill] sm:$0xff]  ;;  %v10675_v27 = vld [vmem:[#allocation73_spill] sm:$0xff]  ;;  %v4110_v50 = vunpack.c.l.b16 %v3947_v62  ;;  %v4111_v55 = vunpack.c.h.b16 %v3947_v62  ;;  %5127 = vmatpush.bf16.msrb.mxu1 %v6721_v23  ;;  %5298 = vmatpush.bf16.msrb.mxu3 %v6744_v3 }
0x1616   :  { %10656 = vst [vmem:[#allocation33_spill] sm:$0xff] %v9551_v14  ;;  %v3951_v19 = vpack.c.bf16 %v10669_v12, %v10668_v11  ;;  %v10671_v26 = vld [vmem:[#allocation68_spill] sm:$0xff]  ;;  %v9583_v5 = vpack.c.bf16 %v10675_v27, %v10674_v37  ;;  %v4115_v11 = vunpack.c.h.b16 %v3949_v21  ;;  %v4116_v12 = vunpack.c.l.b16 %v3950_v42  ;;  %v10676_v48 = vld [vmem:[#allocation31_spill] sm:$0xff] }
0x1617   :  { %10658 = vst [vmem:[#allocation53_spill] sm:$0xff] %v9555_v58  ;;  %v10672_v14 = vld [vmem:[#allocation48_spill] sm:$0xff]  ;;  %v4112_v29 = vunpack.c.l.b16 %v3948_v60  ;;  %v4113_v40 = vunpack.c.h.b16 %v3948_v60  ;;  %v9590_v62 = vmax.f32 %v10676_v48, %v9389_v15  ;;  %v10677_v60 = vld [vmem:[#allocation50_spill] sm:$0xff] }
0x1618   :  { %10659 = vst [vmem:[#allocation47_spill] sm:$0xff] %v9558_v44  ;;  %v10670_v44 = vld [vmem:[#allocation67_spill] sm:$0xff]  ;;  %v9579_v45 = vpack.c.bf16 %v10673_v51, %v10672_v14  ;;  %v4117_v14 = vunpack.c.h.b16 %v3950_v42  ;;  %v4118_v37 = vunpack.c.l.b16 %v3951_v19  ;;  %v4119_v27 = vunpack.c.h.b16 %v3951_v19 }
0x1619   :  { %3847 = vst [vmem:[#allocation2 + $0x100] sm:$0xff] %v9427_v63  ;;  %v9575_v58 = vpack.c.bf16 %v10671_v26, %v10670_v44  ;;  %v4114_v44 = vunpack.c.l.b16 %v3949_v21  ;;  %v4174_v26 = vpack.c.b16 %v4112_v29, %v4110_v50  ;;  %v4175_v51 = vpack.c.b16 %v4113_v40, %v4111_v55  ;;  %v6735_v19 = vld [vmem:[#allocation13 + $0x130] sm:$0xff]  ;;  %v10682_v55 = vld [vmem:[#allocation40_spill] sm:$0xff] }
0x161a   :  { %3848 = vst [vmem:[#allocation2 + $0x108] sm:$0xff] %v9431_v30  ;;  %v9594_v34 = vmax.f32 %v10677_v60, %v9397_v53  ;;  %v4242_v23 = vpack.c.b16 %v4115_v11, %v4113_v40  ;;  %v9600_v42 = vpack.c.b16 %v4117_v14, %v4115_v11  ;;  %v9605_v53 = vpack.c.b16 %v4118_v37, %v4116_v12  ;;  %v6743_v50 = vld [vmem:[#allocation13 + $0x170] sm:$0xff]  ;;  %v10681_v60 = vld [vmem:[#allocation28_spill] sm:$0xff] }
0x161b   :  { %3849 = vst [vmem:[#allocation2 + $0x110] sm:$0xff] %v9436_v33  ;;  %v4241_v10 = vpack.c.b16 %v4114_v44, %v4112_v29  ;;  %4861 = vmatmul.bf16.vlgmr.msrb.gmra.mxu2 %v4174_v26  ;;  %4950 = vmatmul.bf16.vlgmr.msra.gmra.mxu3 %v4175_v51  ;;  %v9598_v21 = vpack.c.b16 %v4116_v12, %v4114_v44  ;;  %v4120_v3 = vunpack.c.l.b16 %v9575_v58  ;;  %v10407_v15 = vunpack.c.h.b16 %v9575_v58  ;;  %v10678_v44 = vld [vmem:[#allocation36_spill] sm:$0xff]  ;;  %v10679_v11 = vld [vmem:[#allocation51_spill] sm:$0xff]  ;;  %v10680_v51 = vld [vmem:[#allocation49_spill] sm:$0xff] }
0x161c   :  { %3850 = vst [vmem:[#allocation2 + $0x118] sm:$0xff] %v9440_v8  ;;  %5128 = vmatmul.bf16.vlgmr.msrb.gmra.mxu1 %v4242_v23  ;;  %v9607_v48 = vpack.c.b16 %v4119_v27, %v4117_v14  ;;  %v10406_v40 = vunpack.c.l.b16 %v9579_v45  ;;  %v3955_v26 = vpack.c.bf16 %v10679_v11, %v10678_v44  ;;  %5210 = vmatpush.bf16.msra.mxu2 %v6735_v19  ;;  %v10683_v29 = vld [vmem:[#allocation52_spill] sm:$0xff] }
0x161d   :  { %3851 = vst [vmem:[#allocation2 + $0x120] sm:$0xff] %v9444_v18  ;;  %5039 = vmatmul.bf16.vlgmr.msrb.gmra.mxu0 %v4241_v10  ;;  %v3956_v10 = vpack.c.bf16 %v10681_v60, %v10680_v51  ;;  %v9618_v12 = vpack.c.b16 %v4120_v3, %v4118_v37  ;;  %v9622_v14 = vpack.c.b16 %v10407_v15, %v4119_v27 }
0x161e   :  { %3852 = vst [vmem:[#allocation2 + $0x128] sm:$0xff] %v9448_v28  ;;  %5299 = vmatpush.bf16.msrb.mxu3 %v6743_v50  ;;  %v9628_v44 = vpack.c.b16 %v10406_v40, %v4120_v3  ;;  %v4126_v11 = vunpack.c.l.b16 %v3955_v26  ;;  %v4127_v51 = vunpack.c.h.b16 %v3955_v26  ;;  %v3957_v27 = vpack.c.bf16 %v10683_v29, %v10682_v55 }
0x161f   :  { %3853 = vst [vmem:[#allocation2 + $0x130] sm:$0xff] %v9453_v17  ;;  %v4128_v60 = vunpack.c.l.b16 %v3956_v10  ;;  %v4129_v37 = vunpack.c.h.b16 %v3956_v10  ;;  %v3958_v23 = vpack.c.bf16 %v9373_v20, %v9362_v1  ;;  %v3959_v19 = vpack.c.bf16 %v9393_v7, %v9384_v61 }
0x1620   :  { %3854 = vst [vmem:[#allocation2 + $0x138] sm:$0xff] %v9457_v49  ;;  %v10684_v3 = vunpack.c.l.b16 %v9583_v5  ;;  %v10686_v26 = vunpack.c.h.b16 %v9583_v5  ;;  %v3960_v29 = vpack.c.bf16 %v9406_v59, %v9401_v22  ;;  %v4130_v61 = vunpack.c.l.b16 %v3957_v27 }
0x1621   :  { %3855 = vst [vmem:[#allocation2 + $0x140] sm:$0xff] %v9461_v36  ;;  %v9646_v10 = vpack.c.b16 %v4128_v60, %v4126_v11  ;;  %v9651_v1 = vpack.c.b16 %v4129_v37, %v4127_v51  ;;  %v4131_v20 = vunpack.c.h.b16 %v3957_v27  ;;  %v4132_v7 = vunpack.c.l.b16 %v3958_v23 }
0x1622   :  { %3856 = vst [vmem:[#allocation2 + $0x148] sm:$0xff] %v9465_v9  ;;  %v9640_v50 = vpack.c.b16 %v4126_v11, %v10684_v3  ;;  %v9644_v40 = vpack.c.b16 %v4127_v51, %v10686_v26  ;;  %v4133_v55 = vunpack.c.h.b16 %v3958_v23  ;;  %v4134_v3 = vunpack.c.l.b16 %v3959_v19 }
0x1623   :  { %3857 = vst [vmem:[#allocation2 + $0x150] sm:$0xff] %v9470_v0  ;;  %v4135_v15 = vunpack.c.h.b16 %v3959_v19  ;;  %v9655_v11 = vpack.c.b16 %v4130_v61, %v4128_v60  ;;  %v9657_v26 = vpack.c.b16 %v4131_v20, %v4129_v37  ;;  %v9659_v59 = vpack.c.b16 %v4132_v7, %v4130_v61 }
0x1624   :  { %3858 = vst [vmem:[#allocation2 + $0x158] sm:$0xff] %v9474_v57  ;;  %v4137_v22 = vunpack.c.h.b16 %v3960_v29  ;;  %v9662_v51 = vpack.c.b16 %v4133_v55, %v4131_v20  ;;  %v9664_v27 = vpack.c.b16 %v4134_v3, %v4132_v7  ;;  %v3961_v60 = vpack.c.bf16 %v9414_v4, %v9410_v43 }
0x1625   :  { %3859 = vst [vmem:[#allocation2 + $0x160] sm:$0xff] %v9478_v13  ;;  %v3962_v37 = vpack.c.bf16 %v9423_v31, %v9418_v35  ;;  %v3964_v61 = vpack.c.bf16 %v9440_v8, %v9436_v33  ;;  %v3965_v20 = vpack.c.bf16 %v9448_v28, %v9444_v18  ;;  %v3967_v4 = vpack.c.bf16 %v9465_v9, %v9461_v36 }
0x1626   :  { %3860 = vst [vmem:[#allocation2 + $0x168] sm:$0xff] %v9482_v2  ;;  %v9671_v19 = vpack.c.b16 %v4137_v22, %v4135_v15  ;;  %v4138_v43 = vunpack.c.l.b16 %v3961_v60  ;;  %v4139_v35 = vunpack.c.h.b16 %v3961_v60 }
0x1627   :  { %10685 = vst [vmem:[#allocation54_spill] sm:$0xff] %v9640_v50  ;;  %v4136_v50 = vunpack.c.l.b16 %v3960_v29  ;;  %v3963_v29 = vpack.c.bf16 %v9431_v30, %v9427_v63  ;;  %v4140_v31 = vunpack.c.l.b16 %v3962_v37  ;;  %v4141_v63 = vunpack.c.h.b16 %v3962_v37 }
0x1628   :  { %3861 = vst [vmem:[#allocation2 + $0x170] sm:$0xff] %v9487_v16  ;;  %v4144_v33 = vunpack.c.l.b16 %v3964_v61  ;;  %v4145_v8 = vunpack.c.h.b16 %v3964_v61  ;;  %v9693_v28 = vpack.c.b16 %v4139_v35, %v4137_v22  ;;  %v4147_v22 = vunpack.c.h.b16 %v3965_v20 }
0x1629   :  { %10687 = vst [vmem:[#allocation55_spill] sm:$0xff] %v9651_v1  ;;  %v9666_v1 = vpack.c.b16 %v4135_v15, %v4133_v55  ;;  %v9668_v23 = vpack.c.b16 %v4136_v50, %v4134_v3  ;;  %v3966_v15 = vpack.c.bf16 %v9457_v49, %v9453_v17  ;;  %v4142_v30 = vunpack.c.l.b16 %v3963_v29 }
0x162a   :  { %3862 = vst [vmem:[#allocation2 + $0x178] sm:$0xff] %v9491_v47  ;;  %v4143_v7 = vunpack.c.h.b16 %v3963_v29  ;;  %v9691_v18 = vpack.c.b16 %v4138_v43, %v4136_v50  ;;  %v9695_v17 = vpack.c.b16 %v4140_v31, %v4138_v43  ;;  %v9697_v49 = vpack.c.b16 %v4141_v63, %v4139_v35  ;;  %v10688_v43 = vld [vmem:[#allocation29_spill] sm:$0xff] }
0x162b   :  { %3863 = vst [vmem:[#allocation2 + $0x180] sm:$0xff] %v9495_v25  ;;  %4866 = vmatmul.bf16.gmra.mxu2 %v9598_v21  ;;  %4955 = vmatmul.bf16.gmra.mxu3 %v9600_v42  ;;  %v9702_v36 = vpack.c.b16 %v4142_v30, %v4140_v31  ;;  %v9706_v55 = vpack.c.b16 %v4144_v33, %v4142_v30  ;;  %v4146_v3 = vunpack.c.l.b16 %v3965_v20  ;;  %v4148_v60 = vunpack.c.l.b16 %v3966_v15 }
0x162c   :  { %3864 = vst [vmem:[#allocation2 + $0x188] sm:$0xff] %v9500_v38  ;;  %v9704_v9 = vpack.c.b16 %v4143_v7, %v4141_v63  ;;  %5133 = vmatmul.bf16.gmra.mxu1 %v9607_v48  ;;  %v9711_v50 = vpack.c.b16 %v4145_v8, %v4143_v7  ;;  %v4149_v21 = vunpack.c.h.b16 %v3966_v15  ;;  %v4150_v42 = vunpack.c.l.b16 %v3967_v4 }
0x162d   :  { %3865 = vst [vmem:[#allocation2 + $0x190] sm:$0xff] %v9504_v56  ;;  %5044 = vmatmul.bf16.gmra.mxu0 %v9605_v53  ;;  %v4151_v37 = vunpack.c.h.b16 %v3967_v4  ;;  %v3968_v29 = vpack.c.bf16 %v9474_v57, %v9470_v0  ;;  %v9717_v61 = vpack.c.b16 %v4146_v3, %v4144_v33  ;;  %v9719_v53 = vpack.c.b16 %v4147_v22, %v4145_v8  ;;  %v10689_v57 = vld [vmem:[#allocation46_spill] sm:$0xff]  ;;  %v10690_v33 = vld [vmem:[#allocation33_spill] sm:$0xff] }
0x162e   :  { %3866 = vst [vmem:[#allocation2 + $0x198] sm:$0xff] %v9508_v41  ;;  %v9721_v48 = vpack.c.b16 %v4148_v60, %v4146_v3  ;;  %v3969_v20 = vpack.c.bf16 %v9482_v2, %v9478_v13  ;;  %v9726_v35 = vpack.c.b16 %v4149_v21, %v4147_v22  ;;  %v9728_v15 = vpack.c.b16 %v4150_v42, %v4148_v60  ;;  %v10691_v22 = vld [vmem:[#allocation53_spill] sm:$0xff] }
0x162f   :  { %3867 = vst [vmem:[#allocation2 + $0x1a0] sm:$0xff] %v9512_v54  ;;  %v9730_v4 = vpack.c.b16 %v4151_v37, %v4149_v21  ;;  %v4152_v0 = vunpack.c.l.b16 %v3968_v29  ;;  %v4153_v31 = vunpack.c.h.b16 %v3968_v29  ;;  %v3970_v7 = vpack.c.bf16 %v9491_v47, %v9487_v16 }
0x1630   :  { %3868 = vst [vmem:[#allocation2 + $0x1a8] sm:$0xff] %v9517_v52  ;;  %v4154_v63 = vunpack.c.l.b16 %v3969_v20  ;;  %v4155_v30 = vunpack.c.h.b16 %v3969_v20  ;;  %v3971_v2 = vpack.c.bf16 %v9500_v38, %v9495_v25  ;;  %v3972_v8 = vpack.c.bf16 %v9508_v41, %v9504_v56 }
0x1631   :  { %3869 = vst [vmem:[#allocation2 + $0x1b0] sm:$0xff] %v9521_v24  ;;  %v9736_v13 = vpack.c.b16 %v4152_v0, %v4150_v42  ;;  %v3973_v3 = vpack.c.bf16 %v9517_v52, %v9512_v54  ;;  %v9745_v60 = vpack.c.b16 %v4153_v31, %v4151_v37  ;;  %v4156_v47 = vunpack.c.l.b16 %v3970_v7  ;;  %v10694_v42 = vld [vmem:[#allocation47_spill] sm:$0xff] }
0x1632   :  { %3870 = vst [vmem:[#allocation2 + $0x1b8] sm:$0xff] %v9525_v32  ;;  %v9747_v21 = vpack.c.b16 %v4154_v63, %v4152_v0  ;;  %v9749_v16 = vpack.c.b16 %v4155_v30, %v4153_v31  ;;  %v4157_v29 = vunpack.c.h.b16 %v3970_v7  ;;  %v4158_v20 = vunpack.c.l.b16 %v3971_v2 }
0x1633   :  { %3871 = vst [vmem:[#allocation2 + $0x1c0] sm:$0xff] %v9529_v39  ;;  %v4159_v25 = vunpack.c.h.b16 %v3971_v2  ;;  %v4160_v38 = vunpack.c.l.b16 %v3972_v8  ;;  %v9753_v56 = vpack.c.b16 %v4156_v47, %v4154_v63  ;;  %v4161_v41 = vunpack.c.h.b16 %v3972_v8 }
0x1634   :  { %3872 = vst [vmem:[#allocation2 + $0x1c8] sm:$0xff] %v9534_v6  ;;  %v4162_v54 = vunpack.c.l.b16 %v3973_v3  ;;  %v4163_v52 = vunpack.c.h.b16 %v3973_v3  ;;  %v9756_v37 = vpack.c.b16 %v4157_v29, %v4155_v30  ;;  %v9758_v0 = vpack.c.b16 %v4158_v20, %v4156_v47 }
0x1635   :  { %3873 = vst [vmem:[#allocation2 + $0x1d0] sm:$0xff] %v9538_v46  ;;  %v9760_v31 = vpack.c.b16 %v4159_v25, %v4157_v29  ;;  %v9764_v7 = vpack.c.b16 %v4161_v41, %v4159_v25  ;;  %v3974_v63 = vpack.c.bf16 %v9525_v32, %v9521_v24  ;;  %v3975_v8 = vpack.c.bf16 %v9534_v6, %v9529_v39 }
0x1636   :  { %3874 = vst [vmem:[#allocation2 + $0x1d8] sm:$0xff] %v10688_v43  ;;  %v9766_v2 = vpack.c.b16 %v4162_v54, %v4160_v38  ;;  %v3976_v30 = vpack.c.bf16 %v10688_v43, %v9538_v46  ;;  %v3977_v3 = vpack.c.bf16 %v10690_v33, %v10689_v57  ;;  %v3978_v47 = vpack.c.bf16 %v10694_v42, %v10691_v22 }
0x1637   :  { %3875 = vst [vmem:[#allocation2 + $0x1e0] sm:$0xff] %v10689_v57  ;;  %v10695_v29 = vunpack.c.h.b16 %v9575_v58  ;;  %v3981_v24 = vpack.c.bf16 %v9594_v34, %v9590_v62  ;;  %v4166_v32 = vunpack.c.l.b16 %v3975_v8  ;;  %v4167_v39 = vunpack.c.h.b16 %v3975_v8 }
0x1638   :  { %3876 = vst [vmem:[#allocation2 + $0x1e8] sm:$0xff] %v10690_v33  ;;  %v4168_v6 = vunpack.c.l.b16 %v3976_v30  ;;  %v4169_v46 = vunpack.c.h.b16 %v3976_v30  ;;  %v4170_v33 = vunpack.c.l.b16 %v3977_v3 }
0x1639   :  { %3877 = vst [vmem:[#allocation2 + $0x1f0] sm:$0xff] %v10691_v22  ;;  %v4171_v22 = vunpack.c.h.b16 %v3977_v3  ;;  %v4239_v3 = vunpack.c.l.b16 %v3981_v24 }
0x163a   :  { %10692 = vst [vmem:[#allocation56_spill] sm:$0xff] %v9747_v21  ;;  %v9768_v21 = vpack.c.b16 %v4163_v52, %v4161_v41  ;;  %v4165_v41 = vunpack.c.h.b16 %v3974_v63  ;;  %v9801_v8 = vpack.c.b16 %v4170_v33, %v4168_v6 }
0x163b   :  { %10693 = vst [vmem:[#allocation57_spill] sm:$0xff] %v9749_v16  ;;  %v9762_v16 = vpack.c.b16 %v4160_v38, %v4158_v20  ;;  %v10696_v20 = vunpack.c.h.b16 %v9579_v45  ;;  %v4164_v38 = vunpack.c.l.b16 %v3974_v63  ;;  %4871 = vmatmul.bf16.gmra.mxu2 %v9618_v12  ;;  %4960 = vmatmul.bf16.gmra.mxu3 %v9622_v14  ;;  %v9796_v63 = vpack.c.b16 %v4168_v6, %v4166_v32 }
0x163c   :  { %3878 = vst [vmem:[#allocation2 + $0x1f8] sm:$0xff] %v10694_v42  ;;  %v9788_v57 = vpack.c.b16 %v4165_v41, %v4163_v52  ;;  %v9794_v42 = vpack.c.b16 %v4167_v39, %v4165_v41  ;;  %v9799_v52 = vpack.c.b16 %v4169_v46, %v4167_v39  ;;  %v9803_v30 = vpack.c.b16 %v4171_v22, %v4169_v46  ;;  %v10702_v46 = vld [vmem:[#allocation55_spill] sm:$0xff] }
0x163d   :  { %3879 = vst [vmem:[#allocation2 + $0x200] sm:$0xff] %v9590_v62  ;;  %v4246_v25 = vpack.c.b16 %v10696_v20, %v10695_v29  ;;  %v9786_v43 = vpack.c.b16 %v4164_v38, %v4162_v54  ;;  %v9792_v58 = vpack.c.b16 %v4166_v32, %v4164_v38  ;;  %v4172_v62 = vunpack.c.l.b16 %v3978_v47  ;;  %5049 = vmatmul.bf16.gmra.mxu0 %v9628_v44  ;;  %v6742_v54 = vld [vmem:[#allocation13 + $0x168] sm:$0xff] }
0x163e   :  { %3880 = vst [vmem:[#allocation2 + $0x208] sm:$0xff] %v9594_v34  ;;  %v6734_v34 = vld [vmem:[#allocation13 + $0x128] sm:$0xff]  ;;  %v4173_v12 = vunpack.c.h.b16 %v3978_v47  ;;  %v4240_v29 = vunpack.c.h.b16 %v3981_v24  ;;  %5300 = vmatpush.bf16.msrb.mxu3 %v6742_v54  ;;  %v10698_v41 = vunpack.c.l.b16 %v9583_v5  ;;  %v10699_v39 = vunpack.c.h.b16 %v9579_v45 }
0x163f   :  { %5138 = vmatmul.bf16.gmra.mxu1 %v4246_v25  ;;  %v9805_v14 = vpack.c.b16 %v4172_v62, %v4170_v33  ;;  %5211 = vmatpush.bf16.msra.mxu2 %v6734_v34  ;;  %v9809_v38 = vpack.c.b16 %v4239_v3, %v4172_v62  ;;  %v10697_v25 = vunpack.c.l.b16 %v9579_v45  ;;  %v10700_v47 = vunpack.c.h.b16 %v9583_v5  ;;  %v10701_v24 = vld [vmem:[#allocation54_spill] sm:$0xff]  ;;  %v6733_v33 = vld [vmem:[#allocation13 + $0x120] sm:$0xff]  ;;  %v6732_v45 = vld [vmem:[#allocation13 + $0x118] sm:$0xff] }
0x1640   :  { %v9807_v20 = vpack.c.b16 %v4173_v12, %v4171_v22  ;;  %v9811_v44 = vpack.c.b16 %v4240_v29, %v4173_v12  ;;  %v6741_v22 = vld [vmem:[#allocation13 + $0x160] sm:$0xff]  ;;  %v6740_v5 = vld [vmem:[#allocation13 + $0x158] sm:$0xff] }
0x1641   :  { %v4180_v32 = vpack.c.b16 %v10698_v41, %v10697_v25  ;;  %v4181_v6 = vpack.c.b16 %v10700_v47, %v10699_v39  ;;  %v6730_v39 = vld [vmem:[#allocation13 + $0x108] sm:$0xff] }
0x1642   :  { %5301 = vmatpush.bf16.msrb.mxu3 %v6741_v22  ;;  %v6738_v47 = vld [vmem:[#allocation13 + $0x148] sm:$0xff] }
0x1643   :  { %5212 = vmatpush.bf16.msra.mxu2 %v6733_v33 }
0x1646   :  { %5302 = vmatpush.bf16.msrb.mxu3 %v6740_v5 }
0x1647   :  { %5213 = vmatpush.bf16.msra.mxu2 %v6732_v45 }
0x164b   :  { %4876 = vmatmul.bf16.gmra.mxu2 %v4180_v32  ;;  %4965 = vmatmul.bf16.gmra.mxu3 %v4181_v6 }
0x164d   :  { %5054 = vmatmul.bf16.gmra.mxu0 %v10701_v24 }
0x164f   :  { %5143 = vmatmul.bf16.gmra.mxu1 %v9644_v40 }
0x165b   :  { %4881 = vmatmul.bf16.gmra.mxu2 %v9646_v10  ;;  %4970 = vmatmul.bf16.gmra.mxu3 %v10702_v46  ;;  %v9841_v10 = vld [vmem:[#allocation14] ss:$0 sm:$0xff] }
0x165d   :  { %5059 = vmatmul.bf16.gmra.mxu0 %v9655_v11  ;;  %v6739_v11 = vld [vmem:[#allocation13 + $0x150] sm:$0xff] }
0x165e   :  { %5303 = vmatpush.bf16.msrb.mxu3 %v6739_v11 }
0x165f   :  { %5148 = vmatmul.bf16.gmra.mxu1 %v9657_v26 }
0x1662   :  { %5304 = vmatpush.bf16.msrb.mxu3 %v6738_v47 }
0x166b   :  { %4886 = vmatmul.bf16.gmra.mxu2 %v9659_v59  ;;  %4975 = vmatmul.bf16.gmra.mxu3 %v9662_v51 }
0x166d   :  { %5064 = vmatmul.bf16.gmra.mxu0 %v9664_v27 }
0x166f   :  { %5153 = vmatmul.bf16.gmra.mxu1 %v9666_v1  ;;  %v6731_v1 = vld [vmem:[#allocation13 + $0x110] sm:$0xff] }
0x1670   :  { %5214 = vmatpush.bf16.msra.mxu2 %v6731_v1 }
0x1674   :  { %5215 = vmatpush.bf16.msra.mxu2 %v6730_v39 }
0x167b   :  { %4891 = vmatmul.bf16.gmra.mxu2 %v9668_v23  ;;  %4980 = vmatmul.bf16.gmra.mxu3 %v9671_v19 }
0x167d   :  { %5069 = vmatmul.bf16.gmra.mxu0 %v9691_v18 }
0x167f   :  { %5158 = vmatmul.bf16.gmra.mxu1 %v9693_v28 }
0x168b   :  { %4896 = vmatmul.bf16.gmra.mxu2 %v9695_v17  ;;  %4985 = vmatmul.bf16.gmra.mxu3 %v9697_v49 }
0x168d   :  { %5074 = vmatmul.bf16.gmra.mxu0 %v9702_v36 }
0x168f   :  { %5163 = vmatmul.bf16.gmra.mxu1 %v9704_v9 }
0x1699   :  { %v5129_v9 = vpop.f32.mrf.mxu1 }
0x169a   :  { %v5040_v40 = vpop.f32.mrf.mxu0 }
0x169b   :  { %4901 = vmatmul.bf16.gmra.mxu2 %v9706_v55  ;;  %4990 = vmatmul.bf16.gmra.mxu3 %v9711_v50 }
0x169d   :  { %5079 = vmatmul.bf16.gmra.mxu0 %v9717_v61 }
0x169e   :  { %v4862_v26 = vpop.f32.mrf.mxu2  ;;  %v4951_v59 = vpop.f32.mrf.mxu3 }
0x169f   :  { %5168 = vmatmul.bf16.gmra.mxu1 %v9719_v53  ;;  %v4863_v51 = vadd.f32 %v9841_v10, %v4862_v26 }
0x16a1   :  { %v4952_v27 = vadd.f32 %v4951_v59, %v4863_v51  ;;  %v5131_v12 = vpop.f32.mrf.mxu1 }
0x16a2   :  { %v5042_v23 = vpop.f32.mrf.mxu0 }
0x16a3   :  { %v5041_v19 = vadd.f32 %v5040_v40, %v4952_v27 }
0x16a5   :  { %v9852_v3 = vadd.f32 %v5129_v9, %v5041_v19 }
0x16a6   :  { %v4864_v18 = vpop.f32.mrf.mxu2  ;;  %v4953_v28 = vpop.f32.mrf.mxu3 }
0x16a7   :  { %v4865_v17 = vadd.f32 %v9841_v10, %v4864_v18 }
0x16a9   :  { %v4954_v49 = vadd.f32 %v4953_v28, %v4865_v17  ;;  %v5134_v33 = vpop.f32.mrf.mxu1 }
0x16aa   :  { %v5045_v36 = vpop.f32.mrf.mxu0 }
0x16ab   :  { %v5043_v55 = vadd.f32 %v5042_v23, %v4954_v49  ;;  %4906 = vmatmul.bf16.gmra.mxu2 %v9721_v48  ;;  %4995 = vmatmul.bf16.gmra.mxu3 %v9726_v35 }
0x16ad   :  { %5084 = vmatmul.bf16.gmra.mxu0 %v9728_v15  ;;  %v10703_v15 = vld [vmem:[#allocation56_spill] sm:$0xff]  ;;  %v9859_v6 = vadd.f32 %v5131_v12, %v5043_v55 }
0x16ae   :  { %v4867_v50 = vpop.f32.mrf.mxu2  ;;  %v4956_v61 = vpop.f32.mrf.mxu3 }
0x16af   :  { %5173 = vmatmul.bf16.gmra.mxu1 %v9730_v4  ;;  %v4868_v53 = vadd.f32 %v9841_v10, %v4867_v50  ;;  %v10704_v4 = vld [vmem:[#allocation57_spill] sm:$0xff] }
0x16b1   :  { %v4957_v62 = vadd.f32 %v4956_v61, %v4868_v53  ;;  %v5136_v26 = vpop.f32.mrf.mxu1  ;;  %v6737_v53 = vld [vmem:[#allocation13 + $0x140] sm:$0xff] }
0x16b2   :  { %v5047_v34 = vpop.f32.mrf.mxu0  ;;  %5305 = vmatpush.bf16.msrb.mxu3 %v6737_v53 }
0x16b3   :  { %v5046_v54 = vadd.f32 %v5045_v36, %v4957_v62 }
0x16b5   :  { %v9863_v11 = vadd.f32 %v5134_v33, %v5046_v54 }
0x16b6   :  { %v4869_v29 = vpop.f32.mrf.mxu2  ;;  %v4958_v25 = vpop.f32.mrf.mxu3 }
0x16b7   :  { %v4870_v48 = vadd.f32 %v9841_v10, %v4869_v29 }
0x16b9   :  { %v4959_v41 = vadd.f32 %v4958_v25, %v4870_v48 }
0x16ba   :  { %v5050_v32 = vpop.f32.mrf.mxu0 }
0x16bb   :  { %v5048_v35 = vadd.f32 %v5047_v34, %v4959_v41  ;;  %4911 = vmatmul.bf16.gmra.mxu2 %v9736_v13  ;;  %5000 = vmatmul.bf16.gmra.mxu3 %v9745_v60 }
0x16bc   :  { %v5139_v49 = vpop.f32.mrf.mxu1 }
0x16bd   :  { %5089 = vmatmul.bf16.gmra.mxu0 %v10703_v15  ;;  %v9870_v18 = vadd.f32 %v5136_v26, %v5048_v35 }
0x16be   :  { %v4872_v24 = vpop.f32.mrf.mxu2  ;;  %v4961_v46 = vpop.f32.mrf.mxu3 }
0x16bf   :  { %5178 = vmatmul.bf16.gmra.mxu1 %v10704_v4  ;;  %v4873_v22 = vadd.f32 %v9841_v10, %v4872_v24 }
0x16c1   :  { %v4962_v45 = vadd.f32 %v4961_v46, %v4873_v22 }
0x16c2   :  { %v5052_v13 = vpop.f32.mrf.mxu0 }
0x16c3   :  { %v5051_v5 = vadd.f32 %v5050_v32, %v4962_v45 }
0x16c4   :  { %v5141_v62 = vpop.f32.mrf.mxu1 }
0x16c5   :  { %v9873_v61 = vadd.f32 %v5139_v49, %v5051_v5 }
0x16c6   :  { %v4874_v40 = vpop.f32.mrf.mxu2  ;;  %v4963_v60 = vpop.f32.mrf.mxu3 }
0x16c7   :  { %v4875_v1 = vadd.f32 %v9841_v10, %v4874_v40 }
0x16c9   :  { %v4964_v59 = vadd.f32 %v4963_v60, %v4875_v1  ;;  %v3984_v60 = vld [vmem:[#allocation2 + $0x30] sm:$0xff]  ;;  %v3985_v1 = vld [vmem:[#allocation2 + $0x38] sm:$0xff] }
0x16ca   :  { %v5055_v28 = vpop.f32.mrf.mxu0 }
0x16cb   :  { %v5053_v51 = vadd.f32 %v5052_v13, %v4964_v59  ;;  %4916 = vmatmul.bf16.gmra.mxu2 %v9753_v56  ;;  %5005 = vmatmul.bf16.gmra.mxu3 %v9756_v37 }
0x16cd   :  { %5094 = vmatmul.bf16.gmra.mxu0 %v9758_v0  ;;  %v9882_v25 = vadd.f32 %v5141_v62, %v5053_v51 }
0x16ce   :  { %v4877_v27 = vpop.f32.mrf.mxu2  ;;  %v4966_v23 = vpop.f32.mrf.mxu3 }
0x16cf   :  { %5183 = vmatmul.bf16.gmra.mxu1 %v9760_v31  ;;  %v4878_v19 = vadd.f32 %v9841_v10, %v4877_v27  ;;  %v6729_v31 = vld [vmem:[#allocation13 + $0x100] sm:$0xff]  ;;  %v4047_v27 = vpack.c.bf16 %v3985_v1, %v3984_v60 }
0x16d0   :  { %5216 = vmatpush.bf16.msra.mxu2 %v6729_v31 }
0x16d1   :  { %v4967_v17 = vadd.f32 %v4966_v23, %v4878_v19 }
0x16d2   :  { %v5057_v37 = vpop.f32.mrf.mxu0 }
0x16d3   :  { %v5056_v36 = vadd.f32 %v5055_v28, %v4967_v17 }
0x16d6   :  { %v4879_v9 = vpop.f32.mrf.mxu2  ;;  %v4968_v55 = vpop.f32.mrf.mxu3 }
0x16d7   :  { %v4880_v56 = vadd.f32 %v9841_v10, %v4879_v9  ;;  %v3986_v9 = vld [vmem:[#allocation2 + $0x40] sm:$0xff] }
0x16d9   :  { %v4969_v50 = vadd.f32 %v4968_v55, %v4880_v56 }
0x16db   :  { %v5058_v0 = vadd.f32 %v5057_v37, %v4969_v50  ;;  %4921 = vmatmul.bf16.gmra.mxu2 %v9762_v16  ;;  %5010 = vmatmul.bf16.gmra.mxu3 %v9764_v7  ;;  %v3987_v50 = vld [vmem:[#allocation2 + $0x48] sm:$0xff]  ;;  %v3988_v37 = vld [vmem:[#allocation2 + $0x50] sm:$0xff] }
0x16dc   :  { %v4048_v62 = vpack.c.bf16 %v3987_v50, %v3986_v9 }
0x16dd   :  { %5099 = vmatmul.bf16.gmra.mxu0 %v9766_v2  ;;  %v5144_v2 = vpop.f32.mrf.mxu1 }
0x16de   :  { %v4882_v34 = vpop.f32.mrf.mxu2  ;;  %v4971_v54 = vpop.f32.mrf.mxu3 }
0x16df   :  { %5188 = vmatmul.bf16.gmra.mxu1 %v9768_v21  ;;  %v4883_v12 = vadd.f32 %v9841_v10, %v4882_v34  ;;  %v9889_v21 = vadd.f32 %v5144_v2, %v5056_v36 }
0x16e1   :  { %v9880_v29 = vadd.f32 %v4971_v54, %v4883_v12  ;;  %v4341_v54 = vunpack.c.l.b16 %v4048_v62 }
0x16e5   :  { %v5146_v39 = vpop.f32.mrf.mxu1 }
0x16e6   :  { %v4884_v16 = vpop.f32.mrf.mxu2  ;;  %v4973_v48 = vpop.f32.mrf.mxu3  ;;  %v9896_v47 = vadd.f32 %v5146_v39, %v5058_v0  ;;  %v3989_v0 = vld [vmem:[#allocation2 + $0x58] sm:$0xff] }
0x16e7   :  { %v4885_v7 = vadd.f32 %v9841_v10, %v4884_v16  ;;  %v4049_v34 = vpack.c.bf16 %v3989_v0, %v3988_v37  ;;  %v4342_v16 = vunpack.c.h.b16 %v4048_v62 }
0x16e9   :  { %v9885_v41 = vadd.f32 %v4973_v48, %v4885_v7  ;;  %v4343_v12 = vunpack.c.l.b16 %v4049_v34  ;;  %v4344_v48 = vunpack.c.h.b16 %v4049_v34 }
0x16eb   :  { %4926 = vmatmul.bf16.gmra.mxu2 %v9786_v43  ;;  %5015 = vmatmul.bf16.gmra.mxu3 %v9788_v57  ;;  %v4404_v39 = vpack.c.b16 %v4344_v48, %v4342_v16 }
0x16ed   :  { %5104 = vmatmul.bf16.gmra.mxu0 %v9792_v58 }
0x16ee   :  { %v4887_v35 = vpop.f32.mrf.mxu2  ;;  %v4976_v32 = vpop.f32.mrf.mxu3 }
0x16ef   :  { %5193 = vmatmul.bf16.gmra.mxu1 %v9794_v42  ;;  %v4888_v15 = vadd.f32 %v9841_v10, %v4887_v35 }
0x16f1   :  { %v9894_v4 = vadd.f32 %v4976_v32, %v4888_v15  ;;  %v4403_v15 = vpack.c.b16 %v4343_v12, %v4341_v54 }
0x16f6   :  { %v4889_v24 = vpop.f32.mrf.mxu2  ;;  %v4978_v46 = vpop.f32.mrf.mxu3 }
0x16f7   :  { %v4890_v43 = vadd.f32 %v9841_v10, %v4889_v24  ;;  %v3990_v24 = vld [vmem:[#allocation2 + $0x60] sm:$0xff] }
0x16f9   :  { %v9899_v57 = vadd.f32 %v4978_v46, %v4890_v43 }
0x16fb   :  { %4931 = vmatmul.bf16.gmra.mxu2 %v9796_v63  ;;  %5020 = vmatmul.bf16.gmra.mxu3 %v9799_v52  ;;  %v3982_v63 = vld [vmem:[#allocation2 + $0x20] sm:$0xff] }
0x16fd   :  { %5109 = vmatmul.bf16.gmra.mxu0 %v9801_v8 }
0x16fe   :  { %v4892_v58 = vpop.f32.mrf.mxu2  ;;  %v4981_v42 = vpop.f32.mrf.mxu3 }
0x16ff   :  { %5198 = vmatmul.bf16.gmra.mxu1 %v9803_v30  ;;  %v4893_v33 = vadd.f32 %v9841_v10, %v4892_v58  ;;  %v3983_v30 = vld [vmem:[#allocation2 + $0x28] sm:$0xff] }
0x1700   :  { %v4046_v51 = vpack.c.bf16 %v3983_v30, %v3982_v63  ;;  %v3991_v58 = vld [vmem:[#allocation2 + $0x68] sm:$0xff] }
0x1701   :  { %v9906_v22 = vadd.f32 %v4981_v42, %v4893_v33  ;;  %v3992_v42 = vld [vmem:[#allocation2 + $0x70] sm:$0xff]  ;;  %v3993_v33 = vld [vmem:[#allocation2 + $0x78] sm:$0xff] }
0x1702   :  { %v4337_v23 = vunpack.c.l.b16 %v4046_v51  ;;  %v4338_v19 = vunpack.c.h.b16 %v4046_v51  ;;  %v4051_v63 = vpack.c.bf16 %v3993_v33, %v3992_v42 }
0x1704   :  { %v4348_v60 = vunpack.c.h.b16 %v4051_v63 }
0x1706   :  { %v4894_v45 = vpop.f32.mrf.mxu2  ;;  %v4983_v5 = vpop.f32.mrf.mxu3 }
0x1707   :  { %v4895_v13 = vadd.f32 %v9841_v10, %v4894_v45 }
0x1709   :  { %v9909_v40 = vadd.f32 %v4983_v5, %v4895_v13  ;;  %v4050_v13 = vpack.c.bf16 %v3991_v58, %v3990_v24  ;;  %v4001_v24 = vld [vmem:[#allocation2 + $0xb8] sm:$0xff] }
0x170b   :  { %4936 = vmatmul.bf16.gmra.mxu2 %v9805_v14  ;;  %5025 = vmatmul.bf16.gmra.mxu3 %v9807_v20  ;;  %v4339_v14 = vunpack.c.l.b16 %v4047_v27  ;;  %v4340_v20 = vunpack.c.h.b16 %v4047_v27  ;;  %v4346_v30 = vunpack.c.h.b16 %v4050_v13 }
0x170d   :  { %5114 = vmatmul.bf16.gmra.mxu0 %v9809_v38  ;;  %v4401_v49 = vpack.c.b16 %v4339_v14, %v4337_v23  ;;  %v4402_v36 = vpack.c.b16 %v4340_v20, %v4338_v19  ;;  %v4406_v14 = vpack.c.b16 %v4348_v60, %v4346_v30  ;;  %v3994_v19 = vld [vmem:[#allocation2 + $0x80] sm:$0xff] }
0x170e   :  { %v4897_v52 = vpop.f32.mrf.mxu2  ;;  %v4986_v8 = vpop.f32.mrf.mxu3 }
0x170f   :  { %5203 = vmatmul.bf16.gmra.mxu1 %v9811_v44  ;;  %v4898_v26 = vadd.f32 %v9841_v10, %v4897_v52  ;;  %v4345_v52 = vunpack.c.l.b16 %v4050_v13 }
0x1711   :  { %v9916_v59 = vadd.f32 %v4986_v8, %v4898_v26  ;;  %v4347_v8 = vunpack.c.l.b16 %v4051_v63 }
0x1713   :  { %v4405_v23 = vpack.c.b16 %v4347_v8, %v4345_v52 }
0x1716   :  { %v4899_v28 = vpop.f32.mrf.mxu2  ;;  %v4988_v38 = vpop.f32.mrf.mxu3 }
0x1717   :  { %v4900_v44 = vadd.f32 %v9841_v10, %v4899_v28 }
0x1719   :  { %v9919_v17 = vadd.f32 %v4988_v38, %v4900_v44  ;;  %v3995_v38 = vld [vmem:[#allocation2 + $0x88] sm:$0xff]  ;;  %v3996_v44 = vld [vmem:[#allocation2 + $0x90] sm:$0xff] }
0x171b   :  { %5217 = vmatmul.bf16.vlgmr.msra.gmra.mxu2 %v4401_v49  ;;  %5306 = vmatmul.bf16.vlgmr.msrb.gmra.mxu3 %v4402_v36  ;;  %v3997_v49 = vld [vmem:[#allocation2 + $0x98] sm:$0xff] }
0x171e   :  { %v4902_v55 = vpop.f32.mrf.mxu2  ;;  %v4991_v56 = vpop.f32.mrf.mxu3 }
0x171f   :  { %v4903_v31 = vadd.f32 %v9841_v10, %v4902_v55  ;;  %v4052_v55 = vpack.c.bf16 %v3995_v38, %v3994_v19  ;;  %v4003_v19 = vld [vmem:[#allocation2 + $0xc8] sm:$0xff] }
0x1721   :  { %v9922_v53 = vadd.f32 %v4991_v56, %v4903_v31  ;;  %v4053_v56 = vpack.c.bf16 %v3997_v49, %v3996_v44  ;;  %v4349_v50 = vunpack.c.l.b16 %v4052_v55  ;;  %v4350_v0 = vunpack.c.h.b16 %v4052_v55 }
0x1723   :  { %v4351_v37 = vunpack.c.l.b16 %v4053_v56  ;;  %v4352_v31 = vunpack.c.h.b16 %v4053_v56 }
0x1725   :  { %v4407_v16 = vpack.c.b16 %v4351_v37, %v4349_v50  ;;  %v4408_v48 = vpack.c.b16 %v4352_v31, %v4350_v0 }
0x1726   :  { %v4904_v7 = vpop.f32.mrf.mxu2  ;;  %v4993_v2 = vpop.f32.mrf.mxu3 }
0x1727   :  { %v4905_v35 = vadd.f32 %v9841_v10, %v4904_v7  ;;  %v3998_v7 = vld [vmem:[#allocation2 + $0xa0] sm:$0xff] }
0x1729   :  { %v9925_v32 = vadd.f32 %v4993_v2, %v4905_v35 }
0x172b   :  { %5222 = vmatmul.bf16.gmra.mxu2 %v4403_v15  ;;  %5311 = vmatmul.bf16.gmra.mxu3 %v4404_v39  ;;  %v3999_v15 = vld [vmem:[#allocation2 + $0xa8] sm:$0xff]  ;;  %v4000_v39 = vld [vmem:[#allocation2 + $0xb0] sm:$0xff] }
0x172c   :  { %v4054_v58 = vpack.c.bf16 %v3999_v15, %v3998_v7  ;;  %v4055_v42 = vpack.c.bf16 %v4001_v24, %v4000_v39  ;;  %v4008_v15 = vld [vmem:[#allocation2 + $0xf0] sm:$0xff]  ;;  %v4009_v39 = vld [vmem:[#allocation2 + $0xf8] sm:$0xff] }
0x172e   :  { %v4907_v46 = vpop.f32.mrf.mxu2  ;;  %v4996_v43 = vpop.f32.mrf.mxu3  ;;  %v4353_v33 = vunpack.c.l.b16 %v4054_v58  ;;  %v4354_v13 = vunpack.c.h.b16 %v4054_v58  ;;  %v4356_v63 = vunpack.c.h.b16 %v4055_v42 }
0x172f   :  { %v4908_v45 = vadd.f32 %v9841_v10, %v4907_v46 }
0x1731   :  { %v9928_v5 = vadd.f32 %v4996_v43, %v4908_v45  ;;  %v4355_v45 = vunpack.c.l.b16 %v4055_v42  ;;  %v4059_v42 = vpack.c.bf16 %v4009_v39, %v4008_v15 }
0x1736   :  { %v4909_v1 = vpop.f32.mrf.mxu2  ;;  %v4998_v26 = vpop.f32.mrf.mxu3 }
0x1737   :  { %v4910_v51 = vadd.f32 %v9841_v10, %v4909_v1  ;;  %v4409_v1 = vpack.c.b16 %v4355_v45, %v4353_v33  ;;  %v4363_v45 = vunpack.c.l.b16 %v4059_v42 }
0x1739   :  { %v9931_v27 = vadd.f32 %v4998_v26, %v4910_v51  ;;  %v4410_v26 = vpack.c.b16 %v4356_v63, %v4354_v13  ;;  %v4002_v51 = vld [vmem:[#allocation2 + $0xc0] sm:$0xff]  ;;  %v4364_v63 = vunpack.c.h.b16 %v4059_v42  ;;  %v4017_v42 = vld [vmem:[#allocation2 + $0x138] sm:$0xff] }
0x173a   :  { %v4056_v49 = vpack.c.bf16 %v4003_v19, %v4002_v51 }
0x173b   :  { %5227 = vmatmul.bf16.gmra.mxu2 %v4405_v23  ;;  %5316 = vmatmul.bf16.gmra.mxu3 %v4406_v14 }
0x173c   :  { %v4357_v55 = vunpack.c.l.b16 %v4056_v49  ;;  %v4358_v50 = vunpack.c.h.b16 %v4056_v49 }
0x173e   :  { %v4912_v20 = vpop.f32.mrf.mxu2  ;;  %v5001_v28 = vpop.f32.mrf.mxu3 }
0x173f   :  { %v4913_v36 = vadd.f32 %v9841_v10, %v4912_v20  ;;  %v4004_v20 = vld [vmem:[#allocation2 + $0xd0] sm:$0xff] }
0x1741   :  { %v9934_v9 = vadd.f32 %v5001_v28, %v4913_v36  ;;  %v4005_v28 = vld [vmem:[#allocation2 + $0xd8] sm:$0xff] }
0x1742   :  { %v4057_v36 = vpack.c.bf16 %v4005_v28, %v4004_v20  ;;  %v4011_v20 = vld [vmem:[#allocation2 + $0x108] sm:$0xff]  ;;  %v4012_v28 = vld [vmem:[#allocation2 + $0x110] sm:$0xff] }
0x1744   :  { %v4359_v56 = vunpack.c.l.b16 %v4057_v36  ;;  %v4360_v37 = vunpack.c.h.b16 %v4057_v36 }
0x1746   :  { %v4914_v62 = vpop.f32.mrf.mxu2  ;;  %v5003_v34 = vpop.f32.mrf.mxu3 }
0x1747   :  { %v4915_v54 = vadd.f32 %v9841_v10, %v4914_v62 }
0x1749   :  { %v9937_v12 = vadd.f32 %v5003_v34, %v4915_v54  ;;  %v4411_v54 = vpack.c.b16 %v4359_v56, %v4357_v55 }
0x174b   :  { %5232 = vmatmul.bf16.gmra.mxu2 %v4407_v16  ;;  %5321 = vmatmul.bf16.gmra.mxu3 %v4408_v48  ;;  %v4412_v16 = vpack.c.b16 %v4360_v37, %v4358_v50  ;;  %v4006_v48 = vld [vmem:[#allocation2 + $0xe0] sm:$0xff] }
0x174e   :  { %v4917_v2 = vpop.f32.mrf.mxu2  ;;  %v5006_v35 = vpop.f32.mrf.mxu3 }
0x174f   :  { %v4918_v46 = vadd.f32 %v9841_v10, %v4917_v2 }
0x1751   :  { %v9940_v43 = vadd.f32 %v5006_v35, %v4918_v46  ;;  %v4007_v35 = vld [vmem:[#allocation2 + $0xe8] sm:$0xff] }
0x1752   :  { %v4058_v58 = vpack.c.bf16 %v4007_v35, %v4006_v48  ;;  %v4014_v35 = vld [vmem:[#allocation2 + $0x120] sm:$0xff] }
0x1754   :  { %v4361_v33 = vunpack.c.l.b16 %v4058_v58  ;;  %v4362_v13 = vunpack.c.h.b16 %v4058_v58  ;;  %v4016_v58 = vld [vmem:[#allocation2 + $0x130] sm:$0xff] }
0x1756   :  { %v4919_v52 = vpop.f32.mrf.mxu2  ;;  %v5008_v8 = vpop.f32.mrf.mxu3  ;;  %v4414_v51 = vpack.c.b16 %v4364_v63, %v4362_v13  ;;  %v4063_v63 = vpack.c.bf16 %v4017_v42, %v4016_v58 }
0x1757   :  { %v4920_v30 = vadd.f32 %v9841_v10, %v4919_v52  ;;  %v9971_v58 = vpop.f32.mrf.mxu0 }
0x1759   :  { %v9943_v60 = vadd.f32 %v5008_v8, %v4920_v30 }
0x175b   :  { %5237 = vmatmul.bf16.gmra.mxu2 %v4409_v1  ;;  %5326 = vmatmul.bf16.gmra.mxu3 %v4410_v26  ;;  %v4413_v26 = vpack.c.b16 %v4363_v45, %v4361_v33 }
0x175e   :  { %v4922_v23 = vpop.f32.mrf.mxu2  ;;  %v5011_v14 = vpop.f32.mrf.mxu3 }
0x175f   :  { %v4923_v38 = vadd.f32 %v9841_v10, %v4922_v23  ;;  %v4010_v23 = vld [vmem:[#allocation2 + $0x100] sm:$0xff] }
0x1760   :  { %v4060_v55 = vpack.c.bf16 %v4011_v20, %v4010_v23 }
0x1761   :  { %v9946_v44 = vadd.f32 %v5011_v14, %v4923_v38  ;;  %v4013_v38 = vld [vmem:[#allocation2 + $0x118] sm:$0xff] }
0x1762   :  { %v4061_v56 = vpack.c.bf16 %v4013_v38, %v4012_v28  ;;  %v4365_v50 = vunpack.c.l.b16 %v4060_v55  ;;  %v4018_v38 = vld [vmem:[#allocation2 + $0x140] sm:$0xff] }
0x1764   :  { %v4367_v37 = vunpack.c.l.b16 %v4061_v56 }
0x1766   :  { %v4924_v0 = vpop.f32.mrf.mxu2  ;;  %v5013_v31 = vpop.f32.mrf.mxu3 }
0x1767   :  { %v4925_v62 = vadd.f32 %v9841_v10, %v4924_v0  ;;  %v4366_v0 = vunpack.c.h.b16 %v4060_v55 }
0x1769   :  { %v9949_v34 = vadd.f32 %v5013_v31, %v4925_v62  ;;  %v4368_v31 = vunpack.c.h.b16 %v4061_v56 }
0x176b   :  { %5242 = vmatmul.bf16.gmra.mxu2 %v4411_v54  ;;  %5331 = vmatmul.bf16.gmra.mxu3 %v4412_v16 }
0x176e   :  { %v4927_v7 = vpop.f32.mrf.mxu2  ;;  %v5016_v2 = vpop.f32.mrf.mxu3 }
0x176f   :  { %v4928_v24 = vadd.f32 %v9841_v10, %v4927_v7  ;;  %v4415_v7 = vpack.c.b16 %v4367_v37, %v4365_v50  ;;  %v4020_v50 = vld [vmem:[#allocation2 + $0x150] sm:$0xff]  ;;  %v4021_v37 = vld [vmem:[#allocation2 + $0x158] sm:$0xff] }
0x1771   :  { %v9952_v46 = vadd.f32 %v5016_v2, %v4928_v24  ;;  %v4416_v2 = vpack.c.b16 %v4368_v31, %v4366_v0  ;;  %v4015_v24 = vld [vmem:[#allocation2 + $0x128] sm:$0xff] }
0x1772   :  { %v4062_v13 = vpack.c.bf16 %v4015_v24, %v4014_v35 }
0x1776   :  { %v4929_v52 = vpop.f32.mrf.mxu2  ;;  %v5018_v8 = vpop.f32.mrf.mxu3 }
0x1777   :  { %v4930_v30 = vadd.f32 %v9841_v10, %v4929_v52  ;;  %v4369_v52 = vunpack.c.l.b16 %v4062_v13 }
0x1779   :  { %v9955_v1 = vadd.f32 %v5018_v8, %v4930_v30  ;;  %v4371_v8 = vunpack.c.l.b16 %v4063_v63  ;;  %v4370_v30 = vunpack.c.h.b16 %v4062_v13 }
0x177b   :  { %5247 = vmatmul.bf16.gmra.mxu2 %v4413_v26  ;;  %5336 = vmatmul.bf16.gmra.mxu3 %v4414_v51  ;;  %v4372_v26 = vunpack.c.h.b16 %v4063_v63  ;;  %v4417_v20 = vpack.c.b16 %v4371_v8, %v4369_v52  ;;  %v4022_v8 = vld [vmem:[#allocation2 + $0x160] sm:$0xff] }
0x177d   :  { %v4418_v28 = vpack.c.b16 %v4372_v26, %v4370_v30  ;;  %v4023_v30 = vld [vmem:[#allocation2 + $0x168] sm:$0xff]  ;;  %v9973_v26 = vpop.f32.mrf.mxu1 }
0x177e   :  { %v4932_v14 = vpop.f32.mrf.mxu2  ;;  %v5021_v19 = vpop.f32.mrf.mxu3 }
0x177f   :  { %v4933_v49 = vadd.f32 %v9841_v10, %v4932_v14 }
0x1781   :  { %v9958_v36 = vadd.f32 %v5021_v19, %v4933_v49  ;;  %v4019_v49 = vld [vmem:[#allocation2 + $0x148] sm:$0xff] }
0x1782   :  { %v4064_v31 = vpack.c.bf16 %v4019_v49, %v4018_v38 }
0x1786   :  { %v4934_v62 = vpop.f32.mrf.mxu2  ;;  %v5023_v54 = vpop.f32.mrf.mxu3 }
0x1787   :  { %v4935_v16 = vadd.f32 %v9841_v10, %v4934_v62 }
0x1789   :  { %v9961_v48 = vadd.f32 %v5023_v54, %v4935_v16  ;;  %v4065_v54 = vpack.c.bf16 %v4021_v37, %v4020_v50 }
0x178b   :  { %5252 = vmatmul.bf16.gmra.mxu2 %v4415_v7  ;;  %5341 = vmatmul.bf16.gmra.mxu3 %v4416_v2  ;;  %v4373_v7 = vunpack.c.l.b16 %v4064_v31  ;;  %v4374_v2 = vunpack.c.h.b16 %v4064_v31  ;;  %v4376_v35 = vunpack.c.h.b16 %v4065_v54 }
0x178d   :  { %v4420_v13 = vpack.c.b16 %v4376_v35, %v4374_v2  ;;  %v9981_v2 = vpop.f32.mrf.mxu1 }
0x178e   :  { %v4937_v15 = vpop.f32.mrf.mxu2  ;;  %v5026_v39 = vpop.f32.mrf.mxu3 }
0x178f   :  { %v4938_v33 = vadd.f32 %v9841_v10, %v4937_v15 }
0x1791   :  { %v9964_v45 = vadd.f32 %v5026_v39, %v4938_v33 }
0x1796   :  { %v4939_v51 = vpop.f32.mrf.mxu2  ;;  %v5028_v23 = vpop.f32.mrf.mxu3 }
0x1797   :  { %v4940_v14 = vadd.f32 %v9841_v10, %v4939_v51  ;;  %v4375_v10 = vunpack.c.l.b16 %v4065_v54  ;;  %v4024_v51 = vld [vmem:[#allocation2 + $0x170] sm:$0xff] }
0x1799   :  { %v9967_v19 = vadd.f32 %v5028_v23, %v4940_v14  ;;  %v4419_v33 = vpack.c.b16 %v4375_v10, %v4373_v7  ;;  %v4025_v23 = vld [vmem:[#allocation2 + $0x178] sm:$0xff] }
0x179a   :  { %v4067_v38 = vpack.c.bf16 %v4025_v23, %v4024_v51  ;;  %v4026_v51 = vld [vmem:[#allocation2 + $0x180] sm:$0xff]  ;;  %v4027_v23 = vld [vmem:[#allocation2 + $0x188] sm:$0xff] }
0x179b   :  { %5257 = vmatmul.bf16.gmra.mxu2 %v4417_v20  ;;  %5346 = vmatmul.bf16.gmra.mxu3 %v4418_v28  ;;  %v4066_v28 = vpack.c.bf16 %v4023_v30, %v4022_v8 }
0x179d   :  { %v4377_v37 = vunpack.c.l.b16 %v4066_v28  ;;  %v4378_v54 = vunpack.c.h.b16 %v4066_v28 }
0x179e   :  { %v5218_v55 = vpop.f32.mrf.mxu2  ;;  %v5307_v56 = vpop.f32.mrf.mxu3 }
0x179f   :  { %v5219_v0 = vadd.f32 %v5218_v55, %v9852_v3 }
0x17a1   :  { %v5308_v62 = vadd.f32 %v5307_v56, %v5219_v0  ;;  %v9976_v56 = vpop.f32.mrf.mxu0 }
0x17a3   :  { %v6581_v16 = vmul.f32 -1.442695, %v5308_v62  ;;  %v4379_v62 = vunpack.c.l.b16 %v4067_v38 }
0x17a5   :  { %6797 = vpow2.f32 %v6581_v16  ;;  %v4380_v16 = vunpack.c.h.b16 %v4067_v38 }
0x17a6   :  { %v5220_v15 = vpop.f32.mrf.mxu2  ;;  %v5309_v39 = vpop.f32.mrf.mxu3 }
0x17a7   :  { %v5221_v24 = vadd.f32 %v5220_v15, %v9859_v6 }
0x17a9   :  { %v5310_v42 = vadd.f32 %v5309_v39, %v5221_v24  ;;  %v4421_v24 = vpack.c.b16 %v4379_v62, %v4377_v37  ;;  %v4068_v62 = vpack.c.bf16 %v4027_v23, %v4026_v51 }
0x17ab   :  { %v6798_v63 = vpop.eup %6797  ;;  %v6582_v3 = vmul.f32 -1.442695, %v5310_v42  ;;  %5262 = vmatmul.bf16.gmra.mxu2 %v4419_v33  ;;  %5351 = vmatmul.bf16.gmra.mxu3 %v4420_v13  ;;  %v4422_v42 = vpack.c.b16 %v4380_v16, %v4378_v54 }
0x17ac   :  { %v5483_v52 = vadd.f32 1.0, %v6798_v63 }
0x17ad   :  { %6799 = vpow2.f32 %v6582_v3 }
0x17ae   :  { %6801 = vrcp.f32 %v5483_v52  ;;  %v5223_v14 = vpop.f32.mrf.mxu2  ;;  %v5312_v6 = vpop.f32.mrf.mxu3  ;;  %v5526_v39 = vand.u32 2147483648, %v5483_v52  ;;  %v5524_v13 = vand.u32 2147483647, %v5483_v52  ;;  %vm5520_vm9 = vweird.f32 %v5483_v52 }
0x17af   :  { %v5224_v20 = vadd.f32 %v5223_v14, %v9863_v11 }
0x17b0   :  { %vm5525_vm2 = vcmp.eq.f32.partialorder %v5524_v13, 8.507059e+37  ;;  %v4382_v13 = vunpack.c.h.b16 %v4068_v62 }
0x17b1   :  { %v5313_v49 = vadd.f32 %v5312_v6, %v5224_v20  ;;  %v5527_v6 = vor.u32 1.1754944e-38, %v5526_v39  ;;  %v4381_v39 = vunpack.c.l.b16 %v4068_v62 }
0x17b3   :  { %v6800_v55 = vpop.eup %6799  ;;  %v6583_v50 = vmul.f32 -1.442695, %v5313_v49  ;;  %v4028_v49 = vld [vmem:[#allocation2 + $0x190] sm:$0xff] }
0x17b4   :  { %v6802_v0 = vpop.eup %6801  ;;  %v9978_v31 = vadd.f32 1.0, %v6800_v55  ;;  %v4029_v55 = vld [vmem:[#allocation2 + $0x198] sm:$0xff] }
0x17b5   :  { %v5516_v7 = vmul.f32 %v6802_v0, %v5483_v52  ;;  %6803 = vpow2.f32 %v6583_v50  ;;  %vm5521_vm8 = vweird.f32 %v6802_v0 }
0x17b6   :  { %6805 = vrcp.f32 %v9978_v31  ;;  %v5225_v10 = vpop.f32.mrf.mxu2  ;;  %v5314_v11 = vpop.f32.mrf.mxu3  ;;  %vm5522_vm13 = vmor %vm5520_vm9, %vm5521_vm8  ;;  %vm5535_vm4 = vweird.f32 %v9978_v31 }
0x17b7   :  { %v5517_v35 = vsub.f32 1.0, %v5516_v7  ;;  %v5226_v15 = vadd.f32 %v5225_v10, %v9870_v18  ;;  %v9986_v18 = vpop.f32.mrf.mxu0  ;;  %v4069_v7 = vpack.c.bf16 %v4029_v55, %v4028_v49  ;;  %v9995_v10 = vpop.f32.mrf.mxu1 }
0x17b9   :  { %v5518_v33 = vmul.f32 %v6802_v0, %v5517_v35  ;;  %v5315_v63 = vadd.f32 %v5314_v11, %v5226_v15  ;;  %v5539_v35 = vand.u32 2147483647, %v9978_v31 }
0x17bb   :  { %v6804_v3 = vpop.eup %6803  ;;  %v5519_v8 = vadd.f32 %v6802_v0, %v5518_v33  ;;  %v6584_v30 = vmul.f32 -1.442695, %v5315_v63  ;;  %5267 = vmatmul.bf16.gmra.mxu2 %v4421_v24  ;;  %5356 = vmatmul.bf16.gmra.mxu3 %v4422_v42  ;;  %vm5540_vm12 = vcmp.eq.f32.partialorder %v5539_v35, 8.507059e+37  ;;  %v4030_v35 = vld [vmem:[#allocation2 + $0x1a0] sm:$0xff] }
0x17bc   :  { %v6806_v14 = vpop.eup %6805  ;;  %v9984_v20 = vadd.f32 1.0, %v6804_v3 }
0x17bd   :  { %v5523_v28 = vsel %vm5522_vm13, %v6802_v0, %v5519_v8  ;;  %v5531_v38 = vmul.f32 %v6806_v14, %v9978_v31  ;;  %6807 = vpow2.f32 %v6584_v30  ;;  %v5541_v0 = vand.u32 2147483648, %v9978_v31 }
0x17be   :  { %v5528_v52 = vsel %vm5525_vm2, %v5527_v6, %v5523_v28  ;;  %6809 = vrcp.f32 %v9984_v20  ;;  %v5228_v50 = vpop.f32.mrf.mxu2  ;;  %v5317_v37 = vpop.f32.mrf.mxu3  ;;  %vm5536_vm3 = vweird.f32 %v6806_v14  ;;  %v4383_v8 = vunpack.c.l.b16 %v4069_v7 }
0x17bf   :  { %5995 = vst [vmem:[%s10279_s12] sm:$0xff] %v5528_v52  ;;  %v5532_v54 = vsub.f32 1.0, %v5531_v38  ;;  %v5229_v16 = vadd.f32 %v5228_v50, %v9873_v61  ;;  %vm5537_vm5 = vmor %vm5535_vm4, %vm5536_vm3  ;;  %v5542_v61 = vor.u32 1.1754944e-38, %v5541_v0  ;;  %v4384_v30 = vunpack.c.h.b16 %v4069_v7  ;;  %v10003_v31 = vpop.f32.mrf.mxu0  ;;  %v10011_v0 = vpop.f32.mrf.mxu1 }
0x17c0   :  { %v4423_v52 = vpack.c.b16 %v4383_v8, %v4381_v39  ;;  %v5554_v62 = vand.u32 2147483647, %v9984_v20  ;;  %vm5550_vm15 = vweird.f32 %v9984_v20 }
0x17c1   :  { %v5533_v11 = vmul.f32 %v6806_v14, %v5532_v54  ;;  %v5318_v15 = vadd.f32 %v5317_v37, %v5229_v16  ;;  %v4424_v50 = vpack.c.b16 %v4384_v30, %v4382_v13  ;;  %v4032_v13 = vld [vmem:[#allocation2 + $0x1b0] sm:$0xff] }
0x17c2   :  { %vm5555_vm10 = vcmp.eq.f32.partialorder %v5554_v62, 8.507059e+37 }
0x17c3   :  { %v6808_v24 = vpop.eup %6807  ;;  %v5534_v42 = vadd.f32 %v6806_v14, %v5533_v11  ;;  %v6585_v33 = vmul.f32 -1.442695, %v5318_v15 }
0x17c4   :  { %v6810_v63 = vpop.eup %6809  ;;  %v9999_v3 = vadd.f32 1.0, %v6808_v24 }
0x17c5   :  { %v5538_v51 = vsel %vm5537_vm5, %v6806_v14, %v5534_v42  ;;  %v5546_v23 = vmul.f32 %v6810_v63, %v9984_v20  ;;  %6811 = vpow2.f32 %v6585_v33  ;;  %v5556_v14 = vand.u32 2147483648, %v9984_v20 }
0x17c6   :  { %v5543_v6 = vsel %vm5540_vm12, %v5542_v61, %v5538_v51  ;;  %6813 = vrcp.f32 %v9999_v3  ;;  %v5230_v28 = vpop.f32.mrf.mxu2  ;;  %v5319_v38 = vpop.f32.mrf.mxu3  ;;  %vm5551_vm14 = vweird.f32 %v6810_v63  ;;  %v4033_v61 = vld [vmem:[#allocation2 + $0x1b8] sm:$0xff]  ;;  %vm5565_vm6 = vweird.f32 %v9999_v3 }
0x17c7   :  { %5996 = vst [vmem:[%s10279_s12 + $0x8] sm:$0xff] %v5543_v6  ;;  %v5547_v49 = vsub.f32 1.0, %v5546_v23  ;;  %v5231_v55 = vadd.f32 %v5230_v28, %v9882_v25  ;;  %v4031_v25 = vld [vmem:[#allocation2 + $0x1a8] sm:$0xff]  ;;  %vm5552_vm1 = vmor %vm5550_vm15, %vm5551_vm14  ;;  %v5557_v39 = vor.u32 1.1754944e-38, %v5556_v14  ;;  %v4071_v28 = vpack.c.bf16 %v4033_v61, %v4032_v13 }
0x17c8   :  { %v4070_v51 = vpack.c.bf16 %v4031_v25, %v4030_v35  ;;  %v10029_v25 = vpop.f32.mrf.mxu1 }
0x17c9   :  { %v5548_v37 = vmul.f32 %v6810_v63, %v5547_v49  ;;  %v5320_v54 = vadd.f32 %v5319_v38, %v5231_v55  ;;  %v10023_v38 = vpop.f32.mrf.mxu0  ;;  %v5569_v55 = vand.u32 2147483647, %v9999_v3  ;;  %v4388_v35 = vunpack.c.h.b16 %v4071_v28 }
0x17cb   :  { %v6812_v16 = vpop.eup %6811  ;;  %v5549_v7 = vadd.f32 %v6810_v63, %v5548_v37  ;;  %v6586_v11 = vmul.f32 -1.442695, %v5320_v54  ;;  %5272 = vmatmul.bf16.gmra.mxu2 %v4423_v52  ;;  %5361 = vmatmul.bf16.gmra.mxu3 %v4424_v50  ;;  %v4385_v52 = vunpack.c.l.b16 %v4070_v51  ;;  %v4386_v54 = vunpack.c.h.b16 %v4070_v51 }
0x17cc   :  { %v6814_v15 = vpop.eup %6813  ;;  %v10014_v24 = vadd.f32 1.0, %v6812_v16  ;;  %vm5570_vm0 = vcmp.eq.f32.partialorder %v5569_v55, 8.507059e+37 }
0x17cd   :  { %v5553_v42 = vsel %vm5552_vm1, %v6810_v63, %v5549_v7  ;;  %v5561_v33 = vmul.f32 %v6814_v15, %v9999_v3  ;;  %6815 = vpow2.f32 %v6586_v11  ;;  %v5571_v63 = vand.u32 2147483648, %v9999_v3 }
0x17ce   :  { %v5558_v8 = vsel %vm5555_vm10, %v5557_v39, %v5553_v42  ;;  %6817 = vrcp.f32 %v10014_v24  ;;  %v5233_v20 = vpop.f32.mrf.mxu2  ;;  %v5322_v30 = vpop.f32.mrf.mxu3  ;;  %vm5566_vm11 = vweird.f32 %v6814_v15  ;;  %v4387_v11 = vunpack.c.l.b16 %v4071_v28 }
0x17cf   :  { %5997 = vst [vmem:[%s10279_s12 + $0x10] sm:$0xff] %v5558_v8  ;;  %v5562_v23 = vsub.f32 1.0, %v5561_v33  ;;  %v5234_v6 = vadd.f32 %v5233_v20, %v9889_v21  ;;  %vm5567_vm7 = vmor %vm5565_vm6, %vm5566_vm11  ;;  %v5572_v21 = vor.u32 1.1754944e-38, %v5571_v63  ;;  %v5061_v20 = vadd.f32 %v9971_v58, %v9880_v29  ;;  %v4035_v29 = vld [vmem:[#allocation2 + $0x1c8] sm:$0xff] }
0x17d0   :  { %v4426_v51 = vpack.c.b16 %v4388_v35, %v4386_v54  ;;  %vm5580_vm9 = vweird.f32 %v10014_v24  ;;  %v4037_v54 = vld [vmem:[#allocation2 + $0x1d8] sm:$0xff] }
0x17d1   :  { %v5563_v49 = vmul.f32 %v6814_v15, %v5562_v23  ;;  %v5323_v14 = vadd.f32 %v5322_v30, %v5234_v6  ;;  %v4425_v30 = vpack.c.b16 %v4387_v11, %v4385_v52  ;;  %v5584_v6 = vand.u32 2147483647, %v10014_v24 }
0x17d3   :  { %v6816_v50 = vpop.eup %6815  ;;  %v5564_v37 = vadd.f32 %v6814_v15, %v5563_v49  ;;  %v6587_v62 = vmul.f32 -1.442695, %v5323_v14  ;;  %v10041_v49 = vpop.f32.mrf.mxu0  ;;  %vm5585_vm2 = vcmp.eq.f32.partialorder %v5584_v6, 8.507059e+37 }
0x17d4   :  { %v6818_v16 = vpop.eup %6817  ;;  %v10027_v7 = vadd.f32 1.0, %v6816_v50 }
0x17d5   :  { %v5568_v39 = vsel %vm5567_vm7, %v6814_v15, %v5564_v37  ;;  %v5576_v42 = vmul.f32 %v6818_v16, %v10014_v24  ;;  %6819 = vpow2.f32 %v6587_v62  ;;  %v5586_v15 = vand.u32 2147483648, %v10014_v24  ;;  %v4036_v62 = vld [vmem:[#allocation2 + $0x1d0] sm:$0xff] }
0x17d6   :  { %v5573_v33 = vsel %vm5570_vm0, %v5572_v21, %v5568_v39  ;;  %6821 = vrcp.f32 %v10027_v7  ;;  %v5235_v3 = vpop.f32.mrf.mxu2  ;;  %v5324_v13 = vpop.f32.mrf.mxu3  ;;  %vm5581_vm8 = vweird.f32 %v6818_v16  ;;  %v5150_v37 = vadd.f32 %v9973_v26, %v5061_v20 }
0x17d7   :  { %5998 = vst [vmem:[%s10279_s12 + $0x18] sm:$0xff] %v5573_v33  ;;  %v5577_v61 = vsub.f32 1.0, %v5576_v42  ;;  %v5236_v8 = vadd.f32 %v5235_v3, %v9896_v47  ;;  %v4034_v47 = vld [vmem:[#allocation2 + $0x1c0] sm:$0xff]  ;;  %vm5582_vm13 = vmor %vm5580_vm9, %vm5581_vm8  ;;  %v5587_v52 = vor.u32 1.1754944e-38, %v5586_v15  ;;  %v10049_v33 = vpop.f32.mrf.mxu1  ;;  %v5599_v20 = vand.u32 2147483647, %v10027_v7 }
0x17d8   :  { %v4072_v42 = vpack.c.bf16 %v4035_v29, %v4034_v47  ;;  %vm5595_vm4 = vweird.f32 %v10027_v7 }
0x17d9   :  { %v5578_v23 = vmul.f32 %v6818_v16, %v5577_v61  ;;  %v5325_v63 = vadd.f32 %v5324_v13, %v5236_v8  ;;  %v4073_v13 = vpack.c.bf16 %v4037_v54, %v4036_v62  ;;  %v5601_v61 = vand.u32 2147483648, %v10027_v7 }
0x17da   :  { %vm5600_vm12 = vcmp.eq.f32.partialorder %v5599_v20, 8.507059e+37 }
0x17db   :  { %v6820_v28 = vpop.eup %6819  ;;  %v5579_v55 = vadd.f32 %v6818_v16, %v5578_v23  ;;  %v6588_v14 = vmul.f32 -1.442695, %v5325_v63  ;;  %5277 = vmatmul.bf16.gmra.mxu2 %v4425_v30  ;;  %5366 = vmatmul.bf16.gmra.mxu3 %v4426_v51  ;;  %v4389_v30 = vunpack.c.l.b16 %v4072_v42  ;;  %v4390_v51 = vunpack.c.h.b16 %v4072_v42  ;;  %v10062_v29 = vpop.f32.mrf.mxu0 }
0x17dc   :  { %v6822_v58 = vpop.eup %6821  ;;  %v10044_v50 = vadd.f32 1.0, %v6820_v28  ;;  %v4391_v28 = vunpack.c.l.b16 %v4073_v13 }
0x17dd   :  { %v5583_v21 = vsel %vm5582_vm13, %v6818_v16, %v5579_v55  ;;  %v5591_v11 = vmul.f32 %v6822_v58, %v10027_v7  ;;  %6823 = vpow2.f32 %v6588_v14  ;;  %v5063_v16 = vadd.f32 %v9976_v56, %v9885_v41 }
0x17de   :  { %v5588_v24 = vsel %vm5585_vm2, %v5587_v52, %v5583_v21  ;;  %6825 = vrcp.f32 %v10044_v50  ;;  %v5238_v35 = vpop.f32.mrf.mxu2  ;;  %v5327_v39 = vpop.f32.mrf.mxu3  ;;  %vm5596_vm3 = vweird.f32 %v6822_v58  ;;  %v5602_v14 = vor.u32 1.1754944e-38, %v5601_v61 }
0x17df   :  { %5999 = vst [vmem:[%s10279_s12 + $0x20] sm:$0xff] %v5588_v24  ;;  %v5592_v26 = vsub.f32 1.0, %v5591_v11  ;;  %v5239_v3 = vadd.f32 %v5238_v35, %v5150_v37  ;;  %vm5597_vm5 = vmor %vm5595_vm4, %vm5596_vm3  ;;  %v5152_v41 = vadd.f32 %v9981_v2, %v5063_v16  ;;  %v4392_v56 = vunpack.c.h.b16 %v4073_v13 }
0x17e0   :  { %v5066_v2 = vadd.f32 %v9986_v18, %v9894_v4  ;;  %v4427_v24 = vpack.c.b16 %v4391_v28, %v4389_v30  ;;  %vm5610_vm15 = vweird.f32 %v10044_v50  ;;  %v4039_v4 = vld [vmem:[#allocation2 + $0x1e8] sm:$0xff] }
0x17e1   :  { %v5593_v8 = vmul.f32 %v6822_v58, %v5592_v26  ;;  %v5328_v15 = vadd.f32 %v5327_v39, %v5239_v3  ;;  %v4428_v35 = vpack.c.b16 %v4392_v56, %v4390_v51  ;;  %v10072_v39 = vpop.f32.mrf.mxu1  ;;  %v5614_v26 = vand.u32 2147483647, %v10044_v50  ;;  %v4040_v51 = vld [vmem:[#allocation2 + $0x1f0] sm:$0xff] }
0x17e2   :  { %v5155_v30 = vadd.f32 %v9995_v10, %v5066_v2 }
0x17e3   :  { %v6824_v23 = vpop.eup %6823  ;;  %v5594_v6 = vadd.f32 %v6822_v58, %v5593_v8  ;;  %v6589_v63 = vmul.f32 -1.442695, %v5328_v15  ;;  %v4038_v8 = vld [vmem:[#allocation2 + $0x1e0] sm:$0xff]  ;;  %vm5615_vm10 = vcmp.eq.f32.partialorder %v5614_v26, 8.507059e+37  ;;  %v10081_v56 = vpop.f32.mrf.mxu0 }
0x17e4   :  { %v6826_v55 = vpop.eup %6825  ;;  %v10059_v47 = vadd.f32 1.0, %v6824_v23  ;;  %v4041_v23 = vld [vmem:[#allocation2 + $0x1f8] sm:$0xff] }
0x17e5   :  { %v5598_v52 = vsel %vm5597_vm5, %v6822_v58, %v5594_v6  ;;  %v5606_v37 = vmul.f32 %v6826_v55, %v10044_v50  ;;  %6827 = vpow2.f32 %v6589_v63  ;;  %v5616_v58 = vand.u32 2147483648, %v10044_v50 }
0x17e6   :  { %v5603_v62 = vsel %vm5600_vm12, %v5602_v14, %v5598_v52  ;;  %6829 = vrcp.f32 %v10059_v47  ;;  %v5240_v7 = vpop.f32.mrf.mxu2  ;;  %v5329_v54 = vpop.f32.mrf.mxu3  ;;  %vm5611_vm14 = vweird.f32 %v6826_v55  ;;  %vm5625_vm6 = vweird.f32 %v10059_v47 }
0x17e7   :  { %6000 = vst [vmem:[%s10279_s12 + $0x28] sm:$0xff] %v5603_v62  ;;  %v5607_v21 = vsub.f32 1.0, %v5606_v37  ;;  %v5241_v11 = vadd.f32 %v5240_v7, %v5152_v41  ;;  %vm5612_vm1 = vmor %vm5610_vm15, %vm5611_vm14  ;;  %v5617_v20 = vor.u32 1.1754944e-38, %v5616_v58  ;;  %v4074_v41 = vpack.c.bf16 %v4039_v4, %v4038_v8 }
0x17e8   :  { %v4075_v37 = vpack.c.bf16 %v4041_v23, %v4040_v51  ;;  %v5631_v62 = vand.u32 2147483648, %v10059_v47 }
0x17e9   :  { %v5608_v42 = vmul.f32 %v6826_v55, %v5607_v21  ;;  %v5330_v3 = vadd.f32 %v5329_v54, %v5241_v11  ;;  %v5629_v54 = vand.u32 2147483647, %v10059_v47  ;;  %v4393_v11 = vunpack.c.l.b16 %v4074_v41 }
0x17ea   :  { %v4394_v2 = vunpack.c.h.b16 %v4074_v41  ;;  %v4395_v26 = vunpack.c.l.b16 %v4075_v37 }
0x17eb   :  { %v6828_v13 = vpop.eup %6827  ;;  %v5609_v16 = vadd.f32 %v6826_v55, %v5608_v42  ;;  %v6590_v61 = vmul.f32 -1.442695, %v5330_v3  ;;  %5282 = vmatmul.bf16.gmra.mxu2 %v4427_v24  ;;  %5371 = vmatmul.bf16.gmra.mxu3 %v4428_v35  ;;  %v10090_v24 = vpop.f32.mrf.mxu1  ;;  %vm5630_vm0 = vcmp.eq.f32.partialorder %v5629_v54, 8.507059e+37 }
0x17ec   :  { %v6830_v18 = vpop.eup %6829  ;;  %v10076_v15 = vadd.f32 1.0, %v6828_v13  ;;  %v4429_v23 = vpack.c.b16 %v4395_v26, %v4393_v11 }
0x17ed   :  { %v5613_v6 = vsel %vm5612_vm1, %v6826_v55, %v5609_v16  ;;  %v5621_v63 = vmul.f32 %v6830_v18, %v10059_v47  ;;  %6831 = vpow2.f32 %v6590_v61  ;;  %v5068_v55 = vadd.f32 %v10003_v31, %v9899_v57 }
0x17ee   :  { %v5618_v50 = vsel %vm5615_vm10, %v5617_v20, %v5613_v6  ;;  %6833 = vrcp.f32 %v10076_v15  ;;  %v5243_v28 = vpop.f32.mrf.mxu2  ;;  %v5332_v14 = vpop.f32.mrf.mxu3  ;;  %vm5626_vm11 = vweird.f32 %v6830_v18  ;;  %v5632_v57 = vor.u32 1.1754944e-38, %v5631_v62 }
0x17ef   :  { %6001 = vst [vmem:[%s10279_s12 + $0x30] sm:$0xff] %v5618_v50  ;;  %v5622_v10 = vsub.f32 1.0, %v5621_v63  ;;  %v5244_v52 = vadd.f32 %v5243_v28, %v5155_v30  ;;  %vm5627_vm7 = vmor %vm5625_vm6, %vm5626_vm11  ;;  %v5157_v13 = vadd.f32 %v10011_v0, %v5068_v55  ;;  %v4396_v16 = vunpack.c.h.b16 %v4075_v37  ;;  %v10104_v63 = vpop.f32.mrf.mxu0  ;;  %v4042_v37 = vld [vmem:[#allocation2 + $0x200] sm:$0xff] }
0x17f0   :  { %v5071_v0 = vadd.f32 %v10023_v38, %v9906_v22  ;;  %v5644_v28 = vand.u32 2147483647, %v10076_v15  ;;  %vm5640_vm9 = vweird.f32 %v10076_v15  ;;  %v4043_v22 = vld [vmem:[#allocation2 + $0x208] sm:$0xff] }
0x17f1   :  { %v5623_v7 = vmul.f32 %v6830_v18, %v5622_v10  ;;  %v5333_v21 = vadd.f32 %v5332_v14, %v5244_v52  ;;  %v4430_v6 = vpack.c.b16 %v4396_v16, %v4394_v2 }
0x17f2   :  { %vm5645_vm2 = vcmp.eq.f32.partialorder %v5644_v28, 8.507059e+37 }
0x17f3   :  { %v6832_v58 = vpop.eup %6831  ;;  %v5624_v35 = vadd.f32 %v6830_v18, %v5623_v7  ;;  %v6591_v42 = vmul.f32 -1.442695, %v5333_v21  ;;  %v5160_v7 = vadd.f32 %v10029_v25, %v5071_v0  ;;  %v10111_v54 = vpop.f32.mrf.mxu1  ;;  %v6928_v25 = vld [vmem:[#allocation2 + $0x8] sm:$0xff] }
0x17f4   :  { %v6834_v3 = vpop.eup %6833  ;;  %v10093_v31 = vadd.f32 1.0, %v6832_v58 }
0x17f5   :  { %v5628_v61 = vsel %vm5627_vm7, %v6830_v18, %v5624_v35  ;;  %v5636_v8 = vmul.f32 %v6834_v3, %v10076_v15  ;;  %6835 = vpow2.f32 %v6591_v42  ;;  %v5646_v18 = vand.u32 2147483648, %v10076_v15 }
0x17f6   :  { %v5633_v4 = vsel %vm5630_vm0, %v5632_v57, %v5628_v61  ;;  %6837 = vrcp.f32 %v10093_v31  ;;  %v5245_v20 = vpop.f32.mrf.mxu2  ;;  %v5334_v47 = vpop.f32.mrf.mxu3  ;;  %vm5641_vm8 = vweird.f32 %v6834_v3  ;;  %v4076_v35 = vpack.c.bf16 %v4043_v22, %v4042_v37 }
0x17f7   :  { %6002 = vst [vmem:[%s10279_s12 + $0x38] sm:$0xff] %v5633_v4  ;;  %v5637_v30 = vsub.f32 1.0, %v5636_v8  ;;  %v5246_v51 = vadd.f32 %v5245_v20, %v5157_v13  ;;  %vm5642_vm13 = vmor %vm5640_vm9, %vm5641_vm8  ;;  %v5647_v55 = vor.u32 1.1754944e-38, %v5646_v18  ;;  %v4077_v57 = vpack.c.bf16 %v6928_v25, %v6928_v25 }
0x17f8   :  { %v5661_v13 = vand.u32 2147483648, %v10093_v31  ;;  %v5659_v61 = vand.u32 2147483647, %v10093_v31  ;;  %v4397_v4 = vunpack.c.l.b16 %v4076_v35  ;;  %v4398_v20 = vunpack.c.h.b16 %v4076_v35 }
0x17f9   :  { %v5638_v50 = vmul.f32 %v6834_v3, %v5637_v30  ;;  %v5335_v14 = vadd.f32 %v5334_v47, %v5246_v51  ;;  %v10122_v30 = vpop.f32.mrf.mxu0  ;;  %vm5655_vm4 = vweird.f32 %v10093_v31  ;;  %v4399_v18 = vunpack.c.l.b16 %v4077_v57 }
0x17fa   :  { %vm5660_vm12 = vcmp.eq.f32.partialorder %v5659_v61, 8.507059e+37 }
0x17fb   :  { %v6836_v41 = vpop.eup %6835  ;;  %v5639_v10 = vadd.f32 %v6834_v3, %v5638_v50  ;;  %v6592_v52 = vmul.f32 -1.442695, %v5335_v14  ;;  %5287 = vmatmul.bf16.gmra.mxu2 %v4429_v23  ;;  %5376 = vmatmul.bf16.gmra.mxu3 %v4430_v6  ;;  %v4400_v50 = vunpack.c.h.b16 %v4077_v57 }
0x17fc   :  { %v6838_v38 = vpop.eup %6837  ;;  %v10108_v62 = vadd.f32 1.0, %v6836_v41 }
0x17fd   :  { %v5643_v21 = vsel %vm5642_vm13, %v6834_v3, %v5639_v10  ;;  %v5651_v11 = vmul.f32 %v6838_v38, %v10093_v31  ;;  %6839 = vpow2.f32 %v6592_v52  ;;  %v5073_v3 = vadd.f32 %v10041_v49, %v9909_v40  ;;  %v10130_v52 = vpop.f32.mrf.mxu1 }
0x17fe   :  { %v5648_v15 = vsel %vm5645_vm2, %v5647_v55, %v5643_v21  ;;  %6841 = vrcp.f32 %v10108_v62  ;;  %v5248_v2 = vpop.f32.mrf.mxu2  ;;  %v5337_v58 = vpop.f32.mrf.mxu3  ;;  %vm5656_vm3 = vweird.f32 %v6838_v38  ;;  %v5662_v40 = vor.u32 1.1754944e-38, %v5661_v13 }
0x17ff   :  { %6003 = vst [vmem:[%s10279_s12 + $0x40] sm:$0xff] %v5648_v15  ;;  %v5652_v42 = vsub.f32 1.0, %v5651_v11  ;;  %v5249_v26 = vadd.f32 %v5248_v2, %v5160_v7  ;;  %vm5657_vm5 = vmor %vm5655_vm4, %vm5656_vm3  ;;  %v5162_v6 = vadd.f32 %v10049_v33, %v5073_v3  ;;  %v5076_v33 = vadd.f32 %v10062_v29, %v9916_v59 }
0x1800   :  { %v4431_v55 = vpack.c.b16 %v4399_v18, %v4397_v4  ;;  %v4432_v7 = vpack.c.b16 %v4400_v50, %v4398_v20  ;;  %v5674_v11 = vand.u32 2147483647, %v10108_v62  ;;  %vm5670_vm15 = vweird.f32 %v10108_v62 }
0x1801   :  { %v5653_v16 = vmul.f32 %v6838_v38, %v5652_v42  ;;  %v5338_v8 = vadd.f32 %v5337_v58, %v5249_v26  ;;  %v5165_v29 = vadd.f32 %v10072_v39, %v5076_v33  ;;  %v10141_v25 = vpop.f32.mrf.mxu0  ;;  %v5078_v39 = vadd.f32 %v10081_v56, %v9919_v17 }
0x1802   :  { %vm5675_vm10 = vcmp.eq.f32.partialorder %v5674_v11, 8.507059e+37  ;;  %v5081_v33 = vadd.f32 %v10104_v63, %v9922_v53 }
0x1803   :  { %v6840_v47 = vpop.eup %6839  ;;  %v5654_v51 = vadd.f32 %v6838_v38, %v5653_v16  ;;  %v6593_v0 = vmul.f32 -1.442695, %v5338_v8  ;;  %v5167_v17 = vadd.f32 %v10090_v24, %v5078_v39 }
0x1804   :  { %v6842_v23 = vpop.eup %6841  ;;  %v10125_v49 = vadd.f32 1.0, %v6840_v47 }
0x1805   :  { %v5658_v28 = vsel %vm5657_vm5, %v6838_v38, %v5654_v51  ;;  %v5666_v14 = vmul.f32 %v6842_v23, %v10108_v62  ;;  %6843 = vpow2.f32 %v6593_v0  ;;  %v5676_v38 = vand.u32 2147483648, %v10108_v62  ;;  %v10150_v20 = vpop.f32.mrf.mxu1 }
0x1806   :  { %v5663_v41 = vsel %vm5660_vm12, %v5662_v40, %v5658_v28  ;;  %6845 = vrcp.f32 %v10125_v49  ;;  %v5250_v10 = vpop.f32.mrf.mxu2  ;;  %v5339_v31 = vpop.f32.mrf.mxu3  ;;  %vm5671_vm14 = vweird.f32 %v6842_v23  ;;  %v5691_v4 = vand.u32 2147483648, %v10125_v49 }
0x1807   :  { %6004 = vst [vmem:[%s10279_s12 + $0x48] sm:$0xff] %v5663_v41  ;;  %v5667_v37 = vsub.f32 1.0, %v5666_v14  ;;  %v5251_v22 = vadd.f32 %v5250_v10, %v5162_v6  ;;  %vm5672_vm1 = vmor %vm5670_vm15, %vm5671_vm14  ;;  %v5677_v26 = vor.u32 1.1754944e-38, %v5676_v38  ;;  %v5689_v51 = vand.u32 2147483647, %v10125_v49 }
0x1808   :  { %vm5685_vm6 = vweird.f32 %v10125_v49  ;;  %v5692_v50 = vor.u32 1.1754944e-38, %v5691_v4 }
0x1809   :  { %v5668_v21 = vmul.f32 %v6842_v23, %v5667_v37  ;;  %v5340_v15 = vadd.f32 %v5339_v31, %v5251_v22  ;;  %vm5690_vm0 = vcmp.eq.f32.partialorder %v5689_v51, 8.507059e+37  ;;  %v10155_v37 = vpop.f32.mrf.mxu0 }
0x180b   :  { %v6844_v2 = vpop.eup %6843  ;;  %v5669_v58 = vadd.f32 %v6842_v23, %v5668_v21  ;;  %v6594_v35 = vmul.f32 -1.442695, %v5340_v15  ;;  %5292 = vmatmul.bf16.gmra.mxu2 %v4431_v55  ;;  %5381 = vmatmul.bf16.gmra.mxu3 %v4432_v7 }
0x180c   :  { %v6846_v42 = vpop.eup %6845  ;;  %v5495_v59 = vadd.f32 1.0, %v6844_v2 }
0x180d   :  { %v5673_v57 = vsel %vm5672_vm1, %v6842_v23, %v5669_v58  ;;  %v5681_v3 = vmul.f32 %v6846_v42, %v10125_v49  ;;  %6847 = vpow2.f32 %v6594_v35  ;;  %vm5686_vm11 = vweird.f32 %v6846_v42  ;;  %v10162_v11 = vpop.f32.mrf.mxu1 }
0x180e   :  { %v5678_v13 = vsel %vm5675_vm10, %v5677_v26, %v5673_v57  ;;  %6849 = vrcp.f32 %v5495_v59  ;;  %v5253_v16 = vpop.f32.mrf.mxu2  ;;  %v5342_v62 = vpop.f32.mrf.mxu3  ;;  %vm5687_vm7 = vmor %vm5685_vm6, %vm5686_vm11  ;;  %v5706_v24 = vand.u32 2147483648, %v5495_v59  ;;  %v5704_v55 = vand.u32 2147483647, %v5495_v59 }
0x180f   :  { %6005 = vst [vmem:[%s10279_s12 + $0x50] sm:$0xff] %v5678_v13  ;;  %v5682_v61 = vsub.f32 1.0, %v5681_v3  ;;  %v5254_v8 = vadd.f32 %v5253_v16, %v5165_v29  ;;  %vm5700_vm9 = vweird.f32 %v5495_v59  ;;  %v5170_v26 = vadd.f32 %v10111_v54, %v5081_v33 }
0x1810   :  { %v5707_v35 = vor.u32 1.1754944e-38, %v5706_v24  ;;  %vm5705_vm2 = vcmp.eq.f32.partialorder %v5704_v55, 8.507059e+37  ;;  %v5083_v16 = vadd.f32 %v10122_v30, %v9925_v32 }
0x1811   :  { %v5683_v47 = vmul.f32 %v6846_v42, %v5682_v61  ;;  %v5343_v0 = vadd.f32 %v5342_v62, %v5254_v8  ;;  %v10170_v61 = vpop.f32.mrf.mxu0 }
0x1813   :  { %v6848_v18 = vpop.eup %6847  ;;  %v5684_v23 = vadd.f32 %v6846_v42, %v5683_v47  ;;  %v6595_v40 = vmul.f32 -1.442695, %v5343_v0 }
0x1814   :  { %v6850_v6 = vpop.eup %6849  ;;  %v5496_v28 = vadd.f32 1.0, %v6848_v18 }
0x1815   :  { %v5688_v56 = vsel %vm5687_vm7, %v6846_v42, %v5684_v23  ;;  %v5696_v14 = vmul.f32 %v6850_v6, %v5495_v59  ;;  %6851 = vpow2.f32 %v6595_v40  ;;  %vm5701_vm8 = vweird.f32 %v6850_v6 }
0x1816   :  { %v5693_v41 = vsel %vm5690_vm0, %v5692_v50, %v5688_v56  ;;  %6853 = vrcp.f32 %v5496_v28  ;;  %v5255_v10 = vpop.f32.mrf.mxu2  ;;  %v5344_v31 = vpop.f32.mrf.mxu3  ;;  %vm5702_vm13 = vmor %vm5700_vm9, %vm5701_vm8  ;;  %v5721_v62 = vand.u32 2147483648, %v5496_v28  ;;  %v5719_v8 = vand.u32 2147483647, %v5496_v28 }
0x1817   :  { %6006 = vst [vmem:[%s10279_s12 + $0x58] sm:$0xff] %v5693_v41  ;;  %v5697_v49 = vsub.f32 1.0, %v5696_v14  ;;  %v5256_v22 = vadd.f32 %v5255_v10, %v5167_v17  ;;  %vm5715_vm4 = vweird.f32 %v5496_v28  ;;  %v5172_v40 = vadd.f32 %v10130_v52, %v5083_v16 }
0x1818   :  { %v5722_v18 = vor.u32 1.1754944e-38, %v5721_v62  ;;  %vm5720_vm12 = vcmp.eq.f32.partialorder %v5719_v8, 8.507059e+37  ;;  %v5086_v41 = vadd.f32 %v10141_v25, %v9928_v5 }
0x1819   :  { %v5698_v38 = vmul.f32 %v6850_v6, %v5697_v49  ;;  %v5345_v7 = vadd.f32 %v5344_v31, %v5256_v22  ;;  %v10180_v33 = vpop.f32.mrf.mxu0 }
0x181b   :  { %v6852_v21 = vpop.eup %6851  ;;  %v5699_v15 = vadd.f32 %v6850_v6, %v5698_v38  ;;  %v6596_v2 = vmul.f32 -1.442695, %v5345_v7 }
0x181c   :  { %v6854_v58 = vpop.eup %6853  ;;  %v5497_v42 = vadd.f32 1.0, %v6852_v21 }
0x181d   :  { %v5703_v29 = vsel %vm5702_vm13, %v6850_v6, %v5699_v15  ;;  %v5711_v53 = vmul.f32 %v6854_v58, %v5496_v28  ;;  %6855 = vpow2.f32 %v6596_v2  ;;  %vm5716_vm3 = vweird.f32 %v6854_v58  ;;  %v10173_v6 = vpop.f32.mrf.mxu1 }
0x181e   :  { %v5708_v63 = vsel %vm5705_vm2, %v5707_v35, %v5703_v29  ;;  %6857 = vrcp.f32 %v5497_v42  ;;  %v5258_v57 = vpop.f32.mrf.mxu2  ;;  %v5347_v3 = vpop.f32.mrf.mxu3  ;;  %vm5717_vm5 = vmor %vm5715_vm4, %vm5716_vm3  ;;  %v5736_v52 = vand.u32 2147483648, %v5497_v42  ;;  %v5734_v31 = vand.u32 2147483647, %v5497_v42 }
0x181f   :  { %6007 = vst [vmem:[%s10279_s12 + $0x60] sm:$0xff] %v5708_v63  ;;  %v5712_v59 = vsub.f32 1.0, %v5711_v53  ;;  %v5259_v13 = vadd.f32 %v5258_v57, %v5170_v26  ;;  %vm5730_vm15 = vweird.f32 %v5497_v42  ;;  %v5175_v15 = vadd.f32 %v10150_v20, %v5086_v41 }
0x1820   :  { %v5737_v7 = vor.u32 1.1754944e-38, %v5736_v52  ;;  %vm5735_vm10 = vcmp.eq.f32.partialorder %v5734_v31, 8.507059e+37  ;;  %v5088_v53 = vadd.f32 %v10155_v37, %v9931_v27 }
0x1821   :  { %v5713_v54 = vmul.f32 %v6854_v58, %v5712_v59  ;;  %v5348_v39 = vadd.f32 %v5347_v3, %v5259_v13 }
0x1823   :  { %v6856_v4 = vpop.eup %6855  ;;  %v5714_v47 = vadd.f32 %v6854_v58, %v5713_v54  ;;  %v6597_v51 = vmul.f32 -1.442695, %v5348_v39  ;;  %v5177_v39 = vadd.f32 %v10162_v11, %v5088_v53 }
0x1824   :  { %v6858_v0 = vpop.eup %6857  ;;  %v5498_v23 = vadd.f32 1.0, %v6856_v4  ;;  %v10191_v4 = vpop.f32.mrf.mxu0 }
0x1825   :  { %v5718_v32 = vsel %vm5717_vm5, %v6854_v58, %v5714_v47  ;;  %v5726_v30 = vmul.f32 %v6858_v0, %v5497_v42  ;;  %6859 = vpow2.f32 %v6597_v51  ;;  %vm5731_vm14 = vweird.f32 %v6858_v0  ;;  %v10183_v26 = vpop.f32.mrf.mxu1 }
0x1826   :  { %v5723_v50 = vsel %vm5720_vm12, %v5722_v18, %v5718_v32  ;;  %6861 = vrcp.f32 %v5498_v23  ;;  %v5260_v17 = vpop.f32.mrf.mxu2  ;;  %v5349_v56 = vpop.f32.mrf.mxu3  ;;  %vm5732_vm1 = vmor %vm5730_vm15, %vm5731_vm14  ;;  %v5751_v20 = vand.u32 2147483648, %v5498_v23  ;;  %v5749_v57 = vand.u32 2147483647, %v5498_v23 }
0x1827   :  { %6008 = vst [vmem:[%s10279_s12 + $0x68] sm:$0xff] %v5723_v50  ;;  %v5727_v28 = vsub.f32 1.0, %v5726_v30  ;;  %v5261_v14 = vadd.f32 %v5260_v17, %v5172_v40  ;;  %vm5745_vm6 = vweird.f32 %v5498_v23  ;;  %v5091_v40 = vadd.f32 %v10170_v61, %v9934_v9 }
0x1828   :  { %v5752_v54 = vor.u32 1.1754944e-38, %v5751_v20  ;;  %vm5750_vm0 = vcmp.eq.f32.partialorder %v5749_v57, 8.507059e+37 }
0x1829   :  { %v5728_v10 = vmul.f32 %v6858_v0, %v5727_v28  ;;  %v5350_v49 = vadd.f32 %v5349_v56, %v5261_v14  ;;  %v5180_v31 = vadd.f32 %v10173_v6, %v5091_v40 }
0x182b   :  { %v6860_v22 = vpop.eup %6859  ;;  %v5729_v24 = vadd.f32 %v6858_v0, %v5728_v10  ;;  %v6598_v38 = vmul.f32 -1.442695, %v5350_v49 }
0x182c   :  { %v6862_v55 = vpop.eup %6861  ;;  %v5499_v21 = vadd.f32 1.0, %v6860_v22 }
0x182d   :  { %v5733_v2 = vsel %vm5732_vm1, %v6858_v0, %v5729_v24  ;;  %v5741_v5 = vmul.f32 %v6862_v55, %v5498_v23  ;;  %6863 = vpow2.f32 %v6598_v38  ;;  %vm5746_vm11 = vweird.f32 %v6862_v55  ;;  %v10198_v32 = vpop.f32.mrf.mxu1  ;;  %v5097_v38 = vpop.f32.mrf.mxu0 }
0x182e   :  { %v5738_v25 = vsel %vm5735_vm10, %v5737_v7, %v5733_v2  ;;  %6865 = vrcp.f32 %v5499_v21  ;;  %v5263_v58 = vpop.f32.mrf.mxu2  ;;  %v5352_v35 = vpop.f32.mrf.mxu3  ;;  %vm5747_vm7 = vmor %vm5745_vm6, %vm5746_vm11  ;;  %v5766_v11 = vand.u32 2147483648, %v5499_v21  ;;  %v5764_v50 = vand.u32 2147483647, %v5499_v21 }
0x182f   :  { %6009 = vst [vmem:[%s10279_s12 + $0x70] sm:$0xff] %v5738_v25  ;;  %v5742_v42 = vsub.f32 1.0, %v5741_v5  ;;  %v5264_v29 = vadd.f32 %v5263_v58, %v5175_v15  ;;  %vm5760_vm9 = vweird.f32 %v5499_v21 }
0x1830   :  { %v5767_v52 = vor.u32 1.1754944e-38, %v5766_v11  ;;  %vm5765_vm2 = vcmp.eq.f32.partialorder %v5764_v50, 8.507059e+37 }
0x1831   :  { %v5743_v63 = vmul.f32 %v6862_v55, %v5742_v42  ;;  %v5353_v3 = vadd.f32 %v5352_v35, %v5264_v29 }
0x1833   :  { %v6864_v59 = vpop.eup %6863  ;;  %v5744_v13 = vadd.f32 %v6862_v55, %v5743_v63  ;;  %v6599_v16 = vmul.f32 -1.442695, %v5353_v3 }
0x1834   :  { %v6866_v62 = vpop.eup %6865  ;;  %v5500_v8 = vadd.f32 1.0, %v6864_v59 }
0x1835   :  { %v5748_v47 = vsel %vm5747_vm7, %v6862_v55, %v5744_v13  ;;  %v5756_v27 = vmul.f32 %v6866_v62, %v5499_v21  ;;  %6867 = vpow2.f32 %v6599_v16  ;;  %vm5761_vm8 = vweird.f32 %v6866_v62  ;;  %v10206_v58 = vpop.f32.mrf.mxu1 }
0x1836   :  { %v5753_v37 = vsel %vm5750_vm0, %v5752_v54, %v5748_v47  ;;  %6869 = vrcp.f32 %v5500_v8  ;;  %v5265_v51 = vpop.f32.mrf.mxu2  ;;  %v5354_v0 = vpop.f32.mrf.mxu3  ;;  %vm5762_vm13 = vmor %vm5760_vm9, %vm5761_vm8  ;;  %v5093_v21 = vadd.f32 %v10180_v33, %v9937_v12  ;;  %v5781_v15 = vand.u32 2147483648, %v5500_v8 }
0x1837   :  { %6010 = vst [vmem:[%s10279_s12 + $0x78] sm:$0xff] %v5753_v37  ;;  %v5757_v18 = vsub.f32 1.0, %v5756_v27  ;;  %v5266_v23 = vadd.f32 %v5265_v51, %v5177_v39  ;;  %v5779_v2 = vand.u32 2147483647, %v5500_v8  ;;  %vm5775_vm4 = vweird.f32 %v5500_v8 }
0x1838   :  { %v5782_v53 = vor.u32 1.1754944e-38, %v5781_v15  ;;  %v5182_v63 = vadd.f32 %v10183_v26, %v5093_v21 }
0x1839   :  { %v5758_v30 = vmul.f32 %v6866_v62, %v5757_v18  ;;  %v5355_v17 = vadd.f32 %v5354_v0, %v5266_v23  ;;  %vm5780_vm12 = vcmp.eq.f32.partialorder %v5779_v2, 8.507059e+37 }
0x183b   :  { %v6868_v56 = vpop.eup %6867  ;;  %v5759_v28 = vadd.f32 %v6866_v62, %v5758_v30  ;;  %v6600_v14 = vmul.f32 -1.442695, %v5355_v17 }
0x183c   :  { %v6870_v41 = vpop.eup %6869  ;;  %v5501_v10 = vadd.f32 1.0, %v6868_v56 }
0x183d   :  { %v5763_v49 = vsel %vm5762_vm13, %v6866_v62, %v5759_v28  ;;  %v5771_v9 = vmul.f32 %v6870_v41, %v5500_v8  ;;  %6871 = vpow2.f32 %v6600_v14  ;;  %vm5776_vm3 = vweird.f32 %v6870_v41  ;;  %v5100_v8 = vpop.f32.mrf.mxu0  ;;  %v5189_v11 = vpop.f32.mrf.mxu1 }
0x183e   :  { %v5768_v61 = vsel %vm5765_vm2, %v5767_v52, %v5763_v49  ;;  %6873 = vrcp.f32 %v5501_v10  ;;  %v5268_v22 = vpop.f32.mrf.mxu2  ;;  %v5357_v24 = vpop.f32.mrf.mxu3  ;;  %vm5777_vm5 = vmor %vm5775_vm4, %vm5776_vm3  ;;  %v5096_v62 = vadd.f32 %v10191_v4, %v9940_v43  ;;  %v5796_v54 = vand.u32 2147483648, %v5501_v10 }
0x183f   :  { %6011 = vst [vmem:[%s10279_s12 + $0x80] sm:$0xff] %v5768_v61  ;;  %v5772_v55 = vsub.f32 1.0, %v5771_v9  ;;  %v5269_v7 = vadd.f32 %v5268_v22, %v5180_v31  ;;  %v5794_v39 = vand.u32 2147483647, %v5501_v10  ;;  %vm5790_vm15 = vweird.f32 %v5501_v10 }
0x1840   :  { %v5797_v18 = vor.u32 1.1754944e-38, %v5796_v54  ;;  %v5185_v40 = vadd.f32 %v10198_v32, %v5096_v62  ;;  %v5098_v14 = vadd.f32 %v5097_v38, %v9943_v60 }
0x1841   :  { %v5773_v6 = vmul.f32 %v6870_v41, %v5772_v55  ;;  %v5358_v5 = vadd.f32 %v5357_v24, %v5269_v7  ;;  %vm5795_vm10 = vcmp.eq.f32.partialorder %v5794_v39, 8.507059e+37 }
0x1842   :  { %v5187_v7 = vadd.f32 %v10206_v58, %v5098_v14 }
0x1843   :  { %v6872_v25 = vpop.eup %6871  ;;  %v5774_v35 = vadd.f32 %v6870_v41, %v5773_v6  ;;  %v6601_v42 = vmul.f32 -1.442695, %v5358_v5 }
0x1844   :  { %v6874_v29 = vpop.eup %6873  ;;  %v5502_v20 = vadd.f32 1.0, %v6872_v25 }
0x1845   :  { %v5778_v57 = vsel %vm5777_vm5, %v6870_v41, %v5774_v35  ;;  %v5786_v12 = vmul.f32 %v6874_v29, %v5501_v10  ;;  %6875 = vpow2.f32 %v6601_v42  ;;  %vm5791_vm14 = vweird.f32 %v6874_v29  ;;  %v5102_v49 = vpop.f32.mrf.mxu0  ;;  %v5191_v2 = vpop.f32.mrf.mxu1 }
0x1846   :  { %v5783_v33 = vsel %vm5780_vm12, %v5782_v53, %v5778_v57  ;;  %6877 = vrcp.f32 %v5502_v20  ;;  %v5270_v3 = vpop.f32.mrf.mxu2  ;;  %v5359_v59 = vpop.f32.mrf.mxu3  ;;  %vm5792_vm1 = vmor %vm5790_vm15, %vm5791_vm14  ;;  %v5811_v41 = vand.u32 2147483648, %v5502_v20  ;;  %v5809_v32 = vand.u32 2147483647, %v5502_v20 }
0x1847   :  { %6012 = vst [vmem:[%s10279_s12 + $0x88] sm:$0xff] %v5783_v33  ;;  %v5787_v13 = vsub.f32 1.0, %v5786_v12  ;;  %v5271_v16 = vadd.f32 %v5270_v3, %v5182_v63  ;;  %vm5805_vm6 = vweird.f32 %v5502_v20  ;;  %v5101_v35 = vadd.f32 %v5100_v8, %v9946_v44 }
0x1848   :  { %v5812_v24 = vor.u32 1.1754944e-38, %v5811_v41  ;;  %vm5810_vm0 = vcmp.eq.f32.partialorder %v5809_v32, 8.507059e+37 }
0x1849   :  { %v5788_v26 = vmul.f32 %v6874_v29, %v5787_v13  ;;  %v5360_v47 = vadd.f32 %v5359_v59, %v5271_v16  ;;  %v5190_v59 = vadd.f32 %v5189_v11, %v5101_v35 }
0x184b   :  { %v6876_v27 = vpop.eup %6875  ;;  %v5789_v37 = vadd.f32 %v6874_v29, %v5788_v26  ;;  %v6602_v51 = vmul.f32 -1.442695, %v5360_v47  ;;  %v5103_v47 = vadd.f32 %v5102_v49, %v9949_v34 }
0x184c   :  { %v6878_v0 = vpop.eup %6877  ;;  %v5503_v23 = vadd.f32 1.0, %v6876_v27 }
0x184d   :  { %v5793_v30 = vsel %vm5792_vm1, %v6874_v29, %v5789_v37  ;;  %v5801_v43 = vmul.f32 %v6878_v0, %v5502_v20  ;;  %6879 = vpow2.f32 %v6602_v51  ;;  %vm5806_vm11 = vweird.f32 %v6878_v0  ;;  %v5105_v13 = vpop.f32.mrf.mxu0  ;;  %v5194_v37 = vpop.f32.mrf.mxu1 }
0x184e   :  { %v5798_v4 = vsel %vm5795_vm10, %v5797_v18, %v5793_v30  ;;  %6881 = vrcp.f32 %v5503_v23  ;;  %v5273_v50 = vpop.f32.mrf.mxu2  ;;  %v5362_v17 = vpop.f32.mrf.mxu3  ;;  %vm5807_vm7 = vmor %vm5805_vm6, %vm5806_vm11  ;;  %v5826_v42 = vand.u32 2147483648, %v5503_v23  ;;  %v5824_v58 = vand.u32 2147483647, %v5503_v23 }
0x184f   :  { %6013 = vst [vmem:[%s10279_s12 + $0x90] sm:$0xff] %v5798_v4  ;;  %v5802_v56 = vsub.f32 1.0, %v5801_v43  ;;  %v5274_v28 = vadd.f32 %v5273_v50, %v5185_v40  ;;  %vm5820_vm9 = vweird.f32 %v5503_v23  ;;  %v5192_v50 = vadd.f32 %v5191_v2, %v5103_v47 }
0x1850   :  { %v5827_v33 = vor.u32 1.1754944e-38, %v5826_v42  ;;  %vm5825_vm2 = vcmp.eq.f32.partialorder %v5824_v58, 8.507059e+37 }
0x1851   :  { %v5803_v52 = vmul.f32 %v6878_v0, %v5802_v56  ;;  %v5363_v10 = vadd.f32 %v5362_v17, %v5274_v28 }
0x1853   :  { %v6880_v31 = vpop.eup %6879  ;;  %v5804_v9 = vadd.f32 %v6878_v0, %v5803_v52  ;;  %v6603_v61 = vmul.f32 -1.442695, %v5363_v10  ;;  %v5106_v10 = vadd.f32 %v5105_v13, %v9952_v46 }
0x1854   :  { %v6882_v22 = vpop.eup %6881  ;;  %v5504_v55 = vadd.f32 1.0, %v6880_v31 }
0x1855   :  { %v5808_v21 = vsel %vm5807_vm7, %v6878_v0, %v5804_v9  ;;  %v5816_v15 = vmul.f32 %v6882_v22, %v5503_v23  ;;  %6883 = vpow2.f32 %v6603_v61  ;;  %vm5821_vm8 = vweird.f32 %v6882_v22  ;;  %v5107_v41 = vpop.f32.mrf.mxu0 }
0x1856   :  { %v5813_v60 = vsel %vm5810_vm0, %v5812_v24, %v5808_v21  ;;  %6885 = vrcp.f32 %v5504_v55  ;;  %v5275_v38 = vpop.f32.mrf.mxu2  ;;  %v5364_v6 = vpop.f32.mrf.mxu3  ;;  %vm5822_vm13 = vmor %vm5820_vm9, %vm5821_vm8  ;;  %v5841_v27 = vand.u32 2147483648, %v5504_v55  ;;  %v5839_v0 = vand.u32 2147483647, %v5504_v55 }
0x1857   :  { %6014 = vst [vmem:[%s10279_s12 + $0x98] sm:$0xff] %v5813_v60  ;;  %v5817_v5 = vsub.f32 1.0, %v5816_v15  ;;  %v5276_v25 = vadd.f32 %v5275_v38, %v5187_v7  ;;  %vm5835_vm4 = vweird.f32 %v5504_v55  ;;  %v5196_v24 = vpop.f32.mrf.mxu1  ;;  %v5195_v38 = vadd.f32 %v5194_v37, %v5106_v10 }
0x1858   :  { %v5842_v43 = vor.u32 1.1754944e-38, %v5841_v27  ;;  %vm5840_vm12 = vcmp.eq.f32.partialorder %v5839_v0, 8.507059e+37 }
0x1859   :  { %v5818_v29 = vmul.f32 %v6882_v22, %v5817_v5  ;;  %v5365_v53 = vadd.f32 %v5364_v6, %v5276_v25 }
0x185b   :  { %v6884_v20 = vpop.eup %6883  ;;  %v5819_v63 = vadd.f32 %v6882_v22, %v5818_v29  ;;  %v6604_v57 = vmul.f32 -1.442695, %v5365_v53  ;;  %v5108_v29 = vadd.f32 %v5107_v41, %v9955_v1 }
0x185c   :  { %v6886_v12 = vpop.eup %6885  ;;  %v5505_v3 = vadd.f32 1.0, %v6884_v20 }
0x185d   :  { %v5823_v16 = vsel %vm5822_vm13, %v6882_v22, %v5819_v63  ;;  %v5831_v62 = vmul.f32 %v6886_v12, %v5504_v55  ;;  %6887 = vpow2.f32 %v6604_v57  ;;  %vm5836_vm3 = vweird.f32 %v6886_v12  ;;  %v5110_v53 = vpop.f32.mrf.mxu0 }
0x185e   :  { %v5828_v44 = vsel %vm5825_vm2, %v5827_v33, %v5823_v16  ;;  %6889 = vrcp.f32 %v5505_v3  ;;  %v5278_v54 = vpop.f32.mrf.mxu2  ;;  %v5367_v8 = vpop.f32.mrf.mxu3  ;;  %vm5837_vm5 = vmor %vm5835_vm4, %vm5836_vm3  ;;  %v5856_v31 = vand.u32 2147483648, %v5505_v3  ;;  %v5854_v9 = vand.u32 2147483647, %v5505_v3 }
0x185f   :  { %6015 = vst [vmem:[%s10279_s12 + $0xa0] sm:$0xff] %v5828_v44  ;;  %v5832_v26 = vsub.f32 1.0, %v5831_v62  ;;  %v5279_v39 = vadd.f32 %v5278_v54, %v5190_v59  ;;  %vm5850_vm15 = vweird.f32 %v5505_v3  ;;  %v5197_v62 = vadd.f32 %v5196_v24, %v5108_v29  ;;  %v5199_v44 = vpop.f32.mrf.mxu1 }
0x1860   :  { %v5857_v15 = vor.u32 1.1754944e-38, %v5856_v31  ;;  %vm5855_vm10 = vcmp.eq.f32.partialorder %v5854_v9, 8.507059e+37  ;;  %v5111_v37 = vadd.f32 %v5110_v53, %v9958_v36 }
0x1861   :  { %v5833_v51 = vmul.f32 %v6886_v12, %v5832_v26  ;;  %v5368_v18 = vadd.f32 %v5367_v8, %v5279_v39 }
0x1863   :  { %v6888_v23 = vpop.eup %6887  ;;  %v5834_v40 = vadd.f32 %v6886_v12, %v5833_v51  ;;  %v6605_v11 = vmul.f32 -1.442695, %v5368_v18 }
0x1864   :  { %v6890_v30 = vpop.eup %6889  ;;  %v5506_v4 = vadd.f32 1.0, %v6888_v23 }
0x1865   :  { %v5838_v17 = vsel %vm5837_vm5, %v6886_v12, %v5834_v40  ;;  %v5846_v56 = vmul.f32 %v6890_v30, %v5505_v3  ;;  %6891 = vpow2.f32 %v6605_v11  ;;  %vm5851_vm14 = vweird.f32 %v6890_v30  ;;  %v5112_v11 = vpop.f32.mrf.mxu0 }
0x1866   :  { %v5843_v34 = vsel %vm5840_vm12, %v5842_v43, %v5838_v17  ;;  %6893 = vrcp.f32 %v5506_v4  ;;  %v5280_v28 = vpop.f32.mrf.mxu2  ;;  %v5369_v14 = vpop.f32.mrf.mxu3  ;;  %vm5852_vm1 = vmor %vm5850_vm15, %vm5851_vm14  ;;  %v5871_v58 = vand.u32 2147483648, %v5506_v4  ;;  %v5869_v63 = vand.u32 2147483647, %v5506_v4 }
0x1867   :  { %6016 = vst [vmem:[%s10279_s12 + $0xa8] sm:$0xff] %v5843_v34  ;;  %v5847_v52 = vsub.f32 1.0, %v5846_v56  ;;  %v5281_v32 = vadd.f32 %v5280_v28, %v5192_v50  ;;  %vm5865_vm6 = vweird.f32 %v5506_v4  ;;  %v5200_v56 = vadd.f32 %v5199_v44, %v5111_v37 }
0x1868   :  { %v5872_v13 = vor.u32 1.1754944e-38, %v5871_v58  ;;  %vm5870_vm0 = vcmp.eq.f32.partialorder %v5869_v63, 8.507059e+37  ;;  %v5113_v31 = vadd.f32 %v5112_v11, %v9961_v48 }
0x1869   :  { %v5848_v49 = vmul.f32 %v6890_v30, %v5847_v52  ;;  %v5370_v61 = vadd.f32 %v5369_v14, %v5281_v32  ;;  %v5201_v52 = vpop.f32.mrf.mxu1 }
0x186b   :  { %v6892_v22 = vpop.eup %6891  ;;  %v5849_v55 = vadd.f32 %v6890_v30, %v5848_v49  ;;  %v6606_v7 = vmul.f32 -1.442695, %v5370_v61 }
0x186c   :  { %v6894_v21 = vpop.eup %6893  ;;  %v5507_v60 = vadd.f32 1.0, %v6892_v22 }
0x186d   :  { %v5853_v6 = vsel %vm5852_vm1, %v6890_v30, %v5849_v55  ;;  %v5861_v2 = vmul.f32 %v6894_v21, %v5506_v4  ;;  %6895 = vpow2.f32 %v6606_v7  ;;  %vm5866_vm11 = vweird.f32 %v6894_v21 }
0x186e   :  { %v5858_v46 = vsel %vm5855_vm10, %v5857_v15, %v5853_v6  ;;  %6897 = vrcp.f32 %v5507_v60  ;;  %v5283_v5 = vpop.f32.mrf.mxu2  ;;  %v5372_v25 = vpop.f32.mrf.mxu3  ;;  %vm5867_vm7 = vmor %vm5865_vm6, %vm5866_vm11  ;;  %v5886_v51 = vand.u32 2147483648, %v5507_v60  ;;  %v5884_v18 = vand.u32 2147483647, %v5507_v60 }
0x186f   :  { %6017 = vst [vmem:[%s10279_s12 + $0xb0] sm:$0xff] %v5858_v46  ;;  %v5862_v35 = vsub.f32 1.0, %v5861_v2  ;;  %v5284_v42 = vadd.f32 %v5283_v5, %v5195_v38  ;;  %vm5880_vm9 = vweird.f32 %v5507_v60  ;;  %v5202_v38 = vadd.f32 %v5201_v52, %v5113_v31  ;;  %v5115_v6 = vpop.f32.mrf.mxu0 }
0x1870   :  { %v5887_v50 = vor.u32 1.1754944e-38, %v5886_v51  ;;  %vm5885_vm2 = vcmp.eq.f32.partialorder %v5884_v18, 8.507059e+37  ;;  %v5116_v29 = vadd.f32 %v5115_v6, %v9964_v45 }
0x1871   :  { %v5863_v20 = vmul.f32 %v6894_v21, %v5862_v35  ;;  %v5373_v57 = vadd.f32 %v5372_v25, %v5284_v42  ;;  %v5204_v53 = vpop.f32.mrf.mxu1 }
0x1873   :  { %v6896_v12 = vpop.eup %6895  ;;  %v5864_v33 = vadd.f32 %v6894_v21, %v5863_v20  ;;  %v6607_v3 = vmul.f32 -1.442695, %v5373_v57 }
0x1874   :  { %v6898_v59 = vpop.eup %6897  ;;  %v5508_v16 = vadd.f32 1.0, %v6896_v12 }
0x1875   :  { %v5868_v54 = vsel %vm5867_vm7, %v6894_v21, %v5864_v33  ;;  %v5876_v8 = vmul.f32 %v6898_v59, %v5507_v60  ;;  %6899 = vpow2.f32 %v6607_v3  ;;  %vm5881_vm8 = vweird.f32 %v6898_v59 }
0x1876   :  { %v5873_v1 = vsel %vm5870_vm0, %v5872_v13, %v5868_v54  ;;  %6901 = vrcp.f32 %v5508_v16  ;;  %v5285_v26 = vpop.f32.mrf.mxu2  ;;  %v5374_v39 = vpop.f32.mrf.mxu3  ;;  %vm5882_vm13 = vmor %vm5880_vm9, %vm5881_vm8  ;;  %v5901_v49 = vand.u32 2147483648, %v5508_v16  ;;  %v5899_v61 = vand.u32 2147483647, %v5508_v16 }
0x1877   :  { %6018 = vst [vmem:[%s10279_s12 + $0xb8] sm:$0xff] %v5873_v1  ;;  %v5877_v47 = vsub.f32 1.0, %v5876_v8  ;;  %v5286_v27 = vadd.f32 %v5285_v26, %v5197_v62  ;;  %vm5895_vm4 = vweird.f32 %v5508_v16  ;;  %v5205_v62 = vadd.f32 %v5204_v53, %v5116_v29  ;;  %v5117_v26 = vpop.f32.mrf.mxu0 }
0x1878   :  { %v5902_v15 = vor.u32 1.1754944e-38, %v5901_v49  ;;  %vm5900_vm12 = vcmp.eq.f32.partialorder %v5899_v61, 8.507059e+37 }
0x1879   :  { %v5878_v0 = vmul.f32 %v6898_v59, %v5877_v47  ;;  %v5375_v23 = vadd.f32 %v5374_v39, %v5286_v27  ;;  %v5118_v27 = vadd.f32 %v5117_v26, %v9967_v19 }
0x187b   :  { %v6900_v40 = vpop.eup %6899  ;;  %v5879_v30 = vadd.f32 %v6898_v59, %v5878_v0  ;;  %v6608_v43 = vmul.f32 -1.442695, %v5375_v23 }
0x187c   :  { %v6902_v4 = vpop.eup %6901  ;;  %v5509_v17 = vadd.f32 1.0, %v6900_v40  ;;  %v5206_v40 = vpop.f32.mrf.mxu1 }
0x187d   :  { %v5883_v34 = vsel %vm5882_vm13, %v6898_v59, %v5879_v30  ;;  %v5891_v28 = vmul.f32 %v6902_v4, %v5508_v16  ;;  %6903 = vpow2.f32 %v6608_v43  ;;  %vm5896_vm3 = vweird.f32 %v6902_v4 }
0x187e   :  { %v5888_v36 = vsel %vm5885_vm2, %v5887_v50, %v5883_v34  ;;  %6905 = vrcp.f32 %v5509_v17  ;;  %v5288_v14 = vpop.f32.mrf.mxu2  ;;  %v5377_v41 = vpop.f32.mrf.mxu3  ;;  %vm5897_vm5 = vmor %vm5895_vm4, %vm5896_vm3  ;;  %v5916_v58 = vand.u32 2147483648, %v5509_v17  ;;  %v5914_v63 = vand.u32 2147483647, %v5509_v17 }
0x187f   :  { %6019 = vst [vmem:[%s10279_s12 + $0xc0] sm:$0xff] %v5888_v36  ;;  %v5892_v32 = vsub.f32 1.0, %v5891_v28  ;;  %v5289_v10 = vadd.f32 %v5288_v14, %v5200_v56  ;;  %vm5910_vm15 = vweird.f32 %v5509_v17 }
0x1880   :  { %v5917_v13 = vor.u32 1.1754944e-38, %v5916_v58  ;;  %vm5915_vm10 = vcmp.eq.f32.partialorder %v5914_v63, 8.507059e+37 }
0x1881   :  { %v5893_v9 = vmul.f32 %v6902_v4, %v5892_v32  ;;  %v5378_v22 = vadd.f32 %v5377_v41, %v5289_v10 }
0x1883   :  { %v6904_v24 = vpop.eup %6903  ;;  %v5894_v55 = vadd.f32 %v6902_v4, %v5893_v9  ;;  %v6609_v7 = vmul.f32 -1.442695, %v5378_v22 }
0x1884   :  { %v6906_v21 = vpop.eup %6905  ;;  %v5510_v60 = vadd.f32 1.0, %v6904_v24 }
0x1885   :  { %v5898_v2 = vsel %vm5897_vm5, %v6902_v4, %v5894_v55  ;;  %v5906_v46 = vmul.f32 %v6906_v21, %v5509_v17  ;;  %6907 = vpow2.f32 %v6609_v7  ;;  %vm5911_vm14 = vweird.f32 %v6906_v21 }
0x1886   :  { %v5903_v48 = vsel %vm5900_vm12, %v5902_v15, %v5898_v2  ;;  %6909 = vrcp.f32 %v5510_v60  ;;  %v5290_v5 = vpop.f32.mrf.mxu2  ;;  %v5379_v25 = vpop.f32.mrf.mxu3  ;;  %vm5912_vm1 = vmor %vm5910_vm15, %vm5911_vm14  ;;  %v5931_v37 = vand.u32 2147483648, %v5510_v60  ;;  %v5929_v0 = vand.u32 2147483647, %v5510_v60 }
0x1887   :  { %6020 = vst [vmem:[%s10279_s12 + $0xc8] sm:$0xff] %v5903_v48  ;;  %v5907_v35 = vsub.f32 1.0, %v5906_v46  ;;  %v5291_v42 = vadd.f32 %v5290_v5, %v5202_v38  ;;  %vm5925_vm6 = vweird.f32 %v5510_v60  ;;  %v5207_v17 = vadd.f32 %v5206_v40, %v5118_v27 }
0x1888   :  { %v5932_v4 = vor.u32 1.1754944e-38, %v5931_v37  ;;  %vm5930_vm0 = vcmp.eq.f32.partialorder %v5929_v0, 8.507059e+37 }
0x1889   :  { %v5908_v20 = vmul.f32 %v6906_v21, %v5907_v35  ;;  %v5380_v57 = vadd.f32 %v5379_v25, %v5291_v42 }
0x188b   :  { %v6908_v12 = vpop.eup %6907  ;;  %v5909_v33 = vadd.f32 %v6906_v21, %v5908_v20  ;;  %v6610_v3 = vmul.f32 -1.442695, %v5380_v57 }
0x188c   :  { %v6910_v59 = vpop.eup %6909  ;;  %v5511_v16 = vadd.f32 1.0, %v6908_v12 }
0x188d   :  { %v5913_v44 = vsel %vm5912_vm1, %v6906_v21, %v5909_v33  ;;  %v5921_v54 = vmul.f32 %v6910_v59, %v5510_v60  ;;  %6911 = vpow2.f32 %v6610_v3  ;;  %vm5926_vm11 = vweird.f32 %v6910_v59 }
0x188e   :  { %v5918_v45 = vsel %vm5915_vm10, %v5917_v13, %v5913_v44  ;;  %6913 = vrcp.f32 %v5511_v16  ;;  %v5293_v8 = vpop.f32.mrf.mxu2  ;;  %v5382_v1 = vpop.f32.mrf.mxu3  ;;  %vm5927_vm7 = vmor %vm5925_vm6, %vm5926_vm11  ;;  %v5946_v41 = vand.u32 2147483648, %v5511_v16  ;;  %v5944_v10 = vand.u32 2147483647, %v5511_v16 }
0x188f   :  { %6021 = vst [vmem:[%s10279_s12 + $0xd0] sm:$0xff] %v5918_v45  ;;  %v5922_v39 = vsub.f32 1.0, %v5921_v54  ;;  %v5294_v47 = vadd.f32 %v5293_v8, %v5205_v62  ;;  %vm5940_vm9 = vweird.f32 %v5511_v16 }
0x1890   :  { %v5947_v24 = vor.u32 1.1754944e-38, %v5946_v41  ;;  %vm5945_vm2 = vcmp.eq.f32.partialorder %v5944_v10, 8.507059e+37 }
0x1891   :  { %v5923_v51 = vmul.f32 %v6910_v59, %v5922_v39  ;;  %v5383_v18 = vadd.f32 %v5382_v1, %v5294_v47 }
0x1893   :  { %v6912_v23 = vpop.eup %6911  ;;  %v5924_v11 = vadd.f32 %v6910_v59, %v5923_v51  ;;  %v6611_v30 = vmul.f32 -1.442695, %v5383_v18 }
0x1894   :  { %v6914_v43 = vpop.eup %6913  ;;  %v5512_v50 = vadd.f32 1.0, %v6912_v23 }
0x1895   :  { %v5928_v56 = vsel %vm5927_vm7, %v6910_v59, %v5924_v11  ;;  %v5936_v34 = vmul.f32 %v6914_v43, %v5511_v16  ;;  %6915 = vpow2.f32 %v6611_v30  ;;  %vm5941_vm8 = vweird.f32 %v6914_v43 }
0x1896   :  { %v5933_v19 = vsel %vm5930_vm0, %v5932_v4, %v5928_v56  ;;  %6917 = vrcp.f32 %v5512_v50  ;;  %v5295_v28 = vpop.f32.mrf.mxu2  ;;  %v5384_v52 = vpop.f32.mrf.mxu3  ;;  %vm5942_vm13 = vmor %vm5940_vm9, %vm5941_vm8  ;;  %v5961_v38 = vand.u32 2147483648, %v5512_v50  ;;  %v5959_v2 = vand.u32 2147483647, %v5512_v50 }
0x1897   :  { %6022 = vst [vmem:[%s10279_s12 + $0xd8] sm:$0xff] %v5933_v19  ;;  %v5937_v36 = vsub.f32 1.0, %v5936_v34  ;;  %v5296_v14 = vadd.f32 %v5295_v28, %v5207_v17  ;;  %vm5955_vm4 = vweird.f32 %v5512_v50 }
0x1898   :  { %v5962_v25 = vor.u32 1.1754944e-38, %v5961_v38  ;;  %vm5960_vm12 = vcmp.eq.f32.partialorder %v5959_v2, 8.507059e+37 }
0x1899   :  { %v5938_v32 = vmul.f32 %v6914_v43, %v5937_v36  ;;  %v5385_v31 = vadd.f32 %v5384_v52, %v5296_v14 }
0x189b   :  { %v6916_v49 = vpop.eup %6915  ;;  %v5939_v9 = vadd.f32 %v6914_v43, %v5938_v32  ;;  %v6612_v61 = vmul.f32 -1.442695, %v5385_v31 }
0x189c   :  { %v6918_v22 = vpop.eup %6917  ;;  %v5513_v55 = vadd.f32 1.0, %v6916_v49 }
0x189d   :  { %v5943_v7 = vsel %vm5942_vm13, %v6914_v43, %v5939_v9  ;;  %v5951_v21 = vmul.f32 %v6918_v22, %v5512_v50  ;;  %6919 = vpow2.f32 %v6612_v61  ;;  %vm5956_vm3 = vweird.f32 %v6918_v22 }
0x189e   :  { %v5948_v15 = vsel %vm5945_vm2, %v5947_v24, %v5943_v7  ;;  %6921 = vrcp.f32 %v5513_v55  ;;  %vm5957_vm5 = vmor %vm5955_vm4, %vm5956_vm3  ;;  %v5976_v20 = vand.u32 2147483648, %v5513_v55  ;;  %v5974_v57 = vand.u32 2147483647, %v5513_v55 }
0x189f   :  { %6023 = vst [vmem:[%s10279_s12 + $0xe0] sm:$0xff] %v5948_v15  ;;  %v5952_v60 = vsub.f32 1.0, %v5951_v21  ;;  %vm5970_vm15 = vweird.f32 %v5513_v55 }
0x18a0   :  { %v5977_v3 = vor.u32 1.1754944e-38, %v5976_v20  ;;  %vm5975_vm10 = vcmp.eq.f32.partialorder %v5974_v57, 8.507059e+37 }
0x18a1   :  { %v5953_v6 = vmul.f32 %v6918_v22, %v5952_v60 }
0x18a3   :  { %v6920_v46 = vpop.eup %6919  ;;  %v5954_v48 = vadd.f32 %v6918_v22, %v5953_v6 }
0x18a4   :  { %v6922_v5 = vpop.eup %6921  ;;  %v5514_v35 = vadd.f32 1.0, %v6920_v46 }
0x18a5   :  { %v5958_v42 = vsel %vm5957_vm5, %v6918_v22, %v5954_v48  ;;  %v5966_v29 = vmul.f32 %v6922_v5, %v5513_v55  ;;  %vm5971_vm14 = vweird.f32 %v6922_v5 }
0x18a6   :  { %v5963_v58 = vsel %vm5960_vm12, %v5962_v25, %v5958_v42  ;;  %6923 = vrcp.f32 %v5514_v35  ;;  %vm5972_vm1 = vmor %vm5970_vm15, %vm5971_vm14  ;;  %v5991_v44 = vand.u32 2147483648, %v5514_v35  ;;  %v5989_v45 = vand.u32 2147483647, %v5514_v35 }
0x18a7   :  { %6024 = vst [vmem:[%s10279_s12 + $0xe8] sm:$0xff] %v5963_v58  ;;  %v5967_v53 = vsub.f32 1.0, %v5966_v29  ;;  %vm5985_vm6 = vweird.f32 %v5514_v35 }
0x18a8   :  { %v5992_v1 = vor.u32 1.1754944e-38, %v5991_v44  ;;  %vm5990_vm0 = vcmp.eq.f32.partialorder %v5989_v45, 8.507059e+37 }
0x18a9   :  { %v5968_v63 = vmul.f32 %v6922_v5, %v5967_v53 }
0x18ab   :  { %v5969_v12 = vadd.f32 %v6922_v5, %v5968_v63 }
0x18ac   :  { %v6924_v33 = vpop.eup %6923 }
0x18ad   :  { %v5973_v59 = vsel %vm5972_vm1, %v6922_v5, %v5969_v12  ;;  %v5981_v13 = vmul.f32 %v6924_v33, %v5514_v35  ;;  %vm5986_vm11 = vweird.f32 %v6924_v33 }
0x18ae   :  { %v5978_v16 = vsel %vm5975_vm10, %v5977_v3, %v5973_v59  ;;  %vm5987_vm7 = vmor %vm5985_vm6, %vm5986_vm11 }
0x18af   :  { %6025 = vst [vmem:[%s10279_s12 + $0xf0] sm:$0xff] %v5978_v16  ;;  %v5982_v62 = vsub.f32 1.0, %v5981_v13 }
0x18b1   :  { %v5983_v54 = vmul.f32 %v6924_v33, %v5982_v62 }
0x18b3   :  { %v5984_v8 = vadd.f32 %v6924_v33, %v5983_v54 }
0x18b5   :  { %v5988_v26 = vsel %vm5987_vm7, %v6924_v33, %v5984_v8 }
0x18b6   :  { %v5993_v39 = vsel %vm5990_vm0, %v5992_v1, %v5988_v26 }
0x18b7   :  { %6026 = vst [vmem:[%s10279_s12 + $0xf8] sm:$0xff] %v5993_v39 }
0x18b8   :  { %6031 = vsyncpa [#allocation4], 1 }
0x18b9   :  { %6032 = vsyncpa [#allocation6], 1 }
0x18ba   :  { %6033 = vsyncpa [#allocation9], 1 }
0x18bb   :  { %6034 = vsyncpa [#allocation12], 1 }
0x18bc   :  { %6035 = vsyncpa [#allocation15], 1 }

</bundles_post_ra>
